<compile_context>
chip_gen: v5e
topology: v5e:2x2
jax: 0.10.0
libtpu: 0.0.40
codegen_flags: <defaults>
</compile_context>

<pallas_src>
import math
from functools import partial

import jax
import jax.numpy as jnp
from jax.experimental import pallas as pl
from jax.experimental.pallas import tpu as pltpu


# ----------------------------------------------------------------------------
# Kernel
# ----------------------------------------------------------------------------
def _mlp_kernel(x_ref, w1_ref, b1_ref, w2_ref, b2_ref, o_ref):
    """Fused Linear(2916,40) + ReLU + Linear(40,40) on one row tile."""
    hp = jax.lax.Precision.HIGHEST  # pinned fp32 MXU contraction
    # Layer 1: (tm, D) x (D, H) on the MXU, f32 accumulation.
    h = jnp.dot(x_ref[...], w1_ref[...],
                preferred_element_type=jnp.float32, precision=hp)
    h = jnp.maximum(h + b1_ref[...], 0.0)            # bias + ReLU on the VPU
    # Layer 2: (tm, H) x (H, O); hidden activation never touches HBM.
    o = jnp.dot(h, w2_ref[...],
                preferred_element_type=jnp.float32, precision=hp)
    o_ref[...] = (o + b2_ref[...]).astype(o_ref.dtype)


# ----------------------------------------------------------------------------
# Wrapper
# ----------------------------------------------------------------------------
def _round_up(v, m):
    return ((v + m - 1) // m) * m


def _default_tile_m(device_kind):
    k = device_kind.lower()
    if ("v5 lite" in k) or ("v5e" in k) or ("v5lite" in k):
        return 512            # ~13 MiB live, under v5e's 16 MiB scoped default
    return 1024               # v6e / v7x: ~25 MiB live, under 32 MiB scoped default


def _is_dual_tensorcore(device_kind):
    k = device_kind.lower()
    return ("v7" in k) or ("tpu7" in k) or ("7x" in k)


def simple_net_forward(x, params, *, tile_m=None):
    """x: (B, 2916) f32. params = (w1 (D,H), b1 (1,H), w2 (H,O), b2 (1,O))."""
    w1, b1, w2, b2 = params
    B, D = x.shape
    H = w1.shape[1]
    O = w2.shape[1]

    dev_kind = jax.devices()[0].device_kind
    if tile_m is None:
        tile_m = _default_tile_m(dev_kind)
    tile_m = max(8, _round_up(tile_m, 8))

    if B <= tile_m:
        tm = B                 # single exact block (full-dim block is always legal)
    else:
        tm = tile_m            # 8-aligned; last block may be ragged (writes masked)
    if _is_dual_tensorcore(dev_kind) and 16 <= B <= 2 * tile_m:
        # v7x has 2 TensorCores: guarantee >= 2 grid steps on the parallel axis.
        tm = _round_up(pl.cdiv(B, 2), 8)

    grid_m = pl.cdiv(B, tm)

    out = pl.pallas_call(
        _mlp_kernel,
        out_shape=jax.ShapeDtypeStruct((B, O), jnp.float32),
        grid_spec=pltpu.PrefetchScalarGridSpec(
            num_scalar_prefetch=0,
            grid=(grid_m,),
            in_specs=[
                pl.BlockSpec((tm, D), lambda i: (i, 0)),   # x row tile (streamed)
                pl.BlockSpec((D, H), lambda i: (0, 0)),    # W1 (resident)
                pl.BlockSpec((1, H), lambda i: (0, 0)),    # b1
                pl.BlockSpec((H, O), lambda i: (0, 0)),    # W2 (resident)
                pl.BlockSpec((1, O), lambda i: (0, 0)),    # b2
            ],
            out_specs=pl.BlockSpec((tm, O), lambda i: (i, 0)),
        ),
        compiler_params=pltpu.CompilerParams(
            dimension_semantics=("parallel",)),
    )(x, w1, b1, w2, b2)
    return out


# ----------------------------------------------------------------------------
# Params / reference
# ----------------------------------------------------------------------------
def init_params(key, D=2916, H=40, O=40):
    """Synthetic params matching nn.Linear default init (U(-1/sqrt(fan_in), .))."""
    k1, k2, k3, k4 = jax.random.split(key, 4)
    bound1 = 1.0 / math.sqrt(D)
    w1 = jax.random.uniform(k1, (D, H), jnp.float32, -bound1, bound1)
    b1 = jax.random.uniform(k2, (1, H), jnp.float32, -bound1, bound1)
    bound2 = 1.0 / math.sqrt(H)
    w2 = jax.random.uniform(k3, (H, O), jnp.float32, -bound2, bound2)
    b2 = jax.random.uniform(k4, (1, O), jnp.float32, -bound2, bound2)
    return w1, b1, w2, b2


def reference_forward(x, params):
    """Pure-JAX reference with precision pinned to f32 (apples-to-apples)."""
    w1, b1, w2, b2 = params
    hp = jax.lax.Precision.HIGHEST
    h = jnp.maximum(jnp.dot(x, w1, precision=hp) + b1, 0.0)
    return jnp.dot(h, w2, precision=hp) + b2


# ----------------------------------------------------------------------------
# Demo / checks
# ----------------------------------------------------------------------------
if __name__ == "__main__":
    D, H, O = 2916, 40, 40

    key = jax.random.PRNGKey(0)
    key, kx1, kx2 = jax.random.split(key, 3)
    params = init_params(key, D, H, O)

    # Primary small example: batch 8 (single tile path).
    x = jax.random.normal(kx1, (8, D), jnp.float32)
    fwd = jax.jit(partial(simple_net_forward))
    out = jax.block_until_ready(fwd(x, params))
    assert out.shape == (8, O), out.shape              # feat_dim = 40
    assert bool(jnp.all(jnp.isfinite(out)))
    ref = reference_forward(x, params)
    max_err = float(jnp.max(jnp.abs(out - ref)))
    assert bool(jnp.allclose(out, ref, atol=1e-4, rtol=1e-4)), max_err

    # Ragged / multi-tile path (no wrapper padding): B=200 with a 64-row tile,
    # so the grid is 4 steps and the last block is only partially valid.
    x2 = jax.random.normal(kx2, (200, D), jnp.float32)
    out2 = jax.block_until_ready(simple_net_forward(x2, params, tile_m=64))
    assert out2.shape == (200, O), out2.shape
    ref2 = reference_forward(x2, params)
    max_err2 = float(jnp.max(jnp.abs(out2 - ref2)))
    assert bool(jnp.allclose(out2, ref2, atol=1e-4, rtol=1e-4)), max_err2

    print("KERNEL_OK")
</pallas_src>

<mosaic_0001>
module attributes {stable_mosaic.version = 11 : i64} {
  func.func @_mlp_kernel(%arg0: i32, %arg1: memref<8x2916xf32, #tpu.memory_space<vmem>>, %arg2: memref<2916x40xf32, #tpu.memory_space<vmem>>, %arg3: memref<1x40xf32, #tpu.memory_space<vmem>>, %arg4: memref<40x40xf32, #tpu.memory_space<vmem>>, %arg5: memref<1x40xf32, #tpu.memory_space<vmem>>, %arg6: memref<8x40xf32, #tpu.memory_space<vmem>>) attributes {dimension_semantics = [#tpu.dimension_semantics<parallel>], iteration_bounds = array<i64: 1>, scalar_prefetch = 0 : i64, scratch_operands = 0 : i64, tpu.core_type = #tpu.core_type<tc>, window_params = [{transform_indices = @transform_0, window_bounds = array<i64: 8, 2916>}, {pipeline_mode = #tpu.pipeline_mode<synchronous>, transform_indices = @transform_1, window_bounds = array<i64: 2916, 40>}, {pipeline_mode = #tpu.pipeline_mode<synchronous>, transform_indices = @transform_2, window_bounds = array<i64: 1, 40>}, {pipeline_mode = #tpu.pipeline_mode<synchronous>, transform_indices = @transform_3, window_bounds = array<i64: 40, 40>}, {pipeline_mode = #tpu.pipeline_mode<synchronous>, transform_indices = @transform_4, window_bounds = array<i64: 1, 40>}, {transform_indices = @transform_5, window_bounds = array<i64: 8, 40>}]} {
    %c0 = arith.constant 0 : index
    %c0_0 = arith.constant 0 : index
    %0 = vector.load %arg1[%c0, %c0_0] : memref<8x2916xf32, #tpu.memory_space<vmem>>, vector<8x2916xf32>
    %c0_1 = arith.constant 0 : index
    %c0_2 = arith.constant 0 : index
    %1 = vector.load %arg2[%c0_1, %c0_2] : memref<2916x40xf32, #tpu.memory_space<vmem>>, vector<2916x40xf32>
    %cst = arith.constant dense<0.000000e+00> : vector<8x40xf32>
    %2 = tpu.matmul %0, %1, %cst {dimension_numbers = #tpu.dot_dimension_numbers<[1], [0], [0], [1], [0, 0, 1, 1], [], []>, precision = #tpu.contract_precision<fp32>} : vector<8x2916xf32>, vector<2916x40xf32>, vector<8x40xf32> -> vector<8x40xf32>
    %c0_3 = arith.constant 0 : index
    %c0_4 = arith.constant 0 : index
    %3 = vector.load %arg3[%c0_3, %c0_4] : memref<1x40xf32, #tpu.memory_space<vmem>>, vector<1x40xf32>
    %4 = vector.broadcast %3 : vector<1x40xf32> to vector<8x40xf32>
    %5 = arith.addf %2, %4 : vector<8x40xf32>
    %cst_5 = arith.constant 0.000000e+00 : f32
    %6 = vector.broadcast %cst_5 : f32 to vector<8x40xf32>
    %7 = arith.maximumf %5, %6 : vector<8x40xf32>
    %c0_6 = arith.constant 0 : index
    %c0_7 = arith.constant 0 : index
    %8 = vector.load %arg4[%c0_6, %c0_7] : memref<40x40xf32, #tpu.memory_space<vmem>>, vector<40x40xf32>
    %cst_8 = arith.constant dense<0.000000e+00> : vector<8x40xf32>
    %9 = tpu.matmul %7, %8, %cst_8 {dimension_numbers = #tpu.dot_dimension_numbers<[1], [0], [0], [1], [0, 0, 1, 1], [], []>, precision = #tpu.contract_precision<fp32>} : vector<8x40xf32>, vector<40x40xf32>, vector<8x40xf32> -> vector<8x40xf32>
    %c0_9 = arith.constant 0 : index
    %c0_10 = arith.constant 0 : index
    %10 = vector.load %arg5[%c0_9, %c0_10] : memref<1x40xf32, #tpu.memory_space<vmem>>, vector<1x40xf32>
    %11 = vector.broadcast %10 : vector<1x40xf32> to vector<8x40xf32>
    %12 = arith.addf %9, %11 : vector<8x40xf32>
    %c0_11 = arith.constant 0 : index
    %c0_12 = arith.constant 0 : index
    %13 = vector.load %arg6[%c0_11, %c0_12] : memref<8x40xf32, #tpu.memory_space<vmem>>, vector<8x40xf32>
    tpu.vector_store %arg6[%c0_11, %c0_12], %12 {strides = array<i32>} : memref<8x40xf32, #tpu.memory_space<vmem>>, vector<8x40xf32>,
    return
  }
  func.func @transform_0(%arg0: i32) -> (i32, i32) {
    %c0_i32 = arith.constant 0 : i32
    %c0_i32_0 = arith.constant 0 : i32
    return %arg0, %c0_i32 : i32, i32
  }
  func.func @transform_1(%arg0: i32) -> (i32, i32) {
    %c0_i32 = arith.constant 0 : i32
    %c0_i32_0 = arith.constant 0 : i32
    %c0_i32_1 = arith.constant 0 : i32
    return %c0_i32, %c0_i32_0 : i32, i32
  }
  func.func @transform_2(%arg0: i32) -> (i32, i32) {
    %c0_i32 = arith.constant 0 : i32
    %c0_i32_0 = arith.constant 0 : i32
    %c0_i32_1 = arith.constant 0 : i32
    return %c0_i32, %c0_i32_0 : i32, i32
  }
  func.func @transform_3(%arg0: i32) -> (i32, i32) {
    %c0_i32 = arith.constant 0 : i32
    %c0_i32_0 = arith.constant 0 : i32
    %c0_i32_1 = arith.constant 0 : i32
    return %c0_i32, %c0_i32_0 : i32, i32
  }
  func.func @transform_4(%arg0: i32) -> (i32, i32) {
    %c0_i32 = arith.constant 0 : i32
    %c0_i32_0 = arith.constant 0 : i32
    %c0_i32_1 = arith.constant 0 : i32
    return %c0_i32, %c0_i32_0 : i32, i32
  }
  func.func @transform_5(%arg0: i32) -> (i32, i32) {
    %c0_i32 = arith.constant 0 : i32
    %c0_i32_0 = arith.constant 0 : i32
    return %arg0, %c0_i32 : i32, i32
  }
}

</mosaic_0001>

<bundles_post_ra>
// kernel: simple_net_forward.1
= control target key start
LH: loop header
LB: loop body
LE: loop exit
PB: predicated region body
PF: predicated region fallthrough
CT: control target
= control target key end

     0   :  { %s15613_s0 = inlined_call_operand.vmem [shape: f32[8,2916], index: 0, kind: input, shape index: {}]   ;;  %s15614_s1 = inlined_call_operand.vmem [shape: f32[2916,40], index: 1, kind: input, shape index: {}]   ;;  %s15615_s2 = inlined_call_operand.vmem [shape: f32[1,40], index: 2, kind: input, shape index: {}]   ;;  %s15616_s3 = inlined_call_operand.vmem [shape: f32[40,40], index: 3, kind: input, shape index: {}]   ;;  %s15617_s4 = inlined_call_operand.vmem [shape: f32[1,40], index: 4, kind: input, shape index: {}]   ;;  %s15618_s5 = inlined_call_operand.hbm [shape: f32[8,40], index: 5, kind: output, shape index: {}]  }
   0x1   :  { %v59_v0 = vld [vmem:[%s15614_s1 + $0x78] sm:$0xff]  ;;  %v58_v1 = vld [vmem:[%s15614_s1 + $0x70] sm:$0xff]  ;;  %v57_v2 = vld [vmem:[%s15614_s1 + $0x68] sm:$0xff] }
   0x2   :  { %v8523_v3 = vand.u32 4294901760, %v59_v0  ;;  %v8525_v4 = vand.u32 4294901760, %v58_v1  ;;  %v8527_v5 = vand.u32 4294901760, %v57_v2  ;;  %v56_v6 = vld [vmem:[%s15614_s1 + $0x60] sm:$0xff]  ;;  %v55_v7 = vld [vmem:[%s15614_s1 + $0x58] sm:$0xff]  ;;  %v54_v8 = vld [vmem:[%s15614_s1 + $0x50] sm:$0xff] }
   0x3   :  { %v8538_v9 = vand.u32 4294901760, %v56_v6  ;;  %v8540_v10 = vand.u32 4294901760, %v55_v7  ;;  %v8542_v11 = vand.u32 4294901760, %v54_v8  ;;  %v53_v12 = vld [vmem:[%s15614_s1 + $0x48] sm:$0xff]  ;;  %v52_v13 = vld [vmem:[%s15614_s1 + $0x40] sm:$0xff]  ;;  %v51_v21 = vld [vmem:[%s15614_s1 + $0x38] sm:$0xff] }
   0x4   :  { %422 = vmatpush.msra.mxu0 %v8523_v3  ;;  %v8552_v14 = vsub.f32 %v59_v0, %v8523_v3  ;;  %v8555_v15 = vsub.f32 %v58_v1, %v8525_v4  ;;  %618 = vmatpush.msra.mxu3 %v8523_v3  ;;  %v8559_v16 = vsub.f32 %v57_v2, %v8527_v5  ;;  %v8561_v17 = vand.u32 4294901760, %v53_v12  ;;  %v50_v26 = vld [vmem:[%s15614_s1 + $0x30] sm:$0xff]  ;;  %v49_v34 = vld [vmem:[%s15614_s1 + $0x28] sm:$0xff] }
   0x5   :  { %v8564_v18 = vsub.f32 %v56_v6, %v8538_v9  ;;  %v8567_v19 = vsub.f32 %v55_v7, %v8540_v10  ;;  %v8570_v20 = vsub.f32 %v54_v8, %v8542_v11  ;;  %v8580_v25 = vand.u32 4294901760, %v52_v13 }
   0x6   :  { %424 = vmatpush.msra.mxu0 %v8525_v4  ;;  %565 = vmatpush.msra.mxu2 %v8552_v14  ;;  %v464_v22 = vand.u32 4294901760, %v8552_v14  ;;  %v15634_v23 = vand.u32 4294901760, %v8555_v15  ;;  %v15632_v24 = vand.u32 4294901760, %v8559_v16  ;;  %v8589_v29 = vsub.f32 %v53_v12, %v8561_v17 }
   0x7   :  { %620 = vmatpush.msra.mxu3 %v8525_v4  ;;  %v15631_v27 = vand.u32 4294901760, %v8564_v18  ;;  %v15628_v28 = vand.u32 4294901760, %v8567_v19  ;;  %v8602_v33 = vand.u32 4294901760, %v51_v21  ;;  %v8608_v35 = vand.u32 4294901760, %v50_v26 }
   0x8   :  { %426 = vmatpush.msra.mxu0 %v8527_v5  ;;  %568 = vmatpush.msra.mxu2 %v8555_v15  ;;  %v465_v30 = vsub.f32 %v8552_v14, %v464_v22  ;;  %v471_v31 = vsub.f32 %v8555_v15, %v15634_v23  ;;  %v477_v32 = vsub.f32 %v8559_v16, %v15632_v24  ;;  %v15626_v36 = vand.u32 4294901760, %v8570_v20 }
   0x9   :  { %622 = vmatpush.msra.mxu3 %v8527_v5 }
   0xa   :  { %10 = vsyncpa [#allocation3], 0  ;;  %428 = vmatpush.msra.mxu0 %v8538_v9  ;;  %v466_v37 = vand.u32 4294901760, %v465_v30  ;;  %571 = vmatpush.msra.mxu2 %v8559_v16  ;;  %v472_v38 = vand.u32 4294901760, %v471_v31  ;;  %v483_v39 = vsub.f32 %v8564_v18, %v15631_v27  ;;  %v8617_v40 = vsub.f32 %v52_v13, %v8580_v25  ;;  %v48_v42 = vld [vmem:[%s15614_s1 + $0x20] sm:$0xff]  ;;  %v47_v47 = vld [vmem:[%s15614_s1 + $0x18] sm:$0xff] }
   0xb   :  { %624 = vmatpush.msra.mxu3 %v8538_v9  ;;  %v489_v41 = vsub.f32 %v8567_v19, %v15628_v28  ;;  %v478_v43 = vand.u32 4294901760, %v477_v32  ;;  %v8627_v44 = vand.u32 4294901760, %v49_v34  ;;  %v15625_v45 = vand.u32 4294901760, %v8589_v29  ;;  %v46_v54 = vld [vmem:[%s15614_s1 + $0x10] sm:$0xff]  ;;  %v75_v59 = vld [vmem:[%s15614_s1 + $0xf8] sm:$0xff]  ;;  %v45_v61 = vld [vmem:[%s15614_s1 + $0x8] sm:$0xff] }
   0xc   :  { %430 = vmatpush.msra.mxu0 %v8540_v10  ;;  %467 = vmatpush.msra.mxu1 %v466_v37  ;;  %v8631_v46 = vsub.f32 %v51_v21, %v8602_v33  ;;  %v495_v48 = vsub.f32 %v8570_v20, %v15626_v36  ;;  %v484_v49 = vand.u32 4294901760, %v483_v39  ;;  %v8642_v50 = vand.u32 4294901760, %v48_v42  ;;  %v44_v2 = vld [vmem:[%s15614_s1] sm:$0xff]  ;;  %v74_v6 = vld [vmem:[%s15614_s1 + $0xf0] sm:$0xff]  ;;  %v73_v32 = vld [vmem:[%s15614_s1 + $0xe8] sm:$0xff]  ;;  %s8483_s23 = smov [#allocation2]  }
   0xd   :  { %574 = vmatpush.msra.mxu2 %v8564_v18  ;;  %626 = vmatpush.msra.mxu3 %v8540_v10  ;;  %v15624_v51 = vand.u32 4294901760, %v8617_v40  ;;  %v8646_v52 = vsub.f32 %v50_v26, %v8608_v35  ;;  %v8650_v53 = vand.u32 4294901760, %v47_v47  ;;  %v490_v55 = vand.u32 4294901760, %v489_v41  ;;  %s8443_s24 = sshll.u32 %s8483_s23, 4  ;;  %s8445_s27 = sshll.u32 %s15618_s5, 4  ;;  %s8444_s24 = int_to_ptr.vmem [resolvable:$true] %s8443_s24  ;;  %s8446_s27 = int_to_ptr.hbm [resolvable:$true] %s8445_s27 }
   0xe   :  { %432 = vmatpush.msra.mxu0 %v8542_v11  ;;  %473 = vmatpush.msra.mxu1 %v472_v38  ;;  %v501_v56 = vsub.f32 %v8589_v29, %v15625_v45  ;;  %v15623_v57 = vand.u32 4294901760, %v8631_v46  ;;  %v8661_v58 = vsub.f32 %v49_v34, %v8627_v44  ;;  %v496_v60 = vand.u32 4294901760, %v495_v48  ;;  %v68_v45 = vld [vmem:[%s15614_s1 + $0xc0] sm:$0xff] }
   0xf   :  { %577 = vmatpush.msra.mxu2 %v8567_v19  ;;  %628 = vmatpush.msra.mxu3 %v8542_v11  ;;  %v507_v62 = vsub.f32 %v8617_v40, %v15624_v51  ;;  %v8675_v63 = vand.u32 4294901760, %v46_v54  ;;  %v15622_v0 = vand.u32 4294901760, %v8646_v52  ;;  %v8679_v1 = vsub.f32 %v48_v42, %v8642_v50 }
  0x10   :  { %434 = vmatpush.msra.mxu0 %v8561_v17  ;;  %479 = vmatpush.msra.mxu1 %v478_v43  ;;  %v8690_v7 = vsub.f32 %v47_v47, %v8650_v53  ;;  %v8692_v8 = vand.u32 4294901760, %v75_v59  ;;  %v502_v12 = vand.u32 4294901760, %v501_v56  ;;  %v513_v13 = vsub.f32 %v8631_v46, %v15623_v57  ;;  %v72_v43 = vld [vmem:[%s15614_s1 + $0xe0] sm:$0xff] }
  0x11   :  { %580 = vmatpush.msra.mxu2 %v8570_v20  ;;  %630 = vmatpush.msra.mxu3 %v8561_v17  ;;  %v8698_v21 = vand.u32 4294901760, %v45_v61  ;;  %v15620_v26 = vand.u32 4294901760, %v8661_v58  ;;  %v8703_v30 = vand.u32 4294901760, %v44_v2  ;;  %v8705_v31 = vand.u32 4294901760, %v74_v6 }
  0x12   :  { %436 = vmatpush.msra.mxu0 %v8580_v25  ;;  %485 = vmatpush.msra.mxu1 %v484_v49  ;;  %v508_v34 = vand.u32 4294901760, %v507_v62  ;;  %v519_v37 = vsub.f32 %v8646_v52, %v15622_v0  ;;  %v15619_v38 = vand.u32 4294901760, %v8679_v1  ;;  %v8716_v39 = vsub.f32 %v46_v54, %v8675_v63 }
  0x13   :  { %583 = vmatpush.msra.mxu2 %v8589_v29  ;;  %632 = vmatpush.msra.mxu3 %v8580_v25  ;;  %v15621_v41 = vand.u32 4294901760, %v8690_v7  ;;  %v8722_v42 = vsub.f32 %v75_v59, %v8692_v8  ;;  %v514_v47 = vand.u32 4294901760, %v513_v13  ;;  %v525_v48 = vsub.f32 %v8661_v58, %v15620_v26  ;;  %v71_v59 = vld [vmem:[%s15614_s1 + $0xd8] sm:$0xff]  ;;  %v70_v13 = vld [vmem:[%s15614_s1 + $0xd0] sm:$0xff] }
  0x14   :  { %438 = vmatpush.msra.mxu0 %v8602_v33  ;;  %491 = vmatpush.msra.mxu1 %v490_v55  ;;  %v8732_v49 = vsub.f32 %v45_v61, %v8698_v21  ;;  %v8734_v54 = vand.u32 4294901760, %v73_v32  ;;  %v8739_v55 = vsub.f32 %v44_v2, %v8703_v30  ;;  %v8742_v56 = vsub.f32 %v74_v6, %v8705_v31 }
  0x15   :  { %586 = vmatpush.msra.mxu2 %v8617_v40  ;;  %634 = vmatpush.msra.mxu3 %v8602_v33  ;;  %v531_v61 = vsub.f32 %v8679_v1, %v15619_v38  ;;  %v15627_v62 = vand.u32 4294901760, %v8716_v39  ;;  %v537_v2 = vsub.f32 %v8690_v7, %v15621_v41  ;;  %v15629_v6 = vand.u32 4294901760, %v8722_v42 }
  0x16   :  { %440 = vmatpush.msra.mxu0 %v8608_v35  ;;  %497 = vmatpush.msra.mxu1 %v496_v60  ;;  %v520_v60 = vand.u32 4294901760, %v519_v37  ;;  %v15630_v37 = vand.u32 4294901760, %v8732_v49  ;;  %v8766_v38 = vsub.f32 %v73_v32, %v8734_v54  ;;  %v8768_v26 = vand.u32 4294901760, %v71_v59 }
  0x17   :  { %589 = vmatpush.msra.mxu2 %v8631_v46  ;;  %636 = vmatpush.msra.mxu3 %v8608_v35  ;;  %v15635_v41 = vand.u32 4294901760, %v8739_v55  ;;  %v15633_v0 = vand.u32 4294901760, %v8742_v56  ;;  %v543_v32 = vsub.f32 %v8716_v39, %v15627_v62  ;;  %v8784_v51 = vand.u32 4294901760, %v70_v13 }
  0x18   :  { %442 = vmatpush.msra.mxu0 %v8627_v44  ;;  %503 = vmatpush.msra.mxu1 %v502_v12  ;;  %v8752_v12 = vand.u32 4294901760, %v72_v43  ;;  %v538_v36 = vand.u32 4294901760, %v537_v2  ;;  %v8800_v62 = vsub.f32 %v71_v59, %v8768_v26  ;;  %v67_v2 = vld [vmem:[%s15614_s1 + $0xb8] sm:$0xff]  ;;  %vm417_vm0 = vcmask 1043456  }
  0x19   :  { %592 = vmatpush.msra.mxu2 %v8646_v52  ;;  %638 = vmatpush.msra.mxu3 %v8627_v44  ;;  %v544_v59 = vand.u32 4294901760, %v543_v32  ;;  %v8820_v24 = vsub.f32 %v70_v13, %v8784_v51  ;;  %v8825_v23 = vand.u32 4294901760, %v67_v2  ;;  %vm413_vm1 = vcmask 818176  }
  0x1a   :  { %444 = vmatpush.msra.mxu0 %v8642_v50  ;;  %509 = vmatpush.msra.mxu1 %v508_v34  ;;  %v526_v34 = vand.u32 4294901760, %v525_v48  ;;  %v532_v48 = vand.u32 4294901760, %v531_v61  ;;  %v8782_v57 = vsub.f32 %v72_v43, %v8752_v12  ;;  %v549_v43 = vsub.f32 %v8732_v49, %v15630_v37 }
  0x1b   :  { %595 = vmatpush.msra.mxu2 %v8661_v58  ;;  %640 = vmatpush.msra.mxu3 %v8642_v50  ;;  %v15636_v61 = vand.u32 4294901760, %v8766_v38  ;;  %v555_v37 = vsub.f32 %v8739_v55, %v15635_v41  ;;  %v15638_v14 = vand.u32 4294901760, %v8800_v62  ;;  %vm8235_vm2 = vcmask 326656  }
  0x1c   :  { %446 = vmatpush.msra.mxu0 %v8650_v53  ;;  %515 = vmatpush.msra.mxu1 %v514_v47  ;;  %v69_v47 = vld [vmem:[%s15614_s1 + $0xc8] sm:$0xff]  ;;  %v15637_v27 = vand.u32 4294901760, %v8782_v57  ;;  %v550_v32 = vand.u32 4294901760, %v549_v43 }
  0x1d   :  { %598 = vmatpush.msra.mxu2 %v8679_v1  ;;  %642 = vmatpush.msra.mxu3 %v8650_v53  ;;  %v8802_v28 = vand.u32 4294901760, %v69_v47  ;;  %v818_v13 = vsub.f32 %v8766_v38, %v15636_v61  ;;  %v65_v43 = vld [vmem:[%s15614_s1 + $0xa8] sm:$0xff]  ;;  %v556_v61 = vand.u32 4294901760, %v555_v37 }
  0x1e   :  { %448 = vmatpush.msra.mxu0 %v8675_v63  ;;  %521 = vmatpush.msra.mxu1 %v520_v60  ;;  %v806_v60 = vsub.f32 %v8722_v42, %v15629_v6  ;;  %v8812_v6 = vand.u32 4294901760, %v68_v45 }
  0x1f   :  { %601 = vmatpush.msra.mxu2 %v8690_v7  ;;  %644 = vmatpush.msra.mxu3 %v8675_v63  ;;  %v819_v37 = vand.u32 4294901760, %v818_v13 }
  0x20   :  { %450 = vmatpush.msra.mxu0 %v8698_v21  ;;  %527 = vmatpush.msra.mxu1 %v526_v34  ;;  %v812_v34 = vsub.f32 %v8742_v56, %v15633_v0  ;;  %v807_v0 = vand.u32 4294901760, %v806_v60  ;;  %v15875_v60 = vand.u32 4294901760, %v8555_v15 }
  0x21   :  { %604 = vmatpush.msra.mxu2 %v8716_v39  ;;  %646 = vmatpush.msra.mxu3 %v8698_v21 }
  0x22   :  { %452 = vmatpush.msra.mxu0 %v8703_v30  ;;  %533 = vmatpush.msra.mxu1 %v532_v48  ;;  %v66_v48 = vld [vmem:[%s15614_s1 + $0xb0] sm:$0xff]  ;;  %v813_v41 = vand.u32 4294901760, %v812_v34  ;;  %v15876_v34 = vand.u32 4294901760, %v8559_v16  ;;  %v8867_v16 = vand.u32 4294901760, %v65_v43 }
  0x23   :  { %607 = vmatpush.msra.mxu2 %v8732_v49  ;;  %648 = vmatpush.msra.mxu3 %v8703_v30 }
  0x24   :  { %659 = vmatpush.msrb.mxu0 %v464_v22  ;;  %539 = vmatpush.msra.mxu1 %v538_v36  ;;  %v8836_v22 = vsub.f32 %v69_v47, %v8802_v28  ;;  %v8842_v36 = vsub.f32 %v68_v45, %v8812_v6  ;;  %v824_v47 = vsub.f32 %v8782_v57, %v15637_v27 }
  0x25   :  { %610 = vmatpush.msra.mxu2 %v8739_v55  ;;  %808 = vmatpush.msrb.mxu3 %v807_v0  ;;  %v8857_v45 = vsub.f32 %v67_v2, %v8825_v23  ;;  %v830_v27 = vsub.f32 %v8800_v62, %v15638_v14  ;;  %v15877_v0 = vand.u32 4294901760, %v8564_v18  ;;  %v8896_v2 = vsub.f32 %v65_v43, %v8867_v16 }
  0x26   :  { %663 = vmatpush.msrb.mxu0 %v15875_v60  ;;  %545 = vmatpush.msra.mxu1 %v544_v59  ;;  %v8852_v60 = vand.u32 4294901760, %v66_v48  ;;  %v64_v59 = vld [vmem:[%s15614_s1 + $0xa0] sm:$0xff]  ;;  %v825_v13 = vand.u32 4294901760, %v824_v47 }
  0x27   :  { %763 = vmatpush.msrb.mxu2 %v8692_v8  ;;  %814 = vmatpush.msrb.mxu3 %v813_v41  ;;  %v8882_v18 = vand.u32 4294901760, %v64_v59  ;;  %v15879_v41 = vand.u32 4294901760, %v8567_v19  ;;  %v831_v47 = vand.u32 4294901760, %v830_v27  ;;  %v62_v27 = vld [vmem:[%s15614_s1 + $0x90] sm:$0xff] }
  0x28   :  { %667 = vmatpush.msrb.mxu0 %v15876_v34  ;;  %551 = vmatpush.msra.mxu1 %v550_v32  ;;  %v63_v32 = vld [vmem:[%s15614_s1 + $0x98] sm:$0xff]  ;;  %v15878_v34 = vand.u32 4294901760, %v8820_v24  ;;  %v8880_v15 = vsub.f32 %v66_v48, %v8852_v60  ;;  %v15880_v48 = vand.u32 4294901760, %v8836_v22 }
  0x29   :  { %765 = vmatpush.msrb.mxu2 %v8705_v31  ;;  %820 = vmatpush.msrb.mxu3 %v819_v37  ;;  %v8898_v19 = vand.u32 4294901760, %v63_v32  ;;  %v8927_v37 = vand.u32 4294901760, %v62_v27 }
  0x2a   :  { %671 = vmatpush.msrb.mxu0 %v15877_v0  ;;  %557 = vmatpush.msra.mxu1 %v556_v61  ;;  %v836_v14 = vsub.f32 %v8820_v24, %v15878_v34  ;;  %v21_v61 = vld [vmem:[%s15613_s0] sm:$0xff]  ;;  %v842_v34 = vsub.f32 %v8836_v22, %v15880_v48  ;;  %v8912_v48 = vsub.f32 %v64_v59, %v8882_v18 }
  0x2b   :  { %767 = vmatpush.msrb.mxu2 %v8734_v54  ;;  %826 = vmatpush.msrb.mxu3 %v825_v13 }
  0x2c   :  { %675 = vmatpush.msrb.mxu0 %v15879_v41  ;;  %726 = vmatpush.msrb.mxu1 %v8523_v3  ;;  %v15881_v3 = vand.u32 4294901760, %v8570_v20  ;;  %v15882_v41 = vand.u32 4294901760, %v8842_v36  ;;  %v837_v43 = vand.u32 4294901760, %v836_v14  ;;  %v8914_v20 = vand.u32 4294901760, %v21_v61  ;;  %v61_v14 = vld [vmem:[%s15614_s1 + $0x88] sm:$0xff] }
  0x2d   :  { %769 = vmatpush.msrb.mxu2 %v8752_v12  ;;  %832 = vmatpush.msrb.mxu3 %v831_v47  ;;  %v843_v59 = vand.u32 4294901760, %v842_v34  ;;  %v15886_v47 = vand.u32 4294901760, %v8880_v15 }
  0x2e   :  { %679 = vmatpush.msrb.mxu0 %v15881_v3  ;;  %728 = vmatpush.msrb.mxu1 %v8525_v4  ;;  %v848_v0 = vsub.f32 %v8842_v36, %v15882_v41  ;;  %v15883_v4 = vand.u32 4294901760, %v8589_v29  ;;  %v15884_v3 = vand.u32 4294901760, %v8857_v45  ;;  %v8930_v29 = vsub.f32 %v63_v32, %v8898_v19 }
  0x2f   :  { %771 = vmatpush.msrb.mxu2 %v8768_v26  ;;  %838 = vmatpush.msrb.mxu3 %v837_v43  ;;  %v860_v34 = vsub.f32 %v8880_v15, %v15886_v47  ;;  %v8944_v13 = vsub.f32 %v21_v61, %v8914_v20  ;;  %v15888_v43 = vand.u32 4294901760, %v8896_v2  ;;  %v8957_v61 = vsub.f32 %v62_v27, %v8927_v37 }
  0x30   :  { %683 = vmatpush.msrb.mxu0 %v15883_v4  ;;  %730 = vmatpush.msrb.mxu1 %v8527_v5  ;;  %v854_v41 = vsub.f32 %v8857_v45, %v15884_v3  ;;  %v15885_v5 = vand.u32 4294901760, %v8617_v40  ;;  %v849_v4 = vand.u32 4294901760, %v848_v0  ;;  %v60_v3 = vld [vmem:[%s15614_s1 + $0x80] sm:$0xff]  ;;  %v8946_v40 = vand.u32 4294901760, %v61_v14 }
  0x31   :  { %773 = vmatpush.msrb.mxu2 %v8784_v51  ;;  %844 = vmatpush.msrb.mxu3 %v843_v59  ;;  %v877_v47 = vand.u32 4294901760, %v8930_v29  ;;  %v8959_v32 = vand.u32 4294901760, %v60_v3 }
  0x32   :  { %687 = vmatpush.msrb.mxu0 %v15885_v5  ;;  %732 = vmatpush.msrb.mxu1 %v8538_v9  ;;  %v15887_v9 = vand.u32 4294901760, %v8631_v46  ;;  %v855_v0 = vand.u32 4294901760, %v854_v41  ;;  %v866_v5 = vsub.f32 %v8896_v2, %v15888_v43  ;;  %v15889_v46 = vand.u32 4294901760, %v8646_v52 }
  0x33   :  { %775 = vmatpush.msrb.mxu2 %v8802_v28  ;;  %850 = vmatpush.msrb.mxu3 %v849_v4  ;;  %v15890_v41 = vand.u32 4294901760, %v8912_v48  ;;  %v8970_v27 = vsub.f32 %v61_v14, %v8946_v40  ;;  %v15891_v43 = vand.u32 4294901760, %v8661_v58  ;;  %v878_v52 = vsub.f32 %v8930_v29, %v877_v47 }
  0x34   :  { %691 = vmatpush.msrb.mxu0 %v15887_v9  ;;  %734 = vmatpush.msrb.mxu1 %v8540_v10  ;;  %v861_v10 = vand.u32 4294901760, %v860_v34  ;;  %v455_v9 = vand.u32 4294901760, %v8944_v13  ;;  %v883_v4 = vand.u32 4294901760, %v8957_v61  ;;  %v8981_v34 = vsub.f32 %v60_v3, %v8959_v32 }
  0x35   :  { %777 = vmatpush.msrb.mxu2 %v8812_v6  ;;  %v872_v59 = vsub.f32 %v8912_v48, %v15890_v41  ;;  %856 = vmatpush.msrb.mxu3 %v855_v0  ;;  %v15892_v14 = vand.u32 4294901760, %v8679_v1  ;;  %v15893_v3 = vand.u32 4294901760, %v8690_v7  ;;  %v15894_v41 = vand.u32 4294901760, %v8716_v39 }
  0x36   :  { %695 = vmatpush.msrb.mxu0 %v15889_v46  ;;  %736 = vmatpush.msrb.mxu1 %v8542_v11  ;;  %v867_v11 = vand.u32 4294901760, %v866_v5  ;;  %v456_v0 = vsub.f32 %v8944_v13, %v455_v9  ;;  %v889_v5 = vand.u32 4294901760, %v8970_v27  ;;  %v884_v1 = vsub.f32 %v8957_v61, %v883_v4 }
  0x37   :  { %779 = vmatpush.msrb.mxu2 %v8825_v23  ;;  %862 = vmatpush.msrb.mxu3 %v861_v10  ;;  %v873_v58 = vand.u32 4294901760, %v872_v59  ;;  %v895_v46 = vand.u32 4294901760, %v8981_v34  ;;  %v15895_v59 = vand.u32 4294901760, %v8732_v49 }
  0x38   :  { %699 = vmatpush.msrb.mxu0 %v15891_v43  ;;  %738 = vmatpush.msrb.mxu1 %v8561_v17  ;;  %v22_v17 = vld [vmem:[%s15613_s0 + $0x8] sm:$0xff]  ;;  %v890_v7 = vsub.f32 %v8970_v27, %v889_v5  ;;  %v885_v39 = vand.u32 4294901760, %v884_v1 }
  0x39   :  { %781 = vmatpush.msrb.mxu2 %v8852_v60  ;;  %868 = vmatpush.msrb.mxu3 %v867_v11  ;;  %v9000_v10 = vand.u32 4294901760, %v22_v17  ;;  %v15896_v11 = vand.u32 4294901760, %v8739_v55  ;;  %v15900_v55 = vand.u32 4294901760, %v8782_v57 }
  0x3a   :  { %703 = vmatpush.msrb.mxu0 %v15892_v14  ;;  %740 = vmatpush.msrb.mxu1 %v8580_v25  ;;  %v879_v25 = vand.u32 4294901760, %v878_v52 }
  0x3b   :  { %783 = vmatpush.msrb.mxu2 %v8867_v16  ;;  %874 = vmatpush.msrb.mxu3 %v873_v58  ;;  %v9017_v43 = vsub.f32 %v22_v17, %v9000_v10 }
  0x3c   :  { %707 = vmatpush.msrb.mxu0 %v15893_v3  ;;  %742 = vmatpush.msrb.mxu1 %v8602_v33  ;;  %v457_v33 = vand.u32 4294901760, %v456_v0  ;;  %v82_v0 = vld [vmem:[%s15614_s1 + $0x130] sm:$0xff] }
  0x3d   :  { %785 = vmatpush.msrb.mxu2 %v8882_v18  ;;  %880 = vmatpush.msrb.mxu3 %v879_v25  ;;  %v796_v52 = vand.u32 4294901760, %v9017_v43 }
  0x3e   :  { %711 = vmatpush.msrb.mxu0 %v15894_v41  ;;  %744 = vmatpush.msrb.mxu1 %v8608_v35  ;;  %v896_v35 = vsub.f32 %v8981_v34, %v895_v46 }
  0x3f   :  { %787 = vmatpush.msrb.mxu2 %v8898_v19  ;;  %458 = vmatmul.f32.vlgmr.msra.gmra.mxu0 %v457_v33  ;;  %v9218_v33 = vand.u32 4294901760, %v82_v0 }
  0x40   :  { %715 = vmatpush.msrb.mxu0 %v15895_v59  ;;  %746 = vmatpush.msrb.mxu1 %v8627_v44  ;;  %v891_v44 = vand.u32 4294901760, %v890_v7  ;;  %v897_v49 = vand.u32 4294901760, %v896_v35  ;;  %v80_v59 = vld [vmem:[%s15614_s1 + $0x120] sm:$0xff] }
  0x41   :  { %789 = vmatpush.msrb.mxu2 %v8927_v37  ;;  %886 = vmatpush.msrb.mxu3 %v885_v39 }
  0x42   :  { %719 = vmatpush.msrb.mxu0 %v15896_v11  ;;  %748 = vmatpush.msrb.mxu1 %v8642_v50  ;;  %v15897_v50 = vand.u32 4294901760, %v8722_v42 }
  0x43   :  { %791 = vmatpush.msrb.mxu2 %v8946_v40  ;;  %892 = vmatpush.msrb.mxu3 %v891_v44  ;;  %v23_v44 = vld [vmem:[%s15613_s0 + $0x10] sm:$0xff] }
  0x44   :  { %906 = vmatpush.msra.mxu0 %v8722_v42  ;;  %750 = vmatpush.msrb.mxu1 %v8650_v53  ;;  %v797_v53 = vsub.f32 %v9017_v43, %v796_v52 }
  0x45   :  { %793 = vmatpush.msrb.mxu2 %v8959_v32  ;;  %898 = vmatpush.msrb.mxu3 %v897_v49 }
  0x46   :  { %909 = vmatpush.msra.mxu0 %v8742_v56  ;;  %752 = vmatpush.msrb.mxu1 %v8675_v63  ;;  %v15898_v63 = vand.u32 4294901760, %v8742_v56  ;;  %v798_v42 = vand.u32 4294901760, %v797_v53  ;;  %v15907_v56 = vand.u32 4294901760, %v8896_v2  ;;  %v9251_v53 = vand.u32 4294901760, %v80_v59 }
  0x47   :  { %613 = vmatmul.f32.vlgmr.msra.gmra.mxu2 %v8944_v13  ;;  %652 = vmatmul.f32.vlgmr.msra.gmra.mxu3 %v455_v9 }
  0x48   :  { %912 = vmatpush.msra.mxu0 %v8766_v38  ;;  %1000 = vmatpush.msra.mxu2 %v15897_v50 }
  0x49   :  { %754 = vmatpush.msrb.mxu1 %v8698_v21  ;;  %1067 = vmatpush.msra.mxu3 %v8692_v8  ;;  %v15899_v21 = vand.u32 4294901760, %v8766_v38  ;;  %v15906_v38 = vand.u32 4294901760, %v8880_v15 }
  0x4a   :  { %915 = vmatpush.msra.mxu0 %v8782_v57  ;;  %1004 = vmatpush.msra.mxu2 %v15898_v63  ;;  %v15902_v57 = vand.u32 4294901760, %v8820_v24 }
  0x4b   :  { %756 = vmatpush.msrb.mxu1 %v8703_v30  ;;  %1069 = vmatpush.msra.mxu3 %v8705_v31  ;;  %v15901_v30 = vand.u32 4294901760, %v8800_v62 }
  0x4c   :  { %918 = vmatpush.msra.mxu0 %v8800_v62  ;;  %559 = vmatmul.f32.vlgmr.msra.gmra.mxu1 %v8914_v20 }
  0x4d   :  { %1008 = vmatpush.msra.mxu2 %v15899_v21  ;;  %959 = vmatpush.msra.mxu1 %v8692_v8  ;;  %v15903_v8 = vand.u32 4294901760, %v8836_v22  ;;  %v9255_v21 = vsub.f32 %v82_v0, %v9218_v33 }
  0x4e   :  { %921 = vmatpush.msra.mxu0 %v8820_v24  ;;  %1071 = vmatpush.msra.mxu3 %v8734_v54  ;;  %v15904_v24 = vand.u32 4294901760, %v8842_v36 }
  0x4f   :  { %1012 = vmatpush.msra.mxu2 %v15900_v55  ;;  %961 = vmatpush.msra.mxu1 %v8705_v31  ;;  %v15905_v31 = vand.u32 4294901760, %v8857_v45  ;;  %v78_v55 = vld [vmem:[%s15614_s1 + $0x110] sm:$0xff] }
  0x50   :  { %799 = vmatmul.f32.vlgmr.msrb.gmra.mxu2 %v798_v42  ;;  %924 = vmatpush.msra.mxu0 %v8836_v22 }
  0x51   :  { %963 = vmatpush.msra.mxu1 %v8734_v54  ;;  %1016 = vmatpush.msra.mxu2 %v15901_v30  ;;  %v89_v54 = vld [vmem:[%s15614_s1 + $0x168] sm:$0xff]  ;;  %v9262_v30 = vand.u32 4294901760, %v23_v44 }
  0x52   :  { %1073 = vmatpush.msra.mxu3 %v8752_v12  ;;  %721 = vmatmul.f32.vlgmr.msrb.gmra.mxu0 %v8914_v20 }
  0x53   :  { %900 = vmatmul.f32.vlgmr.msrb.gmra.mxu3 %v9000_v10  ;;  %927 = vmatpush.msra.mxu0 %v8842_v36  ;;  %v87_v36 = vld [vmem:[%s15614_s1 + $0x158] sm:$0xff] }
  0x54   :  { %965 = vmatpush.msra.mxu1 %v8752_v12  ;;  %1020 = vmatpush.msra.mxu2 %v15902_v57  ;;  %v88_v12 = vld [vmem:[%s15614_s1 + $0x160] sm:$0xff] }
  0x55   :  { %1075 = vmatpush.msra.mxu3 %v8768_v26  ;;  %758 = vmatmul.f32.vlgmr.msrb.gmra.mxu1 %v8914_v20 }
  0x56   :  { %930 = vmatpush.msra.mxu0 %v8857_v45  ;;  %967 = vmatpush.msra.mxu1 %v8768_v26  ;;  %v91_v26 = vld [vmem:[%s15614_s1 + $0x178] sm:$0xff]  ;;  %v86_v45 = vld [vmem:[%s15614_s1 + $0x150] sm:$0xff] }
  0x57   :  { %1024 = vmatpush.msra.mxu2 %v15903_v8  ;;  %1077 = vmatpush.msra.mxu3 %v8784_v51  ;;  %v9146_v20 = vand.u32 4294901760, %v86_v45 }
  0x58   :  { %933 = vmatpush.msra.mxu0 %v8880_v15  ;;  %969 = vmatpush.msra.mxu1 %v8784_v51  ;;  %v90_v51 = vld [vmem:[%s15614_s1 + $0x170] sm:$0xff]  ;;  %v9125_v15 = vand.u32 4294901760, %v88_v12 }
  0x59   :  { %1028 = vmatpush.msra.mxu2 %v15904_v24  ;;  %1079 = vmatpush.msra.mxu3 %v8802_v28  ;;  %v9102_v62 = vand.u32 4294901760, %v90_v51 }
  0x5a   :  { %936 = vmatpush.msra.mxu0 %v8896_v2  ;;  %971 = vmatpush.msra.mxu1 %v8802_v28  ;;  %v9092_v28 = vand.u32 4294901760, %v91_v26  ;;  %v9135_v2 = vand.u32 4294901760, %v87_v36 }
  0x5b   :  { %1032 = vmatpush.msra.mxu2 %v15905_v31  ;;  %1081 = vmatpush.msra.mxu3 %v8812_v6 }
  0x5c   :  { %939 = vmatpush.msra.mxu0 %v8912_v48  ;;  %973 = vmatpush.msra.mxu1 %v8812_v6  ;;  %v9112_v6 = vand.u32 4294901760, %v89_v54  ;;  %v9115_v22 = vsub.f32 %v91_v26, %v9092_v28 }
  0x5d   :  { %1036 = vmatpush.msra.mxu2 %v15906_v38  ;;  %1083 = vmatpush.msra.mxu3 %v8825_v23  ;;  %v9280_v38 = vand.u32 4294901760, %v78_v55 }
  0x5e   :  { %942 = vmatpush.msra.mxu0 %v8930_v29  ;;  %975 = vmatpush.msra.mxu1 %v8825_v23  ;;  %v15908_v23 = vand.u32 4294901760, %v8912_v48  ;;  %v9142_v48 = vsub.f32 %v89_v54, %v9112_v6  ;;  %v9156_v29 = vsub.f32 %v88_v12, %v9125_v15  ;;  %v15642_v54 = vand.u32 4294901760, %v9255_v21  ;;  %v77_v12 = vld [vmem:[%s15614_s1 + $0x108] sm:$0xff] }
  0x5f   :  { %1040 = vmatpush.msra.mxu2 %v15907_v56  ;;  %1085 = vmatpush.msra.mxu3 %v8852_v60  ;;  %v9284_v56 = vsub.f32 %v80_v59, %v9251_v53 }
  0x60   :  { %945 = vmatpush.msra.mxu0 %v8957_v61  ;;  %977 = vmatpush.msra.mxu1 %v8852_v60  ;;  %v9128_v60 = vsub.f32 %v90_v51, %v9102_v62  ;;  %v15652_v17 = vand.u32 4294901760, %v9156_v29 }
  0x61   :  { %1044 = vmatpush.msra.mxu2 %v15908_v23  ;;  %1087 = vmatpush.msra.mxu3 %v8867_v16  ;;  %v9292_v23 = vsub.f32 %v23_v44, %v9262_v30 }
  0x62   :  { %948 = vmatpush.msra.mxu0 %v8970_v27  ;;  %979 = vmatpush.msra.mxu1 %v8867_v16  ;;  %v1146_v16 = vand.u32 4294901760, %v9115_v22  ;;  %v1152_v13 = vand.u32 4294901760, %v9128_v60  ;;  %v9178_v27 = vsub.f32 %v86_v45, %v9146_v20  ;;  %v1165_v41 = vsub.f32 %v9156_v29, %v15652_v17 }
  0x63   :  { %1048 = vmatpush.msra.mxu2 %v877_v47  ;;  %1089 = vmatpush.msra.mxu3 %v8882_v18  ;;  %v84_v47 = vld [vmem:[%s15614_s1 + $0x140] sm:$0xff] }
  0x64   :  { %951 = vmatpush.msra.mxu0 %v8981_v34  ;;  %981 = vmatpush.msra.mxu1 %v8882_v18  ;;  %v85_v18 = vld [vmem:[%s15614_s1 + $0x148] sm:$0xff]  ;;  %v1147_v61 = vsub.f32 %v9115_v22, %v1146_v16  ;;  %v1153_v34 = vsub.f32 %v9128_v60, %v1152_v13  ;;  %v9188_v14 = vand.u32 4294901760, %v84_v47  ;;  %v15647_v1 = vand.u32 4294901760, %v9178_v27 }
  0x65   :  { %1052 = vmatpush.msra.mxu2 %v883_v4  ;;  %1091 = vmatpush.msra.mxu3 %v8898_v19  ;;  %v9172_v9 = vand.u32 4294901760, %v85_v18  ;;  %v83_v4 = vld [vmem:[%s15614_s1 + $0x138] sm:$0xff]  ;;  %v1166_v50 = vand.u32 4294901760, %v1165_v41 }
  0x66   :  { %954 = vmatmul.f32.vlgmr.msra.gmra.mxu0 %v9017_v43  ;;  %983 = vmatpush.msra.mxu1 %v8898_v19  ;;  %v9161_v19 = vsub.f32 %v87_v36, %v9135_v2  ;;  %v9202_v25 = vand.u32 4294901760, %v83_v4  ;;  %v9221_v7 = vsub.f32 %v84_v47, %v9188_v14  ;;  %v1177_v49 = vsub.f32 %v9178_v27, %v15647_v1 }
  0x67   :  { %1104 = vmatpush.msrb.mxu0 %v9092_v28  ;;  %1056 = vmatpush.msra.mxu2 %v889_v5  ;;  %v1148_v5 = vand.u32 4294901760, %v1147_v61  ;;  %v107_v61 = vld [vmem:[%s15614_s1 + $0x1f8] sm:$0xff] }
  0x68   :  { %1093 = vmatpush.msra.mxu3 %v8927_v37  ;;  %985 = vmatpush.msra.mxu1 %v8927_v37  ;;  %v1158_v37 = vand.u32 4294901760, %v9142_v48  ;;  %v15649_v58 = vand.u32 4294901760, %v9161_v19  ;;  %v9237_v43 = vsub.f32 %v83_v4, %v9202_v25  ;;  %v15644_v63 = vand.u32 4294901760, %v9221_v7 }
  0x69   :  { %1106 = vmatpush.msrb.mxu0 %v9102_v62  ;;  %1060 = vmatpush.msra.mxu2 %v895_v46  ;;  %v81_v46 = vld [vmem:[%s15614_s1 + $0x128] sm:$0xff]  ;;  %v1178_v31 = vand.u32 4294901760, %v1177_v49  ;;  %v9307_v4 = vand.u32 4294901760, %v77_v12  ;;  %v9323_v41 = vand.u32 4294901760, %v107_v61 }
  0x6a   :  { %1095 = vmatpush.msra.mxu3 %v8946_v40  ;;  %1062 = vmatmul.f32.vlgmr.msra.gmra.mxu2 %v9000_v10  ;;  %v1159_v3 = vsub.f32 %v9142_v48, %v1158_v37  ;;  %v9233_v35 = vand.u32 4294901760, %v81_v46  ;;  %v15643_v24 = vand.u32 4294901760, %v9237_v43  ;;  %v1189_v51 = vsub.f32 %v9221_v7, %v15644_v63 }
  0x6b   :  { %1108 = vmatpush.msrb.mxu0 %v9112_v6  ;;  %1247 = vmatpush.msrb.mxu2 %v9115_v22  ;;  %v99_v22 = vld [vmem:[%s15614_s1 + $0x1b8] sm:$0xff] }
  0x6c   :  { %987 = vmatpush.msra.mxu1 %v8946_v40  ;;  %1097 = vmatpush.msra.mxu3 %v8959_v32  ;;  %v9205_v40 = vsub.f32 %v85_v18, %v9172_v9  ;;  %v1160_v39 = vand.u32 4294901760, %v1159_v3  ;;  %v9272_v26 = vsub.f32 %v81_v46, %v9233_v35  ;;  %v1195_v45 = vsub.f32 %v9237_v43, %v15643_v24 }
  0x6d   :  { %1099 = vmatmul.f32.vlgmr.msra.gmra.mxu3 %v9000_v10  ;;  %1110 = vmatpush.msrb.mxu0 %v9125_v15  ;;  %v1154_v10 = vand.u32 4294901760, %v1153_v34  ;;  %v76_v34 = vld [vmem:[%s15614_s1 + $0x100] sm:$0xff]  ;;  %v1190_v0 = vand.u32 4294901760, %v1189_v51  ;;  %v15639_v3 = vand.u32 4294901760, %v9284_v56  ;;  %v9318_v46 = vsub.f32 %v78_v55, %v9280_v38 }
  0x6e   :  { %1250 = vmatpush.msrb.mxu2 %v9128_v60  ;;  %1300 = vmatpush.msrb.mxu3 %v9092_v28  ;;  %v15646_v11 = vand.u32 4294901760, %v9205_v40  ;;  %v15640_v18 = vand.u32 4294901760, %v9272_v26  ;;  %v1196_v59 = vand.u32 4294901760, %v1195_v45  ;;  %v9332_v44 = vand.u32 4294901760, %v76_v34  ;;  %v104_v51 = vld [vmem:[%s15614_s1 + $0x1e0] sm:$0xff]  ;;  %v98_v60 = vld [vmem:[%s15614_s1 + $0x1b0] sm:$0xff] }
  0x6f   :  { %989 = vmatpush.msra.mxu1 %v8959_v32  ;;  %1112 = vmatpush.msrb.mxu0 %v9135_v2  ;;  %v1171_v32 = vsub.f32 %v9161_v19, %v15649_v58  ;;  %v1213_v55 = vsub.f32 %v9284_v56, %v15639_v3 }
  0x70   :  { %993 = vmatmul.f32.vlgmr.msra.gmra.mxu1 %v796_v52  ;;  %1253 = vmatpush.msrb.mxu2 %v9142_v48  ;;  %v79_v52 = vld [vmem:[%s15614_s1 + $0x118] sm:$0xff]  ;;  %v1183_v57 = vsub.f32 %v9205_v40, %v15646_v11 }
  0x71   :  { %1149 = vmatpush.msrb.mxu1 %v1148_v5  ;;  %1302 = vmatpush.msrb.mxu3 %v9102_v62  ;;  %v1172_v42 = vand.u32 4294901760, %v1171_v32  ;;  %v9268_v8 = vand.u32 4294901760, %v79_v52  ;;  %v1201_v5 = vsub.f32 %v9255_v21, %v15642_v54  ;;  %v106_v32 = vld [vmem:[%s15614_s1 + $0x1f0] sm:$0xff] }
  0x72   :  { %1114 = vmatpush.msrb.mxu0 %v9146_v20  ;;  %1256 = vmatpush.msrb.mxu2 %v9156_v29  ;;  %v1184_v36 = vand.u32 4294901760, %v1183_v57  ;;  %v15645_v57 = vand.u32 4294901760, %v9318_v46 }
  0x73   :  { %1155 = vmatpush.msrb.mxu1 %v1154_v10  ;;  %1304 = vmatpush.msrb.mxu3 %v9112_v6  ;;  %v9300_v47 = vsub.f32 %v79_v52, %v9268_v8  ;;  %v1137_v10 = vand.u32 4294901760, %v9292_v23  ;;  %v9338_v52 = vsub.f32 %v77_v12, %v9307_v4 }
  0x74   :  { %1116 = vmatpush.msrb.mxu0 %v9172_v9  ;;  %1259 = vmatpush.msrb.mxu2 %v9161_v19 }
  0x75   :  { %1161 = vmatpush.msrb.mxu1 %v1160_v39  ;;  %1306 = vmatpush.msrb.mxu3 %v9125_v15  ;;  %v1207_v39 = vsub.f32 %v9272_v26, %v15640_v18  ;;  %v15641_v49 = vand.u32 4294901760, %v9300_v47  ;;  %v1138_v12 = vsub.f32 %v9292_v23, %v1137_v10  ;;  %v103_v18 = vld [vmem:[%s15614_s1 + $0x1d8] sm:$0xff] }
  0x76   :  { %1118 = vmatpush.msrb.mxu0 %v9188_v14  ;;  %1262 = vmatpush.msrb.mxu2 %v9178_v27  ;;  %v9388_v63 = vand.u32 4294901760, %v103_v18 }
  0x77   :  { %1167 = vmatpush.msrb.mxu1 %v1166_v50  ;;  %1308 = vmatpush.msrb.mxu3 %v9135_v2  ;;  %v105_v50 = vld [vmem:[%s15614_s1 + $0x1e8] sm:$0xff]  ;;  %v1208_v45 = vand.u32 4294901760, %v1207_v39  ;;  %v1214_v39 = vand.u32 4294901760, %v1213_v55  ;;  %v1139_v54 = vand.u32 4294901760, %v1138_v12 }
  0x78   :  { %1120 = vmatpush.msrb.mxu0 %v9202_v25  ;;  %1265 = vmatpush.msrb.mxu2 %v9205_v40  ;;  %v9368_v3 = vand.u32 4294901760, %v105_v50 }
  0x79   :  { %1173 = vmatpush.msrb.mxu1 %v1172_v42  ;;  %1310 = vmatpush.msrb.mxu3 %v9146_v20  ;;  %v1202_v42 = vand.u32 4294901760, %v1201_v5  ;;  %v9366_v5 = vsub.f32 %v76_v34, %v9332_v44  ;;  %v1225_v34 = vsub.f32 %v9318_v46, %v15645_v57 }
  0x7a   :  { %1122 = vmatpush.msrb.mxu0 %v9218_v33  ;;  %1268 = vmatpush.msrb.mxu2 %v9221_v7  ;;  %v9396_v57 = vsub.f32 %v105_v50, %v9368_v3 }
  0x7b   :  { %1179 = vmatpush.msrb.mxu1 %v1178_v31  ;;  %1312 = vmatpush.msrb.mxu3 %v9172_v9  ;;  %v9348_v31 = vand.u32 4294901760, %v106_v32  ;;  %v1226_v50 = vand.u32 4294901760, %v1225_v34 }
  0x7c   :  { %1124 = vmatpush.msrb.mxu0 %v9233_v35  ;;  %1271 = vmatpush.msrb.mxu2 %v9237_v43  ;;  %v15653_v34 = vand.u32 4294901760, %v9396_v57 }
  0x7d   :  { %1185 = vmatpush.msrb.mxu1 %v1184_v36  ;;  %1314 = vmatpush.msrb.mxu3 %v9188_v14  ;;  %v9359_v36 = vsub.f32 %v107_v61, %v9323_v41  ;;  %v15648_v61 = vand.u32 4294901760, %v9338_v52 }
  0x7e   :  { %1126 = vmatpush.msrb.mxu0 %v9251_v53  ;;  %1274 = vmatpush.msrb.mxu2 %v9255_v21 }
  0x7f   :  { %1191 = vmatpush.msrb.mxu1 %v1190_v0  ;;  %1316 = vmatpush.msrb.mxu3 %v9202_v25  ;;  %v1219_v0 = vsub.f32 %v9300_v47, %v15641_v49  ;;  %v9383_v49 = vsub.f32 %v106_v32, %v9348_v31  ;;  %v15650_v24 = vand.u32 4294901760, %v9359_v36  ;;  %v15651_v32 = vand.u32 4294901760, %v9366_v5 }
  0x80   :  { %1128 = vmatpush.msrb.mxu0 %v9268_v8  ;;  %1277 = vmatpush.msrb.mxu2 %v9272_v26  ;;  %v1231_v12 = vsub.f32 %v9338_v52, %v15648_v61  ;;  %v9418_v61 = vsub.f32 %v103_v18, %v9388_v63 }
  0x81   :  { %1197 = vmatpush.msrb.mxu1 %v1196_v59  ;;  %1318 = vmatpush.msrb.mxu3 %v9218_v33  ;;  %v9376_v59 = vand.u32 4294901760, %v104_v51  ;;  %v1220_v55 = vand.u32 4294901760, %v1219_v0  ;;  %v15654_v0 = vand.u32 4294901760, %v9383_v49 }
  0x82   :  { %1130 = vmatpush.msrb.mxu0 %v9280_v38  ;;  %1280 = vmatpush.msrb.mxu2 %v9284_v56  ;;  %v1232_v18 = vand.u32 4294901760, %v1231_v12  ;;  %v15656_v17 = vand.u32 4294901760, %v9418_v61 }
  0x83   :  { %1203 = vmatpush.msrb.mxu1 %v1202_v42  ;;  %1320 = vmatpush.msrb.mxu3 %v9233_v35  ;;  %v102_v42 = vld [vmem:[%s15614_s1 + $0x1d0] sm:$0xff]  ;;  %v9404_v11 = vsub.f32 %v104_v51, %v9376_v59  ;;  %v1488_v51 = vsub.f32 %v9359_v36, %v15650_v24 }
  0x84   :  { %1132 = vmatpush.msrb.mxu0 %v9307_v4  ;;  %1283 = vmatpush.msrb.mxu2 %v9300_v47  ;;  %v9411_v1 = vand.u32 4294901760, %v102_v42 }
  0x85   :  { %1209 = vmatpush.msrb.mxu1 %v1208_v45  ;;  %1322 = vmatpush.msrb.mxu3 %v9251_v53  ;;  %v101_v45 = vld [vmem:[%s15614_s1 + $0x1c8] sm:$0xff]  ;;  %v15655_v24 = vand.u32 4294901760, %v9404_v11  ;;  %v1489_v12 = vand.u32 4294901760, %v1488_v51  ;;  %v9462_v51 = vand.u32 4294901760, %v99_v22 }
  0x86   :  { %1134 = vmatpush.msrb.mxu0 %v9332_v44  ;;  %1286 = vmatpush.msrb.mxu2 %v9318_v46  ;;  %v9429_v58 = vand.u32 4294901760, %v101_v45 }
  0x87   :  { %1215 = vmatpush.msrb.mxu1 %v1214_v39  ;;  %1324 = vmatpush.msrb.mxu3 %v9268_v8  ;;  %v100_v39 = vld [vmem:[%s15614_s1 + $0x1c0] sm:$0xff]  ;;  %v1506_v48 = vsub.f32 %v9404_v11, %v15655_v24  ;;  %v1512_v24 = vsub.f32 %v9418_v61, %v15656_v17 }
  0x88   :  { %1140 = vmatmul.f32.vlgmr.msrb.gmra.mxu0 %v1139_v54  ;;  %1289 = vmatpush.msrb.mxu2 %v9338_v52  ;;  %v1237_v54 = vsub.f32 %v9366_v5, %v15651_v32  ;;  %v9445_v32 = vand.u32 4294901760, %v100_v39 }
  0x89   :  { %1341 = vmatpush.msra.mxu0 %v1146_v16  ;;  %1221 = vmatpush.msrb.mxu1 %v1220_v55  ;;  %v1494_v16 = vsub.f32 %v9383_v49, %v15654_v0  ;;  %v9443_v55 = vsub.f32 %v102_v42, %v9411_v1  ;;  %v1500_v42 = vsub.f32 %v9396_v57, %v15653_v34  ;;  %v9479_v0 = vand.u32 4294901760, %v98_v60 }
  0x8a   :  { %1326 = vmatpush.msrb.mxu3 %v9280_v38  ;;  %1292 = vmatpush.msrb.mxu2 %v9366_v5  ;;  %v1513_v17 = vand.u32 4294901760, %v1512_v24  ;;  %v15912_v24 = vand.u32 4294901760, %v9205_v40  ;;  %v93_v40 = vld [vmem:[%s15614_s1 + $0x188] sm:$0xff] }
  0x8b   :  { %1345 = vmatpush.msra.mxu0 %v1152_v13  ;;  %1227 = vmatpush.msrb.mxu1 %v1226_v50  ;;  %v1238_v13 = vand.u32 4294901760, %v1237_v54  ;;  %v9460_v50 = vsub.f32 %v101_v45, %v9429_v58  ;;  %v15909_v54 = vand.u32 4294901760, %v9156_v29  ;;  %v1495_v45 = vand.u32 4294901760, %v1494_v16  ;;  %v96_v29 = vld [vmem:[%s15614_s1 + $0x1a0] sm:$0xff] }
  0x8c   :  { %1328 = vmatpush.msrb.mxu3 %v9307_v4  ;;  %1295 = vmatmul.f32.vlgmr.msrb.gmra.mxu2 %v9292_v23  ;;  %v15657_v34 = vand.u32 4294901760, %v9443_v55  ;;  %v15910_v23 = vand.u32 4294901760, %v9161_v19  ;;  %v9492_v16 = vsub.f32 %v99_v22, %v9462_v51 }
  0x8d   :  { %1349 = vmatpush.msra.mxu0 %v1158_v37  ;;  %1445 = vmatpush.msra.mxu2 %v9323_v41  ;;  %v97_v37 = vld [vmem:[%s15614_s1 + $0x1a8] sm:$0xff] }
  0x8e   :  { %1233 = vmatpush.msrb.mxu1 %v1232_v18  ;;  %1330 = vmatpush.msrb.mxu3 %v9332_v44  ;;  %v9477_v18 = vsub.f32 %v100_v39, %v9445_v32  ;;  %v15659_v39 = vand.u32 4294901760, %v9460_v50  ;;  %v1518_v19 = vsub.f32 %v9443_v55, %v15657_v34 }
  0x8f   :  { %1334 = vmatmul.f32.vlgmr.msrb.gmra.mxu3 %v1137_v10  ;;  %1353 = vmatpush.msra.mxu0 %v15909_v54  ;;  %v1501_v10 = vand.u32 4294901760, %v1500_v42  ;;  %v9494_v54 = vand.u32 4294901760, %v97_v37  ;;  %v9507_v42 = vsub.f32 %v98_v60, %v9479_v0 }
  0x90   :  { %1447 = vmatpush.msra.mxu2 %v9348_v31  ;;  %1490 = vmatpush.msra.mxu3 %v1489_v12  ;;  %v1507_v12 = vand.u32 4294901760, %v1506_v48  ;;  %v15658_v22 = vand.u32 4294901760, %v9477_v18  ;;  %v15911_v48 = vand.u32 4294901760, %v9178_v27  ;;  %v94_v27 = vld [vmem:[%s15614_s1 + $0x190] sm:$0xff] }
  0x91   :  { %1239 = vmatpush.msrb.mxu1 %v1238_v13  ;;  %1357 = vmatpush.msra.mxu0 %v15910_v23  ;;  %v95_v13 = vld [vmem:[%s15614_s1 + $0x198] sm:$0xff]  ;;  %v9509_v23 = vand.u32 4294901760, %v96_v29  ;;  %v9520_v60 = vsub.f32 %v97_v37, %v9494_v54 }
  0x92   :  { %1241 = vmatmul.f32.vlgmr.msrb.gmra.mxu1 %v9262_v30  ;;  %1449 = vmatpush.msra.mxu2 %v9368_v3  ;;  %v9522_v34 = vand.u32 4294901760, %v95_v13  ;;  %v1530_v37 = vsub.f32 %v9477_v18, %v15658_v22  ;;  %v15915_v22 = vand.u32 4294901760, %v9255_v21  ;;  %v15917_v21 = vand.u32 4294901760, %v9272_v26 }
  0x93   :  { %1408 = vmatpush.msra.mxu1 %v9092_v28  ;;  %1496 = vmatpush.msra.mxu3 %v1495_v45  ;;  %v1524_v28 = vsub.f32 %v9460_v50, %v15659_v39  ;;  %v15660_v45 = vand.u32 4294901760, %v9492_v16 }
  0x94   :  { %1361 = vmatpush.msra.mxu0 %v15911_v48  ;;  %1451 = vmatpush.msra.mxu2 %v9376_v59  ;;  %v9536_v48 = vsub.f32 %v96_v29, %v9509_v23  ;;  %v9555_v39 = vsub.f32 %v95_v13, %v9522_v34 }
  0x95   :  { %1410 = vmatpush.msra.mxu1 %v9102_v62  ;;  %1502 = vmatpush.msra.mxu3 %v1501_v10  ;;  %v1519_v62 = vand.u32 4294901760, %v1518_v19  ;;  %v15661_v10 = vand.u32 4294901760, %v9507_v42  ;;  %v1525_v29 = vand.u32 4294901760, %v1524_v28  ;;  %v1536_v19 = vsub.f32 %v9492_v16, %v15660_v45 }
  0x96   :  { %1365 = vmatpush.msra.mxu0 %v15912_v24  ;;  %1453 = vmatpush.msra.mxu2 %v9388_v63  ;;  %v24_v24 = vld [vmem:[%s15613_s0 + $0x18] sm:$0xff]  ;;  %v1531_v28 = vand.u32 4294901760, %v1530_v37  ;;  %v1553_v45 = vand.u32 4294901760, %v9536_v48 }
  0x97   :  { %1412 = vmatpush.msra.mxu1 %v9112_v6  ;;  %1508 = vmatpush.msra.mxu3 %v1507_v12  ;;  %v15913_v6 = vand.u32 4294901760, %v9221_v7  ;;  %v9547_v12 = vand.u32 4294901760, %v94_v27  ;;  %v92_v7 = vld [vmem:[%s15614_s1 + $0x180] sm:$0xff]  ;;  %v1542_v13 = vsub.f32 %v9507_v42, %v15661_v10  ;;  %v1559_v10 = vand.u32 4294901760, %v9555_v39 }
  0x98   :  { %1455 = vmatpush.msra.mxu2 %v9411_v1 }
  0x99   :  { %1369 = vmatpush.msra.mxu0 %v15913_v6  ;;  %1414 = vmatpush.msra.mxu1 %v9125_v15  ;;  %v15914_v6 = vand.u32 4294901760, %v9237_v43  ;;  %v9563_v15 = vand.u32 4294901760, %v93_v40  ;;  %v9576_v43 = vsub.f32 %v94_v27, %v9547_v12 }
  0x9a   :  { %1514 = vmatpush.msra.mxu3 %v1513_v17  ;;  %1457 = vmatpush.msra.mxu2 %v9429_v58  ;;  %v9565_v17 = vand.u32 4294901760, %v24_v24 }
  0x9b   :  { %1373 = vmatpush.msra.mxu0 %v15914_v6  ;;  %1416 = vmatpush.msra.mxu1 %v9135_v2  ;;  %v9578_v6 = vand.u32 4294901760, %v92_v7  ;;  %v1537_v2 = vand.u32 4294901760, %v1536_v19  ;;  %v15918_v19 = vand.u32 4294901760, %v9284_v56  ;;  %v1565_v26 = vand.u32 4294901760, %v9576_v43 }
  0x9c   :  { %1520 = vmatpush.msra.mxu3 %v1519_v62  ;;  %1459 = vmatpush.msra.mxu2 %v9445_v32  ;;  %v15916_v62 = vand.u32 4294901760, %v9520_v60  ;;  %v9592_v27 = vsub.f32 %v24_v24, %v9565_v17  ;;  %v1560_v24 = vsub.f32 %v9555_v39, %v1559_v10 }
  0x9d   :  { %1377 = vmatpush.msra.mxu0 %v15915_v22  ;;  %1418 = vmatpush.msra.mxu1 %v9146_v20  ;;  %v9589_v22 = vsub.f32 %v93_v40, %v9563_v15  ;;  %v1543_v20 = vand.u32 4294901760, %v1542_v13  ;;  %v9603_v40 = vsub.f32 %v92_v7, %v9578_v6 }
  0x9e   :  { %1526 = vmatpush.msra.mxu3 %v1525_v29  ;;  %v1548_v37 = vsub.f32 %v9520_v60, %v15916_v62  ;;  %1461 = vmatpush.msra.mxu2 %v9462_v51  ;;  %v1554_v29 = vsub.f32 %v9536_v48, %v1553_v45  ;;  %v1478_v13 = vand.u32 4294901760, %v9592_v27  ;;  %v1561_v62 = vand.u32 4294901760, %v1560_v24 }
  0x9f   :  { %1381 = vmatpush.msra.mxu0 %v15917_v21  ;;  %1420 = vmatpush.msra.mxu1 %v9172_v9  ;;  %v1571_v56 = vand.u32 4294901760, %v9589_v22 }
  0xa0   :  { %1532 = vmatpush.msra.mxu3 %v1531_v28  ;;  %1463 = vmatpush.msra.mxu2 %v9479_v0  ;;  %v1549_v9 = vand.u32 4294901760, %v1548_v37  ;;  %v15919_v28 = vand.u32 4294901760, %v9300_v47  ;;  %v1555_v7 = vand.u32 4294901760, %v1554_v29  ;;  %v1566_v47 = vsub.f32 %v9576_v43, %v1565_v26  ;;  %v115_v29 = vld [vmem:[%s15614_s1 + $0x238] sm:$0xff] }
  0xa1   :  { %1385 = vmatpush.msra.mxu0 %v15918_v19  ;;  %1422 = vmatpush.msra.mxu1 %v9188_v14  ;;  %v15920_v14 = vand.u32 4294901760, %v9318_v46  ;;  %v15921_v37 = vand.u32 4294901760, %v9338_v52  ;;  %v1479_v46 = vsub.f32 %v9592_v27, %v1478_v13 }
  0xa2   :  { %1538 = vmatpush.msra.mxu3 %v1537_v2  ;;  %1465 = vmatpush.msra.mxu2 %v9494_v54  ;;  %v1577_v2 = vand.u32 4294901760, %v9603_v40  ;;  %v1567_v52 = vand.u32 4294901760, %v1566_v47 }
  0xa3   :  { %1389 = vmatpush.msra.mxu0 %v15919_v28  ;;  %1424 = vmatpush.msra.mxu1 %v9202_v25  ;;  %v1572_v25 = vsub.f32 %v9589_v22, %v1571_v56 }
  0xa4   :  { %1544 = vmatpush.msra.mxu3 %v1543_v20  ;;  %1467 = vmatpush.msra.mxu2 %v9509_v23  ;;  %v1578_v21 = vsub.f32 %v9603_v40, %v1577_v2 }
  0xa5   :  { %1393 = vmatpush.msra.mxu0 %v15920_v14  ;;  %1426 = vmatpush.msra.mxu1 %v9218_v33  ;;  %v15922_v33 = vand.u32 4294901760, %v9366_v5  ;;  %v1573_v20 = vand.u32 4294901760, %v1572_v25 }
  0xa6   :  { %1550 = vmatpush.msra.mxu3 %v1549_v9  ;;  %1469 = vmatpush.msra.mxu2 %v9522_v34  ;;  %v1579_v5 = vand.u32 4294901760, %v1578_v21  ;;  %v114_v9 = vld [vmem:[%s15614_s1 + $0x230] sm:$0xff]  ;;  %v111_v21 = vld [vmem:[%s15614_s1 + $0x218] sm:$0xff] }
  0xa7   :  { %1397 = vmatpush.msra.mxu0 %v15921_v37  ;;  %1428 = vmatpush.msra.mxu1 %v9233_v35  ;;  %v1480_v35 = vand.u32 4294901760, %v1479_v46  ;;  %v112_v37 = vld [vmem:[%s15614_s1 + $0x220] sm:$0xff] }
  0xa8   :  { %1556 = vmatpush.msra.mxu3 %v1555_v7  ;;  %1471 = vmatpush.msra.mxu2 %v9547_v12 }
  0xa9   :  { %1401 = vmatpush.msra.mxu0 %v15922_v33  ;;  %1430 = vmatpush.msra.mxu1 %v9251_v53  ;;  %v15923_v53 = vand.u32 4294901760, %v9359_v36 }
  0xaa   :  { %1562 = vmatpush.msra.mxu3 %v1561_v62  ;;  %1403 = vmatmul.f32.vlgmr.msra.gmra.mxu0 %v9262_v30 }
  0xab   :  { %1473 = vmatpush.msra.mxu2 %v9563_v15  ;;  %1588 = vmatpush.msrb.mxu0 %v9359_v36 }
  0xac   :  { %1432 = vmatpush.msra.mxu1 %v9268_v8  ;;  %1568 = vmatpush.msra.mxu3 %v1567_v52  ;;  %v15924_v8 = vand.u32 4294901760, %v9383_v49 }
  0xad   :  { %1475 = vmatpush.msra.mxu2 %v9578_v6  ;;  %1591 = vmatpush.msrb.mxu0 %v9383_v49  ;;  %v15932_v49 = vand.u32 4294901760, %v9507_v42 }
  0xae   :  { %1434 = vmatpush.msra.mxu1 %v9280_v38  ;;  %1574 = vmatpush.msra.mxu3 %v1573_v20  ;;  %v15925_v38 = vand.u32 4294901760, %v9396_v57 }
  0xaf   :  { %1481 = vmatmul.f32.vlgmr.msra.gmra.mxu2 %v1480_v35  ;;  %1594 = vmatpush.msrb.mxu0 %v9396_v57  ;;  %v9863_v35 = vand.u32 4294901760, %v112_v37 }
  0xb0   :  { %1682 = vmatpush.msrb.mxu2 %v15923_v53  ;;  %1436 = vmatpush.msra.mxu1 %v9307_v4  ;;  %v15926_v4 = vand.u32 4294901760, %v9404_v11 }
  0xb1   :  { %1580 = vmatpush.msra.mxu3 %v1579_v5  ;;  %1597 = vmatpush.msrb.mxu0 %v9404_v11  ;;  %v15929_v11 = vand.u32 4294901760, %v9460_v50 }
  0xb2   :  { %1582 = vmatmul.f32.vlgmr.msra.gmra.mxu3 %v9565_v17  ;;  %1686 = vmatpush.msrb.mxu2 %v15924_v8 }
  0xb3   :  { %1749 = vmatpush.msrb.mxu3 %v9323_v41  ;;  %1438 = vmatpush.msra.mxu1 %v9332_v44  ;;  %v15931_v44 = vand.u32 4294901760, %v9492_v16 }
  0xb4   :  { %1600 = vmatpush.msrb.mxu0 %v9418_v61  ;;  %1440 = vmatmul.f32.vlgmr.msra.gmra.mxu1 %v9262_v30  ;;  %v15927_v30 = vand.u32 4294901760, %v9418_v61  ;;  %v120_v61 = vld [vmem:[%s15614_s1 + $0x260] sm:$0xff] }
  0xb5   :  { %1690 = vmatpush.msrb.mxu2 %v15925_v38  ;;  %1641 = vmatpush.msrb.mxu1 %v9323_v41  ;;  %v15928_v41 = vand.u32 4294901760, %v9443_v55  ;;  %v110_v38 = vld [vmem:[%s15614_s1 + $0x210] sm:$0xff] }
  0xb6   :  { %1751 = vmatpush.msrb.mxu3 %v9348_v31  ;;  %1603 = vmatpush.msrb.mxu0 %v9443_v55  ;;  %v119_v55 = vld [vmem:[%s15614_s1 + $0x258] sm:$0xff] }
  0xb7   :  { %1694 = vmatpush.msrb.mxu2 %v15926_v4  ;;  %1643 = vmatpush.msrb.mxu1 %v9348_v31  ;;  %v121_v31 = vld [vmem:[%s15614_s1 + $0x268] sm:$0xff] }
  0xb8   :  { %1753 = vmatpush.msrb.mxu3 %v9368_v3  ;;  %1606 = vmatpush.msrb.mxu0 %v9460_v50 }
  0xb9   :  { %1698 = vmatpush.msrb.mxu2 %v15927_v30  ;;  %1645 = vmatpush.msrb.mxu1 %v9368_v3  ;;  %v15930_v3 = vand.u32 4294901760, %v9477_v18 }
  0xba   :  { %1755 = vmatpush.msrb.mxu3 %v9376_v59  ;;  %1609 = vmatpush.msrb.mxu0 %v9477_v18  ;;  %v9748_v18 = vand.u32 4294901760, %v119_v55 }
  0xbb   :  { %1702 = vmatpush.msrb.mxu2 %v15928_v41  ;;  %1647 = vmatpush.msrb.mxu1 %v9376_v59  ;;  %v9724_v59 = vand.u32 4294901760, %v121_v31  ;;  %v9880_v41 = vand.u32 4294901760, %v111_v21 }
  0xbc   :  { %1757 = vmatpush.msrb.mxu3 %v9388_v63  ;;  %1612 = vmatpush.msrb.mxu0 %v9492_v16 }
  0xbd   :  { %1706 = vmatpush.msrb.mxu2 %v15929_v11  ;;  %1649 = vmatpush.msrb.mxu1 %v9388_v63  ;;  %v123_v63 = vld [vmem:[%s15614_s1 + $0x278] sm:$0xff]  ;;  %v9754_v16 = vsub.f32 %v121_v31, %v9724_v59  ;;  %v109_v31 = vld [vmem:[%s15614_s1 + $0x208] sm:$0xff] }
  0xbe   :  { %1759 = vmatpush.msrb.mxu3 %v9411_v1  ;;  %1615 = vmatpush.msrb.mxu0 %v9507_v42  ;;  %v9704_v57 = vand.u32 4294901760, %v123_v63  ;;  %v117_v42 = vld [vmem:[%s15614_s1 + $0x248] sm:$0xff] }
  0xbf   :  { %1710 = vmatpush.msrb.mxu2 %v15930_v3  ;;  %1651 = vmatpush.msrb.mxu1 %v9411_v1  ;;  %v122_v1 = vld [vmem:[%s15614_s1 + $0x270] sm:$0xff] }
  0xc0   :  { %1761 = vmatpush.msrb.mxu3 %v9429_v58  ;;  %1618 = vmatpush.msrb.mxu0 %v9520_v60  ;;  %v9714_v36 = vand.u32 4294901760, %v122_v1 }
  0xc1   :  { %1714 = vmatpush.msrb.mxu2 %v15931_v44  ;;  %1653 = vmatpush.msrb.mxu1 %v9429_v58  ;;  %v15933_v58 = vand.u32 4294901760, %v9520_v60  ;;  %v9774_v60 = vsub.f32 %v119_v55, %v9748_v18 }
  0xc2   :  { %1763 = vmatpush.msrb.mxu3 %v9445_v32  ;;  %1621 = vmatpush.msrb.mxu0 %v9536_v48  ;;  %v9740_v50 = vsub.f32 %v122_v1, %v9714_v36  ;;  %v9784_v48 = vand.u32 4294901760, %v117_v42 }
  0xc3   :  { %1718 = vmatpush.msrb.mxu2 %v15932_v49  ;;  %1655 = vmatpush.msrb.mxu1 %v9445_v32  ;;  %v9727_v32 = vsub.f32 %v123_v63, %v9704_v57  ;;  %v9892_v49 = vand.u32 4294901760, %v110_v38 }
  0xc4   :  { %1765 = vmatpush.msrb.mxu3 %v9462_v51  ;;  %1624 = vmatpush.msrb.mxu0 %v9555_v39 }
  0xc5   :  { %1722 = vmatpush.msrb.mxu2 %v15933_v58  ;;  %1657 = vmatpush.msrb.mxu1 %v9462_v51  ;;  %v118_v51 = vld [vmem:[%s15614_s1 + $0x250] sm:$0xff]  ;;  %v1828_v39 = vand.u32 4294901760, %v9727_v32  ;;  %v9896_v58 = vsub.f32 %v112_v37, %v9863_v35 }
  0xc6   :  { %1767 = vmatpush.msrb.mxu3 %v9479_v0  ;;  %1627 = vmatpush.msrb.mxu0 %v9576_v43  ;;  %v1840_v43 = vand.u32 4294901760, %v9754_v16 }
  0xc7   :  { %1726 = vmatpush.msrb.mxu2 %v1553_v45  ;;  %1659 = vmatpush.msrb.mxu1 %v9479_v0  ;;  %v9737_v0 = vand.u32 4294901760, %v120_v61 }
  0xc8   :  { %1769 = vmatpush.msrb.mxu3 %v9494_v54  ;;  %1630 = vmatpush.msrb.mxu0 %v9589_v22  ;;  %v1841_v28 = vsub.f32 %v9754_v16, %v1840_v43 }
  0xc9   :  { %1730 = vmatpush.msrb.mxu2 %v1559_v10  ;;  %1661 = vmatpush.msrb.mxu1 %v9494_v54  ;;  %v9759_v54 = vand.u32 4294901760, %v118_v51  ;;  %v9768_v45 = vsub.f32 %v120_v61, %v9737_v0  ;;  %v116_v10 = vld [vmem:[%s15614_s1 + $0x240] sm:$0xff] }
  0xca   :  { %1771 = vmatpush.msrb.mxu3 %v9509_v23  ;;  %1633 = vmatpush.msrb.mxu0 %v9603_v40  ;;  %v9800_v19 = vand.u32 4294901760, %v116_v10  ;;  %v15672_v40 = vand.u32 4294901760, %v9774_v60  ;;  %v1842_v25 = vand.u32 4294901760, %v1841_v28  ;;  %v15662_v28 = vand.u32 4294901760, %v9896_v58 }
  0xcb   :  { %1734 = vmatpush.msrb.mxu2 %v1565_v26  ;;  %1663 = vmatpush.msrb.mxu1 %v9509_v23  ;;  %v1834_v23 = vand.u32 4294901760, %v9740_v50  ;;  %v9790_v22 = vsub.f32 %v118_v51, %v9759_v54  ;;  %v15675_v26 = vand.u32 4294901760, %v9768_v45 }
  0xcc   :  { %1773 = vmatpush.msrb.mxu3 %v9522_v34  ;;  %1636 = vmatmul.f32.vlgmr.msrb.gmra.mxu0 %v9592_v27  ;;  %v9833_v62 = vsub.f32 %v116_v10, %v9800_v19  ;;  %v9912_v10 = vsub.f32 %v111_v21, %v9880_v41 }
  0xcd   :  { %1738 = vmatpush.msrb.mxu2 %v1571_v56  ;;  %1786 = vmatpush.msra.mxu0 %v9704_v57  ;;  %v9814_v56 = vand.u32 4294901760, %v115_v29  ;;  %v15670_v7 = vand.u32 4294901760, %v9790_v22  ;;  %v1847_v47 = vsub.f32 %v9768_v45, %v15675_v26 }
  0xce   :  { %1665 = vmatpush.msrb.mxu1 %v9522_v34  ;;  %1775 = vmatpush.msrb.mxu3 %v9547_v12  ;;  %v1829_v34 = vsub.f32 %v9727_v32, %v1828_v39  ;;  %v15667_v5 = vand.u32 4294901760, %v9833_v62 }
  0xcf   :  { %1742 = vmatpush.msrb.mxu2 %v1577_v2  ;;  %1788 = vmatpush.msra.mxu0 %v9714_v36  ;;  %v9830_v2 = vand.u32 4294901760, %v114_v9  ;;  %v9849_v27 = vsub.f32 %v115_v29, %v9814_v56  ;;  %v1859_v52 = vsub.f32 %v9790_v22, %v15670_v7  ;;  %v1848_v20 = vand.u32 4294901760, %v1847_v47 }
  0xd0   :  { %1667 = vmatpush.msrb.mxu1 %v9547_v12  ;;  %1777 = vmatpush.msrb.mxu3 %v9563_v15  ;;  %v1835_v12 = vsub.f32 %v9740_v50, %v1834_v23  ;;  %v1830_v24 = vand.u32 4294901760, %v1829_v34  ;;  %v1871_v63 = vsub.f32 %v9833_v62, %v15667_v5  ;;  %v139_v34 = vld [vmem:[%s15614_s1 + $0x2f8] sm:$0xff]  ;;  %v9919_v29 = vand.u32 4294901760, %v109_v31 }
  0xd1   :  { %1744 = vmatmul.f32.vlgmr.msrb.gmra.mxu2 %v9565_v17  ;;  %1790 = vmatpush.msra.mxu0 %v9724_v59  ;;  %v9867_v53 = vsub.f32 %v114_v9, %v9830_v2  ;;  %v15666_v11 = vand.u32 4294901760, %v9849_v27  ;;  %v1860_v44 = vand.u32 4294901760, %v1859_v52  ;;  %v9935_v47 = vand.u32 4294901760, %v139_v34 }
  0xd2   :  { %1929 = vmatpush.msra.mxu2 %v9727_v32  ;;  %1669 = vmatpush.msrb.mxu1 %v9563_v15  ;;  %v9817_v15 = vsub.f32 %v117_v42, %v9784_v48  ;;  %v1836_v14 = vand.u32 4294901760, %v1835_v12  ;;  %v108_v12 = vld [vmem:[%s15614_s1 + $0x200] sm:$0xff]  ;;  %v1872_v9 = vand.u32 4294901760, %v1871_v63  ;;  %v15664_v52 = vand.u32 4294901760, %v9912_v10  ;;  %v131_v32 = vld [vmem:[%s15614_s1 + $0x2b8] sm:$0xff] }
  0xd3   :  { %1779 = vmatpush.msrb.mxu3 %v9578_v6  ;;  %1792 = vmatpush.msra.mxu0 %v9737_v0  ;;  %v15665_v1 = vand.u32 4294901760, %v9867_v53  ;;  %v1877_v51 = vsub.f32 %v9849_v27, %v15666_v11  ;;  %v9950_v21 = vsub.f32 %v109_v31, %v9919_v29  ;;  %v136_v63 = vld [vmem:[%s15614_s1 + $0x2e0] sm:$0xff] }
  0xd4   :  { %1781 = vmatmul.f32.vlgmr.msrb.gmra.mxu3 %v9565_v17  ;;  %1932 = vmatpush.msra.mxu2 %v9740_v50  ;;  %v113_v17 = vld [vmem:[%s15614_s1 + $0x228] sm:$0xff]  ;;  %v15669_v33 = vand.u32 4294901760, %v9817_v15  ;;  %v130_v50 = vld [vmem:[%s15614_s1 + $0x2b0] sm:$0xff] }
  0xd5   :  { %1982 = vmatpush.msra.mxu3 %v9704_v57  ;;  %1671 = vmatpush.msrb.mxu1 %v9578_v6  ;;  %v1853_v6 = vsub.f32 %v9774_v60, %v15672_v40  ;;  %v9845_v46 = vand.u32 4294901760, %v113_v17  ;;  %v1878_v37 = vand.u32 4294901760, %v1877_v51 }
  0xd6   :  { %1794 = vmatpush.msra.mxu0 %v9748_v18  ;;  %1675 = vmatmul.f32.vlgmr.msrb.gmra.mxu1 %v1478_v13  ;;  %v25_v13 = vld [vmem:[%s15613_s0 + $0x20] sm:$0xff]  ;;  %v1865_v30 = vsub.f32 %v9817_v15, %v15669_v33 }
  0xd7   :  { %1935 = vmatpush.msra.mxu2 %v9754_v16  ;;  %1831 = vmatpush.msra.mxu1 %v1830_v24  ;;  %v1854_v8 = vand.u32 4294901760, %v1853_v6  ;;  %v9874_v4 = vand.u32 4294901760, %v25_v13  ;;  %v9884_v3 = vsub.f32 %v113_v17, %v9845_v46  ;;  %v1883_v24 = vsub.f32 %v9867_v53, %v15665_v1  ;;  %v138_v6 = vld [vmem:[%s15614_s1 + $0x2f0] sm:$0xff] }
  0xd8   :  { %1984 = vmatpush.msra.mxu3 %v9714_v36  ;;  %1796 = vmatpush.msra.mxu0 %v9759_v54  ;;  %v1866_v55 = vand.u32 4294901760, %v1865_v30  ;;  %v9930_v17 = vsub.f32 %v110_v38, %v9892_v49  ;;  %v1895_v38 = vsub.f32 %v9896_v58, %v15662_v28 }
  0xd9   :  { %1938 = vmatpush.msra.mxu2 %v9768_v45  ;;  %1837 = vmatpush.msra.mxu1 %v1836_v14  ;;  %v9904_v61 = vsub.f32 %v25_v13, %v9874_v4  ;;  %v15663_v42 = vand.u32 4294901760, %v9884_v3  ;;  %v9944_v13 = vand.u32 4294901760, %v108_v12 }
  0xda   :  { %1986 = vmatpush.msra.mxu3 %v9724_v59  ;;  %1798 = vmatpush.msra.mxu0 %v9784_v48  ;;  %v15668_v30 = vand.u32 4294901760, %v9930_v17 }
  0xdb   :  { %1941 = vmatpush.msra.mxu2 %v9774_v60  ;;  %1843 = vmatpush.msra.mxu1 %v1842_v25  ;;  %v1819_v14 = vand.u32 4294901760, %v9904_v61  ;;  %v1889_v25 = vsub.f32 %v9884_v3, %v15663_v42  ;;  %v135_v42 = vld [vmem:[%s15614_s1 + $0x2d8] sm:$0xff] }
  0xdc   :  { %1988 = vmatpush.msra.mxu3 %v9737_v0  ;;  %1800 = vmatpush.msra.mxu0 %v9800_v19  ;;  %v10000_v5 = vand.u32 4294901760, %v135_v42 }
  0xdd   :  { %1944 = vmatpush.msra.mxu2 %v9790_v22  ;;  %1849 = vmatpush.msra.mxu1 %v1848_v20  ;;  %v137_v20 = vld [vmem:[%s15614_s1 + $0x2e8] sm:$0xff]  ;;  %v1820_v31 = vsub.f32 %v9904_v61, %v1819_v14  ;;  %v1890_v51 = vand.u32 4294901760, %v1889_v25  ;;  %v1896_v25 = vand.u32 4294901760, %v1895_v38 }
  0xde   :  { %1990 = vmatpush.msra.mxu3 %v9748_v18  ;;  %1802 = vmatpush.msra.mxu0 %v9814_v56  ;;  %v9980_v28 = vand.u32 4294901760, %v137_v20 }
  0xdf   :  { %1947 = vmatpush.msra.mxu2 %v9817_v15  ;;  %1855 = vmatpush.msra.mxu1 %v1854_v8  ;;  %v1884_v8 = vand.u32 4294901760, %v1883_v24  ;;  %v9978_v24 = vsub.f32 %v108_v12, %v9944_v13  ;;  %v1907_v12 = vsub.f32 %v9930_v17, %v15668_v30  ;;  %v1821_v1 = vand.u32 4294901760, %v1820_v31 }
  0xe0   :  { %1992 = vmatpush.msra.mxu3 %v9759_v54  ;;  %1804 = vmatpush.msra.mxu0 %v9830_v2  ;;  %v10008_v30 = vsub.f32 %v137_v20, %v9980_v28 }
  0xe1   :  { %1950 = vmatpush.msra.mxu2 %v9833_v62  ;;  %1861 = vmatpush.msra.mxu1 %v1860_v44  ;;  %v9960_v44 = vand.u32 4294901760, %v138_v6  ;;  %v1908_v20 = vand.u32 4294901760, %v1907_v12 }
  0xe2   :  { %1994 = vmatpush.msra.mxu3 %v9784_v48  ;;  %1806 = vmatpush.msra.mxu0 %v9845_v46  ;;  %v15676_v12 = vand.u32 4294901760, %v10008_v30 }
  0xe3   :  { %1953 = vmatpush.msra.mxu2 %v9849_v27  ;;  %1867 = vmatpush.msra.mxu1 %v1866_v55  ;;  %v9971_v55 = vsub.f32 %v139_v34, %v9935_v47  ;;  %v15671_v34 = vand.u32 4294901760, %v9950_v21 }
  0xe4   :  { %1996 = vmatpush.msra.mxu3 %v9800_v19  ;;  %1808 = vmatpush.msra.mxu0 %v9863_v35 }
  0xe5   :  { %1956 = vmatpush.msra.mxu2 %v9867_v53  ;;  %1873 = vmatpush.msra.mxu1 %v1872_v9  ;;  %v1901_v9 = vsub.f32 %v9912_v10, %v15664_v52  ;;  %v9995_v52 = vsub.f32 %v138_v6, %v9960_v44  ;;  %v15673_v11 = vand.u32 4294901760, %v9971_v55  ;;  %v15674_v6 = vand.u32 4294901760, %v9978_v24 }
  0xe6   :  { %1998 = vmatpush.msra.mxu3 %v9814_v56  ;;  %1810 = vmatpush.msra.mxu0 %v9880_v41  ;;  %v1913_v31 = vsub.f32 %v9950_v21, %v15671_v34  ;;  %v10030_v34 = vsub.f32 %v135_v42, %v10000_v5 }
  0xe7   :  { %1959 = vmatpush.msra.mxu2 %v9884_v3  ;;  %1879 = vmatpush.msra.mxu1 %v1878_v37  ;;  %v9988_v37 = vand.u32 4294901760, %v136_v63  ;;  %v1902_v38 = vand.u32 4294901760, %v1901_v9  ;;  %v15677_v9 = vand.u32 4294901760, %v9995_v52 }
  0xe8   :  { %2000 = vmatpush.msra.mxu3 %v9830_v2  ;;  %1812 = vmatpush.msra.mxu0 %v9892_v49  ;;  %v1914_v42 = vand.u32 4294901760, %v1913_v31  ;;  %v15679_v26 = vand.u32 4294901760, %v10030_v34 }
  0xe9   :  { %1962 = vmatpush.msra.mxu2 %v9896_v58  ;;  %1885 = vmatpush.msra.mxu1 %v1884_v8  ;;  %v134_v8 = vld [vmem:[%s15614_s1 + $0x2d0] sm:$0xff]  ;;  %v10016_v33 = vsub.f32 %v136_v63, %v9988_v37  ;;  %v2170_v63 = vsub.f32 %v9971_v55, %v15673_v11 }
  0xea   :  { %2002 = vmatpush.msra.mxu3 %v9845_v46  ;;  %1814 = vmatpush.msra.mxu0 %v9919_v29  ;;  %v10023_v7 = vand.u32 4294901760, %v134_v8 }
  0xeb   :  { %1965 = vmatpush.msra.mxu2 %v9912_v10  ;;  %1891 = vmatpush.msra.mxu1 %v1890_v51  ;;  %v133_v51 = vld [vmem:[%s15614_s1 + $0x2c8] sm:$0xff]  ;;  %v15678_v11 = vand.u32 4294901760, %v10016_v33  ;;  %v2171_v31 = vand.u32 4294901760, %v2170_v63  ;;  %v10074_v63 = vand.u32 4294901760, %v131_v32 }
  0xec   :  { %2004 = vmatpush.msra.mxu3 %v9863_v35  ;;  %1816 = vmatpush.msra.mxu0 %v9944_v13  ;;  %v10041_v40 = vand.u32 4294901760, %v133_v51 }
  0xed   :  { %1968 = vmatpush.msra.mxu2 %v9930_v17  ;;  %1897 = vmatpush.msra.mxu1 %v1896_v25  ;;  %v132_v25 = vld [vmem:[%s15614_s1 + $0x2c0] sm:$0xff]  ;;  %v2188_v16 = vsub.f32 %v10016_v33, %v15678_v11  ;;  %v2194_v11 = vsub.f32 %v10030_v34, %v15679_v26 }
  0xee   :  { %2006 = vmatpush.msra.mxu3 %v9880_v41  ;;  %1822 = vmatmul.f32.vlgmr.msra.gmra.mxu0 %v1821_v1  ;;  %v1919_v1 = vsub.f32 %v9978_v24, %v15674_v6  ;;  %v10057_v6 = vand.u32 4294901760, %v132_v25 }
  0xef   :  { %1971 = vmatpush.msra.mxu2 %v9950_v21  ;;  %2023 = vmatpush.msrb.mxu0 %v1828_v39  ;;  %v2176_v39 = vsub.f32 %v9995_v52, %v15677_v9  ;;  %v10091_v9 = vand.u32 4294901760, %v130_v50  ;;  %v2195_v26 = vand.u32 4294901760, %v2194_v11  ;;  %v15937_v11 = vand.u32 4294901760, %v9817_v15  ;;  %v125_v15 = vld [vmem:[%s15614_s1 + $0x288] sm:$0xff] }
  0xf0   :  { %1903 = vmatpush.msra.mxu1 %v1902_v38  ;;  %2008 = vmatpush.msra.mxu3 %v9892_v49  ;;  %v10055_v38 = vsub.f32 %v134_v8, %v10023_v7  ;;  %v2182_v8 = vsub.f32 %v10008_v30, %v15676_v12 }
  0xf1   :  { %1974 = vmatpush.msra.mxu2 %v9978_v24  ;;  %2027 = vmatpush.msrb.mxu0 %v1834_v23  ;;  %v1920_v23 = vand.u32 4294901760, %v1919_v1  ;;  %v15934_v1 = vand.u32 4294901760, %v9768_v45  ;;  %v128_v45 = vld [vmem:[%s15614_s1 + $0x2a0] sm:$0xff] }
  0xf2   :  { %1909 = vmatpush.msra.mxu1 %v1908_v20  ;;  %2010 = vmatpush.msra.mxu3 %v9919_v29  ;;  %v10072_v20 = vsub.f32 %v133_v51, %v10041_v40  ;;  %v2177_v51 = vand.u32 4294901760, %v2176_v39  ;;  %v15680_v12 = vand.u32 4294901760, %v10055_v38  ;;  %v10104_v39 = vsub.f32 %v131_v32, %v10074_v63 }
  0xf3   :  { %1977 = vmatmul.f32.vlgmr.msra.gmra.mxu2 %v9904_v61  ;;  %2031 = vmatpush.msrb.mxu0 %v1840_v43  ;;  %v129_v43 = vld [vmem:[%s15614_s1 + $0x2a8] sm:$0xff]  ;;  %v15935_v61 = vand.u32 4294901760, %v9774_v60 }
  0xf4   :  { %2127 = vmatpush.msrb.mxu2 %v9935_v47  ;;  %1915 = vmatpush.msra.mxu1 %v1914_v42  ;;  %v10089_v42 = vsub.f32 %v132_v25, %v10057_v6  ;;  %v15682_v25 = vand.u32 4294901760, %v10072_v20  ;;  %v2200_v60 = vsub.f32 %v10055_v38, %v15680_v12 }
  0xf5   :  { %2012 = vmatpush.msra.mxu3 %v9944_v13  ;;  %2035 = vmatpush.msrb.mxu0 %v15934_v1  ;;  %v10106_v1 = vand.u32 4294901760, %v129_v43 }
  0xf6   :  { %2016 = vmatmul.f32.vlgmr.msra.gmra.mxu3 %v1819_v14  ;;  %2129 = vmatpush.msrb.mxu2 %v9960_v44  ;;  %v2183_v14 = vand.u32 4294901760, %v2182_v8  ;;  %v15681_v32 = vand.u32 4294901760, %v10089_v42  ;;  %v10119_v8 = vsub.f32 %v130_v50, %v10091_v9 }
  0xf7   :  { %2172 = vmatpush.msrb.mxu3 %v2171_v31  ;;  %1921 = vmatpush.msra.mxu1 %v1920_v23  ;;  %v2189_v31 = vand.u32 4294901760, %v2188_v16  ;;  %v127_v23 = vld [vmem:[%s15614_s1 + $0x298] sm:$0xff]  ;;  %v15936_v16 = vand.u32 4294901760, %v9790_v22  ;;  %v10132_v50 = vsub.f32 %v129_v43, %v10106_v1  ;;  %v126_v22 = vld [vmem:[%s15614_s1 + $0x290] sm:$0xff] }
  0xf8   :  { %2039 = vmatpush.msrb.mxu0 %v15935_v61  ;;  %1923 = vmatmul.f32.vlgmr.msra.gmra.mxu1 %v9874_v4  ;;  %v10121_v61 = vand.u32 4294901760, %v128_v45  ;;  %v10134_v12 = vand.u32 4294901760, %v127_v23  ;;  %v2212_v43 = vsub.f32 %v10089_v42, %v15681_v32  ;;  %v15940_v32 = vand.u32 4294901760, %v9867_v53 }
  0xf9   :  { %2131 = vmatpush.msrb.mxu2 %v9980_v28  ;;  %2090 = vmatpush.msrb.mxu1 %v9704_v57  ;;  %v2206_v57 = vsub.f32 %v10072_v20, %v15682_v25  ;;  %v15942_v53 = vand.u32 4294901760, %v9884_v3 }
  0xfa   :  { %2178 = vmatpush.msrb.mxu3 %v2177_v51  ;;  %2043 = vmatpush.msrb.mxu0 %v15936_v16  ;;  %v15683_v51 = vand.u32 4294901760, %v10104_v39  ;;  %v10148_v16 = vsub.f32 %v128_v45, %v10121_v61  ;;  %v10167_v25 = vsub.f32 %v127_v23, %v10134_v12 }
  0xfb   :  { %2133 = vmatpush.msrb.mxu2 %v9988_v37  ;;  %2092 = vmatpush.msrb.mxu1 %v9714_v36  ;;  %v2201_v36 = vand.u32 4294901760, %v2200_v60  ;;  %v2207_v45 = vand.u32 4294901760, %v2206_v57  ;;  %v2213_v57 = vand.u32 4294901760, %v2212_v43 }
  0xfc   :  { %2184 = vmatpush.msrb.mxu3 %v2183_v14  ;;  %2047 = vmatpush.msrb.mxu0 %v15937_v11  ;;  %v15684_v14 = vand.u32 4294901760, %v10119_v8  ;;  %v26_v11 = vld [vmem:[%s15613_s0 + $0x28] sm:$0xff]  ;;  %v2218_v60 = vsub.f32 %v10104_v39, %v15683_v51  ;;  %v2235_v51 = vand.u32 4294901760, %v10148_v16 }
  0xfd   :  { %2135 = vmatpush.msrb.mxu2 %v10000_v5  ;;  %2094 = vmatpush.msrb.mxu1 %v9724_v59  ;;  %v15938_v59 = vand.u32 4294901760, %v9833_v62  ;;  %v124_v62 = vld [vmem:[%s15614_s1 + $0x280] sm:$0xff] }
  0xfe   :  { %2190 = vmatpush.msrb.mxu3 %v2189_v31  ;;  %v10159_v31 = vand.u32 4294901760, %v126_v22  ;;  %v2224_v23 = vsub.f32 %v10119_v8, %v15684_v14  ;;  %v2241_v14 = vand.u32 4294901760, %v10167_v25 }
  0xff   :  { %2051 = vmatpush.msrb.mxu0 %v15938_v59  ;;  %2137 = vmatpush.msrb.mxu2 %v10023_v7  ;;  %v15939_v59 = vand.u32 4294901760, %v9849_v27 }
 0x100   :  { %2096 = vmatpush.msrb.mxu1 %v9737_v0  ;;  %2196 = vmatpush.msrb.mxu3 %v2195_v26  ;;  %v10175_v0 = vand.u32 4294901760, %v125_v15  ;;  %v10177_v26 = vand.u32 4294901760, %v26_v11  ;;  %v10188_v27 = vsub.f32 %v126_v22, %v10159_v31 }
 0x101   :  { %2055 = vmatpush.msrb.mxu0 %v15939_v59  ;;  %2139 = vmatpush.msrb.mxu2 %v10041_v40  ;;  %v10190_v59 = vand.u32 4294901760, %v124_v62 }
 0x102   :  { %2098 = vmatpush.msrb.mxu1 %v9748_v18  ;;  %2202 = vmatpush.msrb.mxu3 %v2201_v36  ;;  %v2219_v18 = vand.u32 4294901760, %v2218_v60  ;;  %v15941_v36 = vand.u32 4294901760, %v10132_v50  ;;  %v10204_v22 = vsub.f32 %v26_v11, %v10177_v26  ;;  %v15943_v60 = vand.u32 4294901760, %v9896_v58 }
 0x103   :  { %2059 = vmatpush.msrb.mxu0 %v15940_v32  ;;  %2141 = vmatpush.msrb.mxu2 %v10057_v6  ;;  %v10201_v32 = vsub.f32 %v125_v15, %v10175_v0  ;;  %v2247_v3 = vand.u32 4294901760, %v10188_v27  ;;  %v10215_v15 = vsub.f32 %v124_v62, %v10190_v59  ;;  %v2242_v11 = vsub.f32 %v10167_v25, %v2241_v14 }
 0x104   :  { %2100 = vmatpush.msrb.mxu1 %v9759_v54  ;;  %2208 = vmatpush.msrb.mxu3 %v2207_v45  ;;  %v2230_v43 = vsub.f32 %v10132_v50, %v15941_v36  ;;  %v2225_v54 = vand.u32 4294901760, %v2224_v23  ;;  %v2236_v45 = vsub.f32 %v10148_v16, %v2235_v51  ;;  %v2160_v23 = vand.u32 4294901760, %v10204_v22 }
 0x105   :  { %2063 = vmatpush.msrb.mxu0 %v15942_v53  ;;  %2143 = vmatpush.msrb.mxu2 %v10074_v63  ;;  %v2253_v58 = vand.u32 4294901760, %v10201_v32  ;;  %v2243_v36 = vand.u32 4294901760, %v2242_v11 }
 0x106   :  { %2102 = vmatpush.msrb.mxu1 %v9784_v48  ;;  %2214 = vmatpush.msrb.mxu3 %v2213_v57  ;;  %v2231_v48 = vand.u32 4294901760, %v2230_v43  ;;  %v15944_v57 = vand.u32 4294901760, %v9912_v10  ;;  %v2237_v62 = vand.u32 4294901760, %v2236_v45  ;;  %v2248_v10 = vsub.f32 %v10188_v27, %v2247_v3  ;;  %v147_v45 = vld [vmem:[%s15614_s1 + $0x338] sm:$0xff] }
 0x107   :  { %2067 = vmatpush.msrb.mxu0 %v15943_v60  ;;  %2145 = vmatpush.msrb.mxu2 %v10091_v9  ;;  %v15946_v43 = vand.u32 4294901760, %v9950_v21 }
 0x108   :  { %2104 = vmatpush.msrb.mxu1 %v9800_v19  ;;  %2220 = vmatpush.msrb.mxu3 %v2219_v18  ;;  %v15945_v19 = vand.u32 4294901760, %v9930_v17  ;;  %v2259_v18 = vand.u32 4294901760, %v10215_v15  ;;  %v2161_v17 = vsub.f32 %v10204_v22, %v2160_v23  ;;  %v2249_v21 = vand.u32 4294901760, %v2248_v10 }
 0x109   :  { %2071 = vmatpush.msrb.mxu0 %v15944_v57  ;;  %2147 = vmatpush.msrb.mxu2 %v10106_v1 }
 0x10a   :  { %2106 = vmatpush.msrb.mxu1 %v9814_v56  ;;  %2226 = vmatpush.msrb.mxu3 %v2225_v54  ;;  %v2254_v56 = vsub.f32 %v10201_v32, %v2253_v58  ;;  %v2260_v53 = vsub.f32 %v10215_v15, %v2259_v18 }
 0x10b   :  { %2075 = vmatpush.msrb.mxu0 %v15945_v19  ;;  %2149 = vmatpush.msrb.mxu2 %v10121_v61 }
 0x10c   :  { %2108 = vmatpush.msrb.mxu1 %v9830_v2  ;;  %2232 = vmatpush.msrb.mxu3 %v2231_v48  ;;  %v15947_v2 = vand.u32 4294901760, %v9978_v24  ;;  %v2255_v54 = vand.u32 4294901760, %v2254_v56  ;;  %v2261_v24 = vand.u32 4294901760, %v2260_v53  ;;  %v146_v48 = vld [vmem:[%s15614_s1 + $0x330] sm:$0xff]  ;;  %v143_v53 = vld [vmem:[%s15614_s1 + $0x318] sm:$0xff] }
 0x10d   :  { %2079 = vmatpush.msrb.mxu0 %v15946_v43  ;;  %2151 = vmatpush.msrb.mxu2 %v10134_v12  ;;  %v144_v43 = vld [vmem:[%s15614_s1 + $0x320] sm:$0xff] }
 0x10e   :  { %2110 = vmatpush.msrb.mxu1 %v9845_v46  ;;  %2238 = vmatpush.msrb.mxu3 %v2237_v62  ;;  %v2162_v46 = vand.u32 4294901760, %v2161_v17 }
 0x10f   :  { %2083 = vmatpush.msrb.mxu0 %v15947_v2  ;;  %2153 = vmatpush.msrb.mxu2 %v10159_v31 }
 0x110   :  { %2112 = vmatpush.msrb.mxu1 %v9863_v35  ;;  %2244 = vmatpush.msrb.mxu3 %v2243_v36  ;;  %v15948_v35 = vand.u32 4294901760, %v9971_v55 }
 0x111   :  { %2085 = vmatmul.f32.vlgmr.msrb.gmra.mxu0 %v9874_v4  ;;  %2155 = vmatpush.msrb.mxu2 %v10175_v0 }
 0x112   :  { %2270 = vmatpush.msra.mxu0 %v9971_v55  ;;  %2114 = vmatpush.msrb.mxu1 %v9880_v41  ;;  %v15949_v41 = vand.u32 4294901760, %v9995_v52 }
 0x113   :  { %2250 = vmatpush.msrb.mxu3 %v2249_v21  ;;  %2157 = vmatpush.msrb.mxu2 %v10190_v59 }
 0x114   :  { %2273 = vmatpush.msra.mxu0 %v9995_v52  ;;  %2116 = vmatpush.msrb.mxu1 %v9892_v49  ;;  %v15950_v49 = vand.u32 4294901760, %v10008_v30  ;;  %v15957_v52 = vand.u32 4294901760, %v10119_v8 }
 0x115   :  { %2256 = vmatpush.msrb.mxu3 %v2255_v54  ;;  %2163 = vmatmul.f32.vlgmr.msrb.gmra.mxu2 %v2162_v46  ;;  %v10475_v46 = vand.u32 4294901760, %v144_v43 }
 0x116   :  { %2276 = vmatpush.msra.mxu0 %v10008_v30  ;;  %2364 = vmatpush.msra.mxu2 %v15948_v35 }
 0x117   :  { %2118 = vmatpush.msrb.mxu1 %v9919_v29  ;;  %2262 = vmatpush.msrb.mxu3 %v2261_v24  ;;  %v15951_v29 = vand.u32 4294901760, %v10016_v33 }
 0x118   :  { %2264 = vmatmul.f32.vlgmr.msrb.gmra.mxu3 %v10177_v26  ;;  %2279 = vmatpush.msra.mxu0 %v10016_v33  ;;  %v15954_v33 = vand.u32 4294901760, %v10072_v20 }
 0x119   :  { %2368 = vmatpush.msra.mxu2 %v15949_v41  ;;  %2431 = vmatpush.msra.mxu3 %v9935_v47 }
 0x11a   :  { %2120 = vmatpush.msrb.mxu1 %v9944_v13  ;;  %2282 = vmatpush.msra.mxu0 %v10030_v34  ;;  %v15956_v13 = vand.u32 4294901760, %v10104_v39 }
 0x11b   :  { %2122 = vmatmul.f32.vlgmr.msrb.gmra.mxu1 %v9874_v4  ;;  %2372 = vmatpush.msra.mxu2 %v15950_v49  ;;  %v15952_v4 = vand.u32 4294901760, %v10030_v34  ;;  %v152_v34 = vld [vmem:[%s15614_s1 + $0x360] sm:$0xff]  ;;  %v142_v49 = vld [vmem:[%s15614_s1 + $0x310] sm:$0xff] }
 0x11c   :  { %2323 = vmatpush.msra.mxu1 %v9935_v47  ;;  %2433 = vmatpush.msra.mxu3 %v9960_v44  ;;  %v15953_v47 = vand.u32 4294901760, %v10055_v38 }
 0x11d   :  { %2285 = vmatpush.msra.mxu0 %v10055_v38  ;;  %2376 = vmatpush.msra.mxu2 %v15951_v29  ;;  %v151_v38 = vld [vmem:[%s15614_s1 + $0x358] sm:$0xff] }
 0x11e   :  { %2325 = vmatpush.msra.mxu1 %v9960_v44  ;;  %2435 = vmatpush.msra.mxu3 %v9980_v28  ;;  %v153_v44 = vld [vmem:[%s15614_s1 + $0x368] sm:$0xff] }
 0x11f   :  { %2288 = vmatpush.msra.mxu0 %v10072_v20  ;;  %2380 = vmatpush.msra.mxu2 %v15952_v4 }
 0x120   :  { %2327 = vmatpush.msra.mxu1 %v9980_v28  ;;  %2437 = vmatpush.msra.mxu3 %v9988_v37  ;;  %v15955_v28 = vand.u32 4294901760, %v10089_v42 }
 0x121   :  { %2291 = vmatpush.msra.mxu0 %v10089_v42  ;;  %2384 = vmatpush.msra.mxu2 %v15953_v47  ;;  %v10360_v42 = vand.u32 4294901760, %v151_v38  ;;  %v10492_v47 = vand.u32 4294901760, %v143_v53 }
 0x122   :  { %2329 = vmatpush.msra.mxu1 %v9988_v37  ;;  %2439 = vmatpush.msra.mxu3 %v10000_v5  ;;  %v10336_v37 = vand.u32 4294901760, %v153_v44 }
 0x123   :  { %2294 = vmatpush.msra.mxu0 %v10104_v39  ;;  %2388 = vmatpush.msra.mxu2 %v15954_v33 }
 0x124   :  { %2331 = vmatpush.msra.mxu1 %v10000_v5  ;;  %2441 = vmatpush.msra.mxu3 %v10023_v7  ;;  %v155_v5 = vld [vmem:[%s15614_s1 + $0x378] sm:$0xff]  ;;  %v10366_v39 = vsub.f32 %v153_v44, %v10336_v37  ;;  %v141_v44 = vld [vmem:[%s15614_s1 + $0x308] sm:$0xff] }
 0x125   :  { %2297 = vmatpush.msra.mxu0 %v10119_v8  ;;  %2392 = vmatpush.msra.mxu2 %v15955_v28  ;;  %v10316_v30 = vand.u32 4294901760, %v155_v5  ;;  %v149_v8 = vld [vmem:[%s15614_s1 + $0x348] sm:$0xff] }
 0x126   :  { %2333 = vmatpush.msra.mxu1 %v10023_v7  ;;  %2443 = vmatpush.msra.mxu3 %v10041_v40  ;;  %v154_v7 = vld [vmem:[%s15614_s1 + $0x370] sm:$0xff] }
 0x127   :  { %2300 = vmatpush.msra.mxu0 %v10132_v50  ;;  %2396 = vmatpush.msra.mxu2 %v15956_v13  ;;  %v10326_v55 = vand.u32 4294901760, %v154_v7 }
 0x128   :  { %2335 = vmatpush.msra.mxu1 %v10041_v40  ;;  %2445 = vmatpush.msra.mxu3 %v10057_v6  ;;  %v15958_v40 = vand.u32 4294901760, %v10132_v50  ;;  %v10386_v50 = vsub.f32 %v151_v38, %v10360_v42 }
 0x129   :  { %2303 = vmatpush.msra.mxu0 %v10148_v16  ;;  %2400 = vmatpush.msra.mxu2 %v15957_v52  ;;  %v10352_v20 = vsub.f32 %v154_v7, %v10326_v55  ;;  %v10396_v16 = vand.u32 4294901760, %v149_v8  ;;  %v10504_v52 = vand.u32 4294901760, %v142_v49 }
 0x12a   :  { %2337 = vmatpush.msra.mxu1 %v10057_v6  ;;  %2447 = vmatpush.msra.mxu3 %v10074_v63  ;;  %v10339_v6 = vsub.f32 %v155_v5, %v10316_v30 }
 0x12b   :  { %2306 = vmatpush.msra.mxu0 %v10167_v25  ;;  %2404 = vmatpush.msra.mxu2 %v15958_v40  ;;  %v10508_v40 = vsub.f32 %v144_v43, %v10475_v46 }
 0x12c   :  { %2339 = vmatpush.msra.mxu1 %v10074_v63  ;;  %2449 = vmatpush.msra.mxu3 %v10091_v9  ;;  %v150_v63 = vld [vmem:[%s15614_s1 + $0x350] sm:$0xff]  ;;  %v2510_v25 = vand.u32 4294901760, %v10339_v6 }
 0x12d   :  { %2309 = vmatpush.msra.mxu0 %v10188_v27  ;;  %2408 = vmatpush.msra.mxu2 %v2235_v51  ;;  %v2522_v27 = vand.u32 4294901760, %v10366_v39 }
 0x12e   :  { %2341 = vmatpush.msra.mxu1 %v10091_v9  ;;  %2451 = vmatpush.msra.mxu3 %v10106_v1  ;;  %v10349_v9 = vand.u32 4294901760, %v152_v34 }
 0x12f   :  { %2312 = vmatpush.msra.mxu0 %v10201_v32  ;;  %2412 = vmatpush.msra.mxu2 %v2241_v14  ;;  %v148_v14 = vld [vmem:[%s15614_s1 + $0x340] sm:$0xff]  ;;  %v2523_v57 = vsub.f32 %v10366_v39, %v2522_v27 }
 0x130   :  { %2343 = vmatpush.msra.mxu1 %v10106_v1  ;;  %2453 = vmatpush.msra.mxu3 %v10121_v61  ;;  %v10371_v1 = vand.u32 4294901760, %v150_v63  ;;  %v10380_v51 = vsub.f32 %v152_v34, %v10349_v9  ;;  %v10412_v60 = vand.u32 4294901760, %v148_v14 }
 0x131   :  { %2315 = vmatpush.msra.mxu0 %v10215_v15  ;;  %2416 = vmatpush.msra.mxu2 %v2247_v3  ;;  %v15695_v15 = vand.u32 4294901760, %v10386_v50  ;;  %v2524_v56 = vand.u32 4294901760, %v2523_v57  ;;  %v15685_v57 = vand.u32 4294901760, %v10508_v40 }
 0x132   :  { %2345 = vmatpush.msra.mxu1 %v10121_v61  ;;  %2455 = vmatpush.msra.mxu3 %v10134_v12  ;;  %v2516_v61 = vand.u32 4294901760, %v10352_v20  ;;  %v10402_v32 = vsub.f32 %v150_v63, %v10371_v1  ;;  %v15698_v3 = vand.u32 4294901760, %v10380_v51  ;;  %v10445_v36 = vsub.f32 %v148_v14, %v10412_v60 }
 0x133   :  { %2318 = vmatmul.f32.vlgmr.msra.gmra.mxu0 %v10204_v22  ;;  %2420 = vmatpush.msra.mxu2 %v2253_v58  ;;  %v10426_v58 = vand.u32 4294901760, %v147_v45  ;;  %v10524_v14 = vsub.f32 %v143_v53, %v10492_v47 }
 0x134   :  { %2468 = vmatpush.msrb.mxu0 %v10316_v30  ;;  %2347 = vmatpush.msra.mxu1 %v10134_v12  ;;  %v2511_v12 = vsub.f32 %v10339_v6, %v2510_v25  ;;  %v15693_v62 = vand.u32 4294901760, %v10402_v32  ;;  %v2529_v10 = vsub.f32 %v10380_v51, %v15698_v3  ;;  %v15690_v24 = vand.u32 4294901760, %v10445_v36 }
 0x135   :  { %2457 = vmatpush.msra.mxu3 %v10159_v31  ;;  %2424 = vmatpush.msra.mxu2 %v2259_v18  ;;  %v10442_v18 = vand.u32 4294901760, %v146_v48  ;;  %v10461_v22 = vsub.f32 %v147_v45, %v10426_v58  ;;  %v10531_v45 = vand.u32 4294901760, %v141_v44 }
 0x136   :  { %2470 = vmatpush.msrb.mxu0 %v10326_v55  ;;  %2349 = vmatpush.msra.mxu1 %v10159_v31  ;;  %v2517_v31 = vsub.f32 %v10352_v20, %v2516_v61  ;;  %v2512_v11 = vand.u32 4294901760, %v2511_v12  ;;  %v2541_v21 = vsub.f32 %v10402_v32, %v15693_v62  ;;  %v2530_v54 = vand.u32 4294901760, %v2529_v10  ;;  %v171_v12 = vld [vmem:[%s15614_s1 + $0x3f8] sm:$0xff] }
 0x137   :  { %2459 = vmatpush.msra.mxu3 %v10175_v0  ;;  %2426 = vmatmul.f32.vlgmr.msra.gmra.mxu2 %v10177_v26  ;;  %v10479_v35 = vsub.f32 %v146_v48, %v10442_v18  ;;  %v15689_v33 = vand.u32 4294901760, %v10461_v22  ;;  %v2553_v5 = vsub.f32 %v10445_v36, %v15690_v24  ;;  %v10547_v10 = vand.u32 4294901760, %v171_v12 }
 0x138   :  { %2472 = vmatpush.msrb.mxu0 %v10336_v37  ;;  %2611 = vmatpush.msrb.mxu2 %v10339_v6  ;;  %v2518_v19 = vand.u32 4294901760, %v2517_v31  ;;  %v2542_v13 = vand.u32 4294901760, %v2541_v21  ;;  %v140_v31 = vld [vmem:[%s15614_s1 + $0x300] sm:$0xff]  ;;  %v15687_v21 = vand.u32 4294901760, %v10524_v14  ;;  %v10562_v53 = vsub.f32 %v141_v44, %v10531_v45  ;;  %v163_v6 = vld [vmem:[%s15614_s1 + $0x3b8] sm:$0xff] }
 0x139   :  { %2351 = vmatpush.msra.mxu1 %v10175_v0  ;;  %2461 = vmatpush.msra.mxu3 %v10190_v59  ;;  %v10429_v0 = vsub.f32 %v149_v8, %v10396_v16  ;;  %v15688_v7 = vand.u32 4294901760, %v10479_v35  ;;  %v2559_v63 = vsub.f32 %v10461_v22, %v15689_v33  ;;  %v2554_v48 = vand.u32 4294901760, %v2553_v5  ;;  %v168_v5 = vld [vmem:[%s15614_s1 + $0x3e0] sm:$0xff] }
 0x13a   :  { %2463 = vmatmul.f32.vlgmr.msra.gmra.mxu3 %v10177_v26  ;;  %2474 = vmatpush.msrb.mxu0 %v10349_v9  ;;  %v145_v26 = vld [vmem:[%s15614_s1 + $0x328] sm:$0xff] }
 0x13b   :  { %2614 = vmatpush.msrb.mxu2 %v10352_v20  ;;  %2664 = vmatpush.msrb.mxu3 %v10316_v30  ;;  %v10457_v17 = vand.u32 4294901760, %v145_v26  ;;  %v15692_v2 = vand.u32 4294901760, %v10429_v0  ;;  %v2560_v43 = vand.u32 4294901760, %v2559_v63  ;;  %v162_v20 = vld [vmem:[%s15614_s1 + $0x3b0] sm:$0xff] }
 0x13c   :  { %2353 = vmatpush.msra.mxu1 %v10190_v59  ;;  %2476 = vmatpush.msrb.mxu0 %v10360_v42  ;;  %v2535_v59 = vsub.f32 %v10386_v50, %v15695_v15 }
 0x13d   :  { %2357 = vmatmul.f32.vlgmr.msra.gmra.mxu1 %v2160_v23  ;;  %2617 = vmatpush.msrb.mxu2 %v10366_v39  ;;  %v27_v23 = vld [vmem:[%s15613_s0 + $0x30] sm:$0xff]  ;;  %v2547_v4 = vsub.f32 %v10429_v0, %v15692_v2  ;;  %v10496_v28 = vsub.f32 %v145_v26, %v10457_v17  ;;  %v10542_v26 = vsub.f32 %v142_v49, %v10504_v52 }
 0x13e   :  { %2513 = vmatpush.msrb.mxu1 %v2512_v11  ;;  %2666 = vmatpush.msrb.mxu3 %v10326_v55  ;;  %v2536_v41 = vand.u32 4294901760, %v2535_v59  ;;  %v10486_v29 = vand.u32 4294901760, %v27_v23  ;;  %v2565_v11 = vsub.f32 %v10479_v35, %v15688_v7  ;;  %v170_v59 = vld [vmem:[%s15614_s1 + $0x3f0] sm:$0xff]  ;;  %v2577_v49 = vsub.f32 %v10508_v40, %v15685_v57 }
 0x13f   :  { %2478 = vmatpush.msrb.mxu0 %v10371_v1  ;;  %2620 = vmatpush.msrb.mxu2 %v10380_v51  ;;  %v2548_v38 = vand.u32 4294901760, %v2547_v4  ;;  %v15686_v8 = vand.u32 4294901760, %v10496_v28  ;;  %v15691_v4 = vand.u32 4294901760, %v10542_v26 }
 0x140   :  { %2519 = vmatpush.msrb.mxu1 %v2518_v19  ;;  %2668 = vmatpush.msrb.mxu3 %v10336_v37  ;;  %v10516_v34 = vsub.f32 %v27_v23, %v10486_v29  ;;  %v10556_v23 = vand.u32 4294901760, %v140_v31 }
 0x141   :  { %2480 = vmatpush.msrb.mxu0 %v10396_v16  ;;  %2623 = vmatpush.msrb.mxu2 %v10386_v50 }
 0x142   :  { %2525 = vmatpush.msrb.mxu1 %v2524_v56  ;;  %2670 = vmatpush.msrb.mxu3 %v10349_v9  ;;  %v2501_v19 = vand.u32 4294901760, %v10516_v34  ;;  %v2571_v56 = vsub.f32 %v10496_v28, %v15686_v8  ;;  %v167_v8 = vld [vmem:[%s15614_s1 + $0x3d8] sm:$0xff] }
 0x143   :  { %2482 = vmatpush.msrb.mxu0 %v10412_v60  ;;  %2626 = vmatpush.msrb.mxu2 %v10402_v32  ;;  %v10612_v24 = vand.u32 4294901760, %v167_v8 }
 0x144   :  { %2531 = vmatpush.msrb.mxu1 %v2530_v54  ;;  %2672 = vmatpush.msrb.mxu3 %v10360_v42  ;;  %v169_v54 = vld [vmem:[%s15614_s1 + $0x3e8] sm:$0xff]  ;;  %v2502_v44 = vsub.f32 %v10516_v34, %v2501_v19  ;;  %v2572_v63 = vand.u32 4294901760, %v2571_v56  ;;  %v2578_v56 = vand.u32 4294901760, %v2577_v49 }
 0x145   :  { %2484 = vmatpush.msrb.mxu0 %v10426_v58  ;;  %2629 = vmatpush.msrb.mxu2 %v10429_v0  ;;  %v10592_v57 = vand.u32 4294901760, %v169_v54 }
 0x146   :  { %2537 = vmatpush.msrb.mxu1 %v2536_v41  ;;  %2674 = vmatpush.msrb.mxu3 %v10371_v1  ;;  %v2566_v41 = vand.u32 4294901760, %v2565_v11  ;;  %v10590_v11 = vsub.f32 %v140_v31, %v10556_v23  ;;  %v2589_v31 = vsub.f32 %v10542_v26, %v15691_v4  ;;  %v2503_v7 = vand.u32 4294901760, %v2502_v44 }
 0x147   :  { %2486 = vmatpush.msrb.mxu0 %v10442_v18  ;;  %2632 = vmatpush.msrb.mxu2 %v10445_v36  ;;  %v10620_v4 = vsub.f32 %v169_v54, %v10592_v57 }
 0x148   :  { %2543 = vmatpush.msrb.mxu1 %v2542_v13  ;;  %2676 = vmatpush.msrb.mxu3 %v10396_v16  ;;  %v10572_v13 = vand.u32 4294901760, %v170_v59  ;;  %v2590_v54 = vand.u32 4294901760, %v2589_v31 }
 0x149   :  { %2488 = vmatpush.msrb.mxu0 %v10457_v17  ;;  %2635 = vmatpush.msrb.mxu2 %v10461_v22  ;;  %v15699_v31 = vand.u32 4294901760, %v10620_v4 }
 0x14a   :  { %2549 = vmatpush.msrb.mxu1 %v2548_v38  ;;  %2678 = vmatpush.msrb.mxu3 %v10412_v60  ;;  %v10583_v38 = vsub.f32 %v171_v12, %v10547_v10  ;;  %v15694_v12 = vand.u32 4294901760, %v10562_v53 }
 0x14b   :  { %2490 = vmatpush.msrb.mxu0 %v10475_v46  ;;  %2638 = vmatpush.msrb.mxu2 %v10479_v35 }
 0x14c   :  { %2555 = vmatpush.msrb.mxu1 %v2554_v48  ;;  %2680 = vmatpush.msrb.mxu3 %v10426_v58  ;;  %v2583_v48 = vsub.f32 %v10524_v14, %v15687_v21  ;;  %v10607_v21 = vsub.f32 %v170_v59, %v10572_v13  ;;  %v15696_v33 = vand.u32 4294901760, %v10583_v38  ;;  %v15697_v59 = vand.u32 4294901760, %v10590_v11 }
 0x14d   :  { %2492 = vmatpush.msrb.mxu0 %v10492_v47  ;;  %2641 = vmatpush.msrb.mxu2 %v10496_v28  ;;  %v2595_v44 = vsub.f32 %v10562_v53, %v15694_v12  ;;  %v10642_v12 = vsub.f32 %v167_v8, %v10612_v24 }
 0x14e   :  { %2561 = vmatpush.msrb.mxu1 %v2560_v43  ;;  %2682 = vmatpush.msrb.mxu3 %v10442_v18  ;;  %v10600_v43 = vand.u32 4294901760, %v168_v5  ;;  %v2584_v49 = vand.u32 4294901760, %v2583_v48  ;;  %v15700_v48 = vand.u32 4294901760, %v10607_v21 }
 0x14f   :  { %2494 = vmatpush.msrb.mxu0 %v10504_v52  ;;  %2644 = vmatpush.msrb.mxu2 %v10508_v40  ;;  %v2596_v8 = vand.u32 4294901760, %v2595_v44  ;;  %v15702_v3 = vand.u32 4294901760, %v10642_v12 }
 0x150   :  { %2567 = vmatpush.msrb.mxu1 %v2566_v41  ;;  %2684 = vmatpush.msrb.mxu3 %v10457_v17  ;;  %v166_v41 = vld [vmem:[%s15614_s1 + $0x3d0] sm:$0xff]  ;;  %v10628_v2 = vsub.f32 %v168_v5, %v10600_v43  ;;  %v2852_v5 = vsub.f32 %v10583_v38, %v15696_v33 }
 0x151   :  { %2496 = vmatpush.msrb.mxu0 %v10531_v45  ;;  %2647 = vmatpush.msrb.mxu2 %v10524_v14  ;;  %v10635_v62 = vand.u32 4294901760, %v166_v41 }
 0x152   :  { %2573 = vmatpush.msrb.mxu1 %v2572_v63  ;;  %2686 = vmatpush.msrb.mxu3 %v10475_v46  ;;  %v165_v63 = vld [vmem:[%s15614_s1 + $0x3c8] sm:$0xff]  ;;  %v15701_v33 = vand.u32 4294901760, %v10628_v2  ;;  %v2853_v44 = vand.u32 4294901760, %v2852_v5  ;;  %v10686_v5 = vand.u32 4294901760, %v163_v6 }
 0x153   :  { %2498 = vmatpush.msrb.mxu0 %v10556_v23  ;;  %2650 = vmatpush.msrb.mxu2 %v10542_v26  ;;  %v10653_v15 = vand.u32 4294901760, %v165_v63 }
 0x154   :  { %2579 = vmatpush.msrb.mxu1 %v2578_v56  ;;  %2688 = vmatpush.msrb.mxu3 %v10492_v47  ;;  %v164_v56 = vld [vmem:[%s15614_s1 + $0x3c0] sm:$0xff]  ;;  %v2870_v39 = vsub.f32 %v10628_v2, %v15701_v33  ;;  %v2876_v33 = vsub.f32 %v10642_v12, %v15702_v3 }
 0x155   :  { %2504 = vmatmul.f32.vlgmr.msrb.gmra.mxu0 %v2503_v7  ;;  %2653 = vmatpush.msrb.mxu2 %v10562_v53  ;;  %v2601_v7 = vsub.f32 %v10590_v11, %v15697_v59  ;;  %v10669_v59 = vand.u32 4294901760, %v164_v56 }
 0x156   :  { %2705 = vmatpush.msra.mxu0 %v2510_v25  ;;  %2585 = vmatpush.msrb.mxu1 %v2584_v49  ;;  %v2858_v25 = vsub.f32 %v10607_v21, %v15700_v48  ;;  %v10667_v49 = vsub.f32 %v166_v41, %v10635_v62  ;;  %v2864_v41 = vsub.f32 %v10620_v4, %v15699_v31  ;;  %v10703_v48 = vand.u32 4294901760, %v162_v20 }
 0x157   :  { %2690 = vmatpush.msrb.mxu3 %v10504_v52  ;;  %2656 = vmatpush.msrb.mxu2 %v10590_v11  ;;  %v2877_v3 = vand.u32 4294901760, %v2876_v33  ;;  %v15962_v33 = vand.u32 4294901760, %v10429_v0  ;;  %v157_v0 = vld [vmem:[%s15614_s1 + $0x388] sm:$0xff] }
 0x158   :  { %2709 = vmatpush.msra.mxu0 %v2516_v61  ;;  %2591 = vmatpush.msrb.mxu1 %v2590_v54  ;;  %v2602_v61 = vand.u32 4294901760, %v2601_v7  ;;  %v10684_v54 = vsub.f32 %v165_v63, %v10653_v15  ;;  %v15959_v7 = vand.u32 4294901760, %v10380_v51  ;;  %v2859_v63 = vand.u32 4294901760, %v2858_v25  ;;  %v160_v51 = vld [vmem:[%s15614_s1 + $0x3a0] sm:$0xff] }
 0x159   :  { %2692 = vmatpush.msrb.mxu3 %v10531_v45  ;;  %2659 = vmatmul.f32.vlgmr.msrb.gmra.mxu2 %v10516_v34  ;;  %v15703_v31 = vand.u32 4294901760, %v10667_v49  ;;  %v15960_v34 = vand.u32 4294901760, %v10386_v50  ;;  %v10716_v25 = vsub.f32 %v163_v6, %v10686_v5 }
 0x15a   :  { %2713 = vmatpush.msra.mxu0 %v2522_v27  ;;  %2809 = vmatpush.msra.mxu2 %v10547_v10  ;;  %v161_v27 = vld [vmem:[%s15614_s1 + $0x3a8] sm:$0xff] }
 0x15b   :  { %2597 = vmatpush.msrb.mxu1 %v2596_v8  ;;  %2694 = vmatpush.msrb.mxu3 %v10556_v23  ;;  %v10701_v8 = vsub.f32 %v164_v56, %v10669_v59  ;;  %v15705_v56 = vand.u32 4294901760, %v10684_v54  ;;  %v2882_v50 = vsub.f32 %v10667_v49, %v15703_v31 }
 0x15c   :  { %2698 = vmatmul.f32.vlgmr.msrb.gmra.mxu3 %v2501_v19  ;;  %2717 = vmatpush.msra.mxu0 %v15959_v7  ;;  %v2865_v19 = vand.u32 4294901760, %v2864_v41  ;;  %v10718_v7 = vand.u32 4294901760, %v161_v27  ;;  %v10731_v41 = vsub.f32 %v162_v20, %v10703_v48 }
 0x15d   :  { %2811 = vmatpush.msra.mxu2 %v10572_v13  ;;  %2854 = vmatpush.msra.mxu3 %v2853_v44  ;;  %v2871_v44 = vand.u32 4294901760, %v2870_v39  ;;  %v15704_v6 = vand.u32 4294901760, %v10701_v8  ;;  %v15961_v39 = vand.u32 4294901760, %v10402_v32  ;;  %v158_v32 = vld [vmem:[%s15614_s1 + $0x390] sm:$0xff] }
 0x15e   :  { %2603 = vmatpush.msrb.mxu1 %v2602_v61  ;;  %2721 = vmatpush.msra.mxu0 %v15960_v34  ;;  %v159_v61 = vld [vmem:[%s15614_s1 + $0x398] sm:$0xff]  ;;  %v10733_v34 = vand.u32 4294901760, %v160_v51  ;;  %v10744_v20 = vsub.f32 %v161_v27, %v10718_v7 }
 0x15f   :  { %2605 = vmatmul.f32.vlgmr.msrb.gmra.mxu1 %v10486_v29  ;;  %2813 = vmatpush.msra.mxu2 %v10592_v57  ;;  %v10746_v31 = vand.u32 4294901760, %v159_v61  ;;  %v2894_v27 = vsub.f32 %v10701_v8, %v15704_v6  ;;  %v15965_v6 = vand.u32 4294901760, %v10479_v35  ;;  %v15967_v35 = vand.u32 4294901760, %v10496_v28 }
 0x160   :  { %2772 = vmatpush.msra.mxu1 %v10316_v30  ;;  %2860 = vmatpush.msra.mxu3 %v2859_v63  ;;  %v2888_v30 = vsub.f32 %v10684_v54, %v15705_v56  ;;  %v15706_v63 = vand.u32 4294901760, %v10716_v25 }
 0x161   :  { %2725 = vmatpush.msra.mxu0 %v15961_v39  ;;  %2815 = vmatpush.msra.mxu2 %v10600_v43  ;;  %v10760_v39 = vsub.f32 %v160_v51, %v10733_v34  ;;  %v10779_v56 = vsub.f32 %v159_v61, %v10746_v31 }
 0x162   :  { %2774 = vmatpush.msra.mxu1 %v10326_v55  ;;  %2866 = vmatpush.msra.mxu3 %v2865_v19  ;;  %v2883_v55 = vand.u32 4294901760, %v2882_v50  ;;  %v15707_v19 = vand.u32 4294901760, %v10731_v41  ;;  %v2889_v51 = vand.u32 4294901760, %v2888_v30  ;;  %v2900_v50 = vsub.f32 %v10716_v25, %v15706_v63 }
 0x163   :  { %2729 = vmatpush.msra.mxu0 %v15962_v33  ;;  %2817 = vmatpush.msra.mxu2 %v10612_v24  ;;  %v28_v33 = vld [vmem:[%s15613_s0 + $0x38] sm:$0xff]  ;;  %v2895_v30 = vand.u32 4294901760, %v2894_v27  ;;  %v2917_v63 = vand.u32 4294901760, %v10760_v39 }
 0x164   :  { %2776 = vmatpush.msra.mxu1 %v10336_v37  ;;  %2872 = vmatpush.msra.mxu3 %v2871_v44  ;;  %v15963_v37 = vand.u32 4294901760, %v10445_v36  ;;  %v10771_v44 = vand.u32 4294901760, %v158_v32  ;;  %v156_v36 = vld [vmem:[%s15614_s1 + $0x380] sm:$0xff]  ;;  %v2906_v61 = vsub.f32 %v10731_v41, %v15707_v19  ;;  %v2923_v19 = vand.u32 4294901760, %v10779_v56 }
 0x165   :  { %2819 = vmatpush.msra.mxu2 %v10635_v62 }
 0x166   :  { %2733 = vmatpush.msra.mxu0 %v15963_v37  ;;  %2778 = vmatpush.msra.mxu1 %v10349_v9  ;;  %v15964_v37 = vand.u32 4294901760, %v10461_v22  ;;  %v10787_v9 = vand.u32 4294901760, %v157_v0  ;;  %v10800_v22 = vsub.f32 %v158_v32, %v10771_v44 }
 0x167   :  { %2878 = vmatpush.msra.mxu3 %v2877_v3  ;;  %2821 = vmatpush.msra.mxu2 %v10653_v15  ;;  %v10789_v3 = vand.u32 4294901760, %v28_v33 }
 0x168   :  { %2737 = vmatpush.msra.mxu0 %v15964_v37  ;;  %2780 = vmatpush.msra.mxu1 %v10360_v42  ;;  %v10802_v37 = vand.u32 4294901760, %v156_v36  ;;  %v2901_v42 = vand.u32 4294901760, %v2900_v50  ;;  %v15968_v50 = vand.u32 4294901760, %v10508_v40  ;;  %v2929_v28 = vand.u32 4294901760, %v10800_v22 }
 0x169   :  { %2884 = vmatpush.msra.mxu3 %v2883_v55  ;;  %2823 = vmatpush.msra.mxu2 %v10669_v59  ;;  %v15966_v55 = vand.u32 4294901760, %v10744_v20  ;;  %v10816_v32 = vsub.f32 %v28_v33, %v10789_v3  ;;  %v2924_v33 = vsub.f32 %v10779_v56, %v2923_v19 }
 0x16a   :  { %2741 = vmatpush.msra.mxu0 %v15965_v6  ;;  %2782 = vmatpush.msra.mxu1 %v10371_v1  ;;  %v10813_v6 = vsub.f32 %v157_v0, %v10787_v9  ;;  %v2907_v1 = vand.u32 4294901760, %v2906_v61  ;;  %v10827_v0 = vsub.f32 %v156_v36, %v10802_v37 }
 0x16b   :  { %2890 = vmatpush.msra.mxu3 %v2889_v51  ;;  %v2912_v27 = vsub.f32 %v10744_v20, %v15966_v55  ;;  %2825 = vmatpush.msra.mxu2 %v10686_v5  ;;  %v2918_v51 = vsub.f32 %v10760_v39, %v2917_v63  ;;  %v2842_v61 = vand.u32 4294901760, %v10816_v32  ;;  %v2925_v55 = vand.u32 4294901760, %v2924_v33 }
 0x16c   :  { %2745 = vmatpush.msra.mxu0 %v15967_v35  ;;  %2784 = vmatpush.msra.mxu1 %v10396_v16  ;;  %v2935_v40 = vand.u32 4294901760, %v10813_v6 }
 0x16d   :  { %2896 = vmatpush.msra.mxu3 %v2895_v30  ;;  %2827 = vmatpush.msra.mxu2 %v10703_v48  ;;  %v2913_v16 = vand.u32 4294901760, %v2912_v27  ;;  %v15969_v30 = vand.u32 4294901760, %v10524_v14  ;;  %v2919_v36 = vand.u32 4294901760, %v2918_v51  ;;  %v2930_v14 = vsub.f32 %v10800_v22, %v2929_v28  ;;  %v179_v51 = vld [vmem:[%s15614_s1 + $0x438] sm:$0xff] }
 0x16e   :  { %2749 = vmatpush.msra.mxu0 %v15968_v50  ;;  %2786 = vmatpush.msra.mxu1 %v10412_v60  ;;  %v15970_v60 = vand.u32 4294901760, %v10542_v26  ;;  %v15971_v27 = vand.u32 4294901760, %v10562_v53  ;;  %v2843_v26 = vsub.f32 %v10816_v32, %v2842_v61 }
 0x16f   :  { %2902 = vmatpush.msra.mxu3 %v2901_v42  ;;  %2829 = vmatpush.msra.mxu2 %v10718_v7  ;;  %v2941_v42 = vand.u32 4294901760, %v10827_v0  ;;  %v2931_v53 = vand.u32 4294901760, %v2930_v14 }
 0x170   :  { %2753 = vmatpush.msra.mxu0 %v15969_v30  ;;  %2788 = vmatpush.msra.mxu1 %v10426_v58  ;;  %v2936_v58 = vsub.f32 %v10813_v6, %v2935_v40 }
 0x171   :  { %2908 = vmatpush.msra.mxu3 %v2907_v1  ;;  %2831 = vmatpush.msra.mxu2 %v10733_v34  ;;  %v2942_v35 = vsub.f32 %v10827_v0, %v2941_v42 }
 0x172   :  { %2757 = vmatpush.msra.mxu0 %v15970_v60  ;;  %2790 = vmatpush.msra.mxu1 %v10442_v18  ;;  %v15972_v18 = vand.u32 4294901760, %v10590_v11  ;;  %v2937_v1 = vand.u32 4294901760, %v2936_v58 }
 0x173   :  { %2914 = vmatpush.msra.mxu3 %v2913_v16  ;;  %2833 = vmatpush.msra.mxu2 %v10746_v31  ;;  %v2943_v11 = vand.u32 4294901760, %v2942_v35  ;;  %v178_v16 = vld [vmem:[%s15614_s1 + $0x430] sm:$0xff]  ;;  %v175_v35 = vld [vmem:[%s15614_s1 + $0x418] sm:$0xff] }
 0x174   :  { %2761 = vmatpush.msra.mxu0 %v15971_v27  ;;  %2792 = vmatpush.msra.mxu1 %v10457_v17  ;;  %v2844_v17 = vand.u32 4294901760, %v2843_v26  ;;  %v176_v27 = vld [vmem:[%s15614_s1 + $0x420] sm:$0xff] }
 0x175   :  { %2920 = vmatpush.msra.mxu3 %v2919_v36  ;;  %2835 = vmatpush.msra.mxu2 %v10771_v44 }
 0x176   :  { %2765 = vmatpush.msra.mxu0 %v15972_v18  ;;  %2794 = vmatpush.msra.mxu1 %v10475_v46  ;;  %v15973_v46 = vand.u32 4294901760, %v10583_v38 }
 0x177   :  { %2926 = vmatpush.msra.mxu3 %v2925_v55  ;;  %2767 = vmatmul.f32.vlgmr.msra.gmra.mxu0 %v10486_v29 }
 0x178   :  { %2837 = vmatpush.msra.mxu2 %v10787_v9  ;;  %2952 = vmatpush.msrb.mxu0 %v10583_v38 }
 0x179   :  { %2796 = vmatpush.msra.mxu1 %v10492_v47  ;;  %2932 = vmatpush.msra.mxu3 %v2931_v53  ;;  %v15974_v47 = vand.u32 4294901760, %v10607_v21 }
 0x17a   :  { %2839 = vmatpush.msra.mxu2 %v10802_v37  ;;  %2955 = vmatpush.msrb.mxu0 %v10607_v21  ;;  %v15982_v21 = vand.u32 4294901760, %v10731_v41 }
 0x17b   :  { %2798 = vmatpush.msra.mxu1 %v10504_v52  ;;  %2938 = vmatpush.msra.mxu3 %v2937_v1  ;;  %v15975_v52 = vand.u32 4294901760, %v10620_v4 }
 0x17c   :  { %2845 = vmatmul.f32.vlgmr.msra.gmra.mxu2 %v2844_v17  ;;  %2958 = vmatpush.msrb.mxu0 %v10620_v4  ;;  %v11087_v17 = vand.u32 4294901760, %v176_v27 }
 0x17d   :  { %3046 = vmatpush.msrb.mxu2 %v15973_v46  ;;  %2800 = vmatpush.msra.mxu1 %v10531_v45  ;;  %v15976_v45 = vand.u32 4294901760, %v10628_v2 }
 0x17e   :  { %2944 = vmatpush.msra.mxu3 %v2943_v11  ;;  %2961 = vmatpush.msrb.mxu0 %v10628_v2  ;;  %v15979_v2 = vand.u32 4294901760, %v10684_v54 }
 0x17f   :  { %2946 = vmatmul.f32.vlgmr.msra.gmra.mxu3 %v10789_v3  ;;  %3050 = vmatpush.msrb.mxu2 %v15974_v47 }
 0x180   :  { %3113 = vmatpush.msrb.mxu3 %v10547_v10  ;;  %2802 = vmatpush.msra.mxu1 %v10556_v23  ;;  %v15981_v23 = vand.u32 4294901760, %v10716_v25 }
 0x181   :  { %2964 = vmatpush.msrb.mxu0 %v10642_v12  ;;  %2804 = vmatmul.f32.vlgmr.msra.gmra.mxu1 %v10486_v29  ;;  %v15977_v29 = vand.u32 4294901760, %v10642_v12  ;;  %v184_v12 = vld [vmem:[%s15614_s1 + $0x460] sm:$0xff] }
 0x182   :  { %3054 = vmatpush.msrb.mxu2 %v15975_v52  ;;  %3005 = vmatpush.msrb.mxu1 %v10547_v10  ;;  %v15978_v10 = vand.u32 4294901760, %v10667_v49  ;;  %v174_v52 = vld [vmem:[%s15614_s1 + $0x410] sm:$0xff] }
 0x183   :  { %3115 = vmatpush.msrb.mxu3 %v10572_v13  ;;  %2967 = vmatpush.msrb.mxu0 %v10667_v49  ;;  %v183_v49 = vld [vmem:[%s15614_s1 + $0x458] sm:$0xff] }
 0x184   :  { %3058 = vmatpush.msrb.mxu2 %v15976_v45  ;;  %3007 = vmatpush.msrb.mxu1 %v10572_v13  ;;  %v185_v13 = vld [vmem:[%s15614_s1 + $0x468] sm:$0xff] }
 0x185   :  { %3117 = vmatpush.msrb.mxu3 %v10592_v57  ;;  %2970 = vmatpush.msrb.mxu0 %v10684_v54 }
 0x186   :  { %3062 = vmatpush.msrb.mxu2 %v15977_v29  ;;  %3009 = vmatpush.msrb.mxu1 %v10592_v57  ;;  %v15980_v57 = vand.u32 4294901760, %v10701_v8 }
 0x187   :  { %3119 = vmatpush.msrb.mxu3 %v10600_v43  ;;  %2973 = vmatpush.msrb.mxu0 %v10701_v8  ;;  %v10972_v8 = vand.u32 4294901760, %v183_v49 }
 0x188   :  { %3066 = vmatpush.msrb.mxu2 %v15978_v10  ;;  %3011 = vmatpush.msrb.mxu1 %v10600_v43  ;;  %v10948_v43 = vand.u32 4294901760, %v185_v13  ;;  %v11104_v10 = vand.u32 4294901760, %v175_v35 }
 0x189   :  { %3121 = vmatpush.msrb.mxu3 %v10612_v24  ;;  %2976 = vmatpush.msrb.mxu0 %v10716_v25 }
 0x18a   :  { %3070 = vmatpush.msrb.mxu2 %v15979_v2  ;;  %3013 = vmatpush.msrb.mxu1 %v10612_v24  ;;  %v187_v24 = vld [vmem:[%s15614_s1 + $0x478] sm:$0xff]  ;;  %v10978_v25 = vsub.f32 %v185_v13, %v10948_v43  ;;  %v173_v13 = vld [vmem:[%s15614_s1 + $0x408] sm:$0xff] }
 0x18b   :  { %3123 = vmatpush.msrb.mxu3 %v10635_v62  ;;  %2979 = vmatpush.msrb.mxu0 %v10731_v41  ;;  %v10928_v4 = vand.u32 4294901760, %v187_v24  ;;  %v181_v41 = vld [vmem:[%s15614_s1 + $0x448] sm:$0xff] }
 0x18c   :  { %3074 = vmatpush.msrb.mxu2 %v15980_v57  ;;  %3015 = vmatpush.msrb.mxu1 %v10635_v62  ;;  %v186_v62 = vld [vmem:[%s15614_s1 + $0x470] sm:$0xff] }
 0x18d   :  { %3125 = vmatpush.msrb.mxu3 %v10653_v15  ;;  %2982 = vmatpush.msrb.mxu0 %v10744_v20  ;;  %v10938_v38 = vand.u32 4294901760, %v186_v62 }
 0x18e   :  { %3078 = vmatpush.msrb.mxu2 %v15981_v23  ;;  %3017 = vmatpush.msrb.mxu1 %v10653_v15  ;;  %v15983_v15 = vand.u32 4294901760, %v10744_v20  ;;  %v10998_v20 = vsub.f32 %v183_v49, %v10972_v8 }
 0x18f   :  { %3127 = vmatpush.msrb.mxu3 %v10669_v59  ;;  %2985 = vmatpush.msrb.mxu0 %v10760_v39  ;;  %v10964_v54 = vsub.f32 %v186_v62, %v10938_v38  ;;  %v11008_v39 = vand.u32 4294901760, %v181_v41 }
 0x190   :  { %3082 = vmatpush.msrb.mxu2 %v15982_v21  ;;  %3019 = vmatpush.msrb.mxu1 %v10669_v59  ;;  %v10951_v59 = vsub.f32 %v187_v24, %v10928_v4  ;;  %v11116_v21 = vand.u32 4294901760, %v174_v52 }
 0x191   :  { %3129 = vmatpush.msrb.mxu3 %v10686_v5  ;;  %2988 = vmatpush.msrb.mxu0 %v10779_v56 }
 0x192   :  { %3086 = vmatpush.msrb.mxu2 %v15983_v15  ;;  %3021 = vmatpush.msrb.mxu1 %v10686_v5  ;;  %v182_v5 = vld [vmem:[%s15614_s1 + $0x450] sm:$0xff]  ;;  %v3192_v56 = vand.u32 4294901760, %v10951_v59  ;;  %v11120_v15 = vsub.f32 %v176_v27, %v11087_v17 }
 0x193   :  { %3131 = vmatpush.msrb.mxu3 %v10703_v48  ;;  %2991 = vmatpush.msrb.mxu0 %v10800_v22  ;;  %v3204_v22 = vand.u32 4294901760, %v10978_v25 }
 0x194   :  { %3090 = vmatpush.msrb.mxu2 %v2917_v63  ;;  %3023 = vmatpush.msrb.mxu1 %v10703_v48  ;;  %v10961_v48 = vand.u32 4294901760, %v184_v12 }
 0x195   :  { %3133 = vmatpush.msrb.mxu3 %v10718_v7  ;;  %2994 = vmatpush.msrb.mxu0 %v10813_v6  ;;  %v3205_v30 = vsub.f32 %v10978_v25, %v3204_v22 }
 0x196   :  { %3094 = vmatpush.msrb.mxu2 %v2923_v19  ;;  %3025 = vmatpush.msrb.mxu1 %v10718_v7  ;;  %v10983_v7 = vand.u32 4294901760, %v182_v5  ;;  %v10992_v63 = vsub.f32 %v184_v12, %v10961_v48  ;;  %v180_v19 = vld [vmem:[%s15614_s1 + $0x440] sm:$0xff] }
 0x197   :  { %3135 = vmatpush.msrb.mxu3 %v10733_v34  ;;  %2997 = vmatpush.msrb.mxu0 %v10827_v0  ;;  %v11024_v50 = vand.u32 4294901760, %v180_v19  ;;  %v15718_v0 = vand.u32 4294901760, %v10998_v20  ;;  %v3206_v58 = vand.u32 4294901760, %v3205_v30  ;;  %v15708_v30 = vand.u32 4294901760, %v11120_v15 }
 0x198   :  { %3098 = vmatpush.msrb.mxu2 %v2929_v28  ;;  %3027 = vmatpush.msrb.mxu1 %v10733_v34  ;;  %v3198_v34 = vand.u32 4294901760, %v10964_v54  ;;  %v11014_v6 = vsub.f32 %v182_v5, %v10983_v7  ;;  %v15721_v28 = vand.u32 4294901760, %v10992_v63 }
 0x199   :  { %3137 = vmatpush.msrb.mxu3 %v10746_v31  ;;  %3000 = vmatmul.f32.vlgmr.msrb.gmra.mxu0 %v10816_v32  ;;  %v11057_v55 = vsub.f32 %v180_v19, %v11024_v50  ;;  %v11136_v19 = vsub.f32 %v175_v35, %v11104_v10 }
 0x19a   :  { %3102 = vmatpush.msrb.mxu2 %v2935_v40  ;;  %3150 = vmatpush.msra.mxu0 %v10928_v4  ;;  %v11038_v40 = vand.u32 4294901760, %v179_v51  ;;  %v15716_v36 = vand.u32 4294901760, %v11014_v6  ;;  %v3211_v14 = vsub.f32 %v10992_v63, %v15721_v28 }
 0x19b   :  { %3029 = vmatpush.msrb.mxu1 %v10746_v31  ;;  %3139 = vmatpush.msrb.mxu3 %v10771_v44  ;;  %v3193_v31 = vsub.f32 %v10951_v59, %v3192_v56  ;;  %v15713_v11 = vand.u32 4294901760, %v11057_v55 }
 0x19c   :  { %3106 = vmatpush.msrb.mxu2 %v2941_v42  ;;  %3152 = vmatpush.msra.mxu0 %v10938_v38  ;;  %v11054_v42 = vand.u32 4294901760, %v178_v16  ;;  %v11073_v32 = vsub.f32 %v179_v51, %v11038_v40  ;;  %v3223_v53 = vsub.f32 %v11014_v6, %v15716_v36  ;;  %v3212_v1 = vand.u32 4294901760, %v3211_v14 }
 0x19d   :  { %3031 = vmatpush.msrb.mxu1 %v10771_v44  ;;  %3141 = vmatpush.msrb.mxu3 %v10787_v9  ;;  %v3199_v44 = vsub.f32 %v10964_v54, %v3198_v34  ;;  %v3194_v33 = vand.u32 4294901760, %v3193_v31  ;;  %v3235_v24 = vsub.f32 %v11057_v55, %v15713_v11  ;;  %v203_v31 = vld [vmem:[%s15614_s1 + $0x4f8] sm:$0xff]  ;;  %v11143_v51 = vand.u32 4294901760, %v173_v13 }
 0x19e   :  { %3108 = vmatmul.f32.vlgmr.msrb.gmra.mxu2 %v10789_v3  ;;  %3154 = vmatpush.msra.mxu0 %v10948_v43  ;;  %v11091_v46 = vsub.f32 %v178_v16, %v11054_v42  ;;  %v15712_v2 = vand.u32 4294901760, %v11073_v32  ;;  %v3224_v23 = vand.u32 4294901760, %v3223_v53  ;;  %v11159_v14 = vand.u32 4294901760, %v203_v31 }
 0x19f   :  { %3293 = vmatpush.msra.mxu2 %v10951_v59  ;;  %3033 = vmatpush.msrb.mxu1 %v10787_v9  ;;  %v11041_v9 = vsub.f32 %v181_v41, %v11008_v39  ;;  %v3200_v60 = vand.u32 4294901760, %v3199_v44  ;;  %v172_v44 = vld [vmem:[%s15614_s1 + $0x400] sm:$0xff]  ;;  %v3236_v16 = vand.u32 4294901760, %v3235_v24  ;;  %v15710_v53 = vand.u32 4294901760, %v11136_v19  ;;  %v195_v59 = vld [vmem:[%s15614_s1 + $0x4b8] sm:$0xff] }
 0x1a0   :  { %3143 = vmatpush.msrb.mxu3 %v10802_v37  ;;  %3156 = vmatpush.msra.mxu0 %v10961_v48  ;;  %v15711_v62 = vand.u32 4294901760, %v11091_v46  ;;  %v3241_v5 = vsub.f32 %v11073_v32, %v15712_v2  ;;  %v11174_v35 = vsub.f32 %v173_v13, %v11143_v51  ;;  %v200_v24 = vld [vmem:[%s15614_s1 + $0x4e0] sm:$0xff] }
 0x1a1   :  { %3145 = vmatmul.f32.vlgmr.msrb.gmra.mxu3 %v10789_v3  ;;  %3296 = vmatpush.msra.mxu2 %v10964_v54  ;;  %v177_v3 = vld [vmem:[%s15614_s1 + $0x428] sm:$0xff]  ;;  %v15715_v18 = vand.u32 4294901760, %v11041_v9  ;;  %v194_v54 = vld [vmem:[%s15614_s1 + $0x4b0] sm:$0xff] }
 0x1a2   :  { %3346 = vmatpush.msra.mxu3 %v10928_v4  ;;  %3035 = vmatpush.msrb.mxu1 %v10802_v37  ;;  %v3217_v37 = vsub.f32 %v10998_v20, %v15718_v0  ;;  %v11069_v26 = vand.u32 4294901760, %v177_v3  ;;  %v3242_v27 = vand.u32 4294901760, %v3241_v5 }
 0x1a3   :  { %3158 = vmatpush.msra.mxu0 %v10972_v8  ;;  %3039 = vmatmul.f32.vlgmr.msrb.gmra.mxu1 %v2842_v61  ;;  %v29_v61 = vld [vmem:[%s15613_s0 + $0x40] sm:$0xff]  ;;  %v3229_v29 = vsub.f32 %v11041_v9, %v15715_v18 }
 0x1a4   :  { %3299 = vmatpush.msra.mxu2 %v10978_v25  ;;  %3195 = vmatpush.msra.mxu1 %v3194_v33  ;;  %v3218_v47 = vand.u32 4294901760, %v3217_v37  ;;  %v11098_v45 = vand.u32 4294901760, %v29_v61  ;;  %v11108_v57 = vsub.f32 %v177_v3, %v11069_v26  ;;  %v3247_v33 = vsub.f32 %v11091_v46, %v15711_v62  ;;  %v202_v37 = vld [vmem:[%s15614_s1 + $0x4f0] sm:$0xff] }
 0x1a5   :  { %3348 = vmatpush.msra.mxu3 %v10938_v38  ;;  %3160 = vmatpush.msra.mxu0 %v10983_v7  ;;  %v3230_v49 = vand.u32 4294901760, %v3229_v29  ;;  %v11154_v3 = vsub.f32 %v174_v52, %v11116_v21  ;;  %v3259_v52 = vsub.f32 %v11120_v15, %v15708_v30 }
 0x1a6   :  { %3302 = vmatpush.msra.mxu2 %v10992_v63  ;;  %3201 = vmatpush.msra.mxu1 %v3200_v60  ;;  %v11128_v12 = vsub.f32 %v29_v61, %v11098_v45  ;;  %v15709_v41 = vand.u32 4294901760, %v11108_v57  ;;  %v11168_v61 = vand.u32 4294901760, %v172_v44 }
 0x1a7   :  { %3350 = vmatpush.msra.mxu3 %v10948_v43  ;;  %3162 = vmatpush.msra.mxu0 %v11008_v39  ;;  %v15714_v29 = vand.u32 4294901760, %v11154_v3 }
 0x1a8   :  { %3305 = vmatpush.msra.mxu2 %v10998_v20  ;;  %3207 = vmatpush.msra.mxu1 %v3206_v58  ;;  %v3183_v60 = vand.u32 4294901760, %v11128_v12  ;;  %v3253_v58 = vsub.f32 %v11108_v57, %v15709_v41  ;;  %v199_v41 = vld [vmem:[%s15614_s1 + $0x4d8] sm:$0xff] }
 0x1a9   :  { %3352 = vmatpush.msra.mxu3 %v10961_v48  ;;  %3164 = vmatpush.msra.mxu0 %v11024_v50  ;;  %v11224_v11 = vand.u32 4294901760, %v199_v41 }
 0x1aa   :  { %3308 = vmatpush.msra.mxu2 %v11014_v6  ;;  %3213 = vmatpush.msra.mxu1 %v3212_v1  ;;  %v201_v1 = vld [vmem:[%s15614_s1 + $0x4e8] sm:$0xff]  ;;  %v3184_v13 = vsub.f32 %v11128_v12, %v3183_v60  ;;  %v3254_v5 = vand.u32 4294901760, %v3253_v58  ;;  %v3260_v58 = vand.u32 4294901760, %v3259_v52 }
 0x1ab   :  { %3354 = vmatpush.msra.mxu3 %v10972_v8  ;;  %3166 = vmatpush.msra.mxu0 %v11038_v40  ;;  %v11204_v30 = vand.u32 4294901760, %v201_v1 }
 0x1ac   :  { %3311 = vmatpush.msra.mxu2 %v11041_v9  ;;  %3219 = vmatpush.msra.mxu1 %v3218_v47  ;;  %v3248_v47 = vand.u32 4294901760, %v3247_v33  ;;  %v11202_v33 = vsub.f32 %v172_v44, %v11168_v61  ;;  %v3271_v44 = vsub.f32 %v11154_v3, %v15714_v29  ;;  %v3185_v62 = vand.u32 4294901760, %v3184_v13 }
 0x1ad   :  { %3356 = vmatpush.msra.mxu3 %v10983_v7  ;;  %3168 = vmatpush.msra.mxu0 %v11054_v42  ;;  %v11232_v29 = vsub.f32 %v201_v1, %v11204_v30 }
 0x1ae   :  { %3314 = vmatpush.msra.mxu2 %v11057_v55  ;;  %3225 = vmatpush.msra.mxu1 %v3224_v23  ;;  %v11184_v23 = vand.u32 4294901760, %v202_v37  ;;  %v3272_v1 = vand.u32 4294901760, %v3271_v44 }
 0x1af   :  { %3358 = vmatpush.msra.mxu3 %v11008_v39  ;;  %3170 = vmatpush.msra.mxu0 %v11069_v26  ;;  %v15722_v44 = vand.u32 4294901760, %v11232_v29 }
 0x1b0   :  { %3317 = vmatpush.msra.mxu2 %v11073_v32  ;;  %3231 = vmatpush.msra.mxu1 %v3230_v49  ;;  %v11195_v49 = vsub.f32 %v203_v31, %v11159_v14  ;;  %v15717_v31 = vand.u32 4294901760, %v11174_v35 }
 0x1b1   :  { %3360 = vmatpush.msra.mxu3 %v11024_v50  ;;  %3172 = vmatpush.msra.mxu0 %v11087_v17 }
 0x1b2   :  { %3320 = vmatpush.msra.mxu2 %v11091_v46  ;;  %3237 = vmatpush.msra.mxu1 %v3236_v16  ;;  %v3265_v16 = vsub.f32 %v11136_v19, %v15710_v53  ;;  %v11219_v53 = vsub.f32 %v202_v37, %v11184_v23  ;;  %v15719_v2 = vand.u32 4294901760, %v11195_v49  ;;  %v15720_v37 = vand.u32 4294901760, %v11202_v33 }
 0x1b3   :  { %3362 = vmatpush.msra.mxu3 %v11038_v40  ;;  %3174 = vmatpush.msra.mxu0 %v11104_v10  ;;  %v3277_v13 = vsub.f32 %v11174_v35, %v15717_v31  ;;  %v11254_v31 = vsub.f32 %v199_v41, %v11224_v11 }
 0x1b4   :  { %3323 = vmatpush.msra.mxu2 %v11108_v57  ;;  %3243 = vmatpush.msra.mxu1 %v3242_v27  ;;  %v11212_v27 = vand.u32 4294901760, %v200_v24  ;;  %v3266_v52 = vand.u32 4294901760, %v3265_v16  ;;  %v15723_v16 = vand.u32 4294901760, %v11219_v53 }
 0x1b5   :  { %3364 = vmatpush.msra.mxu3 %v11054_v42  ;;  %3176 = vmatpush.msra.mxu0 %v11116_v21  ;;  %v3278_v41 = vand.u32 4294901760, %v3277_v13  ;;  %v15725_v28 = vand.u32 4294901760, %v11254_v31 }
 0x1b6   :  { %3326 = vmatpush.msra.mxu2 %v11120_v15  ;;  %3249 = vmatpush.msra.mxu1 %v3248_v47  ;;  %v198_v47 = vld [vmem:[%s15614_s1 + $0x4d0] sm:$0xff]  ;;  %v11240_v18 = vsub.f32 %v200_v24, %v11212_v27  ;;  %v3534_v24 = vsub.f32 %v11195_v49, %v15719_v2 }
 0x1b7   :  { %3366 = vmatpush.msra.mxu3 %v11069_v26  ;;  %3178 = vmatpush.msra.mxu0 %v11143_v51  ;;  %v11247_v36 = vand.u32 4294901760, %v198_v47 }
 0x1b8   :  { %3329 = vmatpush.msra.mxu2 %v11136_v19  ;;  %3255 = vmatpush.msra.mxu1 %v3254_v5  ;;  %v197_v5 = vld [vmem:[%s15614_s1 + $0x4c8] sm:$0xff]  ;;  %v15724_v2 = vand.u32 4294901760, %v11240_v18  ;;  %v3535_v13 = vand.u32 4294901760, %v3534_v24  ;;  %v11298_v24 = vand.u32 4294901760, %v195_v59 }
 0x1b9   :  { %3368 = vmatpush.msra.mxu3 %v11087_v17  ;;  %3180 = vmatpush.msra.mxu0 %v11168_v61  ;;  %v11265_v0 = vand.u32 4294901760, %v197_v5 }
 0x1ba   :  { %3332 = vmatpush.msra.mxu2 %v11154_v3  ;;  %3261 = vmatpush.msra.mxu1 %v3260_v58  ;;  %v196_v58 = vld [vmem:[%s15614_s1 + $0x4c0] sm:$0xff]  ;;  %v3552_v25 = vsub.f32 %v11240_v18, %v15724_v2  ;;  %v3558_v2 = vsub.f32 %v11254_v31, %v15725_v28 }
 0x1bb   :  { %3370 = vmatpush.msra.mxu3 %v11104_v10  ;;  %3186 = vmatmul.f32.vlgmr.msra.gmra.mxu0 %v3185_v62  ;;  %v3283_v62 = vsub.f32 %v11202_v33, %v15720_v37  ;;  %v11281_v37 = vand.u32 4294901760, %v196_v58 }
 0x1bc   :  { %3335 = vmatpush.msra.mxu2 %v11174_v35  ;;  %3387 = vmatpush.msrb.mxu0 %v3192_v56  ;;  %v3540_v56 = vsub.f32 %v11219_v53, %v15723_v16  ;;  %v11315_v16 = vand.u32 4294901760, %v194_v54  ;;  %v3559_v28 = vand.u32 4294901760, %v3558_v2  ;;  %v15987_v2 = vand.u32 4294901760, %v11041_v9  ;;  %v189_v9 = vld [vmem:[%s15614_s1 + $0x488] sm:$0xff] }
 0x1bd   :  { %3267 = vmatpush.msra.mxu1 %v3266_v52  ;;  %3372 = vmatpush.msra.mxu3 %v11116_v21  ;;  %v11279_v52 = vsub.f32 %v198_v47, %v11247_v36  ;;  %v3546_v47 = vsub.f32 %v11232_v29, %v15722_v44 }
 0x1be   :  { %3338 = vmatpush.msra.mxu2 %v11202_v33  ;;  %3391 = vmatpush.msrb.mxu0 %v3198_v34  ;;  %v3284_v34 = vand.u32 4294901760, %v3283_v62  ;;  %v15984_v62 = vand.u32 4294901760, %v10992_v63  ;;  %v192_v63 = vld [vmem:[%s15614_s1 + $0x4a0] sm:$0xff] }
 0x1bf   :  { %3273 = vmatpush.msra.mxu1 %v3272_v1  ;;  %3374 = vmatpush.msra.mxu3 %v11143_v51  ;;  %v11296_v1 = vsub.f32 %v197_v5, %v11265_v0  ;;  %v3541_v5 = vand.u32 4294901760, %v3540_v56  ;;  %v15726_v44 = vand.u32 4294901760, %v11279_v52  ;;  %v11328_v56 = vsub.f32 %v195_v59, %v11298_v24 }
 0x1c0   :  { %3341 = vmatmul.f32.vlgmr.msra.gmra.mxu2 %v11128_v12  ;;  %3395 = vmatpush.msrb.mxu0 %v3204_v22  ;;  %v193_v22 = vld [vmem:[%s15614_s1 + $0x4a8] sm:$0xff]  ;;  %v15985_v12 = vand.u32 4294901760, %v10998_v20 }
 0x1c1   :  { %3491 = vmatpush.msrb.mxu2 %v11159_v14  ;;  %3279 = vmatpush.msra.mxu1 %v3278_v41  ;;  %v11313_v41 = vsub.f32 %v196_v58, %v11281_v37  ;;  %v15728_v58 = vand.u32 4294901760, %v11296_v1  ;;  %v3564_v20 = vsub.f32 %v11279_v52, %v15726_v44 }
 0x1c2   :  { %3376 = vmatpush.msra.mxu3 %v11168_v61  ;;  %3399 = vmatpush.msrb.mxu0 %v15984_v62  ;;  %v11330_v62 = vand.u32 4294901760, %v193_v22 }
 0x1c3   :  { %3380 = vmatmul.f32.vlgmr.msra.gmra.mxu3 %v3183_v60  ;;  %3493 = vmatpush.msrb.mxu2 %v11184_v23  ;;  %v3547_v60 = vand.u32 4294901760, %v3546_v47  ;;  %v15727_v59 = vand.u32 4294901760, %v11313_v41  ;;  %v11343_v47 = vsub.f32 %v194_v54, %v11315_v16 }
 0x1c4   :  { %3536 = vmatpush.msrb.mxu3 %v3535_v13  ;;  %3285 = vmatpush.msra.mxu1 %v3284_v34  ;;  %v3553_v13 = vand.u32 4294901760, %v3552_v25  ;;  %v191_v34 = vld [vmem:[%s15614_s1 + $0x498] sm:$0xff]  ;;  %v15986_v25 = vand.u32 4294901760, %v11014_v6  ;;  %v11356_v54 = vsub.f32 %v193_v22, %v11330_v62  ;;  %v190_v6 = vld [vmem:[%s15614_s1 + $0x490] sm:$0xff] }
 0x1c5   :  { %3403 = vmatpush.msrb.mxu0 %v15985_v12  ;;  %3287 = vmatmul.f32.vlgmr.msra.gmra.mxu1 %v11098_v45  ;;  %v11345_v12 = vand.u32 4294901760, %v192_v63  ;;  %v11358_v44 = vand.u32 4294901760, %v191_v34  ;;  %v3576_v22 = vsub.f32 %v11313_v41, %v15727_v59  ;;  %v15990_v59 = vand.u32 4294901760, %v11091_v46 }
 0x1c6   :  { %3495 = vmatpush.msrb.mxu2 %v11204_v30  ;;  %3454 = vmatpush.msrb.mxu1 %v10928_v4  ;;  %v3570_v4 = vsub.f32 %v11296_v1, %v15728_v58  ;;  %v15992_v46 = vand.u32 4294901760, %v11108_v57 }
 0x1c7   :  { %3542 = vmatpush.msrb.mxu3 %v3541_v5  ;;  %3407 = vmatpush.msrb.mxu0 %v15986_v25  ;;  %v15729_v5 = vand.u32 4294901760, %v11328_v56  ;;  %v11372_v25 = vsub.f32 %v192_v63, %v11345_v12  ;;  %v11391_v58 = vsub.f32 %v191_v34, %v11358_v44 }
 0x1c8   :  { %3497 = vmatpush.msrb.mxu2 %v11212_v27  ;;  %3456 = vmatpush.msrb.mxu1 %v10938_v38  ;;  %v3565_v38 = vand.u32 4294901760, %v3564_v20  ;;  %v3571_v63 = vand.u32 4294901760, %v3570_v4  ;;  %v3577_v4 = vand.u32 4294901760, %v3576_v22 }
 0x1c9   :  { %3548 = vmatpush.msrb.mxu3 %v3547_v60  ;;  %3411 = vmatpush.msrb.mxu0 %v15987_v2  ;;  %v15730_v60 = vand.u32 4294901760, %v11343_v47  ;;  %v30_v2 = vld [vmem:[%s15613_s0 + $0x48] sm:$0xff]  ;;  %v3582_v20 = vsub.f32 %v11328_v56, %v15729_v5  ;;  %v3599_v5 = vand.u32 4294901760, %v11372_v25 }
 0x1ca   :  { %3499 = vmatpush.msrb.mxu2 %v11224_v11  ;;  %3458 = vmatpush.msrb.mxu1 %v10948_v43  ;;  %v15988_v43 = vand.u32 4294901760, %v11057_v55  ;;  %v188_v55 = vld [vmem:[%s15614_s1 + $0x480] sm:$0xff] }
 0x1cb   :  { %3554 = vmatpush.msrb.mxu3 %v3553_v13  ;;  %v11383_v13 = vand.u32 4294901760, %v190_v6  ;;  %v3588_v34 = vsub.f32 %v11343_v47, %v15730_v60  ;;  %v3605_v60 = vand.u32 4294901760, %v11391_v58 }
 0x1cc   :  { %3415 = vmatpush.msrb.mxu0 %v15988_v43  ;;  %3501 = vmatpush.msrb.mxu2 %v11247_v36  ;;  %v15989_v43 = vand.u32 4294901760, %v11073_v32 }
 0x1cd   :  { %3460 = vmatpush.msrb.mxu1 %v10961_v48  ;;  %3560 = vmatpush.msrb.mxu3 %v3559_v28  ;;  %v11399_v48 = vand.u32 4294901760, %v189_v9  ;;  %v11401_v28 = vand.u32 4294901760, %v30_v2  ;;  %v11412_v32 = vsub.f32 %v190_v6, %v11383_v13 }
 0x1ce   :  { %3419 = vmatpush.msrb.mxu0 %v15989_v43  ;;  %3503 = vmatpush.msrb.mxu2 %v11265_v0  ;;  %v11414_v43 = vand.u32 4294901760, %v188_v55 }
 0x1cf   :  { %3462 = vmatpush.msrb.mxu1 %v10972_v8  ;;  %3566 = vmatpush.msrb.mxu3 %v3565_v38  ;;  %v3583_v8 = vand.u32 4294901760, %v3582_v20  ;;  %v15991_v38 = vand.u32 4294901760, %v11356_v54  ;;  %v11428_v6 = vsub.f32 %v30_v2, %v11401_v28  ;;  %v15993_v20 = vand.u32 4294901760, %v11120_v15 }
 0x1d0   :  { %3423 = vmatpush.msrb.mxu0 %v15990_v59  ;;  %3505 = vmatpush.msrb.mxu2 %v11281_v37  ;;  %v11425_v59 = vsub.f32 %v189_v9, %v11399_v48  ;;  %v3611_v57 = vand.u32 4294901760, %v11412_v32  ;;  %v11439_v9 = vsub.f32 %v188_v55, %v11414_v43  ;;  %v3606_v2 = vsub.f32 %v11391_v58, %v3605_v60 }
 0x1d1   :  { %3464 = vmatpush.msrb.mxu1 %v10983_v7  ;;  %3572 = vmatpush.msrb.mxu3 %v3571_v63  ;;  %v3594_v22 = vsub.f32 %v11356_v54, %v15991_v38  ;;  %v3589_v7 = vand.u32 4294901760, %v3588_v34  ;;  %v3600_v63 = vsub.f32 %v11372_v25, %v3599_v5  ;;  %v3524_v34 = vand.u32 4294901760, %v11428_v6 }
 0x1d2   :  { %3427 = vmatpush.msrb.mxu0 %v15992_v46  ;;  %3507 = vmatpush.msrb.mxu2 %v11298_v24  ;;  %v3617_v15 = vand.u32 4294901760, %v11425_v59  ;;  %v3607_v38 = vand.u32 4294901760, %v3606_v2 }
 0x1d3   :  { %3466 = vmatpush.msrb.mxu1 %v11008_v39  ;;  %3578 = vmatpush.msrb.mxu3 %v3577_v4  ;;  %v3595_v39 = vand.u32 4294901760, %v3594_v22  ;;  %v15994_v4 = vand.u32 4294901760, %v11136_v19  ;;  %v3601_v55 = vand.u32 4294901760, %v3600_v63  ;;  %v3612_v19 = vsub.f32 %v11412_v32, %v3611_v57  ;;  %v211_v63 = vld [vmem:[%s15614_s1 + $0x538] sm:$0xff] }
 0x1d4   :  { %3431 = vmatpush.msrb.mxu0 %v15993_v20  ;;  %3509 = vmatpush.msrb.mxu2 %v11315_v16  ;;  %v15996_v22 = vand.u32 4294901760, %v11174_v35 }
 0x1d5   :  { %3468 = vmatpush.msrb.mxu1 %v11024_v50  ;;  %3584 = vmatpush.msrb.mxu3 %v3583_v8  ;;  %v15995_v50 = vand.u32 4294901760, %v11154_v3  ;;  %v3623_v8 = vand.u32 4294901760, %v11439_v9  ;;  %v3525_v3 = vsub.f32 %v11428_v6, %v3524_v34  ;;  %v3613_v35 = vand.u32 4294901760, %v3612_v19 }
 0x1d6   :  { %3435 = vmatpush.msrb.mxu0 %v15994_v4  ;;  %3511 = vmatpush.msrb.mxu2 %v11330_v62 }
 0x1d7   :  { %3470 = vmatpush.msrb.mxu1 %v11038_v40  ;;  %3590 = vmatpush.msrb.mxu3 %v3589_v7  ;;  %v3618_v40 = vsub.f32 %v11425_v59, %v3617_v15  ;;  %v3624_v46 = vsub.f32 %v11439_v9, %v3623_v8 }
 0x1d8   :  { %3439 = vmatpush.msrb.mxu0 %v15995_v50  ;;  %3513 = vmatpush.msrb.mxu2 %v11345_v12 }
 0x1d9   :  { %3472 = vmatpush.msrb.mxu1 %v11054_v42  ;;  %3596 = vmatpush.msrb.mxu3 %v3595_v39  ;;  %v15997_v42 = vand.u32 4294901760, %v11202_v33  ;;  %v3619_v7 = vand.u32 4294901760, %v3618_v40  ;;  %v3625_v33 = vand.u32 4294901760, %v3624_v46  ;;  %v210_v39 = vld [vmem:[%s15614_s1 + $0x530] sm:$0xff]  ;;  %v207_v46 = vld [vmem:[%s15614_s1 + $0x518] sm:$0xff] }
 0x1da   :  { %3443 = vmatpush.msrb.mxu0 %v15996_v22  ;;  %3515 = vmatpush.msrb.mxu2 %v11358_v44  ;;  %v208_v22 = vld [vmem:[%s15614_s1 + $0x520] sm:$0xff] }
 0x1db   :  { %3474 = vmatpush.msrb.mxu1 %v11069_v26  ;;  %3602 = vmatpush.msrb.mxu3 %v3601_v55  ;;  %v3526_v26 = vand.u32 4294901760, %v3525_v3 }
 0x1dc   :  { %3447 = vmatpush.msrb.mxu0 %v15997_v42  ;;  %3517 = vmatpush.msrb.mxu2 %v11383_v13 }
 0x1dd   :  { %3476 = vmatpush.msrb.mxu1 %v11087_v17  ;;  %3608 = vmatpush.msrb.mxu3 %v3607_v38  ;;  %v15998_v17 = vand.u32 4294901760, %v11195_v49 }
 0x1de   :  { %3449 = vmatmul.f32.vlgmr.msrb.gmra.mxu0 %v11098_v45  ;;  %3519 = vmatpush.msrb.mxu2 %v11399_v48 }
 0x1df   :  { %3634 = vmatpush.msra.mxu0 %v11195_v49  ;;  %3478 = vmatpush.msrb.mxu1 %v11104_v10  ;;  %v15999_v10 = vand.u32 4294901760, %v11219_v53 }
 0x1e0   :  { %3614 = vmatpush.msrb.mxu3 %v3613_v35  ;;  %3521 = vmatpush.msrb.mxu2 %v11414_v43 }
 0x1e1   :  { %3637 = vmatpush.msra.mxu0 %v11219_v53  ;;  %3480 = vmatpush.msrb.mxu1 %v11116_v21  ;;  %v16000_v21 = vand.u32 4294901760, %v11232_v29  ;;  %v16007_v53 = vand.u32 4294901760, %v11343_v47 }
 0x1e2   :  { %3620 = vmatpush.msrb.mxu3 %v3619_v7  ;;  %3527 = vmatmul.f32.vlgmr.msrb.gmra.mxu2 %v3526_v26  ;;  %v11699_v26 = vand.u32 4294901760, %v208_v22 }
 0x1e3   :  { %3640 = vmatpush.msra.mxu0 %v11232_v29  ;;  %3728 = vmatpush.msra.mxu2 %v15998_v17 }
 0x1e4   :  { %3482 = vmatpush.msrb.mxu1 %v11143_v51  ;;  %3626 = vmatpush.msrb.mxu3 %v3625_v33  ;;  %v16001_v51 = vand.u32 4294901760, %v11240_v18 }
 0x1e5   :  { %3628 = vmatmul.f32.vlgmr.msrb.gmra.mxu3 %v11401_v28  ;;  %3643 = vmatpush.msra.mxu0 %v11240_v18  ;;  %v16004_v18 = vand.u32 4294901760, %v11296_v1 }
 0x1e6   :  { %3732 = vmatpush.msra.mxu2 %v15999_v10  ;;  %3795 = vmatpush.msra.mxu3 %v11159_v14 }
 0x1e7   :  { %3484 = vmatpush.msrb.mxu1 %v11168_v61  ;;  %3646 = vmatpush.msra.mxu0 %v11254_v31  ;;  %v16006_v61 = vand.u32 4294901760, %v11328_v56 }
 0x1e8   :  { %3486 = vmatmul.f32.vlgmr.msrb.gmra.mxu1 %v11098_v45  ;;  %3736 = vmatpush.msra.mxu2 %v16000_v21  ;;  %v16002_v45 = vand.u32 4294901760, %v11254_v31  ;;  %v216_v31 = vld [vmem:[%s15614_s1 + $0x560] sm:$0xff]  ;;  %v206_v21 = vld [vmem:[%s15614_s1 + $0x510] sm:$0xff] }
 0x1e9   :  { %3687 = vmatpush.msra.mxu1 %v11159_v14  ;;  %3797 = vmatpush.msra.mxu3 %v11184_v23  ;;  %v16003_v14 = vand.u32 4294901760, %v11279_v52 }
 0x1ea   :  { %3649 = vmatpush.msra.mxu0 %v11279_v52  ;;  %3740 = vmatpush.msra.mxu2 %v16001_v51  ;;  %v215_v52 = vld [vmem:[%s15614_s1 + $0x558] sm:$0xff] }
 0x1eb   :  { %3689 = vmatpush.msra.mxu1 %v11184_v23  ;;  %3799 = vmatpush.msra.mxu3 %v11204_v30  ;;  %v217_v23 = vld [vmem:[%s15614_s1 + $0x568] sm:$0xff] }
 0x1ec   :  { %3652 = vmatpush.msra.mxu0 %v11296_v1  ;;  %3744 = vmatpush.msra.mxu2 %v16002_v45 }
 0x1ed   :  { %3691 = vmatpush.msra.mxu1 %v11204_v30  ;;  %3801 = vmatpush.msra.mxu3 %v11212_v27  ;;  %v16005_v30 = vand.u32 4294901760, %v11313_v41 }
 0x1ee   :  { %3655 = vmatpush.msra.mxu0 %v11313_v41  ;;  %3748 = vmatpush.msra.mxu2 %v16003_v14  ;;  %v11584_v41 = vand.u32 4294901760, %v215_v52  ;;  %v11716_v14 = vand.u32 4294901760, %v207_v46 }
 0x1ef   :  { %3693 = vmatpush.msra.mxu1 %v11212_v27  ;;  %3803 = vmatpush.msra.mxu3 %v11224_v11  ;;  %v11560_v27 = vand.u32 4294901760, %v217_v23 }
 0x1f0   :  { %3658 = vmatpush.msra.mxu0 %v11328_v56  ;;  %3752 = vmatpush.msra.mxu2 %v16004_v18 }
 0x1f1   :  { %3695 = vmatpush.msra.mxu1 %v11224_v11  ;;  %3805 = vmatpush.msra.mxu3 %v11247_v36  ;;  %v219_v11 = vld [vmem:[%s15614_s1 + $0x578] sm:$0xff]  ;;  %v11590_v56 = vsub.f32 %v217_v23, %v11560_v27  ;;  %v205_v23 = vld [vmem:[%s15614_s1 + $0x508] sm:$0xff] }
 0x1f2   :  { %3661 = vmatpush.msra.mxu0 %v11343_v47  ;;  %3756 = vmatpush.msra.mxu2 %v16005_v30  ;;  %v11540_v29 = vand.u32 4294901760, %v219_v11  ;;  %v213_v47 = vld [vmem:[%s15614_s1 + $0x548] sm:$0xff] }
 0x1f3   :  { %3697 = vmatpush.msra.mxu1 %v11247_v36  ;;  %3807 = vmatpush.msra.mxu3 %v11265_v0  ;;  %v218_v36 = vld [vmem:[%s15614_s1 + $0x570] sm:$0xff] }
 0x1f4   :  { %3664 = vmatpush.msra.mxu0 %v11356_v54  ;;  %3760 = vmatpush.msra.mxu2 %v16006_v61  ;;  %v11550_v49 = vand.u32 4294901760, %v218_v36 }
 0x1f5   :  { %3699 = vmatpush.msra.mxu1 %v11265_v0  ;;  %3809 = vmatpush.msra.mxu3 %v11281_v37  ;;  %v16008_v0 = vand.u32 4294901760, %v11356_v54  ;;  %v11610_v54 = vsub.f32 %v215_v52, %v11584_v41 }
 0x1f6   :  { %3667 = vmatpush.msra.mxu0 %v11372_v25  ;;  %3764 = vmatpush.msra.mxu2 %v16007_v53  ;;  %v11576_v1 = vsub.f32 %v218_v36, %v11550_v49  ;;  %v11620_v25 = vand.u32 4294901760, %v213_v47  ;;  %v11728_v53 = vand.u32 4294901760, %v206_v21 }
 0x1f7   :  { %3701 = vmatpush.msra.mxu1 %v11281_v37  ;;  %3811 = vmatpush.msra.mxu3 %v11298_v24  ;;  %v11563_v37 = vsub.f32 %v219_v11, %v11540_v29 }
 0x1f8   :  { %3670 = vmatpush.msra.mxu0 %v11391_v58  ;;  %3768 = vmatpush.msra.mxu2 %v16008_v0  ;;  %v11732_v0 = vsub.f32 %v208_v22, %v11699_v26 }
 0x1f9   :  { %3703 = vmatpush.msra.mxu1 %v11298_v24  ;;  %3813 = vmatpush.msra.mxu3 %v11315_v16  ;;  %v214_v24 = vld [vmem:[%s15614_s1 + $0x550] sm:$0xff]  ;;  %v3874_v58 = vand.u32 4294901760, %v11563_v37 }
 0x1fa   :  { %3673 = vmatpush.msra.mxu0 %v11412_v32  ;;  %3772 = vmatpush.msra.mxu2 %v3599_v5  ;;  %v3886_v32 = vand.u32 4294901760, %v11590_v56 }
 0x1fb   :  { %3705 = vmatpush.msra.mxu1 %v11315_v16  ;;  %3815 = vmatpush.msra.mxu3 %v11330_v62  ;;  %v11573_v16 = vand.u32 4294901760, %v216_v31 }
 0x1fc   :  { %3676 = vmatpush.msra.mxu0 %v11425_v59  ;;  %3776 = vmatpush.msra.mxu2 %v3605_v60  ;;  %v212_v60 = vld [vmem:[%s15614_s1 + $0x540] sm:$0xff]  ;;  %v3887_v4 = vsub.f32 %v11590_v56, %v3886_v32 }
 0x1fd   :  { %3707 = vmatpush.msra.mxu1 %v11330_v62  ;;  %3817 = vmatpush.msra.mxu3 %v11345_v12  ;;  %v11595_v62 = vand.u32 4294901760, %v214_v24  ;;  %v11604_v5 = vsub.f32 %v216_v31, %v11573_v16  ;;  %v11636_v20 = vand.u32 4294901760, %v212_v60 }
 0x1fe   :  { %3679 = vmatpush.msra.mxu0 %v11439_v9  ;;  %3780 = vmatpush.msra.mxu2 %v3611_v57  ;;  %v15741_v9 = vand.u32 4294901760, %v11610_v54  ;;  %v3888_v40 = vand.u32 4294901760, %v3887_v4  ;;  %v15731_v4 = vand.u32 4294901760, %v11732_v0 }
 0x1ff   :  { %3709 = vmatpush.msra.mxu1 %v11345_v12  ;;  %3819 = vmatpush.msra.mxu3 %v11358_v44  ;;  %v3880_v12 = vand.u32 4294901760, %v11576_v1  ;;  %v11626_v59 = vsub.f32 %v214_v24, %v11595_v62  ;;  %v15744_v57 = vand.u32 4294901760, %v11604_v5  ;;  %v11669_v38 = vsub.f32 %v212_v60, %v11636_v20 }
 0x200   :  { %3682 = vmatmul.f32.vlgmr.msra.gmra.mxu0 %v11428_v6  ;;  %3784 = vmatpush.msra.mxu2 %v3617_v15  ;;  %v11650_v15 = vand.u32 4294901760, %v211_v63  ;;  %v11748_v60 = vsub.f32 %v207_v46, %v11716_v14 }
 0x201   :  { %3832 = vmatpush.msrb.mxu0 %v11540_v29  ;;  %3711 = vmatpush.msra.mxu1 %v11358_v44  ;;  %v3875_v44 = vsub.f32 %v11563_v37, %v3874_v58  ;;  %v15739_v55 = vand.u32 4294901760, %v11626_v59  ;;  %v3893_v19 = vsub.f32 %v11604_v5, %v15744_v57  ;;  %v15736_v33 = vand.u32 4294901760, %v11669_v38 }
 0x202   :  { %3821 = vmatpush.msra.mxu3 %v11383_v13  ;;  %3788 = vmatpush.msra.mxu2 %v3623_v8  ;;  %v11666_v8 = vand.u32 4294901760, %v210_v39  ;;  %v11685_v6 = vsub.f32 %v211_v63, %v11650_v15  ;;  %v11755_v63 = vand.u32 4294901760, %v205_v23 }
 0x203   :  { %3834 = vmatpush.msrb.mxu0 %v11550_v49  ;;  %3713 = vmatpush.msra.mxu1 %v11383_v13  ;;  %v3881_v13 = vsub.f32 %v11576_v1, %v3880_v12  ;;  %v3876_v2 = vand.u32 4294901760, %v3875_v44  ;;  %v3905_v35 = vsub.f32 %v11626_v59, %v15739_v55  ;;  %v3894_v7 = vand.u32 4294901760, %v3893_v19  ;;  %v235_v44 = vld [vmem:[%s15614_s1 + $0x5f8] sm:$0xff] }
 0x204   :  { %3823 = vmatpush.msra.mxu3 %v11399_v48  ;;  %3790 = vmatmul.f32.vlgmr.msra.gmra.mxu2 %v11401_v28  ;;  %v11703_v17 = vsub.f32 %v210_v39, %v11666_v8  ;;  %v15735_v18 = vand.u32 4294901760, %v11685_v6  ;;  %v3917_v11 = vsub.f32 %v11669_v38, %v15736_v33  ;;  %v11771_v19 = vand.u32 4294901760, %v235_v44 }
 0x205   :  { %3836 = vmatpush.msrb.mxu0 %v11560_v27  ;;  %3975 = vmatpush.msrb.mxu2 %v11563_v37  ;;  %v3882_v50 = vand.u32 4294901760, %v3881_v13  ;;  %v3906_v61 = vand.u32 4294901760, %v3905_v35  ;;  %v204_v13 = vld [vmem:[%s15614_s1 + $0x500] sm:$0xff]  ;;  %v15733_v35 = vand.u32 4294901760, %v11748_v60  ;;  %v11786_v46 = vsub.f32 %v205_v23, %v11755_v63  ;;  %v227_v37 = vld [vmem:[%s15614_s1 + $0x5b8] sm:$0xff] }
 0x206   :  { %3715 = vmatpush.msra.mxu1 %v11399_v48  ;;  %3825 = vmatpush.msra.mxu3 %v11414_v43  ;;  %v11653_v48 = vsub.f32 %v213_v47, %v11620_v25  ;;  %v15734_v36 = vand.u32 4294901760, %v11703_v17  ;;  %v3923_v24 = vsub.f32 %v11685_v6, %v15735_v18  ;;  %v3918_v39 = vand.u32 4294901760, %v3917_v11  ;;  %v232_v11 = vld [vmem:[%s15614_s1 + $0x5e0] sm:$0xff] }
 0x207   :  { %3827 = vmatmul.f32.vlgmr.msra.gmra.mxu3 %v11401_v28  ;;  %3838 = vmatpush.msrb.mxu0 %v11573_v16  ;;  %v209_v28 = vld [vmem:[%s15614_s1 + $0x528] sm:$0xff] }
 0x208   :  { %3978 = vmatpush.msrb.mxu2 %v11576_v1  ;;  %4028 = vmatpush.msrb.mxu3 %v11540_v29  ;;  %v11681_v3 = vand.u32 4294901760, %v209_v28  ;;  %v15738_v42 = vand.u32 4294901760, %v11653_v48  ;;  %v3924_v22 = vand.u32 4294901760, %v3923_v24  ;;  %v226_v1 = vld [vmem:[%s15614_s1 + $0x5b0] sm:$0xff] }
 0x209   :  { %3717 = vmatpush.msra.mxu1 %v11414_v43  ;;  %3840 = vmatpush.msrb.mxu0 %v11584_v41  ;;  %v3899_v43 = vsub.f32 %v11610_v54, %v15741_v9 }
 0x20a   :  { %3721 = vmatmul.f32.vlgmr.msra.gmra.mxu1 %v3524_v34  ;;  %3981 = vmatpush.msrb.mxu2 %v11590_v56  ;;  %v31_v34 = vld [vmem:[%s15613_s0 + $0x50] sm:$0xff]  ;;  %v3911_v45 = vsub.f32 %v11653_v48, %v15738_v42  ;;  %v11720_v30 = vsub.f32 %v209_v28, %v11681_v3  ;;  %v11766_v28 = vsub.f32 %v206_v21, %v11728_v53 }
 0x20b   :  { %3877 = vmatpush.msrb.mxu1 %v3876_v2  ;;  %4030 = vmatpush.msrb.mxu3 %v11550_v49  ;;  %v3900_v10 = vand.u32 4294901760, %v3899_v43  ;;  %v11710_v51 = vand.u32 4294901760, %v31_v34  ;;  %v3929_v2 = vsub.f32 %v11703_v17, %v15734_v36  ;;  %v234_v43 = vld [vmem:[%s15614_s1 + $0x5f0] sm:$0xff]  ;;  %v3941_v21 = vsub.f32 %v11732_v0, %v15731_v4 }
 0x20c   :  { %3842 = vmatpush.msrb.mxu0 %v11595_v62  ;;  %3984 = vmatpush.msrb.mxu2 %v11604_v5  ;;  %v3912_v52 = vand.u32 4294901760, %v3911_v45  ;;  %v15732_v47 = vand.u32 4294901760, %v11720_v30  ;;  %v15737_v45 = vand.u32 4294901760, %v11766_v28 }
 0x20d   :  { %3883 = vmatpush.msrb.mxu1 %v3882_v50  ;;  %4032 = vmatpush.msrb.mxu3 %v11560_v27  ;;  %v11740_v31 = vsub.f32 %v31_v34, %v11710_v51  ;;  %v11780_v34 = vand.u32 4294901760, %v204_v13 }
 0x20e   :  { %3844 = vmatpush.msrb.mxu0 %v11620_v25  ;;  %3987 = vmatpush.msrb.mxu2 %v11610_v54 }
 0x20f   :  { %3889 = vmatpush.msrb.mxu1 %v3888_v40  ;;  %4034 = vmatpush.msrb.mxu3 %v11573_v16  ;;  %v3865_v50 = vand.u32 4294901760, %v11740_v31  ;;  %v3935_v40 = vsub.f32 %v11720_v30, %v15732_v47  ;;  %v231_v47 = vld [vmem:[%s15614_s1 + $0x5d8] sm:$0xff] }
 0x210   :  { %3846 = vmatpush.msrb.mxu0 %v11636_v20  ;;  %3990 = vmatpush.msrb.mxu2 %v11626_v59  ;;  %v11836_v33 = vand.u32 4294901760, %v231_v47 }
 0x211   :  { %3895 = vmatpush.msrb.mxu1 %v3894_v7  ;;  %4036 = vmatpush.msrb.mxu3 %v11584_v41  ;;  %v233_v7 = vld [vmem:[%s15614_s1 + $0x5e8] sm:$0xff]  ;;  %v3866_v23 = vsub.f32 %v11740_v31, %v3865_v50  ;;  %v3936_v24 = vand.u32 4294901760, %v3935_v40  ;;  %v3942_v40 = vand.u32 4294901760, %v3941_v21 }
 0x212   :  { %3848 = vmatpush.msrb.mxu0 %v11650_v15  ;;  %3993 = vmatpush.msrb.mxu2 %v11653_v48  ;;  %v11816_v4 = vand.u32 4294901760, %v233_v7 }
 0x213   :  { %3901 = vmatpush.msrb.mxu1 %v3900_v10  ;;  %4038 = vmatpush.msrb.mxu3 %v11595_v62  ;;  %v3930_v10 = vand.u32 4294901760, %v3929_v2  ;;  %v11814_v2 = vsub.f32 %v204_v13, %v11780_v34  ;;  %v3953_v13 = vsub.f32 %v11766_v28, %v15737_v45  ;;  %v3867_v36 = vand.u32 4294901760, %v3866_v23 }
 0x214   :  { %3850 = vmatpush.msrb.mxu0 %v11666_v8  ;;  %3996 = vmatpush.msrb.mxu2 %v11669_v38  ;;  %v11844_v45 = vsub.f32 %v233_v7, %v11816_v4 }
 0x215   :  { %3907 = vmatpush.msrb.mxu1 %v3906_v61  ;;  %4040 = vmatpush.msrb.mxu3 %v11620_v25  ;;  %v11796_v61 = vand.u32 4294901760, %v234_v43  ;;  %v3954_v7 = vand.u32 4294901760, %v3953_v13 }
 0x216   :  { %3852 = vmatpush.msrb.mxu0 %v11681_v3  ;;  %3999 = vmatpush.msrb.mxu2 %v11685_v6  ;;  %v15745_v13 = vand.u32 4294901760, %v11844_v45 }
 0x217   :  { %3913 = vmatpush.msrb.mxu1 %v3912_v52  ;;  %4042 = vmatpush.msrb.mxu3 %v11636_v20  ;;  %v11807_v52 = vsub.f32 %v235_v44, %v11771_v19  ;;  %v15740_v44 = vand.u32 4294901760, %v11786_v46 }
 0x218   :  { %3854 = vmatpush.msrb.mxu0 %v11699_v26  ;;  %4002 = vmatpush.msrb.mxu2 %v11703_v17 }
 0x219   :  { %3919 = vmatpush.msrb.mxu1 %v3918_v39  ;;  %4044 = vmatpush.msrb.mxu3 %v11650_v15  ;;  %v3947_v39 = vsub.f32 %v11748_v60, %v15733_v35  ;;  %v11831_v35 = vsub.f32 %v234_v43, %v11796_v61  ;;  %v15742_v18 = vand.u32 4294901760, %v11807_v52  ;;  %v15743_v43 = vand.u32 4294901760, %v11814_v2 }
 0x21a   :  { %3856 = vmatpush.msrb.mxu0 %v11716_v14  ;;  %4005 = vmatpush.msrb.mxu2 %v11720_v30  ;;  %v3959_v23 = vsub.f32 %v11786_v46, %v15740_v44  ;;  %v11866_v44 = vsub.f32 %v231_v47, %v11836_v33 }
 0x21b   :  { %3925 = vmatpush.msrb.mxu1 %v3924_v22  ;;  %4046 = vmatpush.msrb.mxu3 %v11666_v8  ;;  %v11824_v22 = vand.u32 4294901760, %v232_v11  ;;  %v3948_v21 = vand.u32 4294901760, %v3947_v39  ;;  %v15746_v39 = vand.u32 4294901760, %v11831_v35 }
 0x21c   :  { %3858 = vmatpush.msrb.mxu0 %v11728_v53  ;;  %4008 = vmatpush.msrb.mxu2 %v11732_v0  ;;  %v3960_v47 = vand.u32 4294901760, %v3959_v23  ;;  %v15748_v57 = vand.u32 4294901760, %v11866_v44 }
 0x21d   :  { %3931 = vmatpush.msrb.mxu1 %v3930_v10  ;;  %4048 = vmatpush.msrb.mxu3 %v11681_v3  ;;  %v230_v10 = vld [vmem:[%s15614_s1 + $0x5d0] sm:$0xff]  ;;  %v11852_v42 = vsub.f32 %v232_v11, %v11824_v22  ;;  %v4216_v11 = vsub.f32 %v11807_v52, %v15742_v18 }
 0x21e   :  { %3860 = vmatpush.msrb.mxu0 %v11755_v63  ;;  %4011 = vmatpush.msrb.mxu2 %v11748_v60  ;;  %v11859_v55 = vand.u32 4294901760, %v230_v10 }
 0x21f   :  { %3937 = vmatpush.msrb.mxu1 %v3936_v24  ;;  %4050 = vmatpush.msrb.mxu3 %v11699_v26  ;;  %v229_v24 = vld [vmem:[%s15614_s1 + $0x5c8] sm:$0xff]  ;;  %v15747_v18 = vand.u32 4294901760, %v11852_v42  ;;  %v4217_v23 = vand.u32 4294901760, %v4216_v11  ;;  %v11910_v11 = vand.u32 4294901760, %v227_v37 }
 0x220   :  { %3862 = vmatpush.msrb.mxu0 %v11780_v34  ;;  %4014 = vmatpush.msrb.mxu2 %v11766_v28  ;;  %v11877_v9 = vand.u32 4294901760, %v229_v24 }
 0x221   :  { %3943 = vmatpush.msrb.mxu1 %v3942_v40  ;;  %4052 = vmatpush.msrb.mxu3 %v11716_v14  ;;  %v228_v40 = vld [vmem:[%s15614_s1 + $0x5c0] sm:$0xff]  ;;  %v4234_v56 = vsub.f32 %v11852_v42, %v15747_v18  ;;  %v4240_v18 = vsub.f32 %v11866_v44, %v15748_v57 }
 0x222   :  { %3868 = vmatmul.f32.vlgmr.msrb.gmra.mxu0 %v3867_v36  ;;  %4017 = vmatpush.msrb.mxu2 %v11786_v46  ;;  %v3965_v36 = vsub.f32 %v11814_v2, %v15743_v43  ;;  %v11893_v43 = vand.u32 4294901760, %v228_v40 }
 0x223   :  { %4069 = vmatpush.msra.mxu0 %v3874_v58  ;;  %3949 = vmatpush.msrb.mxu1 %v3948_v21  ;;  %v4222_v58 = vsub.f32 %v11831_v35, %v15746_v39  ;;  %v11891_v21 = vsub.f32 %v230_v10, %v11859_v55  ;;  %v4228_v10 = vsub.f32 %v11844_v45, %v15745_v13  ;;  %v11927_v39 = vand.u32 4294901760, %v226_v1 }
 0x224   :  { %4054 = vmatpush.msrb.mxu3 %v11728_v53  ;;  %4020 = vmatpush.msrb.mxu2 %v11814_v2  ;;  %v4241_v57 = vand.u32 4294901760, %v4240_v18  ;;  %v16012_v18 = vand.u32 4294901760, %v11653_v48  ;;  %v221_v48 = vld [vmem:[%s15614_s1 + $0x588] sm:$0xff] }
 0x225   :  { %4073 = vmatpush.msra.mxu0 %v3880_v12  ;;  %3955 = vmatpush.msrb.mxu1 %v3954_v7  ;;  %v3966_v12 = vand.u32 4294901760, %v3965_v36  ;;  %v11908_v7 = vsub.f32 %v229_v24, %v11877_v9  ;;  %v16009_v36 = vand.u32 4294901760, %v11604_v5  ;;  %v4223_v24 = vand.u32 4294901760, %v4222_v58  ;;  %v224_v5 = vld [vmem:[%s15614_s1 + $0x5a0] sm:$0xff] }
 0x226   :  { %4056 = vmatpush.msrb.mxu3 %v11755_v63  ;;  %4023 = vmatmul.f32.vlgmr.msrb.gmra.mxu2 %v11740_v31  ;;  %v15749_v13 = vand.u32 4294901760, %v11891_v21  ;;  %v16010_v31 = vand.u32 4294901760, %v11610_v54  ;;  %v11940_v58 = vsub.f32 %v227_v37, %v11910_v11 }
 0x227   :  { %4077 = vmatpush.msra.mxu0 %v3886_v32  ;;  %4173 = vmatpush.msra.mxu2 %v11771_v19  ;;  %v225_v32 = vld [vmem:[%s15614_s1 + $0x5a8] sm:$0xff] }
 0x228   :  { %3961 = vmatpush.msrb.mxu1 %v3960_v47  ;;  %4058 = vmatpush.msrb.mxu3 %v11780_v34  ;;  %v11925_v47 = vsub.f32 %v228_v40, %v11893_v43  ;;  %v15751_v40 = vand.u32 4294901760, %v11908_v7  ;;  %v4246_v54 = vsub.f32 %v11891_v21, %v15749_v13 }
 0x229   :  { %4062 = vmatmul.f32.vlgmr.msrb.gmra.mxu3 %v3865_v50  ;;  %4081 = vmatpush.msra.mxu0 %v16009_v36  ;;  %v4229_v50 = vand.u32 4294901760, %v4228_v10  ;;  %v11942_v36 = vand.u32 4294901760, %v225_v32  ;;  %v11955_v10 = vsub.f32 %v226_v1, %v11927_v39 }
 0x22a   :  { %4175 = vmatpush.msra.mxu2 %v11796_v61  ;;  %4218 = vmatpush.msra.mxu3 %v4217_v23  ;;  %v4235_v23 = vand.u32 4294901760, %v4234_v56  ;;  %v15750_v37 = vand.u32 4294901760, %v11925_v47  ;;  %v16011_v56 = vand.u32 4294901760, %v11626_v59  ;;  %v222_v59 = vld [vmem:[%s15614_s1 + $0x590] sm:$0xff] }
 0x22b   :  { %3967 = vmatpush.msrb.mxu1 %v3966_v12  ;;  %4085 = vmatpush.msra.mxu0 %v16010_v31  ;;  %v223_v12 = vld [vmem:[%s15614_s1 + $0x598] sm:$0xff]  ;;  %v11957_v31 = vand.u32 4294901760, %v224_v5  ;;  %v11968_v1 = vsub.f32 %v225_v32, %v11942_v36 }
 0x22c   :  { %3969 = vmatmul.f32.vlgmr.msrb.gmra.mxu1 %v11710_v51  ;;  %4177 = vmatpush.msra.mxu2 %v11816_v4  ;;  %v11970_v13 = vand.u32 4294901760, %v223_v12  ;;  %v4258_v32 = vsub.f32 %v11925_v47, %v15750_v37  ;;  %v16015_v37 = vand.u32 4294901760, %v11703_v17  ;;  %v16017_v17 = vand.u32 4294901760, %v11720_v30 }
 0x22d   :  { %4136 = vmatpush.msra.mxu1 %v11540_v29  ;;  %4224 = vmatpush.msra.mxu3 %v4223_v24  ;;  %v4252_v29 = vsub.f32 %v11908_v7, %v15751_v40  ;;  %v15752_v24 = vand.u32 4294901760, %v11940_v58 }
 0x22e   :  { %4089 = vmatpush.msra.mxu0 %v16011_v56  ;;  %4179 = vmatpush.msra.mxu2 %v11824_v22  ;;  %v11984_v56 = vsub.f32 %v224_v5, %v11957_v31  ;;  %v12003_v40 = vsub.f32 %v223_v12, %v11970_v13 }
 0x22f   :  { %4138 = vmatpush.msra.mxu1 %v11550_v49  ;;  %4230 = vmatpush.msra.mxu3 %v4229_v50  ;;  %v4247_v49 = vand.u32 4294901760, %v4246_v54  ;;  %v15753_v50 = vand.u32 4294901760, %v11955_v10  ;;  %v4253_v5 = vand.u32 4294901760, %v4252_v29  ;;  %v4264_v54 = vsub.f32 %v11940_v58, %v15752_v24 }
 0x230   :  { %4093 = vmatpush.msra.mxu0 %v16012_v18  ;;  %4181 = vmatpush.msra.mxu2 %v11836_v33  ;;  %v32_v18 = vld [vmem:[%s15613_s0 + $0x58] sm:$0xff]  ;;  %v4259_v29 = vand.u32 4294901760, %v4258_v32  ;;  %v4281_v24 = vand.u32 4294901760, %v11984_v56 }
 0x231   :  { %4140 = vmatpush.msra.mxu1 %v11560_v27  ;;  %4236 = vmatpush.msra.mxu3 %v4235_v23  ;;  %v16013_v27 = vand.u32 4294901760, %v11669_v38  ;;  %v11995_v23 = vand.u32 4294901760, %v222_v59  ;;  %v220_v38 = vld [vmem:[%s15614_s1 + $0x580] sm:$0xff]  ;;  %v4270_v12 = vsub.f32 %v11955_v10, %v15753_v50  ;;  %v4287_v50 = vand.u32 4294901760, %v12003_v40 }
 0x232   :  { %4183 = vmatpush.msra.mxu2 %v11859_v55 }
 0x233   :  { %4097 = vmatpush.msra.mxu0 %v16013_v27  ;;  %4142 = vmatpush.msra.mxu1 %v11573_v16  ;;  %v16014_v27 = vand.u32 4294901760, %v11685_v6  ;;  %v12011_v16 = vand.u32 4294901760, %v221_v48  ;;  %v12024_v6 = vsub.f32 %v222_v59, %v11995_v23 }
 0x234   :  { %4242 = vmatpush.msra.mxu3 %v4241_v57  ;;  %4185 = vmatpush.msra.mxu2 %v11877_v9  ;;  %v12013_v57 = vand.u32 4294901760, %v32_v18 }
 0x235   :  { %4101 = vmatpush.msra.mxu0 %v16014_v27  ;;  %4144 = vmatpush.msra.mxu1 %v11584_v41  ;;  %v12026_v27 = vand.u32 4294901760, %v220_v38  ;;  %v4265_v41 = vand.u32 4294901760, %v4264_v54  ;;  %v16018_v54 = vand.u32 4294901760, %v11732_v0  ;;  %v4293_v30 = vand.u32 4294901760, %v12024_v6 }
 0x236   :  { %4248 = vmatpush.msra.mxu3 %v4247_v49  ;;  %4187 = vmatpush.msra.mxu2 %v11893_v43  ;;  %v16016_v49 = vand.u32 4294901760, %v11968_v1  ;;  %v12040_v59 = vsub.f32 %v32_v18, %v12013_v57  ;;  %v4288_v18 = vsub.f32 %v12003_v40, %v4287_v50 }
 0x237   :  { %4105 = vmatpush.msra.mxu0 %v16015_v37  ;;  %4146 = vmatpush.msra.mxu1 %v11595_v62  ;;  %v12037_v37 = vsub.f32 %v221_v48, %v12011_v16  ;;  %v4271_v62 = vand.u32 4294901760, %v4270_v12  ;;  %v12051_v48 = vsub.f32 %v220_v38, %v12026_v27 }
 0x238   :  { %4254 = vmatpush.msra.mxu3 %v4253_v5  ;;  %v4276_v32 = vsub.f32 %v11968_v1, %v16016_v49  ;;  %4189 = vmatpush.msra.mxu2 %v11910_v11  ;;  %v4282_v5 = vsub.f32 %v11984_v56, %v4281_v24  ;;  %v4206_v12 = vand.u32 4294901760, %v12040_v59  ;;  %v4289_v49 = vand.u32 4294901760, %v4288_v18 }
 0x239   :  { %4109 = vmatpush.msra.mxu0 %v16017_v17  ;;  %4148 = vmatpush.msra.mxu1 %v11620_v25  ;;  %v4299_v0 = vand.u32 4294901760, %v12037_v37 }
 0x23a   :  { %4260 = vmatpush.msra.mxu3 %v4259_v29  ;;  %4191 = vmatpush.msra.mxu2 %v11927_v39  ;;  %v4277_v25 = vand.u32 4294901760, %v4276_v32  ;;  %v16019_v29 = vand.u32 4294901760, %v11748_v60  ;;  %v4283_v38 = vand.u32 4294901760, %v4282_v5  ;;  %v4294_v60 = vsub.f32 %v12024_v6, %v4293_v30  ;;  %v243_v5 = vld [vmem:[%s15614_s1 + $0x638] sm:$0xff] }
 0x23b   :  { %4113 = vmatpush.msra.mxu0 %v16018_v54  ;;  %4150 = vmatpush.msra.mxu1 %v11636_v20  ;;  %v16020_v20 = vand.u32 4294901760, %v11766_v28  ;;  %v16021_v32 = vand.u32 4294901760, %v11786_v46  ;;  %v4207_v28 = vsub.f32 %v12040_v59, %v4206_v12 }
 0x23c   :  { %4266 = vmatpush.msra.mxu3 %v4265_v41  ;;  %4193 = vmatpush.msra.mxu2 %v11942_v36  ;;  %v4305_v41 = vand.u32 4294901760, %v12051_v48  ;;  %v4295_v46 = vand.u32 4294901760, %v4294_v60 }
 0x23d   :  { %4117 = vmatpush.msra.mxu0 %v16019_v29  ;;  %4152 = vmatpush.msra.mxu1 %v11650_v15  ;;  %v4300_v15 = vsub.f32 %v12037_v37, %v4299_v0 }
 0x23e   :  { %4272 = vmatpush.msra.mxu3 %v4271_v62  ;;  %4195 = vmatpush.msra.mxu2 %v11957_v31  ;;  %v4306_v17 = vsub.f32 %v12051_v48, %v4305_v41 }
 0x23f   :  { %4121 = vmatpush.msra.mxu0 %v16020_v20  ;;  %4154 = vmatpush.msra.mxu1 %v11666_v8  ;;  %v16022_v8 = vand.u32 4294901760, %v11814_v2  ;;  %v4301_v62 = vand.u32 4294901760, %v4300_v15 }
 0x240   :  { %4278 = vmatpush.msra.mxu3 %v4277_v25  ;;  %4197 = vmatpush.msra.mxu2 %v11970_v13  ;;  %v4307_v2 = vand.u32 4294901760, %v4306_v17  ;;  %v242_v25 = vld [vmem:[%s15614_s1 + $0x630] sm:$0xff]  ;;  %v239_v17 = vld [vmem:[%s15614_s1 + $0x618] sm:$0xff] }
 0x241   :  { %4125 = vmatpush.msra.mxu0 %v16021_v32  ;;  %4156 = vmatpush.msra.mxu1 %v11681_v3  ;;  %v4208_v3 = vand.u32 4294901760, %v4207_v28  ;;  %v240_v32 = vld [vmem:[%s15614_s1 + $0x620] sm:$0xff] }
 0x242   :  { %4284 = vmatpush.msra.mxu3 %v4283_v38  ;;  %4199 = vmatpush.msra.mxu2 %v11995_v23 }
 0x243   :  { %4129 = vmatpush.msra.mxu0 %v16022_v8  ;;  %4158 = vmatpush.msra.mxu1 %v11699_v26  ;;  %v16023_v26 = vand.u32 4294901760, %v11807_v52 }
 0x244   :  { %4290 = vmatpush.msra.mxu3 %v4289_v49  ;;  %4131 = vmatmul.f32.vlgmr.msra.gmra.mxu0 %v11710_v51 }
 0x245   :  { %4201 = vmatpush.msra.mxu2 %v12011_v16  ;;  %4316 = vmatpush.msrb.mxu0 %v11807_v52 }
 0x246   :  { %4160 = vmatpush.msra.mxu1 %v11716_v14  ;;  %4296 = vmatpush.msra.mxu3 %v4295_v46  ;;  %v16024_v14 = vand.u32 4294901760, %v11831_v35 }
 0x247   :  { %4203 = vmatpush.msra.mxu2 %v12026_v27  ;;  %4319 = vmatpush.msrb.mxu0 %v11831_v35  ;;  %v16032_v35 = vand.u32 4294901760, %v11955_v10 }
 0x248   :  { %4162 = vmatpush.msra.mxu1 %v11728_v53  ;;  %4302 = vmatpush.msra.mxu3 %v4301_v62  ;;  %v16025_v53 = vand.u32 4294901760, %v11844_v45 }
 0x249   :  { %4209 = vmatmul.f32.vlgmr.msra.gmra.mxu2 %v4208_v3  ;;  %4322 = vmatpush.msrb.mxu0 %v11844_v45  ;;  %v12311_v3 = vand.u32 4294901760, %v240_v32 }
 0x24a   :  { %4410 = vmatpush.msrb.mxu2 %v16023_v26  ;;  %4164 = vmatpush.msra.mxu1 %v11755_v63  ;;  %v16026_v63 = vand.u32 4294901760, %v11852_v42 }
 0x24b   :  { %4308 = vmatpush.msra.mxu3 %v4307_v2  ;;  %4325 = vmatpush.msrb.mxu0 %v11852_v42  ;;  %v16029_v42 = vand.u32 4294901760, %v11908_v7 }
 0x24c   :  { %4310 = vmatmul.f32.vlgmr.msra.gmra.mxu3 %v12013_v57  ;;  %4414 = vmatpush.msrb.mxu2 %v16024_v14 }
 0x24d   :  { %4477 = vmatpush.msrb.mxu3 %v11771_v19  ;;  %4166 = vmatpush.msra.mxu1 %v11780_v34  ;;  %v16031_v34 = vand.u32 4294901760, %v11940_v58 }
 0x24e   :  { %4328 = vmatpush.msrb.mxu0 %v11866_v44  ;;  %4168 = vmatmul.f32.vlgmr.msra.gmra.mxu1 %v11710_v51  ;;  %v16027_v51 = vand.u32 4294901760, %v11866_v44  ;;  %v248_v44 = vld [vmem:[%s15614_s1 + $0x660] sm:$0xff] }
 0x24f   :  { %4418 = vmatpush.msrb.mxu2 %v16025_v53  ;;  %4369 = vmatpush.msrb.mxu1 %v11771_v19  ;;  %v16028_v19 = vand.u32 4294901760, %v11891_v21  ;;  %v238_v53 = vld [vmem:[%s15614_s1 + $0x610] sm:$0xff] }
 0x250   :  { %4479 = vmatpush.msrb.mxu3 %v11796_v61  ;;  %4331 = vmatpush.msrb.mxu0 %v11891_v21  ;;  %v247_v21 = vld [vmem:[%s15614_s1 + $0x658] sm:$0xff] }
 0x251   :  { %4422 = vmatpush.msrb.mxu2 %v16026_v63  ;;  %4371 = vmatpush.msrb.mxu1 %v11796_v61  ;;  %v249_v61 = vld [vmem:[%s15614_s1 + $0x668] sm:$0xff] }
 0x252   :  { %4481 = vmatpush.msrb.mxu3 %v11816_v4  ;;  %4334 = vmatpush.msrb.mxu0 %v11908_v7 }
 0x253   :  { %4426 = vmatpush.msrb.mxu2 %v16027_v51  ;;  %4373 = vmatpush.msrb.mxu1 %v11816_v4  ;;  %v16030_v4 = vand.u32 4294901760, %v11925_v47 }
 0x254   :  { %4483 = vmatpush.msrb.mxu3 %v11824_v22  ;;  %4337 = vmatpush.msrb.mxu0 %v11925_v47  ;;  %v12196_v47 = vand.u32 4294901760, %v247_v21 }
 0x255   :  { %4430 = vmatpush.msrb.mxu2 %v16028_v19  ;;  %4375 = vmatpush.msrb.mxu1 %v11824_v22  ;;  %v12172_v22 = vand.u32 4294901760, %v249_v61  ;;  %v12328_v19 = vand.u32 4294901760, %v239_v17 }
 0x256   :  { %4485 = vmatpush.msrb.mxu3 %v11836_v33  ;;  %4340 = vmatpush.msrb.mxu0 %v11940_v58 }
 0x257   :  { %4434 = vmatpush.msrb.mxu2 %v16029_v42  ;;  %4377 = vmatpush.msrb.mxu1 %v11836_v33  ;;  %v251_v33 = vld [vmem:[%s15614_s1 + $0x678] sm:$0xff]  ;;  %v12202_v58 = vsub.f32 %v249_v61, %v12172_v22  ;;  %v237_v61 = vld [vmem:[%s15614_s1 + $0x608] sm:$0xff] }
 0x258   :  { %4487 = vmatpush.msrb.mxu3 %v11859_v55  ;;  %4343 = vmatpush.msrb.mxu0 %v11955_v10  ;;  %v12152_v45 = vand.u32 4294901760, %v251_v33  ;;  %v245_v10 = vld [vmem:[%s15614_s1 + $0x648] sm:$0xff] }
 0x259   :  { %4438 = vmatpush.msrb.mxu2 %v16030_v4  ;;  %4379 = vmatpush.msrb.mxu1 %v11859_v55  ;;  %v250_v55 = vld [vmem:[%s15614_s1 + $0x670] sm:$0xff] }
 0x25a   :  { %4489 = vmatpush.msrb.mxu3 %v11877_v9  ;;  %4346 = vmatpush.msrb.mxu0 %v11968_v1  ;;  %v12162_v52 = vand.u32 4294901760, %v250_v55 }
 0x25b   :  { %4442 = vmatpush.msrb.mxu2 %v16031_v34  ;;  %4381 = vmatpush.msrb.mxu1 %v11877_v9  ;;  %v16033_v9 = vand.u32 4294901760, %v11968_v1  ;;  %v12222_v1 = vsub.f32 %v247_v21, %v12196_v47 }
 0x25c   :  { %4491 = vmatpush.msrb.mxu3 %v11893_v43  ;;  %4349 = vmatpush.msrb.mxu0 %v11984_v56  ;;  %v12188_v7 = vsub.f32 %v250_v55, %v12162_v52  ;;  %v12232_v56 = vand.u32 4294901760, %v245_v10 }
 0x25d   :  { %4446 = vmatpush.msrb.mxu2 %v16032_v35  ;;  %4383 = vmatpush.msrb.mxu1 %v11893_v43  ;;  %v12175_v43 = vsub.f32 %v251_v33, %v12152_v45  ;;  %v12340_v35 = vand.u32 4294901760, %v238_v53 }
 0x25e   :  { %4493 = vmatpush.msrb.mxu3 %v11910_v11  ;;  %4352 = vmatpush.msrb.mxu0 %v12003_v40 }
 0x25f   :  { %4450 = vmatpush.msrb.mxu2 %v16033_v9  ;;  %4385 = vmatpush.msrb.mxu1 %v11910_v11  ;;  %v246_v11 = vld [vmem:[%s15614_s1 + $0x650] sm:$0xff]  ;;  %v4556_v40 = vand.u32 4294901760, %v12175_v43  ;;  %v12344_v9 = vsub.f32 %v240_v32, %v12311_v3 }
 0x260   :  { %4495 = vmatpush.msrb.mxu3 %v11927_v39  ;;  %4355 = vmatpush.msrb.mxu0 %v12024_v6  ;;  %v4568_v6 = vand.u32 4294901760, %v12202_v58 }
 0x261   :  { %4454 = vmatpush.msrb.mxu2 %v4281_v24  ;;  %4387 = vmatpush.msrb.mxu1 %v11927_v39  ;;  %v12185_v39 = vand.u32 4294901760, %v248_v44 }
 0x262   :  { %4497 = vmatpush.msrb.mxu3 %v11942_v36  ;;  %4358 = vmatpush.msrb.mxu0 %v12037_v37  ;;  %v4569_v29 = vsub.f32 %v12202_v58, %v4568_v6 }
 0x263   :  { %4458 = vmatpush.msrb.mxu2 %v4287_v50  ;;  %4389 = vmatpush.msrb.mxu1 %v11942_v36  ;;  %v12207_v36 = vand.u32 4294901760, %v246_v11  ;;  %v12216_v24 = vsub.f32 %v248_v44, %v12185_v39  ;;  %v244_v50 = vld [vmem:[%s15614_s1 + $0x640] sm:$0xff] }
 0x264   :  { %4499 = vmatpush.msrb.mxu3 %v11957_v31  ;;  %4361 = vmatpush.msrb.mxu0 %v12051_v48  ;;  %v12248_v54 = vand.u32 4294901760, %v244_v50  ;;  %v15764_v48 = vand.u32 4294901760, %v12222_v1  ;;  %v4570_v15 = vand.u32 4294901760, %v4569_v29  ;;  %v15754_v29 = vand.u32 4294901760, %v12344_v9 }
 0x265   :  { %4462 = vmatpush.msrb.mxu2 %v4293_v30  ;;  %4391 = vmatpush.msrb.mxu1 %v11957_v31  ;;  %v4562_v31 = vand.u32 4294901760, %v12188_v7  ;;  %v12238_v37 = vsub.f32 %v246_v11, %v12207_v36  ;;  %v15767_v30 = vand.u32 4294901760, %v12216_v24 }
 0x266   :  { %4501 = vmatpush.msrb.mxu3 %v11970_v13  ;;  %4364 = vmatmul.f32.vlgmr.msrb.gmra.mxu0 %v12040_v59  ;;  %v12281_v49 = vsub.f32 %v244_v50, %v12248_v54  ;;  %v12360_v50 = vsub.f32 %v239_v17, %v12328_v19 }
 0x267   :  { %4466 = vmatpush.msrb.mxu2 %v4299_v0  ;;  %4514 = vmatpush.msra.mxu0 %v12152_v45  ;;  %v12262_v0 = vand.u32 4294901760, %v243_v5  ;;  %v15762_v38 = vand.u32 4294901760, %v12238_v37  ;;  %v4575_v60 = vsub.f32 %v12216_v24, %v15767_v30 }
 0x268   :  { %4393 = vmatpush.msrb.mxu1 %v11970_v13  ;;  %4503 = vmatpush.msrb.mxu3 %v11995_v23  ;;  %v4557_v13 = vsub.f32 %v12175_v43, %v4556_v40  ;;  %v15759_v2 = vand.u32 4294901760, %v12281_v49 }
 0x269   :  { %4470 = vmatpush.msrb.mxu2 %v4305_v41  ;;  %4516 = vmatpush.msra.mxu0 %v12162_v52  ;;  %v12278_v41 = vand.u32 4294901760, %v242_v25  ;;  %v12297_v59 = vsub.f32 %v243_v5, %v12262_v0  ;;  %v4587_v46 = vsub.f32 %v12238_v37, %v15762_v38  ;;  %v4576_v62 = vand.u32 4294901760, %v4575_v60 }
 0x26a   :  { %4395 = vmatpush.msrb.mxu1 %v11995_v23  ;;  %4505 = vmatpush.msrb.mxu3 %v12011_v16  ;;  %v4563_v23 = vsub.f32 %v12188_v7, %v4562_v31  ;;  %v4558_v18 = vand.u32 4294901760, %v4557_v13  ;;  %v4599_v33 = vsub.f32 %v12281_v49, %v15759_v2  ;;  %v267_v13 = vld [vmem:[%s15614_s1 + $0x6f8] sm:$0xff]  ;;  %v12367_v5 = vand.u32 4294901760, %v237_v61 }
 0x26b   :  { %4472 = vmatmul.f32.vlgmr.msrb.gmra.mxu2 %v12013_v57  ;;  %4518 = vmatpush.msra.mxu0 %v12172_v22  ;;  %v12315_v26 = vsub.f32 %v242_v25, %v12278_v41  ;;  %v15758_v42 = vand.u32 4294901760, %v12297_v59  ;;  %v4588_v34 = vand.u32 4294901760, %v4587_v46  ;;  %v12383_v60 = vand.u32 4294901760, %v267_v13 }
 0x26c   :  { %4657 = vmatpush.msra.mxu2 %v12175_v43  ;;  %4397 = vmatpush.msrb.mxu1 %v12011_v16  ;;  %v12265_v16 = vsub.f32 %v245_v10, %v12232_v56  ;;  %v4564_v20 = vand.u32 4294901760, %v4563_v23  ;;  %v236_v23 = vld [vmem:[%s15614_s1 + $0x600] sm:$0xff]  ;;  %v4600_v25 = vand.u32 4294901760, %v4599_v33  ;;  %v15756_v46 = vand.u32 4294901760, %v12360_v50  ;;  %v259_v43 = vld [vmem:[%s15614_s1 + $0x6b8] sm:$0xff] }
 0x26d   :  { %4507 = vmatpush.msrb.mxu3 %v12026_v27  ;;  %4520 = vmatpush.msra.mxu0 %v12185_v39  ;;  %v15757_v55 = vand.u32 4294901760, %v12315_v26  ;;  %v4605_v11 = vsub.f32 %v12297_v59, %v15758_v42  ;;  %v12398_v17 = vsub.f32 %v237_v61, %v12367_v5  ;;  %v264_v33 = vld [vmem:[%s15614_s1 + $0x6e0] sm:$0xff] }
 0x26e   :  { %4509 = vmatmul.f32.vlgmr.msrb.gmra.mxu3 %v12013_v57  ;;  %4660 = vmatpush.msra.mxu2 %v12188_v7  ;;  %v241_v57 = vld [vmem:[%s15614_s1 + $0x628] sm:$0xff]  ;;  %v15761_v8 = vand.u32 4294901760, %v12265_v16  ;;  %v258_v7 = vld [vmem:[%s15614_s1 + $0x6b0] sm:$0xff] }
 0x26f   :  { %4710 = vmatpush.msra.mxu3 %v12152_v45  ;;  %4399 = vmatpush.msrb.mxu1 %v12026_v27  ;;  %v4581_v27 = vsub.f32 %v12222_v1, %v15764_v48  ;;  %v12293_v28 = vand.u32 4294901760, %v241_v57  ;;  %v4606_v32 = vand.u32 4294901760, %v4605_v11 }
 0x270   :  { %4522 = vmatpush.msra.mxu0 %v12196_v47  ;;  %4403 = vmatmul.f32.vlgmr.msrb.gmra.mxu1 %v4206_v12  ;;  %v33_v12 = vld [vmem:[%s15613_s0 + $0x60] sm:$0xff]  ;;  %v4593_v51 = vsub.f32 %v12265_v16, %v15761_v8 }
 0x271   :  { %4663 = vmatpush.msra.mxu2 %v12202_v58  ;;  %4559 = vmatpush.msra.mxu1 %v4558_v18  ;;  %v4582_v14 = vand.u32 4294901760, %v4581_v27  ;;  %v12322_v63 = vand.u32 4294901760, %v33_v12  ;;  %v12332_v4 = vsub.f32 %v241_v57, %v12293_v28  ;;  %v4611_v18 = vsub.f32 %v12315_v26, %v15757_v55  ;;  %v266_v27 = vld [vmem:[%s15614_s1 + $0x6f0] sm:$0xff] }
 0x272   :  { %4712 = vmatpush.msra.mxu3 %v12162_v52  ;;  %4524 = vmatpush.msra.mxu0 %v12207_v36  ;;  %v4594_v21 = vand.u32 4294901760, %v4593_v51  ;;  %v12378_v57 = vsub.f32 %v238_v53, %v12340_v35  ;;  %v4623_v53 = vsub.f32 %v12344_v9, %v15754_v29 }
 0x273   :  { %4666 = vmatpush.msra.mxu2 %v12216_v24  ;;  %4565 = vmatpush.msra.mxu1 %v4564_v20  ;;  %v12352_v44 = vsub.f32 %v33_v12, %v12322_v63  ;;  %v15755_v10 = vand.u32 4294901760, %v12332_v4  ;;  %v12392_v12 = vand.u32 4294901760, %v236_v23 }
 0x274   :  { %4714 = vmatpush.msra.mxu3 %v12172_v22  ;;  %4526 = vmatpush.msra.mxu0 %v12232_v56  ;;  %v15760_v51 = vand.u32 4294901760, %v12378_v57 }
 0x275   :  { %4669 = vmatpush.msra.mxu2 %v12222_v1  ;;  %4571 = vmatpush.msra.mxu1 %v4570_v15  ;;  %v4547_v20 = vand.u32 4294901760, %v12352_v44  ;;  %v4617_v15 = vsub.f32 %v12332_v4, %v15755_v10  ;;  %v263_v10 = vld [vmem:[%s15614_s1 + $0x6d8] sm:$0xff] }
 0x276   :  { %4716 = vmatpush.msra.mxu3 %v12185_v39  ;;  %4528 = vmatpush.msra.mxu0 %v12248_v54  ;;  %v12448_v2 = vand.u32 4294901760, %v263_v10 }
 0x277   :  { %4672 = vmatpush.msra.mxu2 %v12238_v37  ;;  %4577 = vmatpush.msra.mxu1 %v4576_v62  ;;  %v265_v62 = vld [vmem:[%s15614_s1 + $0x6e8] sm:$0xff]  ;;  %v4548_v61 = vsub.f32 %v12352_v44, %v4547_v20  ;;  %v4618_v11 = vand.u32 4294901760, %v4617_v15  ;;  %v4624_v15 = vand.u32 4294901760, %v4623_v53 }
 0x278   :  { %4718 = vmatpush.msra.mxu3 %v12196_v47  ;;  %4530 = vmatpush.msra.mxu0 %v12262_v0  ;;  %v12428_v29 = vand.u32 4294901760, %v265_v62 }
 0x279   :  { %4675 = vmatpush.msra.mxu2 %v12265_v16  ;;  %4583 = vmatpush.msra.mxu1 %v4582_v14  ;;  %v4612_v14 = vand.u32 4294901760, %v4611_v18  ;;  %v12426_v18 = vsub.f32 %v236_v23, %v12392_v12  ;;  %v4635_v23 = vsub.f32 %v12378_v57, %v15760_v51  ;;  %v4549_v55 = vand.u32 4294901760, %v4548_v61 }
 0x27a   :  { %4720 = vmatpush.msra.mxu3 %v12207_v36  ;;  %4532 = vmatpush.msra.mxu0 %v12278_v41  ;;  %v12456_v51 = vsub.f32 %v265_v62, %v12428_v29 }
 0x27b   :  { %4678 = vmatpush.msra.mxu2 %v12281_v49  ;;  %4589 = vmatpush.msra.mxu1 %v4588_v34  ;;  %v12408_v34 = vand.u32 4294901760, %v266_v27  ;;  %v4636_v62 = vand.u32 4294901760, %v4635_v23 }
 0x27c   :  { %4722 = vmatpush.msra.mxu3 %v12232_v56  ;;  %4534 = vmatpush.msra.mxu0 %v12293_v28  ;;  %v15768_v23 = vand.u32 4294901760, %v12456_v51 }
 0x27d   :  { %4681 = vmatpush.msra.mxu2 %v12297_v59  ;;  %4595 = vmatpush.msra.mxu1 %v4594_v21  ;;  %v12419_v21 = vsub.f32 %v267_v13, %v12383_v60  ;;  %v15763_v13 = vand.u32 4294901760, %v12398_v17 }
 0x27e   :  { %4724 = vmatpush.msra.mxu3 %v12248_v54  ;;  %4536 = vmatpush.msra.mxu0 %v12311_v3 }
 0x27f   :  { %4684 = vmatpush.msra.mxu2 %v12315_v26  ;;  %4601 = vmatpush.msra.mxu1 %v4600_v25  ;;  %v4629_v25 = vsub.f32 %v12360_v50, %v15756_v46  ;;  %v12443_v46 = vsub.f32 %v266_v27, %v12408_v34  ;;  %v15765_v42 = vand.u32 4294901760, %v12419_v21  ;;  %v15766_v27 = vand.u32 4294901760, %v12426_v18 }
 0x280   :  { %4726 = vmatpush.msra.mxu3 %v12262_v0  ;;  %4538 = vmatpush.msra.mxu0 %v12328_v19  ;;  %v4641_v61 = vsub.f32 %v12398_v17, %v15763_v13  ;;  %v12478_v13 = vsub.f32 %v263_v10, %v12448_v2 }
 0x281   :  { %4687 = vmatpush.msra.mxu2 %v12332_v4  ;;  %4607 = vmatpush.msra.mxu1 %v4606_v32  ;;  %v12436_v32 = vand.u32 4294901760, %v264_v33  ;;  %v4630_v53 = vand.u32 4294901760, %v4629_v25  ;;  %v15769_v25 = vand.u32 4294901760, %v12443_v46 }
 0x282   :  { %4728 = vmatpush.msra.mxu3 %v12278_v41  ;;  %4540 = vmatpush.msra.mxu0 %v12340_v35  ;;  %v4642_v10 = vand.u32 4294901760, %v4641_v61  ;;  %v15771_v30 = vand.u32 4294901760, %v12478_v13 }
 0x283   :  { %4690 = vmatpush.msra.mxu2 %v12344_v9  ;;  %4613 = vmatpush.msra.mxu1 %v4612_v14  ;;  %v262_v14 = vld [vmem:[%s15614_s1 + $0x6d0] sm:$0xff]  ;;  %v12464_v8 = vsub.f32 %v264_v33, %v12436_v32  ;;  %v4898_v33 = vsub.f32 %v12419_v21, %v15765_v42 }
 0x284   :  { %4730 = vmatpush.msra.mxu3 %v12293_v28  ;;  %4542 = vmatpush.msra.mxu0 %v12367_v5  ;;  %v12471_v38 = vand.u32 4294901760, %v262_v14 }
 0x285   :  { %4693 = vmatpush.msra.mxu2 %v12360_v50  ;;  %4619 = vmatpush.msra.mxu1 %v4618_v11  ;;  %v261_v11 = vld [vmem:[%s15614_s1 + $0x6c8] sm:$0xff]  ;;  %v15770_v42 = vand.u32 4294901760, %v12464_v8  ;;  %v4899_v61 = vand.u32 4294901760, %v4898_v33  ;;  %v12522_v33 = vand.u32 4294901760, %v259_v43 }
 0x286   :  { %4732 = vmatpush.msra.mxu3 %v12311_v3  ;;  %4544 = vmatpush.msra.mxu0 %v12392_v12  ;;  %v12489_v48 = vand.u32 4294901760, %v261_v11 }
 0x287   :  { %4696 = vmatpush.msra.mxu2 %v12378_v57  ;;  %4625 = vmatpush.msra.mxu1 %v4624_v15  ;;  %v260_v15 = vld [vmem:[%s15614_s1 + $0x6c0] sm:$0xff]  ;;  %v4916_v58 = vsub.f32 %v12464_v8, %v15770_v42  ;;  %v4922_v42 = vsub.f32 %v12478_v13, %v15771_v30 }
 0x288   :  { %4734 = vmatpush.msra.mxu3 %v12328_v19  ;;  %4550 = vmatmul.f32.vlgmr.msra.gmra.mxu0 %v4549_v55  ;;  %v4647_v55 = vsub.f32 %v12426_v18, %v15766_v27  ;;  %v12505_v27 = vand.u32 4294901760, %v260_v15 }
 0x289   :  { %4699 = vmatpush.msra.mxu2 %v12398_v17  ;;  %4751 = vmatpush.msrb.mxu0 %v4556_v40  ;;  %v4904_v40 = vsub.f32 %v12443_v46, %v15769_v25  ;;  %v12539_v25 = vand.u32 4294901760, %v258_v7  ;;  %v4923_v30 = vand.u32 4294901760, %v4922_v42  ;;  %v16037_v42 = vand.u32 4294901760, %v12265_v16  ;;  %v253_v16 = vld [vmem:[%s15614_s1 + $0x688] sm:$0xff] }
 0x28a   :  { %4631 = vmatpush.msra.mxu1 %v4630_v53  ;;  %4736 = vmatpush.msra.mxu3 %v12340_v35  ;;  %v12503_v53 = vsub.f32 %v262_v14, %v12471_v38  ;;  %v4910_v14 = vsub.f32 %v12456_v51, %v15768_v23 }
 0x28b   :  { %4702 = vmatpush.msra.mxu2 %v12426_v18  ;;  %4755 = vmatpush.msrb.mxu0 %v4562_v31  ;;  %v4648_v31 = vand.u32 4294901760, %v4647_v55  ;;  %v16034_v55 = vand.u32 4294901760, %v12216_v24  ;;  %v256_v24 = vld [vmem:[%s15614_s1 + $0x6a0] sm:$0xff] }
 0x28c   :  { %4637 = vmatpush.msra.mxu1 %v4636_v62  ;;  %4738 = vmatpush.msra.mxu3 %v12367_v5  ;;  %v12520_v62 = vsub.f32 %v261_v11, %v12489_v48  ;;  %v4905_v11 = vand.u32 4294901760, %v4904_v40  ;;  %v15772_v23 = vand.u32 4294901760, %v12503_v53  ;;  %v12552_v40 = vsub.f32 %v259_v43, %v12522_v33 }
 0x28d   :  { %4705 = vmatmul.f32.vlgmr.msra.gmra.mxu2 %v12352_v44  ;;  %4759 = vmatpush.msrb.mxu0 %v4568_v6  ;;  %v257_v6 = vld [vmem:[%s15614_s1 + $0x6a8] sm:$0xff]  ;;  %v16035_v44 = vand.u32 4294901760, %v12222_v1 }
 0x28e   :  { %4855 = vmatpush.msrb.mxu2 %v12383_v60  ;;  %4643 = vmatpush.msra.mxu1 %v4642_v10  ;;  %v12537_v10 = vsub.f32 %v260_v15, %v12505_v27  ;;  %v15774_v15 = vand.u32 4294901760, %v12520_v62  ;;  %v4928_v1 = vsub.f32 %v12503_v53, %v15772_v23 }
 0x28f   :  { %4740 = vmatpush.msra.mxu3 %v12392_v12  ;;  %4763 = vmatpush.msrb.mxu0 %v16034_v55  ;;  %v12554_v55 = vand.u32 4294901760, %v257_v6 }
 0x290   :  { %4744 = vmatmul.f32.vlgmr.msra.gmra.mxu3 %v4547_v20  ;;  %4857 = vmatpush.msrb.mxu2 %v12408_v34  ;;  %v4911_v20 = vand.u32 4294901760, %v4910_v14  ;;  %v15773_v43 = vand.u32 4294901760, %v12537_v10  ;;  %v12567_v14 = vsub.f32 %v258_v7, %v12539_v25 }
 0x291   :  { %4900 = vmatpush.msrb.mxu3 %v4899_v61  ;;  %4649 = vmatpush.msra.mxu1 %v4648_v31  ;;  %v4917_v61 = vand.u32 4294901760, %v4916_v58  ;;  %v255_v31 = vld [vmem:[%s15614_s1 + $0x698] sm:$0xff]  ;;  %v16036_v58 = vand.u32 4294901760, %v12238_v37  ;;  %v12580_v7 = vsub.f32 %v257_v6, %v12554_v55  ;;  %v254_v37 = vld [vmem:[%s15614_s1 + $0x690] sm:$0xff] }
 0x292   :  { %4767 = vmatpush.msrb.mxu0 %v16035_v44  ;;  %4651 = vmatmul.f32.vlgmr.msra.gmra.mxu1 %v12322_v63  ;;  %v12569_v44 = vand.u32 4294901760, %v256_v24  ;;  %v12582_v23 = vand.u32 4294901760, %v255_v31  ;;  %v4940_v6 = vsub.f32 %v12537_v10, %v15773_v43  ;;  %v16040_v43 = vand.u32 4294901760, %v12315_v26 }
 0x293   :  { %4859 = vmatpush.msrb.mxu2 %v12428_v29  ;;  %4818 = vmatpush.msrb.mxu1 %v12152_v45  ;;  %v4934_v45 = vsub.f32 %v12520_v62, %v15774_v15  ;;  %v16042_v26 = vand.u32 4294901760, %v12332_v4 }
 0x294   :  { %4906 = vmatpush.msrb.mxu3 %v4905_v11  ;;  %4771 = vmatpush.msrb.mxu0 %v16036_v58  ;;  %v15775_v11 = vand.u32 4294901760, %v12552_v40  ;;  %v12596_v58 = vsub.f32 %v256_v24, %v12569_v44  ;;  %v12615_v15 = vsub.f32 %v255_v31, %v12582_v23 }
 0x295   :  { %4861 = vmatpush.msrb.mxu2 %v12436_v32  ;;  %4820 = vmatpush.msrb.mxu1 %v12162_v52  ;;  %v4929_v52 = vand.u32 4294901760, %v4928_v1  ;;  %v4935_v24 = vand.u32 4294901760, %v4934_v45  ;;  %v4941_v45 = vand.u32 4294901760, %v4940_v6 }
 0x296   :  { %4912 = vmatpush.msrb.mxu3 %v4911_v20  ;;  %4775 = vmatpush.msrb.mxu0 %v16037_v42  ;;  %v15776_v20 = vand.u32 4294901760, %v12567_v14  ;;  %v34_v42 = vld [vmem:[%s15613_s0 + $0x68] sm:$0xff]  ;;  %v4946_v1 = vsub.f32 %v12552_v40, %v15775_v11  ;;  %v4963_v11 = vand.u32 4294901760, %v12596_v58 }
 0x297   :  { %4863 = vmatpush.msrb.mxu2 %v12448_v2  ;;  %4822 = vmatpush.msrb.mxu1 %v12172_v22  ;;  %v16038_v22 = vand.u32 4294901760, %v12281_v49  ;;  %v252_v49 = vld [vmem:[%s15614_s1 + $0x680] sm:$0xff] }
 0x298   :  { %4918 = vmatpush.msrb.mxu3 %v4917_v61  ;;  %v12607_v61 = vand.u32 4294901760, %v254_v37  ;;  %v4952_v31 = vsub.f32 %v12567_v14, %v15776_v20  ;;  %v4969_v20 = vand.u32 4294901760, %v12615_v15 }
 0x299   :  { %4779 = vmatpush.msrb.mxu0 %v16038_v22  ;;  %4865 = vmatpush.msrb.mxu2 %v12471_v38  ;;  %v16039_v22 = vand.u32 4294901760, %v12297_v59 }
 0x29a   :  { %4824 = vmatpush.msrb.mxu1 %v12185_v39  ;;  %4924 = vmatpush.msrb.mxu3 %v4923_v30  ;;  %v12623_v39 = vand.u32 4294901760, %v253_v16  ;;  %v12625_v30 = vand.u32 4294901760, %v34_v42  ;;  %v12636_v59 = vsub.f32 %v254_v37, %v12607_v61 }
 0x29b   :  { %4783 = vmatpush.msrb.mxu0 %v16039_v22  ;;  %4867 = vmatpush.msrb.mxu2 %v12489_v48  ;;  %v12638_v22 = vand.u32 4294901760, %v252_v49 }
 0x29c   :  { %4826 = vmatpush.msrb.mxu1 %v12196_v47  ;;  %4930 = vmatpush.msrb.mxu3 %v4929_v52  ;;  %v4947_v47 = vand.u32 4294901760, %v4946_v1  ;;  %v16041_v52 = vand.u32 4294901760, %v12580_v7  ;;  %v12652_v37 = vsub.f32 %v34_v42, %v12625_v30  ;;  %v16043_v1 = vand.u32 4294901760, %v12344_v9 }
 0x29d   :  { %4787 = vmatpush.msrb.mxu0 %v16040_v43  ;;  %4869 = vmatpush.msrb.mxu2 %v12505_v27  ;;  %v12649_v43 = vsub.f32 %v253_v16, %v12623_v39  ;;  %v4975_v4 = vand.u32 4294901760, %v12636_v59  ;;  %v12663_v16 = vsub.f32 %v252_v49, %v12638_v22  ;;  %v4970_v42 = vsub.f32 %v12615_v15, %v4969_v20 }
 0x29e   :  { %4828 = vmatpush.msrb.mxu1 %v12207_v36  ;;  %4936 = vmatpush.msrb.mxu3 %v4935_v24  ;;  %v4958_v6 = vsub.f32 %v12580_v7, %v16041_v52  ;;  %v4953_v36 = vand.u32 4294901760, %v4952_v31  ;;  %v4964_v24 = vsub.f32 %v12596_v58, %v4963_v11  ;;  %v4888_v31 = vand.u32 4294901760, %v12652_v37 }
 0x29f   :  { %4791 = vmatpush.msrb.mxu0 %v16042_v26  ;;  %4871 = vmatpush.msrb.mxu2 %v12522_v33  ;;  %v4981_v9 = vand.u32 4294901760, %v12649_v43  ;;  %v4971_v52 = vand.u32 4294901760, %v4970_v42 }
 0x2a0   :  { %4830 = vmatpush.msrb.mxu1 %v12232_v56  ;;  %4942 = vmatpush.msrb.mxu3 %v4941_v45  ;;  %v4959_v56 = vand.u32 4294901760, %v4958_v6  ;;  %v16044_v45 = vand.u32 4294901760, %v12360_v50  ;;  %v4965_v49 = vand.u32 4294901760, %v4964_v24  ;;  %v4976_v50 = vsub.f32 %v12636_v59, %v4975_v4  ;;  %v275_v24 = vld [vmem:[%s15614_s1 + $0x738] sm:$0xff] }
 0x2a1   :  { %4795 = vmatpush.msrb.mxu0 %v16043_v1  ;;  %4873 = vmatpush.msrb.mxu2 %v12539_v25  ;;  %v16046_v6 = vand.u32 4294901760, %v12398_v17 }
 0x2a2   :  { %4832 = vmatpush.msrb.mxu1 %v12248_v54  ;;  %4948 = vmatpush.msrb.mxu3 %v4947_v47  ;;  %v16045_v54 = vand.u32 4294901760, %v12378_v57  ;;  %v4987_v47 = vand.u32 4294901760, %v12663_v16  ;;  %v4889_v57 = vsub.f32 %v12652_v37, %v4888_v31  ;;  %v4977_v17 = vand.u32 4294901760, %v4976_v50 }
 0x2a3   :  { %4799 = vmatpush.msrb.mxu0 %v16044_v45  ;;  %4875 = vmatpush.msrb.mxu2 %v12554_v55 }
 0x2a4   :  { %4834 = vmatpush.msrb.mxu1 %v12262_v0  ;;  %4954 = vmatpush.msrb.mxu3 %v4953_v36  ;;  %v4982_v0 = vsub.f32 %v12649_v43, %v4981_v9  ;;  %v4988_v26 = vsub.f32 %v12663_v16, %v4987_v47 }
 0x2a5   :  { %4803 = vmatpush.msrb.mxu0 %v16045_v54  ;;  %4877 = vmatpush.msrb.mxu2 %v12569_v44 }
 0x2a6   :  { %4836 = vmatpush.msrb.mxu1 %v12278_v41  ;;  %4960 = vmatpush.msrb.mxu3 %v4959_v56  ;;  %v16047_v41 = vand.u32 4294901760, %v12426_v18  ;;  %v4983_v36 = vand.u32 4294901760, %v4982_v0  ;;  %v4989_v18 = vand.u32 4294901760, %v4988_v26  ;;  %v274_v56 = vld [vmem:[%s15614_s1 + $0x730] sm:$0xff]  ;;  %v271_v26 = vld [vmem:[%s15614_s1 + $0x718] sm:$0xff] }
 0x2a7   :  { %4807 = vmatpush.msrb.mxu0 %v16046_v6  ;;  %4879 = vmatpush.msrb.mxu2 %v12582_v23  ;;  %v272_v6 = vld [vmem:[%s15614_s1 + $0x720] sm:$0xff] }
 0x2a8   :  { %4838 = vmatpush.msrb.mxu1 %v12293_v28  ;;  %4966 = vmatpush.msrb.mxu3 %v4965_v49  ;;  %v4890_v28 = vand.u32 4294901760, %v4889_v57 }
 0x2a9   :  { %4811 = vmatpush.msrb.mxu0 %v16047_v41  ;;  %4881 = vmatpush.msrb.mxu2 %v12607_v61 }
 0x2aa   :  { %4840 = vmatpush.msrb.mxu1 %v12311_v3  ;;  %4972 = vmatpush.msrb.mxu3 %v4971_v52  ;;  %v16048_v3 = vand.u32 4294901760, %v12419_v21 }
 0x2ab   :  { %4813 = vmatmul.f32.vlgmr.msrb.gmra.mxu0 %v12322_v63  ;;  %4883 = vmatpush.msrb.mxu2 %v12623_v39 }
 0x2ac   :  { %4998 = vmatpush.msra.mxu0 %v12419_v21  ;;  %4842 = vmatpush.msrb.mxu1 %v12328_v19  ;;  %v16049_v19 = vand.u32 4294901760, %v12443_v46 }
 0x2ad   :  { %4978 = vmatpush.msrb.mxu3 %v4977_v17  ;;  %4885 = vmatpush.msrb.mxu2 %v12638_v22 }
 0x2ae   :  { %5001 = vmatpush.msra.mxu0 %v12443_v46  ;;  %4844 = vmatpush.msrb.mxu1 %v12340_v35  ;;  %v16050_v35 = vand.u32 4294901760, %v12456_v51  ;;  %v16057_v46 = vand.u32 4294901760, %v12567_v14 }
 0x2af   :  { %4984 = vmatpush.msrb.mxu3 %v4983_v36  ;;  %4891 = vmatmul.f32.vlgmr.msrb.gmra.mxu2 %v4890_v28  ;;  %v12923_v28 = vand.u32 4294901760, %v272_v6 }
 0x2b0   :  { %5004 = vmatpush.msra.mxu0 %v12456_v51  ;;  %5092 = vmatpush.msra.mxu2 %v16048_v3 }
 0x2b1   :  { %4846 = vmatpush.msrb.mxu1 %v12367_v5  ;;  %4990 = vmatpush.msrb.mxu3 %v4989_v18  ;;  %v16051_v5 = vand.u32 4294901760, %v12464_v8 }
 0x2b2   :  { %4992 = vmatmul.f32.vlgmr.msrb.gmra.mxu3 %v12625_v30  ;;  %5007 = vmatpush.msra.mxu0 %v12464_v8  ;;  %v16054_v8 = vand.u32 4294901760, %v12520_v62 }
 0x2b3   :  { %5096 = vmatpush.msra.mxu2 %v16049_v19  ;;  %5159 = vmatpush.msra.mxu3 %v12383_v60 }
 0x2b4   :  { %4848 = vmatpush.msrb.mxu1 %v12392_v12  ;;  %5010 = vmatpush.msra.mxu0 %v12478_v13  ;;  %v16056_v12 = vand.u32 4294901760, %v12552_v40 }
 0x2b5   :  { %4850 = vmatmul.f32.vlgmr.msrb.gmra.mxu1 %v12322_v63  ;;  %5100 = vmatpush.msra.mxu2 %v16050_v35  ;;  %v16052_v63 = vand.u32 4294901760, %v12478_v13  ;;  %v280_v13 = vld [vmem:[%s15614_s1 + $0x760] sm:$0xff]  ;;  %v270_v35 = vld [vmem:[%s15614_s1 + $0x710] sm:$0xff] }
 0x2b6   :  { %5051 = vmatpush.msra.mxu1 %v12383_v60  ;;  %5161 = vmatpush.msra.mxu3 %v12408_v34  ;;  %v16053_v60 = vand.u32 4294901760, %v12503_v53 }
 0x2b7   :  { %5013 = vmatpush.msra.mxu0 %v12503_v53  ;;  %5104 = vmatpush.msra.mxu2 %v16051_v5  ;;  %v279_v53 = vld [vmem:[%s15614_s1 + $0x758] sm:$0xff] }
 0x2b8   :  { %5053 = vmatpush.msra.mxu1 %v12408_v34  ;;  %5163 = vmatpush.msra.mxu3 %v12428_v29  ;;  %v281_v34 = vld [vmem:[%s15614_s1 + $0x768] sm:$0xff] }
 0x2b9   :  { %5016 = vmatpush.msra.mxu0 %v12520_v62  ;;  %5108 = vmatpush.msra.mxu2 %v16052_v63 }
 0x2ba   :  { %5055 = vmatpush.msra.mxu1 %v12428_v29  ;;  %5165 = vmatpush.msra.mxu3 %v12436_v32  ;;  %v16055_v29 = vand.u32 4294901760, %v12537_v10 }
 0x2bb   :  { %5019 = vmatpush.msra.mxu0 %v12537_v10  ;;  %5112 = vmatpush.msra.mxu2 %v16053_v60  ;;  %v12808_v10 = vand.u32 4294901760, %v279_v53  ;;  %v12940_v60 = vand.u32 4294901760, %v271_v26 }
 0x2bc   :  { %5057 = vmatpush.msra.mxu1 %v12436_v32  ;;  %5167 = vmatpush.msra.mxu3 %v12448_v2  ;;  %v12784_v32 = vand.u32 4294901760, %v281_v34 }
 0x2bd   :  { %5022 = vmatpush.msra.mxu0 %v12552_v40  ;;  %5116 = vmatpush.msra.mxu2 %v16054_v8 }
 0x2be   :  { %5059 = vmatpush.msra.mxu1 %v12448_v2  ;;  %5169 = vmatpush.msra.mxu3 %v12471_v38  ;;  %v283_v2 = vld [vmem:[%s15614_s1 + $0x778] sm:$0xff]  ;;  %v12814_v40 = vsub.f32 %v281_v34, %v12784_v32  ;;  %v269_v34 = vld [vmem:[%s15614_s1 + $0x708] sm:$0xff] }
 0x2bf   :  { %5025 = vmatpush.msra.mxu0 %v12567_v14  ;;  %5120 = vmatpush.msra.mxu2 %v16055_v29  ;;  %v12764_v51 = vand.u32 4294901760, %v283_v2  ;;  %v277_v14 = vld [vmem:[%s15614_s1 + $0x748] sm:$0xff] }
 0x2c0   :  { %5061 = vmatpush.msra.mxu1 %v12471_v38  ;;  %5171 = vmatpush.msra.mxu3 %v12489_v48  ;;  %v282_v38 = vld [vmem:[%s15614_s1 + $0x770] sm:$0xff] }
 0x2c1   :  { %5028 = vmatpush.msra.mxu0 %v12580_v7  ;;  %5124 = vmatpush.msra.mxu2 %v16056_v12  ;;  %v12774_v21 = vand.u32 4294901760, %v282_v38 }
 0x2c2   :  { %5063 = vmatpush.msra.mxu1 %v12489_v48  ;;  %5173 = vmatpush.msra.mxu3 %v12505_v27  ;;  %v16058_v48 = vand.u32 4294901760, %v12580_v7  ;;  %v12834_v7 = vsub.f32 %v279_v53, %v12808_v10 }
 0x2c3   :  { %5031 = vmatpush.msra.mxu0 %v12596_v58  ;;  %5128 = vmatpush.msra.mxu2 %v16057_v46  ;;  %v12800_v62 = vsub.f32 %v282_v38, %v12774_v21  ;;  %v12844_v58 = vand.u32 4294901760, %v277_v14  ;;  %v12952_v46 = vand.u32 4294901760, %v270_v35 }
 0x2c4   :  { %5065 = vmatpush.msra.mxu1 %v12505_v27  ;;  %5175 = vmatpush.msra.mxu3 %v12522_v33  ;;  %v12787_v27 = vsub.f32 %v283_v2, %v12764_v51 }
 0x2c5   :  { %5034 = vmatpush.msra.mxu0 %v12615_v15  ;;  %5132 = vmatpush.msra.mxu2 %v16058_v48  ;;  %v12956_v48 = vsub.f32 %v272_v6, %v12923_v28 }
 0x2c6   :  { %5067 = vmatpush.msra.mxu1 %v12522_v33  ;;  %5177 = vmatpush.msra.mxu3 %v12539_v25  ;;  %v278_v33 = vld [vmem:[%s15614_s1 + $0x750] sm:$0xff]  ;;  %v5238_v15 = vand.u32 4294901760, %v12787_v27 }
 0x2c7   :  { %5037 = vmatpush.msra.mxu0 %v12636_v59  ;;  %5136 = vmatpush.msra.mxu2 %v4963_v11  ;;  %v5250_v59 = vand.u32 4294901760, %v12814_v40 }
 0x2c8   :  { %5069 = vmatpush.msra.mxu1 %v12539_v25  ;;  %5179 = vmatpush.msra.mxu3 %v12554_v55  ;;  %v12797_v25 = vand.u32 4294901760, %v280_v13 }
 0x2c9   :  { %5040 = vmatpush.msra.mxu0 %v12649_v43  ;;  %5140 = vmatpush.msra.mxu2 %v4969_v20  ;;  %v276_v20 = vld [vmem:[%s15614_s1 + $0x740] sm:$0xff]  ;;  %v5251_v45 = vsub.f32 %v12814_v40, %v5250_v59 }
 0x2ca   :  { %5071 = vmatpush.msra.mxu1 %v12554_v55  ;;  %5181 = vmatpush.msra.mxu3 %v12569_v44  ;;  %v12819_v55 = vand.u32 4294901760, %v278_v33  ;;  %v12828_v11 = vsub.f32 %v280_v13, %v12797_v25  ;;  %v12860_v1 = vand.u32 4294901760, %v276_v20 }
 0x2cb   :  { %5043 = vmatpush.msra.mxu0 %v12663_v16  ;;  %5144 = vmatpush.msra.mxu2 %v4975_v4  ;;  %v15787_v16 = vand.u32 4294901760, %v12834_v7  ;;  %v5252_v0 = vand.u32 4294901760, %v5251_v45  ;;  %v15777_v45 = vand.u32 4294901760, %v12956_v48 }
 0x2cc   :  { %5073 = vmatpush.msra.mxu1 %v12569_v44  ;;  %5183 = vmatpush.msra.mxu3 %v12582_v23  ;;  %v5244_v44 = vand.u32 4294901760, %v12800_v62  ;;  %v12850_v43 = vsub.f32 %v278_v33, %v12819_v55  ;;  %v15790_v4 = vand.u32 4294901760, %v12828_v11  ;;  %v12893_v52 = vsub.f32 %v276_v20, %v12860_v1 }
 0x2cd   :  { %5046 = vmatmul.f32.vlgmr.msra.gmra.mxu0 %v12652_v37  ;;  %5148 = vmatpush.msra.mxu2 %v4981_v9  ;;  %v12874_v9 = vand.u32 4294901760, %v275_v24  ;;  %v12972_v20 = vsub.f32 %v271_v26, %v12940_v60 }
 0x2ce   :  { %5196 = vmatpush.msrb.mxu0 %v12764_v51  ;;  %5075 = vmatpush.msra.mxu1 %v12582_v23  ;;  %v5239_v23 = vsub.f32 %v12787_v27, %v5238_v15  ;;  %v15785_v49 = vand.u32 4294901760, %v12850_v43  ;;  %v5257_v50 = vsub.f32 %v12828_v11, %v15790_v4  ;;  %v15782_v18 = vand.u32 4294901760, %v12893_v52 }
 0x2cf   :  { %5185 = vmatpush.msra.mxu3 %v12607_v61  ;;  %5152 = vmatpush.msra.mxu2 %v4987_v47  ;;  %v12890_v47 = vand.u32 4294901760, %v274_v56  ;;  %v12909_v37 = vsub.f32 %v275_v24, %v12874_v9  ;;  %v12979_v24 = vand.u32 4294901760, %v269_v34 }
 0x2d0   :  { %5198 = vmatpush.msrb.mxu0 %v12774_v21  ;;  %5077 = vmatpush.msra.mxu1 %v12607_v61  ;;  %v5245_v61 = vsub.f32 %v12800_v62, %v5244_v44  ;;  %v5240_v42 = vand.u32 4294901760, %v5239_v23  ;;  %v5269_v17 = vsub.f32 %v12850_v43, %v15785_v49  ;;  %v5258_v36 = vand.u32 4294901760, %v5257_v50  ;;  %v299_v23 = vld [vmem:[%s15614_s1 + $0x7f8] sm:$0xff] }
 0x2d1   :  { %5187 = vmatpush.msra.mxu3 %v12623_v39  ;;  %5154 = vmatmul.f32.vlgmr.msra.gmra.mxu2 %v12625_v30  ;;  %v12927_v3 = vsub.f32 %v274_v56, %v12890_v47  ;;  %v15781_v8 = vand.u32 4294901760, %v12909_v37  ;;  %v5281_v2 = vsub.f32 %v12893_v52, %v15782_v18  ;;  %v12995_v50 = vand.u32 4294901760, %v299_v23 }
 0x2d2   :  { %5200 = vmatpush.msrb.mxu0 %v12784_v32  ;;  %5339 = vmatpush.msrb.mxu2 %v12787_v27  ;;  %v5246_v54 = vand.u32 4294901760, %v5245_v61  ;;  %v5270_v12 = vand.u32 4294901760, %v5269_v17  ;;  %v268_v61 = vld [vmem:[%s15614_s1 + $0x700] sm:$0xff]  ;;  %v15779_v17 = vand.u32 4294901760, %v12972_v20  ;;  %v13010_v26 = vsub.f32 %v269_v34, %v12979_v24  ;;  %v291_v27 = vld [vmem:[%s15614_s1 + $0x7b8] sm:$0xff] }
 0x2d3   :  { %5079 = vmatpush.msra.mxu1 %v12623_v39  ;;  %5189 = vmatpush.msra.mxu3 %v12638_v22  ;;  %v12877_v39 = vsub.f32 %v277_v14, %v12844_v58  ;;  %v15780_v38 = vand.u32 4294901760, %v12927_v3  ;;  %v5287_v33 = vsub.f32 %v12909_v37, %v15781_v8  ;;  %v5282_v56 = vand.u32 4294901760, %v5281_v2  ;;  %v296_v2 = vld [vmem:[%s15614_s1 + $0x7e0] sm:$0xff] }
 0x2d4   :  { %5191 = vmatmul.f32.vlgmr.msra.gmra.mxu3 %v12625_v30  ;;  %5202 = vmatpush.msrb.mxu0 %v12797_v25  ;;  %v273_v30 = vld [vmem:[%s15614_s1 + $0x728] sm:$0xff] }
 0x2d5   :  { %5342 = vmatpush.msrb.mxu2 %v12800_v62  ;;  %5392 = vmatpush.msrb.mxu3 %v12764_v51  ;;  %v12905_v57 = vand.u32 4294901760, %v273_v30  ;;  %v15784_v41 = vand.u32 4294901760, %v12877_v39  ;;  %v5288_v6 = vand.u32 4294901760, %v5287_v33  ;;  %v290_v62 = vld [vmem:[%s15614_s1 + $0x7b0] sm:$0xff] }
 0x2d6   :  { %5081 = vmatpush.msra.mxu1 %v12638_v22  ;;  %5204 = vmatpush.msrb.mxu0 %v12808_v10  ;;  %v5263_v22 = vsub.f32 %v12834_v7, %v15787_v16 }
 0x2d7   :  { %5085 = vmatmul.f32.vlgmr.msra.gmra.mxu1 %v4888_v31  ;;  %5345 = vmatpush.msrb.mxu2 %v12814_v40  ;;  %v35_v31 = vld [vmem:[%s15613_s0 + $0x70] sm:$0xff]  ;;  %v5275_v63 = vsub.f32 %v12877_v39, %v15784_v41  ;;  %v12944_v29 = vsub.f32 %v273_v30, %v12905_v57  ;;  %v12990_v30 = vsub.f32 %v270_v35, %v12952_v46 }
 0x2d8   :  { %5241 = vmatpush.msrb.mxu1 %v5240_v42  ;;  %5394 = vmatpush.msrb.mxu3 %v12774_v21  ;;  %v5264_v19 = vand.u32 4294901760, %v5263_v22  ;;  %v12934_v5 = vand.u32 4294901760, %v35_v31  ;;  %v5293_v42 = vsub.f32 %v12927_v3, %v15780_v38  ;;  %v298_v22 = vld [vmem:[%s15614_s1 + $0x7f0] sm:$0xff]  ;;  %v5305_v35 = vsub.f32 %v12956_v48, %v15777_v45 }
 0x2d9   :  { %5206 = vmatpush.msrb.mxu0 %v12819_v55  ;;  %5348 = vmatpush.msrb.mxu2 %v12828_v11  ;;  %v5276_v53 = vand.u32 4294901760, %v5275_v63  ;;  %v15778_v14 = vand.u32 4294901760, %v12944_v29  ;;  %v15783_v63 = vand.u32 4294901760, %v12990_v30 }
 0x2da   :  { %5247 = vmatpush.msrb.mxu1 %v5246_v54  ;;  %5396 = vmatpush.msrb.mxu3 %v12784_v32  ;;  %v12964_v13 = vsub.f32 %v35_v31, %v12934_v5  ;;  %v13004_v31 = vand.u32 4294901760, %v268_v61 }
 0x2db   :  { %5208 = vmatpush.msrb.mxu0 %v12844_v58  ;;  %5351 = vmatpush.msrb.mxu2 %v12834_v7 }
 0x2dc   :  { %5253 = vmatpush.msrb.mxu1 %v5252_v0  ;;  %5398 = vmatpush.msrb.mxu3 %v12797_v25  ;;  %v5229_v54 = vand.u32 4294901760, %v12964_v13  ;;  %v5299_v0 = vsub.f32 %v12944_v29, %v15778_v14  ;;  %v295_v14 = vld [vmem:[%s15614_s1 + $0x7d8] sm:$0xff] }
 0x2dd   :  { %5210 = vmatpush.msrb.mxu0 %v12860_v1  ;;  %5354 = vmatpush.msrb.mxu2 %v12850_v43  ;;  %v13060_v18 = vand.u32 4294901760, %v295_v14 }
 0x2de   :  { %5259 = vmatpush.msrb.mxu1 %v5258_v36  ;;  %5400 = vmatpush.msrb.mxu3 %v12808_v10  ;;  %v297_v36 = vld [vmem:[%s15614_s1 + $0x7e8] sm:$0xff]  ;;  %v5230_v34 = vsub.f32 %v12964_v13, %v5229_v54  ;;  %v5300_v33 = vand.u32 4294901760, %v5299_v0  ;;  %v5306_v0 = vand.u32 4294901760, %v5305_v35 }
 0x2df   :  { %5212 = vmatpush.msrb.mxu0 %v12874_v9  ;;  %5357 = vmatpush.msrb.mxu2 %v12877_v39  ;;  %v13040_v45 = vand.u32 4294901760, %v297_v36 }
 0x2e0   :  { %5265 = vmatpush.msrb.mxu1 %v5264_v19  ;;  %5402 = vmatpush.msrb.mxu3 %v12819_v55  ;;  %v5294_v19 = vand.u32 4294901760, %v5293_v42  ;;  %v13038_v42 = vsub.f32 %v268_v61, %v13004_v31  ;;  %v5317_v61 = vsub.f32 %v12990_v30, %v15783_v63  ;;  %v5231_v38 = vand.u32 4294901760, %v5230_v34 }
 0x2e1   :  { %5214 = vmatpush.msrb.mxu0 %v12890_v47  ;;  %5360 = vmatpush.msrb.mxu2 %v12893_v52  ;;  %v13068_v63 = vsub.f32 %v297_v36, %v13040_v45 }
 0x2e2   :  { %5271 = vmatpush.msrb.mxu1 %v5270_v12  ;;  %5404 = vmatpush.msrb.mxu3 %v12844_v58  ;;  %v13020_v12 = vand.u32 4294901760, %v298_v22  ;;  %v5318_v36 = vand.u32 4294901760, %v5317_v61 }
 0x2e3   :  { %5216 = vmatpush.msrb.mxu0 %v12905_v57  ;;  %5363 = vmatpush.msrb.mxu2 %v12909_v37  ;;  %v15791_v61 = vand.u32 4294901760, %v13068_v63 }
 0x2e4   :  { %5277 = vmatpush.msrb.mxu1 %v5276_v53  ;;  %5406 = vmatpush.msrb.mxu3 %v12860_v1  ;;  %v13031_v53 = vsub.f32 %v299_v23, %v12995_v50  ;;  %v15786_v23 = vand.u32 4294901760, %v13010_v26 }
 0x2e5   :  { %5218 = vmatpush.msrb.mxu0 %v12923_v28  ;;  %5366 = vmatpush.msrb.mxu2 %v12927_v3 }
 0x2e6   :  { %5283 = vmatpush.msrb.mxu1 %v5282_v56  ;;  %5408 = vmatpush.msrb.mxu3 %v12874_v9  ;;  %v5311_v56 = vsub.f32 %v12972_v20, %v15779_v17  ;;  %v13055_v17 = vsub.f32 %v298_v22, %v13020_v12  ;;  %v15788_v8 = vand.u32 4294901760, %v13031_v53  ;;  %v15789_v22 = vand.u32 4294901760, %v13038_v42 }
 0x2e7   :  { %5220 = vmatpush.msrb.mxu0 %v12940_v60  ;;  %5369 = vmatpush.msrb.mxu2 %v12944_v29  ;;  %v5323_v34 = vsub.f32 %v13010_v26, %v15786_v23  ;;  %v13090_v23 = vsub.f32 %v295_v14, %v13060_v18 }
 0x2e8   :  { %5289 = vmatpush.msrb.mxu1 %v5288_v6  ;;  %5410 = vmatpush.msrb.mxu3 %v12890_v47  ;;  %v13048_v6 = vand.u32 4294901760, %v296_v2  ;;  %v5312_v35 = vand.u32 4294901760, %v5311_v56  ;;  %v15792_v56 = vand.u32 4294901760, %v13055_v17 }
 0x2e9   :  { %5222 = vmatpush.msrb.mxu0 %v12952_v46  ;;  %5372 = vmatpush.msrb.mxu2 %v12956_v48  ;;  %v5324_v14 = vand.u32 4294901760, %v5323_v34  ;;  %v15794_v4 = vand.u32 4294901760, %v13090_v23 }
 0x2ea   :  { %5295 = vmatpush.msrb.mxu1 %v5294_v19  ;;  %5412 = vmatpush.msrb.mxu3 %v12905_v57  ;;  %v294_v19 = vld [vmem:[%s15614_s1 + $0x7d0] sm:$0xff]  ;;  %v13076_v41 = vsub.f32 %v296_v2, %v13048_v6  ;;  %v5580_v2 = vsub.f32 %v13031_v53, %v15788_v8 }
 0x2eb   :  { %5224 = vmatpush.msrb.mxu0 %v12979_v24  ;;  %5375 = vmatpush.msrb.mxu2 %v12972_v20  ;;  %v13083_v49 = vand.u32 4294901760, %v294_v19 }
 0x2ec   :  { %5301 = vmatpush.msrb.mxu1 %v5300_v33  ;;  %5414 = vmatpush.msrb.mxu3 %v12923_v28  ;;  %v293_v33 = vld [vmem:[%s15614_s1 + $0x7c8] sm:$0xff]  ;;  %v15793_v8 = vand.u32 4294901760, %v13076_v41  ;;  %v5581_v34 = vand.u32 4294901760, %v5580_v2  ;;  %v13134_v2 = vand.u32 4294901760, %v291_v27 }
 0x2ed   :  { %5226 = vmatpush.msrb.mxu0 %v13004_v31  ;;  %5378 = vmatpush.msrb.mxu2 %v12990_v30  ;;  %v13101_v16 = vand.u32 4294901760, %v293_v33 }
 0x2ee   :  { %5307 = vmatpush.msrb.mxu1 %v5306_v0  ;;  %5416 = vmatpush.msrb.mxu3 %v12940_v60  ;;  %v292_v0 = vld [vmem:[%s15614_s1 + $0x7c0] sm:$0xff]  ;;  %v5598_v40 = vsub.f32 %v13076_v41, %v15793_v8  ;;  %v5604_v8 = vsub.f32 %v13090_v23, %v15794_v4 }
 0x2ef   :  { %5232 = vmatmul.f32.vlgmr.msrb.gmra.mxu0 %v5231_v38  ;;  %5381 = vmatpush.msrb.mxu2 %v13010_v26  ;;  %v5329_v38 = vsub.f32 %v13038_v42, %v15789_v22  ;;  %v13117_v22 = vand.u32 4294901760, %v292_v0 }
 0x2f0   :  { %5433 = vmatpush.msra.mxu0 %v5238_v15  ;;  %5313 = vmatpush.msrb.mxu1 %v5312_v35  ;;  %v5586_v15 = vsub.f32 %v13055_v17, %v15792_v56  ;;  %v13115_v35 = vsub.f32 %v294_v19, %v13083_v49  ;;  %v5592_v19 = vsub.f32 %v13068_v63, %v15791_v61  ;;  %v13151_v56 = vand.u32 4294901760, %v290_v62 }
 0x2f1   :  { %5418 = vmatpush.msrb.mxu3 %v12952_v46  ;;  %5384 = vmatpush.msrb.mxu2 %v13038_v42  ;;  %v5605_v4 = vand.u32 4294901760, %v5604_v8  ;;  %v16062_v8 = vand.u32 4294901760, %v12877_v39  ;;  %v285_v39 = vld [vmem:[%s15614_s1 + $0x788] sm:$0xff] }
 0x2f2   :  { %5437 = vmatpush.msra.mxu0 %v5244_v44  ;;  %5319 = vmatpush.msrb.mxu1 %v5318_v36  ;;  %v5330_v44 = vand.u32 4294901760, %v5329_v38  ;;  %v13132_v36 = vsub.f32 %v293_v33, %v13101_v16  ;;  %v16059_v38 = vand.u32 4294901760, %v12828_v11  ;;  %v5587_v33 = vand.u32 4294901760, %v5586_v15  ;;  %v288_v11 = vld [vmem:[%s15614_s1 + $0x7a0] sm:$0xff] }
 0x2f3   :  { %5420 = vmatpush.msrb.mxu3 %v12979_v24  ;;  %5387 = vmatmul.f32.vlgmr.msrb.gmra.mxu2 %v12964_v13  ;;  %v15795_v61 = vand.u32 4294901760, %v13115_v35  ;;  %v16060_v13 = vand.u32 4294901760, %v12834_v7  ;;  %v13164_v15 = vsub.f32 %v291_v27, %v13134_v2 }
 0x2f4   :  { %5441 = vmatpush.msra.mxu0 %v5250_v59  ;;  %5537 = vmatpush.msra.mxu2 %v12995_v50  ;;  %v289_v59 = vld [vmem:[%s15614_s1 + $0x7a8] sm:$0xff] }
 0x2f5   :  { %5325 = vmatpush.msrb.mxu1 %v5324_v14  ;;  %5422 = vmatpush.msrb.mxu3 %v13004_v31  ;;  %v13149_v14 = vsub.f32 %v292_v0, %v13117_v22  ;;  %v15797_v0 = vand.u32 4294901760, %v13132_v36  ;;  %v5610_v7 = vsub.f32 %v13115_v35, %v15795_v61 }
 0x2f6   :  { %5426 = vmatmul.f32.vlgmr.msrb.gmra.mxu3 %v5229_v54  ;;  %5445 = vmatpush.msra.mxu0 %v16059_v38  ;;  %v5593_v54 = vand.u32 4294901760, %v5592_v19  ;;  %v13166_v38 = vand.u32 4294901760, %v289_v59  ;;  %v13179_v19 = vsub.f32 %v290_v62, %v13151_v56 }
 0x2f7   :  { %5539 = vmatpush.msra.mxu2 %v13020_v12  ;;  %5582 = vmatpush.msra.mxu3 %v5581_v34  ;;  %v5599_v34 = vand.u32 4294901760, %v5598_v40  ;;  %v15796_v27 = vand.u32 4294901760, %v13149_v14  ;;  %v16061_v40 = vand.u32 4294901760, %v12850_v43  ;;  %v286_v43 = vld [vmem:[%s15614_s1 + $0x790] sm:$0xff] }
 0x2f8   :  { %5331 = vmatpush.msrb.mxu1 %v5330_v44  ;;  %5449 = vmatpush.msra.mxu0 %v16060_v13  ;;  %v287_v44 = vld [vmem:[%s15614_s1 + $0x798] sm:$0xff]  ;;  %v13181_v13 = vand.u32 4294901760, %v288_v11  ;;  %v13192_v62 = vsub.f32 %v289_v59, %v13166_v38 }
 0x2f9   :  { %5333 = vmatmul.f32.vlgmr.msrb.gmra.mxu1 %v12934_v5  ;;  %5541 = vmatpush.msra.mxu2 %v13040_v45  ;;  %v13194_v61 = vand.u32 4294901760, %v287_v44  ;;  %v5622_v59 = vsub.f32 %v13149_v14, %v15796_v27  ;;  %v16065_v27 = vand.u32 4294901760, %v12927_v3  ;;  %v16067_v3 = vand.u32 4294901760, %v12944_v29 }
 0x2fa   :  { %5500 = vmatpush.msra.mxu1 %v12764_v51  ;;  %5588 = vmatpush.msra.mxu3 %v5587_v33  ;;  %v5616_v51 = vsub.f32 %v13132_v36, %v15797_v0  ;;  %v15798_v33 = vand.u32 4294901760, %v13164_v15 }
 0x2fb   :  { %5453 = vmatpush.msra.mxu0 %v16061_v40  ;;  %5543 = vmatpush.msra.mxu2 %v13048_v6  ;;  %v13208_v40 = vsub.f32 %v288_v11, %v13181_v13  ;;  %v13227_v0 = vsub.f32 %v287_v44, %v13194_v61 }
 0x2fc   :  { %5502 = vmatpush.msra.mxu1 %v12774_v21  ;;  %5594 = vmatpush.msra.mxu3 %v5593_v54  ;;  %v5611_v21 = vand.u32 4294901760, %v5610_v7  ;;  %v15799_v54 = vand.u32 4294901760, %v13179_v19  ;;  %v5617_v11 = vand.u32 4294901760, %v5616_v51  ;;  %v5628_v7 = vsub.f32 %v13164_v15, %v15798_v33 }
 0x2fd   :  { %5457 = vmatpush.msra.mxu0 %v16062_v8  ;;  %5545 = vmatpush.msra.mxu2 %v13060_v18  ;;  %v36_v8 = vld [vmem:[%s15613_s0 + $0x78] sm:$0xff]  ;;  %v5623_v51 = vand.u32 4294901760, %v5622_v59  ;;  %v5645_v33 = vand.u32 4294901760, %v13208_v40 }
 0x2fe   :  { %5504 = vmatpush.msra.mxu1 %v12784_v32  ;;  %5600 = vmatpush.msra.mxu3 %v5599_v34  ;;  %v16063_v32 = vand.u32 4294901760, %v12893_v52  ;;  %v13219_v34 = vand.u32 4294901760, %v286_v43  ;;  %v284_v52 = vld [vmem:[%s15614_s1 + $0x780] sm:$0xff]  ;;  %v5634_v44 = vsub.f32 %v13179_v19, %v15799_v54  ;;  %v5651_v54 = vand.u32 4294901760, %v13227_v0 }
 0x2ff   :  { %5547 = vmatpush.msra.mxu2 %v13083_v49 }
 0x300   :  { %5461 = vmatpush.msra.mxu0 %v16063_v32  ;;  %5506 = vmatpush.msra.mxu1 %v12797_v25  ;;  %v16064_v32 = vand.u32 4294901760, %v12909_v37  ;;  %v13235_v25 = vand.u32 4294901760, %v285_v39  ;;  %v13248_v37 = vsub.f32 %v286_v43, %v13219_v34 }
 0x301   :  { %5606 = vmatpush.msra.mxu3 %v5605_v4  ;;  %5549 = vmatpush.msra.mxu2 %v13101_v16  ;;  %v13237_v4 = vand.u32 4294901760, %v36_v8 }
 0x302   :  { %5465 = vmatpush.msra.mxu0 %v16064_v32  ;;  %5508 = vmatpush.msra.mxu1 %v12808_v10  ;;  %v13250_v32 = vand.u32 4294901760, %v284_v52  ;;  %v5629_v10 = vand.u32 4294901760, %v5628_v7  ;;  %v16068_v7 = vand.u32 4294901760, %v12956_v48  ;;  %v5657_v29 = vand.u32 4294901760, %v13248_v37 }
 0x303   :  { %5612 = vmatpush.msra.mxu3 %v5611_v21  ;;  %5551 = vmatpush.msra.mxu2 %v13117_v22  ;;  %v16066_v21 = vand.u32 4294901760, %v13192_v62  ;;  %v13264_v43 = vsub.f32 %v36_v8, %v13237_v4  ;;  %v5652_v8 = vsub.f32 %v13227_v0, %v5651_v54 }
 0x304   :  { %5469 = vmatpush.msra.mxu0 %v16065_v27  ;;  %5510 = vmatpush.msra.mxu1 %v12819_v55  ;;  %v13261_v27 = vsub.f32 %v285_v39, %v13235_v25  ;;  %v5635_v55 = vand.u32 4294901760, %v5634_v44  ;;  %v13275_v39 = vsub.f32 %v284_v52, %v13250_v32 }
 0x305   :  { %5618 = vmatpush.msra.mxu3 %v5617_v11  ;;  %v5640_v59 = vsub.f32 %v13192_v62, %v16066_v21  ;;  %5553 = vmatpush.msra.mxu2 %v13134_v2  ;;  %v5646_v11 = vsub.f32 %v13208_v40, %v5645_v33  ;;  %v5570_v44 = vand.u32 4294901760, %v13264_v43  ;;  %v5653_v21 = vand.u32 4294901760, %v5652_v8 }
 0x306   :  { %5473 = vmatpush.msra.mxu0 %v16067_v3  ;;  %5512 = vmatpush.msra.mxu1 %v12844_v58  ;;  %v5663_v48 = vand.u32 4294901760, %v13261_v27 }
 0x307   :  { %5624 = vmatpush.msra.mxu3 %v5623_v51  ;;  %5555 = vmatpush.msra.mxu2 %v13151_v56  ;;  %v5641_v58 = vand.u32 4294901760, %v5640_v59  ;;  %v16069_v51 = vand.u32 4294901760, %v12972_v20  ;;  %v5647_v52 = vand.u32 4294901760, %v5646_v11  ;;  %v5658_v20 = vsub.f32 %v13248_v37, %v5657_v29  ;;  %v307_v11 = vld [vmem:[%s15614_s1 + $0x838] sm:$0xff] }
 0x308   :  { %5477 = vmatpush.msra.mxu0 %v16068_v7  ;;  %5514 = vmatpush.msra.mxu1 %v12860_v1  ;;  %v16070_v1 = vand.u32 4294901760, %v12990_v30  ;;  %v16071_v59 = vand.u32 4294901760, %v13010_v26  ;;  %v5571_v30 = vsub.f32 %v13264_v43, %v5570_v44 }
 0x309   :  { %5630 = vmatpush.msra.mxu3 %v5629_v10  ;;  %5557 = vmatpush.msra.mxu2 %v13166_v38  ;;  %v5669_v10 = vand.u32 4294901760, %v13275_v39  ;;  %v5659_v26 = vand.u32 4294901760, %v5658_v20 }
 0x30a   :  { %5481 = vmatpush.msra.mxu0 %v16069_v51  ;;  %5516 = vmatpush.msra.mxu1 %v12874_v9  ;;  %v5664_v9 = vsub.f32 %v13261_v27, %v5663_v48 }
 0x30b   :  { %5636 = vmatpush.msra.mxu3 %v5635_v55  ;;  %5559 = vmatpush.msra.mxu2 %v13181_v13  ;;  %v5670_v3 = vsub.f32 %v13275_v39, %v5669_v10 }
 0x30c   :  { %5485 = vmatpush.msra.mxu0 %v16070_v1  ;;  %5518 = vmatpush.msra.mxu1 %v12890_v47  ;;  %v16072_v47 = vand.u32 4294901760, %v13038_v42  ;;  %v5665_v55 = vand.u32 4294901760, %v5664_v9 }
 0x30d   :  { %5642 = vmatpush.msra.mxu3 %v5641_v58  ;;  %5561 = vmatpush.msra.mxu2 %v13194_v61  ;;  %v5671_v42 = vand.u32 4294901760, %v5670_v3  ;;  %v306_v58 = vld [vmem:[%s15614_s1 + $0x830] sm:$0xff]  ;;  %v303_v3 = vld [vmem:[%s15614_s1 + $0x818] sm:$0xff] }
 0x30e   :  { %5489 = vmatpush.msra.mxu0 %v16071_v59  ;;  %5520 = vmatpush.msra.mxu1 %v12905_v57  ;;  %v5572_v57 = vand.u32 4294901760, %v5571_v30  ;;  %v304_v59 = vld [vmem:[%s15614_s1 + $0x820] sm:$0xff] }
 0x30f   :  { %5648 = vmatpush.msra.mxu3 %v5647_v52  ;;  %5563 = vmatpush.msra.mxu2 %v13219_v34 }
 0x310   :  { %5493 = vmatpush.msra.mxu0 %v16072_v47  ;;  %5522 = vmatpush.msra.mxu1 %v12923_v28  ;;  %v16073_v28 = vand.u32 4294901760, %v13031_v53 }
 0x311   :  { %5654 = vmatpush.msra.mxu3 %v5653_v21  ;;  %5495 = vmatmul.f32.vlgmr.msra.gmra.mxu0 %v12934_v5 }
 0x312   :  { %5565 = vmatpush.msra.mxu2 %v13235_v25  ;;  %5680 = vmatpush.msrb.mxu0 %v13031_v53 }
 0x313   :  { %5524 = vmatpush.msra.mxu1 %v12940_v60  ;;  %5660 = vmatpush.msra.mxu3 %v5659_v26  ;;  %v16074_v60 = vand.u32 4294901760, %v13055_v17 }
 0x314   :  { %5567 = vmatpush.msra.mxu2 %v13250_v32  ;;  %5683 = vmatpush.msrb.mxu0 %v13055_v17  ;;  %v16082_v17 = vand.u32 4294901760, %v13179_v19 }
 0x315   :  { %5526 = vmatpush.msra.mxu1 %v12952_v46  ;;  %5666 = vmatpush.msra.mxu3 %v5665_v55  ;;  %v16075_v46 = vand.u32 4294901760, %v13068_v63 }
 0x316   :  { %5573 = vmatmul.f32.vlgmr.msra.gmra.mxu2 %v5572_v57  ;;  %5686 = vmatpush.msrb.mxu0 %v13068_v63  ;;  %v13535_v57 = vand.u32 4294901760, %v304_v59 }
 0x317   :  { %5774 = vmatpush.msrb.mxu2 %v16073_v28  ;;  %5528 = vmatpush.msra.mxu1 %v12979_v24  ;;  %v16076_v24 = vand.u32 4294901760, %v13076_v41 }
 0x318   :  { %5672 = vmatpush.msra.mxu3 %v5671_v42  ;;  %5689 = vmatpush.msrb.mxu0 %v13076_v41  ;;  %v16079_v41 = vand.u32 4294901760, %v13132_v36 }
 0x319   :  { %5674 = vmatmul.f32.vlgmr.msra.gmra.mxu3 %v13237_v4  ;;  %5778 = vmatpush.msrb.mxu2 %v16074_v60 }
 0x31a   :  { %5841 = vmatpush.msrb.mxu3 %v12995_v50  ;;  %5530 = vmatpush.msra.mxu1 %v13004_v31  ;;  %v16081_v31 = vand.u32 4294901760, %v13164_v15 }
 0x31b   :  { %5692 = vmatpush.msrb.mxu0 %v13090_v23  ;;  %5532 = vmatmul.f32.vlgmr.msra.gmra.mxu1 %v12934_v5  ;;  %v16077_v5 = vand.u32 4294901760, %v13090_v23  ;;  %v312_v23 = vld [vmem:[%s15614_s1 + $0x860] sm:$0xff] }
 0x31c   :  { %5782 = vmatpush.msrb.mxu2 %v16075_v46  ;;  %5733 = vmatpush.msrb.mxu1 %v12995_v50  ;;  %v16078_v50 = vand.u32 4294901760, %v13115_v35  ;;  %v302_v46 = vld [vmem:[%s15614_s1 + $0x810] sm:$0xff] }
 0x31d   :  { %5843 = vmatpush.msrb.mxu3 %v13020_v12  ;;  %5695 = vmatpush.msrb.mxu0 %v13115_v35  ;;  %v311_v35 = vld [vmem:[%s15614_s1 + $0x858] sm:$0xff] }
 0x31e   :  { %5786 = vmatpush.msrb.mxu2 %v16076_v24  ;;  %5735 = vmatpush.msrb.mxu1 %v13020_v12  ;;  %v313_v12 = vld [vmem:[%s15614_s1 + $0x868] sm:$0xff] }
 0x31f   :  { %5845 = vmatpush.msrb.mxu3 %v13040_v45  ;;  %5698 = vmatpush.msrb.mxu0 %v13132_v36 }
 0x320   :  { %5790 = vmatpush.msrb.mxu2 %v16077_v5  ;;  %5737 = vmatpush.msrb.mxu1 %v13040_v45  ;;  %v16080_v45 = vand.u32 4294901760, %v13149_v14 }
 0x321   :  { %5847 = vmatpush.msrb.mxu3 %v13048_v6  ;;  %5701 = vmatpush.msrb.mxu0 %v13149_v14  ;;  %v13420_v14 = vand.u32 4294901760, %v311_v35 }
 0x322   :  { %5794 = vmatpush.msrb.mxu2 %v16078_v50  ;;  %5739 = vmatpush.msrb.mxu1 %v13048_v6  ;;  %v13396_v6 = vand.u32 4294901760, %v313_v12  ;;  %v13552_v50 = vand.u32 4294901760, %v303_v3 }
 0x323   :  { %5849 = vmatpush.msrb.mxu3 %v13060_v18  ;;  %5704 = vmatpush.msrb.mxu0 %v13164_v15 }
 0x324   :  { %5798 = vmatpush.msrb.mxu2 %v16079_v41  ;;  %5741 = vmatpush.msrb.mxu1 %v13060_v18  ;;  %v315_v18 = vld [vmem:[%s15614_s1 + $0x878] sm:$0xff]  ;;  %v13426_v15 = vsub.f32 %v313_v12, %v13396_v6  ;;  %v301_v12 = vld [vmem:[%s15614_s1 + $0x808] sm:$0xff] }
 0x325   :  { %5851 = vmatpush.msrb.mxu3 %v13083_v49  ;;  %5707 = vmatpush.msrb.mxu0 %v13179_v19  ;;  %v13376_v63 = vand.u32 4294901760, %v315_v18  ;;  %v309_v19 = vld [vmem:[%s15614_s1 + $0x848] sm:$0xff] }
 0x326   :  { %5802 = vmatpush.msrb.mxu2 %v16080_v45  ;;  %5743 = vmatpush.msrb.mxu1 %v13083_v49  ;;  %v314_v49 = vld [vmem:[%s15614_s1 + $0x870] sm:$0xff] }
 0x327   :  { %5853 = vmatpush.msrb.mxu3 %v13101_v16  ;;  %5710 = vmatpush.msrb.mxu0 %v13192_v62  ;;  %v13386_v53 = vand.u32 4294901760, %v314_v49 }
 0x328   :  { %5806 = vmatpush.msrb.mxu2 %v16081_v31  ;;  %5745 = vmatpush.msrb.mxu1 %v13101_v16  ;;  %v16083_v16 = vand.u32 4294901760, %v13192_v62  ;;  %v13446_v62 = vsub.f32 %v311_v35, %v13420_v14 }
 0x329   :  { %5855 = vmatpush.msrb.mxu3 %v13117_v22  ;;  %5713 = vmatpush.msrb.mxu0 %v13208_v40  ;;  %v13412_v36 = vsub.f32 %v314_v49, %v13386_v53  ;;  %v13456_v40 = vand.u32 4294901760, %v309_v19 }
 0x32a   :  { %5810 = vmatpush.msrb.mxu2 %v16082_v17  ;;  %5747 = vmatpush.msrb.mxu1 %v13117_v22  ;;  %v13399_v22 = vsub.f32 %v315_v18, %v13376_v63  ;;  %v13564_v17 = vand.u32 4294901760, %v302_v46 }
 0x32b   :  { %5857 = vmatpush.msrb.mxu3 %v13134_v2  ;;  %5716 = vmatpush.msrb.mxu0 %v13227_v0 }
 0x32c   :  { %5814 = vmatpush.msrb.mxu2 %v16083_v16  ;;  %5749 = vmatpush.msrb.mxu1 %v13134_v2  ;;  %v310_v2 = vld [vmem:[%s15614_s1 + $0x850] sm:$0xff]  ;;  %v5920_v0 = vand.u32 4294901760, %v13399_v22  ;;  %v13568_v16 = vsub.f32 %v304_v59, %v13535_v57 }
 0x32d   :  { %5859 = vmatpush.msrb.mxu3 %v13151_v56  ;;  %5719 = vmatpush.msrb.mxu0 %v13248_v37  ;;  %v5932_v37 = vand.u32 4294901760, %v13426_v15 }
 0x32e   :  { %5818 = vmatpush.msrb.mxu2 %v5645_v33  ;;  %5751 = vmatpush.msrb.mxu1 %v13151_v56  ;;  %v13409_v56 = vand.u32 4294901760, %v312_v23 }
 0x32f   :  { %5861 = vmatpush.msrb.mxu3 %v13166_v38  ;;  %5722 = vmatpush.msrb.mxu0 %v13261_v27  ;;  %v5933_v51 = vsub.f32 %v13426_v15, %v5932_v37 }
 0x330   :  { %5822 = vmatpush.msrb.mxu2 %v5651_v54  ;;  %5753 = vmatpush.msrb.mxu1 %v13166_v38  ;;  %v13431_v38 = vand.u32 4294901760, %v310_v2  ;;  %v13440_v33 = vsub.f32 %v312_v23, %v13409_v56  ;;  %v308_v54 = vld [vmem:[%s15614_s1 + $0x840] sm:$0xff] }
 0x331   :  { %5863 = vmatpush.msrb.mxu3 %v13181_v13  ;;  %5725 = vmatpush.msrb.mxu0 %v13275_v39  ;;  %v13472_v7 = vand.u32 4294901760, %v308_v54  ;;  %v15809_v39 = vand.u32 4294901760, %v13446_v62  ;;  %v5934_v9 = vand.u32 4294901760, %v5933_v51  ;;  %v15800_v51 = vand.u32 4294901760, %v13568_v16 }
 0x332   :  { %5826 = vmatpush.msrb.mxu2 %v5657_v29  ;;  %5755 = vmatpush.msrb.mxu1 %v13181_v13  ;;  %v5926_v13 = vand.u32 4294901760, %v13412_v36  ;;  %v13462_v27 = vsub.f32 %v310_v2, %v13431_v38  ;;  %v15811_v29 = vand.u32 4294901760, %v13440_v33 }
 0x333   :  { %5865 = vmatpush.msrb.mxu3 %v13194_v61  ;;  %5728 = vmatmul.f32.vlgmr.msrb.gmra.mxu0 %v13264_v43  ;;  %v13505_v21 = vsub.f32 %v308_v54, %v13472_v7  ;;  %v13584_v54 = vsub.f32 %v303_v3, %v13552_v50 }
 0x334   :  { %5830 = vmatpush.msrb.mxu2 %v5663_v48  ;;  %5878 = vmatpush.msra.mxu0 %v13376_v63  ;;  %v13486_v48 = vand.u32 4294901760, %v307_v11  ;;  %v15808_v52 = vand.u32 4294901760, %v13462_v27  ;;  %v5939_v20 = vsub.f32 %v13440_v33, %v15811_v29 }
 0x335   :  { %5757 = vmatpush.msrb.mxu1 %v13194_v61  ;;  %5867 = vmatpush.msrb.mxu3 %v13219_v34  ;;  %v5921_v61 = vsub.f32 %v13399_v22, %v5920_v0  ;;  %v15805_v42 = vand.u32 4294901760, %v13505_v21 }
 0x336   :  { %5834 = vmatpush.msrb.mxu2 %v5669_v10  ;;  %5880 = vmatpush.msra.mxu0 %v13386_v53  ;;  %v13502_v10 = vand.u32 4294901760, %v306_v58  ;;  %v13521_v43 = vsub.f32 %v307_v11, %v13486_v48  ;;  %v5951_v26 = vsub.f32 %v13462_v27, %v15808_v52  ;;  %v5940_v55 = vand.u32 4294901760, %v5939_v20 }
 0x337   :  { %5759 = vmatpush.msrb.mxu1 %v13219_v34  ;;  %5869 = vmatpush.msrb.mxu3 %v13235_v25  ;;  %v5927_v34 = vsub.f32 %v13412_v36, %v5926_v13  ;;  %v5922_v8 = vand.u32 4294901760, %v5921_v61  ;;  %v5963_v18 = vsub.f32 %v13505_v21, %v15805_v42  ;;  %v331_v61 = vld [vmem:[%s15614_s1 + $0x8f8] sm:$0xff]  ;;  %v13591_v11 = vand.u32 4294901760, %v301_v12 }
 0x338   :  { %5836 = vmatmul.f32.vlgmr.msrb.gmra.mxu2 %v13237_v4  ;;  %5882 = vmatpush.msra.mxu0 %v13396_v6  ;;  %v13539_v28 = vsub.f32 %v306_v58, %v13502_v10  ;;  %v15804_v41 = vand.u32 4294901760, %v13521_v43  ;;  %v5952_v31 = vand.u32 4294901760, %v5951_v26  ;;  %v13607_v20 = vand.u32 4294901760, %v331_v61 }
 0x339   :  { %6021 = vmatpush.msra.mxu2 %v13399_v22  ;;  %5761 = vmatpush.msrb.mxu1 %v13235_v25  ;;  %v13489_v25 = vsub.f32 %v309_v19, %v13456_v40  ;;  %v5928_v1 = vand.u32 4294901760, %v5927_v34  ;;  %v300_v34 = vld [vmem:[%s15614_s1 + $0x800] sm:$0xff]  ;;  %v5964_v58 = vand.u32 4294901760, %v5963_v18  ;;  %v15802_v26 = vand.u32 4294901760, %v13584_v54  ;;  %v323_v22 = vld [vmem:[%s15614_s1 + $0x8b8] sm:$0xff] }
 0x33a   :  { %5871 = vmatpush.msrb.mxu3 %v13250_v32  ;;  %5884 = vmatpush.msra.mxu0 %v13409_v56  ;;  %v15803_v49 = vand.u32 4294901760, %v13539_v28  ;;  %v5969_v2 = vsub.f32 %v13521_v43, %v15804_v41  ;;  %v13622_v3 = vsub.f32 %v301_v12, %v13591_v11  ;;  %v328_v18 = vld [vmem:[%s15614_s1 + $0x8e0] sm:$0xff] }
 0x33b   :  { %5873 = vmatmul.f32.vlgmr.msrb.gmra.mxu3 %v13237_v4  ;;  %6024 = vmatpush.msra.mxu2 %v13412_v36  ;;  %v305_v4 = vld [vmem:[%s15614_s1 + $0x828] sm:$0xff]  ;;  %v15807_v47 = vand.u32 4294901760, %v13489_v25 }
 0x33c   :  { %6074 = vmatpush.msra.mxu3 %v13376_v63  ;;  %5763 = vmatpush.msrb.mxu1 %v13250_v32  ;;  %v5945_v32 = vsub.f32 %v13446_v62, %v15809_v39  ;;  %v13517_v30 = vand.u32 4294901760, %v305_v4  ;;  %v5970_v59 = vand.u32 4294901760, %v5969_v2  ;;  %v13697_v39 = vpop.f32.mrf.mxu0 }
 0x33d   :  { %5886 = vmatpush.msra.mxu0 %v13420_v14  ;;  %5767 = vmatmul.f32.vlgmr.msrb.gmra.mxu1 %v5570_v44  ;;  %v37_v44 = vld [vmem:[%s15613_s0 + $0x80] sm:$0xff]  ;;  %v5957_v5 = vsub.f32 %v13489_v25, %v15807_v47  ;;  %16085 = vst [vmem:[#allocation6_spill] sm:$0xff] %v13697_v39 }
 0x33e   :  { %6027 = vmatpush.msra.mxu2 %v13426_v15  ;;  %5923 = vmatpush.msra.mxu1 %v5922_v8  ;;  %v5946_v60 = vand.u32 4294901760, %v5945_v32  ;;  %v13546_v24 = vand.u32 4294901760, %v37_v44  ;;  %v13556_v45 = vsub.f32 %v305_v4, %v13517_v30  ;;  %v5975_v8 = vsub.f32 %v13539_v28, %v15803_v49  ;;  %v330_v32 = vld [vmem:[%s15614_s1 + $0x8f0] sm:$0xff] }
 0x33f   :  { %6076 = vmatpush.msra.mxu3 %v13386_v53  ;;  %5888 = vmatpush.msra.mxu0 %v13431_v38  ;;  %v5958_v35 = vand.u32 4294901760, %v5957_v5  ;;  %v13602_v4 = vsub.f32 %v302_v46, %v13564_v17  ;;  %v5987_v46 = vsub.f32 %v13568_v16, %v15800_v51 }
 0x340   :  { %6030 = vmatpush.msra.mxu2 %v13440_v33  ;;  %5929 = vmatpush.msra.mxu1 %v5928_v1  ;;  %v13576_v23 = vsub.f32 %v37_v44, %v13546_v24  ;;  %v15801_v19 = vand.u32 4294901760, %v13556_v45  ;;  %v13616_v44 = vand.u32 4294901760, %v300_v34 }
 0x341   :  { %6078 = vmatpush.msra.mxu3 %v13396_v6  ;;  %5890 = vmatpush.msra.mxu0 %v13456_v40  ;;  %v15806_v5 = vand.u32 4294901760, %v13602_v4 }
 0x342   :  { %6033 = vmatpush.msra.mxu2 %v13446_v62  ;;  %5935 = vmatpush.msra.mxu1 %v5934_v9  ;;  %v15814_v1 = vand.u32 4294901760, %v13576_v23  ;;  %v5981_v9 = vsub.f32 %v13556_v45, %v15801_v19  ;;  %v327_v19 = vld [vmem:[%s15614_s1 + $0x8d8] sm:$0xff] }
 0x343   :  { %6080 = vmatpush.msra.mxu3 %v13409_v56  ;;  %5892 = vmatpush.msra.mxu0 %v13472_v7  ;;  %v13672_v42 = vand.u32 4294901760, %v327_v19 }
 0x344   :  { %6036 = vmatpush.msra.mxu2 %v13462_v27  ;;  %5941 = vmatpush.msra.mxu1 %v5940_v55  ;;  %v329_v55 = vld [vmem:[%s15614_s1 + $0x8e8] sm:$0xff]  ;;  %v5912_v12 = vsub.f32 %v13576_v23, %v15814_v1  ;;  %v5982_v2 = vand.u32 4294901760, %v5981_v9  ;;  %v5988_v9 = vand.u32 4294901760, %v5987_v46 }
 0x345   :  { %6082 = vmatpush.msra.mxu3 %v13420_v14  ;;  %5894 = vmatpush.msra.mxu0 %v13486_v48  ;;  %v13652_v51 = vand.u32 4294901760, %v329_v55 }
 0x346   :  { %6039 = vmatpush.msra.mxu2 %v13489_v25  ;;  %5947 = vmatpush.msra.mxu1 %v5946_v60  ;;  %v5976_v60 = vand.u32 4294901760, %v5975_v8  ;;  %v13650_v8 = vsub.f32 %v300_v34, %v13616_v44  ;;  %v5999_v34 = vsub.f32 %v13602_v4, %v15806_v5  ;;  %v5913_v49 = vand.u32 4294901760, %v5912_v12 }
 0x347   :  { %6084 = vmatpush.msra.mxu3 %v13431_v38  ;;  %5896 = vmatpush.msra.mxu0 %v13502_v10  ;;  %v13680_v5 = vsub.f32 %v329_v55, %v13652_v51 }
 0x348   :  { %6042 = vmatpush.msra.mxu2 %v13505_v21  ;;  %5953 = vmatpush.msra.mxu1 %v5952_v31  ;;  %v13632_v31 = vand.u32 4294901760, %v330_v32  ;;  %v6000_v55 = vand.u32 4294901760, %v5999_v34 }
 0x349   :  { %6086 = vmatpush.msra.mxu3 %v13456_v40  ;;  %5898 = vmatpush.msra.mxu0 %v13517_v30  ;;  %v15816_v34 = vand.u32 4294901760, %v13680_v5 }
 0x34a   :  { %6045 = vmatpush.msra.mxu2 %v13521_v43  ;;  %5959 = vmatpush.msra.mxu1 %v5958_v35  ;;  %v13643_v35 = vsub.f32 %v331_v61, %v13607_v20  ;;  %v15810_v61 = vand.u32 4294901760, %v13622_v3 }
 0x34b   :  { %6088 = vmatpush.msra.mxu3 %v13472_v7  ;;  %5900 = vmatpush.msra.mxu0 %v13535_v57 }
 0x34c   :  { %6048 = vmatpush.msra.mxu2 %v13539_v28  ;;  %5965 = vmatpush.msra.mxu1 %v5964_v58  ;;  %v5993_v58 = vsub.f32 %v13584_v54, %v15802_v26  ;;  %v13667_v26 = vsub.f32 %v330_v32, %v13632_v31  ;;  %v15812_v41 = vand.u32 4294901760, %v13643_v35  ;;  %v15813_v32 = vand.u32 4294901760, %v13650_v8 }
 0x34d   :  { %6090 = vmatpush.msra.mxu3 %v13486_v48  ;;  %5902 = vmatpush.msra.mxu0 %v13552_v50  ;;  %v6005_v12 = vsub.f32 %v13622_v3, %v15810_v61  ;;  %v13704_v61 = vsub.f32 %v327_v19, %v13672_v42 }
 0x34e   :  { %6051 = vmatpush.msra.mxu2 %v13556_v45  ;;  %5971 = vmatpush.msra.mxu1 %v5970_v59  ;;  %v13660_v59 = vand.u32 4294901760, %v328_v18  ;;  %v5994_v46 = vand.u32 4294901760, %v5993_v58  ;;  %v15815_v58 = vand.u32 4294901760, %v13667_v26 }
 0x34f   :  { %6092 = vmatpush.msra.mxu3 %v13502_v10  ;;  %5904 = vmatpush.msra.mxu0 %v13564_v17  ;;  %v6006_v19 = vand.u32 4294901760, %v6005_v12  ;;  %v13733_v12 = vpop.f32.mrf.mxu2 }
 0x350   :  { %6054 = vmatpush.msra.mxu2 %v13568_v16  ;;  %5977 = vmatpush.msra.mxu1 %v5976_v60  ;;  %v326_v60 = vld [vmem:[%s15614_s1 + $0x8d0] sm:$0xff]  ;;  %v13688_v47 = vsub.f32 %v328_v18, %v13660_v59  ;;  %v6262_v18 = vsub.f32 %v13643_v35, %v15812_v41  ;;  %16086 = vst [vmem:[#allocation7_spill] sm:$0xff] %v13733_v12 }
 0x351   :  { %6094 = vmatpush.msra.mxu3 %v13517_v30  ;;  %5906 = vmatpush.msra.mxu0 %v13591_v11  ;;  %v13695_v52 = vand.u32 4294901760, %v326_v60 }
 0x352   :  { %6057 = vmatpush.msra.mxu2 %v13584_v54  ;;  %5983 = vmatpush.msra.mxu1 %v5982_v2  ;;  %v325_v2 = vld [vmem:[%s15614_s1 + $0x8c8] sm:$0xff]  ;;  %v15817_v41 = vand.u32 4294901760, %v13688_v47  ;;  %v6263_v1 = vand.u32 4294901760, %v6262_v18  ;;  %v13750_v18 = vand.u32 4294901760, %v323_v22 }
 0x353   :  { %6096 = vmatpush.msra.mxu3 %v13535_v57  ;;  %5908 = vmatpush.msra.mxu0 %v13616_v44  ;;  %16084 = vst [vmem:[#allocation5_spill] sm:$0xff] %v13695_v52  ;;  %v13715_v29 = vand.u32 4294901760, %v325_v2 }
 0x354   :  { %6060 = vmatpush.msra.mxu2 %v13602_v4  ;;  %5989 = vmatpush.msra.mxu1 %v5988_v9  ;;  %v324_v9 = vld [vmem:[%s15614_s1 + $0x8c0] sm:$0xff]  ;;  %v6280_v15 = vsub.f32 %v13688_v47, %v15817_v41  ;;  %v16090_v41 = vand.u32 4294901760, %v13704_v61 }
 0x355   :  { %6098 = vmatpush.msra.mxu3 %v13552_v50  ;;  %5914 = vmatmul.f32.vlgmr.msra.gmra.mxu0 %v5913_v49  ;;  %v6011_v49 = vsub.f32 %v13650_v8, %v15813_v32  ;;  %v13731_v32 = vand.u32 4294901760, %v324_v9 }
 0x356   :  { %6063 = vmatpush.msra.mxu2 %v13622_v3  ;;  %6115 = vmatpush.msrb.mxu0 %v5920_v0  ;;  %v6268_v0 = vsub.f32 %v13667_v26, %v15815_v58  ;;  %v13748_v58 = vsub.f32 %v325_v2, %v13715_v29  ;;  %v16089_v2 = vand.u32 4294901760, %v13440_v33  ;;  %v320_v33 = vld [vmem:[%s15614_s1 + $0x8a0] sm:$0xff] }
 0x357   :  { %5995 = vmatpush.msra.mxu1 %v5994_v46  ;;  %6100 = vmatpush.msra.mxu3 %v13564_v17  ;;  %v13729_v46 = vsub.f32 %v326_v60, %v13695_v52  ;;  %v6012_v60 = vand.u32 4294901760, %v6011_v49  ;;  %v13759_v49 = vpop.f32.mrf.mxu3  ;;  %v13767_v12 = vsub.f32 %v324_v9, %v13731_v32 }
 0x358   :  { %6066 = vmatpush.msra.mxu2 %v13650_v8  ;;  %6119 = vmatpush.msrb.mxu0 %v5926_v13  ;;  %v322_v13 = vld [vmem:[%s15614_s1 + $0x8b0] sm:$0xff]  ;;  %16087 = vst [vmem:[#allocation8_spill] sm:$0xff] %v13759_v49  ;;  %v6269_v36 = vand.u32 4294901760, %v6268_v0  ;;  %v6286_v49 = vsub.f32 %v13704_v61, %v16090_v41  ;;  %v13782_v0 = vsub.f32 %v323_v22, %v13750_v18  ;;  %v6281_v41 = vand.u32 4294901760, %v6280_v15 }
 0x359   :  { %6001 = vmatpush.msra.mxu1 %v6000_v55  ;;  %6102 = vmatpush.msra.mxu3 %v13591_v11  ;;  %v6274_v55 = vsub.f32 %v13680_v5, %v15816_v34  ;;  %v16088_v34 = vand.u32 4294901760, %v13576_v23  ;;  %v13769_v39 = vand.u32 4294901760, %v322_v13  ;;  %v16092_v15 = vand.u32 4294901760, %v13462_v27  ;;  %v318_v27 = vld [vmem:[%s15614_s1 + $0x890] sm:$0xff] }
 0x35a   :  { %6069 = vmatmul.f32.vlgmr.msra.gmra.mxu2 %v13576_v23  ;;  %6123 = vmatpush.msrb.mxu0 %v5932_v37  ;;  %v321_v37 = vld [vmem:[%s15614_s1 + $0x8a8] sm:$0xff]  ;;  %v16091_v23 = vand.u32 4294901760, %v13446_v62  ;;  %v319_v62 = vld [vmem:[%s15614_s1 + $0x898] sm:$0xff]  ;;  %v6287_v9 = vand.u32 4294901760, %v6286_v49  ;;  %v16094_v49 = vand.u32 4294901760, %v13489_v25 }
 0x35b   :  { %6219 = vmatpush.msrb.mxu2 %v13607_v20  ;;  %6007 = vmatpush.msra.mxu1 %v6006_v19  ;;  %v15818_v19 = vand.u32 4294901760, %v13729_v46  ;;  %v317_v25 = vld [vmem:[%s15614_s1 + $0x888] sm:$0xff] }
 0x35c   :  { %6104 = vmatpush.msra.mxu3 %v13616_v44  ;;  %6127 = vmatpush.msrb.mxu0 %v16089_v2  ;;  %v13784_v2 = vand.u32 4294901760, %v321_v37 }
 0x35d   :  { %6108 = vmatmul.f32.vlgmr.msra.gmra.mxu3 %v16088_v34  ;;  %6221 = vmatpush.msrb.mxu2 %v13632_v31  ;;  %v6275_v34 = vand.u32 4294901760, %v6274_v55  ;;  %v6292_v22 = vsub.f32 %v13729_v46, %v15818_v19  ;;  %v13799_v55 = vsub.f32 %v322_v13, %v13769_v39  ;;  %v15819_v19 = vand.u32 4294901760, %v13782_v0 }
 0x35e   :  { %6264 = vmatpush.msrb.mxu3 %v6263_v1  ;;  %6013 = vmatpush.msra.mxu1 %v6012_v60  ;;  %v13786_v1 = vpop.f32.mrf.mxu1  ;;  %v13812_v13 = vsub.f32 %v321_v37, %v13784_v2  ;;  %v13814_v60 = vand.u32 4294901760, %v319_v62 }
 0x35f   :  { %6131 = vmatpush.msrb.mxu0 %v16091_v23  ;;  %6015 = vmatmul.f32.vlgmr.msra.gmra.mxu1 %v13546_v24  ;;  %v13801_v23 = vand.u32 4294901760, %v320_v33 }
 0x360   :  { %6223 = vmatpush.msrb.mxu2 %v13652_v51  ;;  %6182 = vmatpush.msrb.mxu1 %v13376_v63  ;;  %v16093_v63 = vand.u32 4294901760, %v13748_v58 }
 0x361   :  { %6270 = vmatpush.msrb.mxu3 %v6269_v36  ;;  %6135 = vmatpush.msrb.mxu0 %v16092_v15  ;;  %v13847_v15 = vsub.f32 %v319_v62, %v13814_v60  ;;  %v16098_v62 = vand.u32 4294901760, %v13799_v55 }
 0x362   :  { %6225 = vmatpush.msrb.mxu2 %v13660_v59  ;;  %6184 = vmatpush.msrb.mxu1 %v13386_v53  ;;  %v6298_v36 = vsub.f32 %v13748_v58, %v16093_v63  ;;  %v6293_v53 = vand.u32 4294901760, %v6292_v22  ;;  %v13828_v63 = vsub.f32 %v320_v33, %v13801_v23  ;;  %v6310_v22 = vsub.f32 %v13782_v0, %v15819_v19 }
 0x363   :  { %6276 = vmatpush.msrb.mxu3 %v6275_v34  ;;  %6139 = vmatpush.msrb.mxu0 %v16094_v49  ;;  %v16095_v34 = vand.u32 4294901760, %v13767_v12  ;;  %v38_v49 = vld [vmem:[%s15613_s0 + $0x88] sm:$0xff]  ;;  %v6316_v19 = vsub.f32 %v13799_v55, %v16098_v62  ;;  %v6333_v62 = vand.u32 4294901760, %v13847_v15 }
 0x364   :  { %6227 = vmatpush.msrb.mxu2 %v13672_v42  ;;  %6186 = vmatpush.msrb.mxu1 %v13396_v6  ;;  %v16096_v6 = vand.u32 4294901760, %v13505_v21  ;;  %v6299_v33 = vand.u32 4294901760, %v6298_v36  ;;  %v316_v21 = vld [vmem:[%s15614_s1 + $0x880] sm:$0xff] }
 0x365   :  { %6282 = vmatpush.msrb.mxu3 %v6281_v41  ;;  %v6304_v37 = vsub.f32 %v13767_v12, %v16095_v34  ;;  %v13839_v41 = vand.u32 4294901760, %v318_v27  ;;  %v6327_v34 = vand.u32 4294901760, %v13828_v63 }
 0x366   :  { %6143 = vmatpush.msrb.mxu0 %v16096_v6  ;;  %6229 = vmatpush.msrb.mxu2 %v13695_v52  ;;  %v16097_v6 = vand.u32 4294901760, %v13521_v43  ;;  %v16099_v52 = vand.u32 4294901760, %v13539_v28  ;;  %v16101_v28 = vand.u32 4294901760, %v13556_v45 }
 0x367   :  { %6188 = vmatpush.msrb.mxu1 %v13409_v56  ;;  %6288 = vmatpush.msrb.mxu3 %v6287_v9  ;;  %v13855_v56 = vand.u32 4294901760, %v317_v25  ;;  %v13857_v9 = vand.u32 4294901760, %v38_v49  ;;  %v6305_v36 = vand.u32 4294901760, %v6304_v37  ;;  %v13868_v43 = vsub.f32 %v318_v27, %v13839_v41 }
 0x368   :  { %6147 = vmatpush.msrb.mxu0 %v16097_v6  ;;  %6231 = vmatpush.msrb.mxu2 %v13715_v29  ;;  %v13870_v6 = vand.u32 4294901760, %v316_v21 }
 0x369   :  { %6190 = vmatpush.msrb.mxu1 %v13420_v14  ;;  %6294 = vmatpush.msrb.mxu3 %v6293_v53  ;;  %v6311_v14 = vand.u32 4294901760, %v6310_v22  ;;  %v16100_v53 = vand.u32 4294901760, %v13812_v13  ;;  %v13884_v27 = vsub.f32 %v38_v49, %v13857_v9  ;;  %v16102_v22 = vand.u32 4294901760, %v13568_v16 }
 0x36a   :  { %6151 = vmatpush.msrb.mxu0 %v16099_v52  ;;  %6233 = vmatpush.msrb.mxu2 %v13731_v32  ;;  %v13881_v52 = vsub.f32 %v317_v25, %v13855_v56  ;;  %v6339_v45 = vand.u32 4294901760, %v13868_v43  ;;  %v13895_v25 = vsub.f32 %v316_v21, %v13870_v6  ;;  %v16103_v49 = vand.u32 4294901760, %v13584_v54 }
 0x36b   :  { %6192 = vmatpush.msrb.mxu1 %v13431_v38  ;;  %6300 = vmatpush.msrb.mxu3 %v6299_v33  ;;  %v6322_v37 = vsub.f32 %v13812_v13, %v16100_v53  ;;  %v6317_v38 = vand.u32 4294901760, %v6316_v19  ;;  %v6328_v33 = vsub.f32 %v13828_v63, %v6327_v34  ;;  %v6334_v19 = vsub.f32 %v13847_v15, %v6333_v62 }
 0x36c   :  { %6155 = vmatpush.msrb.mxu0 %v16101_v28  ;;  %6235 = vmatpush.msrb.mxu2 %v13750_v18  ;;  %v6345_v16 = vand.u32 4294901760, %v13881_v52  ;;  %v6340_v54 = vsub.f32 %v13868_v43, %v6339_v45 }
 0x36d   :  { %6194 = vmatpush.msrb.mxu1 %v13456_v40  ;;  %6306 = vmatpush.msrb.mxu3 %v6305_v36  ;;  %v6323_v40 = vand.u32 4294901760, %v6322_v37  ;;  %v6252_v36 = vand.u32 4294901760, %v13884_v27  ;;  %v6329_v21 = vand.u32 4294901760, %v6328_v33  ;;  %v6335_v53 = vand.u32 4294901760, %v6334_v19 }
 0x36e   :  { %6159 = vmatpush.msrb.mxu0 %v16102_v22  ;;  %6237 = vmatpush.msrb.mxu2 %v13769_v39  ;;  %v16105_v37 = vand.u32 4294901760, %v13622_v3  ;;  %v6341_v3 = vand.u32 4294901760, %v6340_v54  ;;  %v16107_v22 = vand.u32 4294901760, %v13643_v35  ;;  %v343_v54 = vld [vmem:[%s15614_s1 + $0x958] sm:$0xff] }
 0x36f   :  { %6196 = vmatpush.msrb.mxu1 %v13472_v7  ;;  %6312 = vmatpush.msrb.mxu3 %v6311_v14  ;;  %v16104_v7 = vand.u32 4294901760, %v13602_v4  ;;  %v6351_v14 = vand.u32 4294901760, %v13895_v25  ;;  %v6253_v4 = vsub.f32 %v13884_v27, %v6252_v36 }
 0x370   :  { %6163 = vmatpush.msrb.mxu0 %v16103_v49  ;;  %6239 = vmatpush.msrb.mxu2 %v13784_v2  ;;  %v759_v49 = vpop.f32.mrf.mxu1 }
 0x371   :  { %6198 = vmatpush.msrb.mxu1 %v13486_v48  ;;  %6318 = vmatpush.msrb.mxu3 %v6317_v38  ;;  %v6346_v48 = vsub.f32 %v13881_v52, %v6345_v16  ;;  %v6352_v28 = vsub.f32 %v13895_v25, %v6351_v14  ;;  %v13932_v38 = vpop.f32.mrf.mxu0  ;;  %v6254_v33 = vand.u32 4294901760, %v6253_v4 }
 0x372   :  { %6167 = vmatpush.msrb.mxu0 %v16104_v7  ;;  %6241 = vmatpush.msrb.mxu2 %v13801_v23 }
 0x373   :  { %6200 = vmatpush.msrb.mxu1 %v13502_v10  ;;  %6324 = vmatpush.msrb.mxu3 %v6323_v40  ;;  %v16106_v10 = vand.u32 4294901760, %v13650_v8  ;;  %v6353_v8 = vand.u32 4294901760, %v6352_v28  ;;  %v13950_v40 = vpop.f32.mrf.mxu3 }
 0x374   :  { %6171 = vmatpush.msrb.mxu0 %v16105_v37  ;;  %6243 = vmatpush.msrb.mxu2 %v13814_v60 }
 0x375   :  { %6202 = vmatpush.msrb.mxu1 %v13517_v30  ;;  %6330 = vmatpush.msrb.mxu3 %v6329_v21  ;;  %v6347_v30 = vand.u32 4294901760, %v6346_v48 }
 0x376   :  { %6175 = vmatpush.msrb.mxu0 %v16106_v10  ;;  %6245 = vmatpush.msrb.mxu2 %v13839_v41 }
 0x377   :  { %6204 = vmatpush.msrb.mxu1 %v13535_v57  ;;  %6336 = vmatpush.msrb.mxu3 %v6335_v53  ;;  %v13941_v57 = vpop.f32.mrf.mxu2 }
 0x378   :  { %6177 = vmatmul.f32.vlgmr.msrb.gmra.mxu0 %v13546_v24  ;;  %6247 = vmatpush.msrb.mxu2 %v13855_v56 }
 0x379   :  { %6362 = vmatpush.msra.mxu0 %v13643_v35  ;;  %6206 = vmatpush.msrb.mxu1 %v13552_v50  ;;  %v8455_v50 = vld [vmem:[%s15615_s2] ss:$0 sm:$0xff]  ;;  %v16109_v35 = vld [vmem:[#allocation6_spill] sm:$0xff]  ;;  %v955_v48 = vpop.f32.mrf.mxu0 }
 0x37a   :  { %6342 = vmatpush.msrb.mxu3 %v6341_v3  ;;  %6249 = vmatpush.msrb.mxu2 %v13870_v6  ;;  %v460_v19 = vadd.f32 %v8455_v50, %v16109_v35  ;;  %v338_v50 = vld [vmem:[%s15614_s1 + $0x930] sm:$0xff] }
 0x37b   :  { %6365 = vmatpush.msra.mxu0 %v13667_v26  ;;  %6208 = vmatpush.msrb.mxu1 %v13564_v17  ;;  %v16108_v17 = vand.u32 4294901760, %v13667_v26  ;;  %v16111_v26 = vand.u32 4294901760, %v13688_v47 }
 0x37c   :  { %6348 = vmatpush.msrb.mxu3 %v6347_v30  ;;  %6255 = vmatmul.f32.vlgmr.msrb.gmra.mxu2 %v6254_v33 }
 0x37d   :  { %6368 = vmatpush.msra.mxu0 %v13680_v5  ;;  %6456 = vmatpush.msra.mxu2 %v16107_v22 }
 0x37e   :  { %6210 = vmatpush.msrb.mxu1 %v13591_v11  ;;  %6354 = vmatpush.msrb.mxu3 %v6353_v8  ;;  %v16110_v11 = vand.u32 4294901760, %v13680_v5 }
 0x37f   :  { %6356 = vmatmul.f32.vlgmr.msrb.gmra.mxu3 %v13857_v9  ;;  %6371 = vmatpush.msra.mxu0 %v13688_v47  ;;  %v16113_v47 = vand.u32 4294901760, %v13729_v46  ;;  %v1063_v3 = vpop.f32.mrf.mxu2 }
 0x380   :  { %6460 = vmatpush.msra.mxu2 %v16108_v17  ;;  %6523 = vmatpush.msra.mxu3 %v13607_v20 }
 0x381   :  { %6212 = vmatpush.msrb.mxu1 %v13616_v44  ;;  %6374 = vmatpush.msra.mxu0 %v13704_v61  ;;  %v561_v44 = vadd.f32 %v13786_v1, %v460_v19  ;;  %v346_v1 = vld [vmem:[%s15614_s1 + $0x970] sm:$0xff] }
 0x382   :  { %6214 = vmatmul.f32.vlgmr.msrb.gmra.mxu1 %v13546_v24  ;;  %6464 = vmatpush.msra.mxu2 %v16110_v11  ;;  %v16112_v24 = vand.u32 4294901760, %v13704_v61  ;;  %v16117_v61 = vand.u32 4294901760, %v13767_v12 }
 0x383   :  { %6415 = vmatpush.msra.mxu1 %v13607_v20  ;;  %6525 = vmatpush.msra.mxu3 %v13632_v31  ;;  %v16114_v20 = vld [vmem:[#allocation7_spill] sm:$0xff] }
 0x384   :  { %6377 = vmatpush.msra.mxu0 %v13729_v46  ;;  %6468 = vmatpush.msra.mxu2 %v16111_v26  ;;  %v615_v5 = vadd.f32 %v16114_v20, %v561_v44  ;;  %v336_v20 = vld [vmem:[%s15614_s1 + $0x920] sm:$0xff] }
 0x385   :  { %6417 = vmatpush.msra.mxu1 %v13632_v31  ;;  %6527 = vmatpush.msra.mxu3 %v13652_v51  ;;  %v16115_v31 = vand.u32 4294901760, %v13748_v58 }
 0x386   :  { %6380 = vmatpush.msra.mxu0 %v13748_v58  ;;  %6472 = vmatpush.msra.mxu2 %v16112_v24  ;;  %v16119_v58 = vand.u32 4294901760, %v13782_v0  ;;  %v14138_v24 = vand.u32 4294901760, %v338_v50 }
 0x387   :  { %6419 = vmatpush.msra.mxu1 %v13652_v51  ;;  %6529 = vmatpush.msra.mxu3 %v13660_v59  ;;  %v16116_v51 = vld [vmem:[#allocation5_spill] sm:$0xff] }
 0x388   :  { %6383 = vmatpush.msra.mxu0 %v13767_v12  ;;  %6476 = vmatpush.msra.mxu2 %v16113_v47  ;;  %v16120_v12 = vand.u32 4294901760, %v13799_v55 }
 0x389   :  { %6421 = vmatpush.msra.mxu1 %v13660_v59  ;;  %6531 = vmatpush.msra.mxu3 %v13672_v42  ;;  %v16118_v59 = vld [vmem:[#allocation8_spill] sm:$0xff] }
 0x38a   :  { %6386 = vmatpush.msra.mxu0 %v13782_v0  ;;  %6480 = vmatpush.msra.mxu2 %v16115_v31  ;;  %v654_v46 = vadd.f32 %v16118_v59, %v615_v5 }
 0x38b   :  { %6423 = vmatpush.msra.mxu1 %v13672_v42  ;;  %6533 = vmatpush.msra.mxu3 %v16116_v51  ;;  %v347_v42 = vld [vmem:[%s15614_s1 + $0x978] sm:$0xff] }
 0x38c   :  { %6389 = vmatpush.msra.mxu0 %v13799_v55  ;;  %6484 = vmatpush.msra.mxu2 %v16117_v61  ;;  %v14009_v0 = vand.u32 4294901760, %v347_v42  ;;  %v723_v21 = vadd.f32 %v13932_v38, %v654_v46  ;;  %v345_v55 = vld [vmem:[%s15614_s1 + $0x968] sm:$0xff]  ;;  %v994_v38 = vpop.f32.mrf.mxu1  ;;  %v335_v46 = vld [vmem:[%s15614_s1 + $0x918] sm:$0xff] }
 0x38d   :  { %6425 = vmatpush.msra.mxu1 %v16116_v51  ;;  %6535 = vmatpush.msra.mxu3 %v13715_v29  ;;  %v14030_v7 = vand.u32 4294901760, %v345_v55 }
 0x38e   :  { %6392 = vmatpush.msra.mxu0 %v13812_v13  ;;  %6488 = vmatpush.msra.mxu2 %v16119_v58  ;;  %v760_v53 = vadd.f32 %v759_v49, %v723_v21 }
 0x38f   :  { %6427 = vmatpush.msra.mxu1 %v13715_v29  ;;  %6537 = vmatpush.msra.mxu3 %v13731_v32  ;;  %v16121_v29 = vand.u32 4294901760, %v13812_v13  ;;  %v344_v13 = vld [vmem:[%s15614_s1 + $0x960] sm:$0xff] }
 0x390   :  { %6395 = vmatpush.msra.mxu0 %v13828_v63  ;;  %6492 = vmatpush.msra.mxu2 %v16120_v12  ;;  %v801_v37 = vadd.f32 %v13941_v57, %v760_v53  ;;  %v14188_v53 = vand.u32 4294901760, %v335_v46 }
 0x391   :  { %6429 = vmatpush.msra.mxu1 %v13731_v32  ;;  %6539 = vmatpush.msra.mxu3 %v13750_v18  ;;  %v14020_v32 = vand.u32 4294901760, %v346_v1 }
 0x392   :  { %6398 = vmatpush.msra.mxu0 %v13847_v15  ;;  %6496 = vmatpush.msra.mxu2 %v16121_v29  ;;  %v14054_v15 = vand.u32 4294901760, %v343_v54  ;;  %v334_v29 = vld [vmem:[%s15614_s1 + $0x910] sm:$0xff] }
 0x393   :  { %6431 = vmatpush.msra.mxu1 %v13750_v18  ;;  %6541 = vmatpush.msra.mxu3 %v13769_v39  ;;  %v14033_v18 = vsub.f32 %v347_v42, %v14009_v0  ;;  %v14046_v63 = vsub.f32 %v346_v1, %v14020_v32  ;;  %v14171_v42 = vand.u32 4294901760, %v336_v20  ;;  %v14175_v1 = vsub.f32 %v338_v50, %v14138_v24 }
 0x394   :  { %6401 = vmatpush.msra.mxu0 %v13868_v43  ;;  %6500 = vmatpush.msra.mxu2 %v6327_v34  ;;  %v342_v34 = vld [vmem:[%s15614_s1 + $0x950] sm:$0xff] }
 0x395   :  { %6433 = vmatpush.msra.mxu1 %v13769_v39  ;;  %6543 = vmatpush.msra.mxu3 %v13784_v2  ;;  %v14043_v39 = vand.u32 4294901760, %v344_v13  ;;  %v14066_v43 = vand.u32 4294901760, %v342_v34 }
 0x396   :  { %6404 = vmatpush.msra.mxu0 %v13881_v52  ;;  %6504 = vmatpush.msra.mxu2 %v6333_v62  ;;  %v14060_v62 = vsub.f32 %v345_v55, %v14030_v7  ;;  %v14081_v52 = vsub.f32 %v343_v54, %v14054_v15 }
 0x397   :  { %6435 = vmatpush.msra.mxu1 %v13784_v2  ;;  %6545 = vmatpush.msra.mxu3 %v13801_v23  ;;  %v6602_v2 = vand.u32 4294901760, %v14033_v18  ;;  %v14075_v4 = vsub.f32 %v344_v13, %v14043_v39  ;;  %v14098_v28 = vsub.f32 %v342_v34, %v14066_v43  ;;  %v1141_v13 = vpop.f32.mrf.mxu0 }
 0x398   :  { %6407 = vmatpush.msra.mxu0 %v13895_v25  ;;  %6508 = vmatpush.msra.mxu2 %v6339_v45  ;;  %v6608_v45 = vand.u32 4294901760, %v14046_v63  ;;  %v15836_v25 = vand.u32 4294901760, %v14060_v62  ;;  %v15830_v22 = vand.u32 4294901760, %v14081_v52 }
 0x399   :  { %6437 = vmatpush.msra.mxu1 %v13801_v23  ;;  %6547 = vmatpush.msra.mxu3 %v13814_v60  ;;  %v341_v23 = vld [vmem:[%s15614_s1 + $0x948] sm:$0xff]  ;;  %v15831_v8 = vand.u32 4294901760, %v14075_v4  ;;  %v15829_v11 = vand.u32 4294901760, %v14098_v28 }
 0x39a   :  { %6410 = vmatmul.f32.vlgmr.msra.gmra.mxu0 %v13884_v27  ;;  %6512 = vmatpush.msra.mxu2 %v6345_v16  ;;  %v340_v16 = vld [vmem:[%s15614_s1 + $0x940] sm:$0xff]  ;;  %v14091_v10 = vand.u32 4294901760, %v341_v23  ;;  %v6609_v30 = vsub.f32 %v14046_v63, %v6608_v45  ;;  %v6615_v35 = vsub.f32 %v14060_v62, %v15836_v25 }
 0x39b   :  { %6560 = vmatpush.msrb.mxu0 %v14009_v0  ;;  %6439 = vmatpush.msra.mxu1 %v13814_v60  ;;  %v6603_v60 = vsub.f32 %v14033_v18, %v6602_v2  ;;  %v14108_v33 = vand.u32 4294901760, %v340_v16  ;;  %v6621_v44 = vsub.f32 %v14075_v4, %v15831_v8  ;;  %v6633_v59 = vsub.f32 %v14098_v28, %v15829_v11 }
 0x39c   :  { %6549 = vmatpush.msra.mxu3 %v13839_v41  ;;  %6516 = vmatpush.msra.mxu2 %v6351_v14  ;;  %v902_v14 = vadd.f32 %v13950_v40, %v801_v37  ;;  %v1100_v40 = vpop.f32.mrf.mxu3  ;;  %v6610_v26 = vand.u32 4294901760, %v6609_v30  ;;  %v6616_v5 = vand.u32 4294901760, %v6615_v35  ;;  %v14220_v35 = vsub.f32 %v335_v46, %v14188_v53 }
 0x39d   :  { %6562 = vmatpush.msrb.mxu0 %v14020_v32  ;;  %6441 = vmatpush.msra.mxu1 %v13839_v41  ;;  %v339_v41 = vld [vmem:[%s15614_s1 + $0x938] sm:$0xff]  ;;  %v6604_v17 = vand.u32 4294901760, %v6603_v60  ;;  %v14141_v47 = vsub.f32 %v340_v16, %v14108_v33  ;;  %v6622_v58 = vand.u32 4294901760, %v6621_v44  ;;  %v1242_v16 = vpop.f32.mrf.mxu1  ;;  %v332_v44 = vld [vmem:[%s15614_s1 + $0x900] sm:$0xff] }
 0x39e   :  { %6551 = vmatpush.msra.mxu3 %v13855_v56  ;;  %6518 = vmatmul.f32.vlgmr.msra.gmra.mxu2 %v13857_v9  ;;  %v956_v57 = vadd.f32 %v955_v48, %v902_v14  ;;  %v14122_v19 = vand.u32 4294901760, %v339_v41  ;;  %v14200_v14 = vand.u32 4294901760, %v334_v29 }
 0x39f   :  { %6564 = vmatpush.msrb.mxu0 %v14030_v7  ;;  %6703 = vmatpush.msrb.mxu2 %v14033_v18  ;;  %v15826_v12 = vand.u32 4294901760, %v14141_v47  ;;  %v355_v18 = vld [vmem:[%s15614_s1 + $0x9b8] sm:$0xff] }
 0x3a0   :  { %6443 = vmatpush.msra.mxu1 %v13855_v56  ;;  %6553 = vmatpush.msra.mxu3 %v13870_v6  ;;  %v14125_v56 = vsub.f32 %v341_v23, %v14091_v10  ;;  %v995_v49 = vadd.f32 %v994_v38, %v956_v57  ;;  %v14157_v27 = vsub.f32 %v339_v41, %v14122_v19  ;;  %v6634_v23 = vand.u32 4294901760, %v6633_v59  ;;  %v333_v38 = vld [vmem:[%s15614_s1 + $0x908] sm:$0xff] }
 0x3a1   :  { %6555 = vmatmul.f32.vlgmr.msra.gmra.mxu3 %v13857_v9  ;;  %6566 = vmatpush.msrb.mxu0 %v14043_v39  ;;  %v337_v9 = vld [vmem:[%s15614_s1 + $0x928] sm:$0xff]  ;;  %v6645_v60 = vsub.f32 %v14141_v47, %v15826_v12  ;;  %v14204_v41 = vsub.f32 %v336_v20, %v14171_v42  ;;  %v359_v12 = vld [vmem:[%s15614_s1 + $0x9d8] sm:$0xff] }
 0x3a2   :  { %6706 = vmatpush.msrb.mxu2 %v14046_v63  ;;  %6756 = vmatpush.msrb.mxu3 %v14009_v0  ;;  %v14153_v31 = vand.u32 4294901760, %v337_v9  ;;  %v15827_v51 = vand.u32 4294901760, %v14125_v56  ;;  %v1064_v61 = vadd.f32 %v1063_v3, %v995_v49  ;;  %v15825_v34 = vand.u32 4294901760, %v14157_v27  ;;  %v363_v49 = vld [vmem:[%s15614_s1 + $0x9f8] sm:$0xff]  ;;  %v354_v63 = vld [vmem:[%s15614_s1 + $0x9b0] sm:$0xff] }
 0x3a3   :  { %6445 = vmatpush.msra.mxu1 %v13870_v6  ;;  %6568 = vmatpush.msrb.mxu0 %v14054_v15  ;;  %v6627_v6 = vsub.f32 %v14081_v52, %v15830_v22  ;;  %v15824_v3 = vand.u32 4294901760, %v14175_v1  ;;  %v6646_v20 = vand.u32 4294901760, %v6645_v60  ;;  %v14243_v46 = vand.u32 4294901760, %v363_v49 }
 0x3a4   :  { %6449 = vmatmul.f32.vlgmr.msra.gmra.mxu1 %v6252_v36  ;;  %6709 = vmatpush.msrb.mxu2 %v14060_v62  ;;  %v39_v36 = vld [vmem:[%s15613_s0 + $0x90] sm:$0xff]  ;;  %v6639_v54 = vsub.f32 %v14125_v56, %v15827_v51  ;;  %v14192_v37 = vsub.f32 %v337_v9, %v14153_v31  ;;  %v1101_v48 = vadd.f32 %v1100_v40, %v1064_v61  ;;  %v1335_v60 = vpop.f32.mrf.mxu3  ;;  %v14308_v8 = vand.u32 4294901760, %v359_v12 }
 0x3a5   :  { %6605 = vmatpush.msrb.mxu1 %v6604_v17  ;;  %6758 = vmatpush.msrb.mxu3 %v14020_v32  ;;  %v6628_v21 = vand.u32 4294901760, %v6627_v6  ;;  %v14182_v55 = vand.u32 4294901760, %v39_v36  ;;  %v6651_v40 = vsub.f32 %v14157_v27, %v15825_v34  ;;  %v1296_v6 = vpop.f32.mrf.mxu2  ;;  %v14238_v61 = vsub.f32 %v334_v29, %v14200_v14  ;;  %16123 = vst [vmem:[#allocation7_spill] sm:$0xff] %v14243_v46  ;;  %v1441_v51 = vpop.f32.mrf.mxu1 }
 0x3a6   :  { %6570 = vmatpush.msrb.mxu0 %v14066_v43  ;;  %6712 = vmatpush.msrb.mxu2 %v14075_v4  ;;  %v1142_v30 = vadd.f32 %v1141_v13, %v1101_v48  ;;  %v6640_v50 = vand.u32 4294901760, %v6639_v54  ;;  %v15823_v17 = vand.u32 4294901760, %v14192_v37  ;;  %v14252_v13 = vand.u32 4294901760, %v332_v44 }
 0x3a7   :  { %6611 = vmatpush.msrb.mxu1 %v6610_v26  ;;  %6760 = vmatpush.msrb.mxu3 %v14030_v7  ;;  %v14212_v57 = vsub.f32 %v39_v36, %v14182_v55  ;;  %v14227_v26 = vand.u32 4294901760, %v333_v38  ;;  %v15822_v36 = vand.u32 4294901760, %v14204_v41  ;;  %v15828_v54 = vand.u32 4294901760, %v14220_v35 }
 0x3a8   :  { %6572 = vmatpush.msrb.mxu0 %v14091_v10  ;;  %6715 = vmatpush.msrb.mxu2 %v14081_v52  ;;  %v1243_v9 = vadd.f32 %v1242_v16, %v1142_v30  ;;  %v6663_v29 = vsub.f32 %v14192_v37, %v15823_v17  ;;  %16124 = vst [vmem:[#allocation5_spill] sm:$0xff] %v14252_v13  ;;  %v361_v16 = vld [vmem:[%s15614_s1 + $0x9e8] sm:$0xff] }
 0x3a9   :  { %6617 = vmatpush.msrb.mxu1 %v6616_v5  ;;  %6762 = vmatpush.msrb.mxu3 %v14043_v39  ;;  %16122 = vst [vmem:[#allocation6_spill] sm:$0xff] %v14227_v26  ;;  %v6657_v5 = vsub.f32 %v14175_v1, %v15824_v3  ;;  %v15834_v59 = vand.u32 4294901760, %v14212_v57  ;;  %v6675_v17 = vsub.f32 %v14220_v35, %v15828_v54  ;;  %v14288_v34 = vand.u32 4294901760, %v361_v16 }
 0x3aa   :  { %6574 = vmatpush.msrb.mxu0 %v14108_v33  ;;  %6718 = vmatpush.msrb.mxu2 %v14098_v28  ;;  %v1297_v48 = vadd.f32 %v1296_v6, %v1243_v9  ;;  %v14286_v3 = vsub.f32 %v332_v44, %v14252_v13 }
 0x3ab   :  { %6623 = vmatpush.msrb.mxu1 %v6622_v58  ;;  %6764 = vmatpush.msrb.mxu3 %v14054_v15  ;;  %v362_v58 = vld [vmem:[%s15614_s1 + $0x9f0] sm:$0xff]  ;;  %v6658_v30 = vand.u32 4294901760, %v6657_v5  ;;  %v6594_v6 = vsub.f32 %v14212_v57, %v15834_v59  ;;  %v1404_v5 = vpop.f32.mrf.mxu0 }
 0x3ac   :  { %6576 = vmatpush.msrb.mxu0 %v14122_v19  ;;  %6721 = vmatpush.msrb.mxu2 %v14125_v56  ;;  %v14268_v9 = vand.u32 4294901760, %v362_v58 }
 0x3ad   :  { %6629 = vmatpush.msrb.mxu1 %v6628_v21  ;;  %6766 = vmatpush.msrb.mxu3 %v14066_v43  ;;  %v6652_v21 = vand.u32 4294901760, %v6651_v40  ;;  %v15832_v40 = vand.u32 4294901760, %v14238_v61 }
 0x3ae   :  { %6578 = vmatpush.msrb.mxu0 %v14138_v24  ;;  %6724 = vmatpush.msrb.mxu2 %v14141_v47  ;;  %v14303_v11 = vsub.f32 %v362_v58, %v14268_v9  ;;  %v15837_v58 = vand.u32 4294901760, %v14286_v3 }
 0x3af   :  { %6635 = vmatpush.msrb.mxu1 %v6634_v23  ;;  %6768 = vmatpush.msrb.mxu3 %v14091_v10  ;;  %v14258_v23 = vsub.f32 %v333_v38, %v14227_v26  ;;  %v360_v38 = vld [vmem:[%s15614_s1 + $0x9e0] sm:$0xff]  ;;  %v6681_v54 = vsub.f32 %v14238_v61, %v15832_v40 }
 0x3b0   :  { %6580 = vmatpush.msrb.mxu0 %v14153_v31  ;;  %6727 = vmatpush.msrb.mxu2 %v14157_v27 }
 0x3b1   :  { %6641 = vmatpush.msrb.mxu1 %v6640_v50  ;;  %6770 = vmatpush.msrb.mxu3 %v14108_v33  ;;  %v6669_v50 = vsub.f32 %v14204_v41, %v15822_v36  ;;  %v6664_v36 = vand.u32 4294901760, %v6663_v29  ;;  %v14296_v29 = vand.u32 4294901760, %v360_v38 }
 0x3b2   :  { %6582 = vmatpush.msrb.mxu0 %v14171_v42  ;;  %6730 = vmatpush.msrb.mxu2 %v14175_v1 }
 0x3b3   :  { %6647 = vmatpush.msrb.mxu1 %v6646_v20  ;;  %6772 = vmatpush.msrb.mxu3 %v14122_v19  ;;  %v14279_v20 = vsub.f32 %v363_v49, %v14243_v46  ;;  %v1336_v49 = vadd.f32 %v1335_v60, %v1297_v48  ;;  %v6670_v44 = vand.u32 4294901760, %v6669_v50  ;;  %v6595_v60 = vand.u32 4294901760, %v6594_v6 }
 0x3b4   :  { %6584 = vmatpush.msrb.mxu0 %v14188_v53  ;;  %6733 = vmatpush.msrb.mxu2 %v14192_v37  ;;  %v6676_v50 = vand.u32 4294901760, %v6675_v17  ;;  %v14324_v40 = vsub.f32 %v360_v38, %v14296_v29  ;;  %v357_v17 = vld [vmem:[%s15614_s1 + $0x9c8] sm:$0xff] }
 0x3b5   :  { %6653 = vmatpush.msrb.mxu1 %v6652_v21  ;;  %6774 = vmatpush.msrb.mxu3 %v14138_v24  ;;  %v15833_v21 = vand.u32 4294901760, %v14258_v23  ;;  %v1405_v48 = vadd.f32 %v1404_v5, %v1336_v49  ;;  %v15835_v22 = vand.u32 4294901760, %v14279_v20  ;;  %v14316_v5 = vsub.f32 %v361_v16, %v14288_v34 }
 0x3b6   :  { %6586 = vmatpush.msrb.mxu0 %v14200_v14  ;;  %6736 = vmatpush.msrb.mxu2 %v14204_v41  ;;  %v15838_v16 = vand.u32 4294901760, %v14303_v11  ;;  %v14349_v59 = vand.u32 4294901760, %v357_v17 }
 0x3b7   :  { %6659 = vmatpush.msrb.mxu1 %v6658_v30  ;;  %6776 = vmatpush.msrb.mxu3 %v14153_v31  ;;  %v358_v30 = vld [vmem:[%s15614_s1 + $0x9d0] sm:$0xff]  ;;  %v1442_v49 = vadd.f32 %v1441_v51, %v1405_v48  ;;  %v6687_v6 = vsub.f32 %v14258_v23, %v15833_v21  ;;  %v6682_v51 = vand.u32 4294901760, %v6681_v54  ;;  %v6944_v38 = vsub.f32 %v14279_v20, %v15835_v22 }
 0x3b8   :  { %6588 = vmatpush.msrb.mxu0 %v14227_v26  ;;  %6739 = vmatpush.msrb.mxu2 %v14220_v35  ;;  %v14331_v48 = vand.u32 4294901760, %v358_v30  ;;  %v14338_v21 = vsub.f32 %v359_v12, %v14308_v8  ;;  %v6693_v54 = vsub.f32 %v14286_v3, %v15837_v58  ;;  %16125 = vst [vmem:[#allocation8_spill] sm:$0xff] %v14349_v59 }
 0x3b9   :  { %6665 = vmatpush.msrb.mxu1 %v6664_v36  ;;  %6778 = vmatpush.msrb.mxu3 %v14171_v42  ;;  %v1482_v36 = vpop.f32.mrf.mxu2  ;;  %v6688_v12 = vand.u32 4294901760, %v6687_v6  ;;  %v6945_v6 = vand.u32 4294901760, %v6944_v38  ;;  %v14380_v25 = vsub.f32 %v357_v17, %v14349_v59  ;;  %v14382_v38 = vand.u32 4294901760, %v355_v18 }
 0x3ba   :  { %6590 = vmatpush.msrb.mxu0 %v14252_v13  ;;  %6742 = vmatpush.msrb.mxu2 %v14238_v61  ;;  %v1483_v22 = vadd.f32 %v1482_v36, %v1442_v49  ;;  %v14363_v49 = vsub.f32 %v358_v30, %v14331_v48  ;;  %v6694_v30 = vand.u32 4294901760, %v6693_v54  ;;  %v353_v54 = vld [vmem:[%s15614_s1 + $0x9a8] sm:$0xff]  ;;  %v16129_v17 = vand.u32 4294901760, %v14075_v4  ;;  %v352_v4 = vld [vmem:[%s15614_s1 + $0x9a0] sm:$0xff] }
 0x3bb   :  { %6671 = vmatpush.msrb.mxu1 %v6670_v44  ;;  %6780 = vmatpush.msrb.mxu3 %v14188_v53  ;;  %v356_v44 = vld [vmem:[%s15614_s1 + $0x9c0] sm:$0xff] }
 0x3bc   :  { %6596 = vmatmul.f32.vlgmr.msrb.gmra.mxu0 %v6595_v60  ;;  %6745 = vmatpush.msrb.mxu2 %v14258_v23  ;;  %v15840_v60 = vand.u32 4294901760, %v14316_v5  ;;  %v14365_v36 = vand.u32 4294901760, %v356_v44 }
 0x3bd   :  { %6797 = vmatpush.msra.mxu0 %v6602_v2  ;;  %6677 = vmatpush.msrb.mxu1 %v6676_v50  ;;  %v1583_v2 = vpop.f32.mrf.mxu3  ;;  %v6950_v50 = vsub.f32 %v14303_v11, %v15838_v16 }
 0x3be   :  { %6782 = vmatpush.msrb.mxu3 %v14200_v14  ;;  %6748 = vmatpush.msrb.mxu2 %v14286_v3  ;;  %v6956_v16 = vsub.f32 %v14316_v5, %v15840_v60  ;;  %v1584_v58 = vadd.f32 %v1583_v2, %v1483_v22  ;;  %v16128_v60 = vand.u32 4294901760, %v14212_v57  ;;  %v15845_v22 = vand.u32 4294901760, %v14363_v49 }
 0x3bf   :  { %6801 = vmatpush.msra.mxu0 %v6608_v45  ;;  %6683 = vmatpush.msrb.mxu1 %v6682_v51  ;;  %v1637_v45 = vpop.f32.mrf.mxu0  ;;  %v16126_v51 = vand.u32 4294901760, %v14060_v62  ;;  %v14399_v2 = vand.u32 4294901760, %v354_v63 }
 0x3c0   :  { %6784 = vmatpush.msrb.mxu3 %v14227_v26  ;;  %6751 = vmatmul.f32.vlgmr.msrb.gmra.mxu2 %v14212_v57  ;;  %v16127_v26 = vand.u32 4294901760, %v14324_v40 }
 0x3c1   :  { %6805 = vmatpush.msra.mxu0 %v16126_v51  ;;  %6901 = vmatpush.msra.mxu2 %v14243_v46  ;;  %v1676_v51 = vpop.f32.mrf.mxu1  ;;  %v6951_v46 = vand.u32 4294901760, %v6950_v50  ;;  %v15844_v50 = vand.u32 4294901760, %v14380_v25 }
 0x3c2   :  { %6689 = vmatpush.msrb.mxu1 %v6688_v12  ;;  %6786 = vmatpush.msrb.mxu3 %v14252_v13  ;;  %v6962_v62 = vsub.f32 %v14324_v40, %v16127_v26  ;;  %v14397_v12 = vsub.f32 %v356_v44, %v14365_v36  ;;  %v1638_v26 = vadd.f32 %v1637_v45, %v1584_v58  ;;  %v16130_v13 = vand.u32 4294901760, %v14338_v21 }
 0x3c3   :  { %6790 = vmatmul.f32.vlgmr.msrb.gmra.mxu3 %v16128_v60  ;;  %6809 = vmatpush.msra.mxu0 %v16129_v17  ;;  %v16131_v60 = vand.u32 4294901760, %v14081_v52  ;;  %v6957_v44 = vand.u32 4294901760, %v6956_v16  ;;  %v14412_v58 = vsub.f32 %v355_v18, %v14382_v38  ;;  %v14414_v45 = vand.u32 4294901760, %v353_v54  ;;  %v1745_v52 = vpop.f32.mrf.mxu2 }
 0x3c4   :  { %6903 = vmatpush.msra.mxu2 %v14268_v9  ;;  %6946 = vmatpush.msra.mxu3 %v6945_v6  ;;  %v6968_v57 = vsub.f32 %v14338_v21, %v16130_v13  ;;  %v1677_v6 = vadd.f32 %v1676_v51, %v1638_v26  ;;  %v6963_v13 = vand.u32 4294901760, %v6962_v62  ;;  %v6974_v16 = vsub.f32 %v14363_v49, %v15845_v22 }
 0x3c5   :  { %6695 = vmatpush.msrb.mxu1 %v6694_v30  ;;  %6813 = vmatpush.msra.mxu0 %v16131_v60  ;;  %v351_v30 = vld [vmem:[%s15614_s1 + $0x998] sm:$0xff]  ;;  %v15846_v18 = vand.u32 4294901760, %v14397_v12  ;;  %v14427_v51 = vsub.f32 %v354_v63, %v14399_v2  ;;  %v14429_v17 = vand.u32 4294901760, %v352_v4  ;;  %v16132_v62 = vand.u32 4294901760, %v14098_v28  ;;  %v350_v28 = vld [vmem:[%s15614_s1 + $0x990] sm:$0xff] }
 0x3c6   :  { %6697 = vmatmul.f32.vlgmr.msrb.gmra.mxu1 %v14182_v55  ;;  %6905 = vmatpush.msra.mxu2 %v14288_v34  ;;  %v6969_v26 = vand.u32 4294901760, %v6968_v57  ;;  %v14440_v63 = vsub.f32 %v353_v54, %v14414_v45  ;;  %v14442_v60 = vand.u32 4294901760, %v351_v30  ;;  %v16133_v57 = vand.u32 4294901760, %v14125_v56  ;;  %v349_v56 = vld [vmem:[%s15614_s1 + $0x988] sm:$0xff] }
 0x3c7   :  { %6864 = vmatpush.msra.mxu1 %v14009_v0  ;;  %6952 = vmatpush.msra.mxu3 %v6951_v46  ;;  %v6980_v0 = vsub.f32 %v14380_v25, %v15844_v50  ;;  %v15847_v46 = vand.u32 4294901760, %v14412_v58  ;;  %v6986_v54 = vsub.f32 %v14397_v12, %v15846_v18  ;;  %v14456_v22 = vsub.f32 %v352_v4, %v14429_v17 }
 0x3c8   :  { %6817 = vmatpush.msra.mxu0 %v16132_v62  ;;  %6907 = vmatpush.msra.mxu2 %v14296_v29  ;;  %v1746_v62 = vadd.f32 %v1745_v52, %v1677_v6  ;;  %v40_v6 = vld [vmem:[%s15613_s0 + $0x98] sm:$0xff]  ;;  %v1823_v52 = vpop.f32.mrf.mxu0  ;;  %v14475_v18 = vsub.f32 %v351_v30, %v14442_v60  ;;  %v16135_v50 = vand.u32 4294901760, %v14157_v27  ;;  %v16137_v27 = vand.u32 4294901760, %v14175_v1 }
 0x3c9   :  { %6866 = vmatpush.msra.mxu1 %v14020_v32  ;;  %6958 = vmatpush.msra.mxu3 %v6957_v44  ;;  %v1782_v32 = vpop.f32.mrf.mxu3  ;;  %v6975_v44 = vand.u32 4294901760, %v6974_v16  ;;  %v6981_v4 = vand.u32 4294901760, %v6980_v0  ;;  %v6992_v16 = vsub.f32 %v14412_v58, %v15847_v46  ;;  %v1924_v0 = vpop.f32.mrf.mxu1  ;;  %v6987_v30 = vand.u32 4294901760, %v6986_v54 }
 0x3ca   :  { %6821 = vmatpush.msra.mxu0 %v16133_v57  ;;  %6909 = vmatpush.msra.mxu2 %v14308_v8  ;;  %v16136_v46 = vand.u32 4294901760, %v14427_v51  ;;  %v7015_v54 = vand.u32 4294901760, %v14475_v18  ;;  %v16139_v1 = vand.u32 4294901760, %v14192_v37  ;;  %v16140_v37 = vand.u32 4294901760, %v14204_v41 }
 0x3cb   :  { %6868 = vmatpush.msra.mxu1 %v14030_v7  ;;  %6964 = vmatpush.msra.mxu3 %v6963_v13  ;;  %v16134_v7 = vand.u32 4294901760, %v14141_v47  ;;  %v14467_v13 = vand.u32 4294901760, %v350_v28  ;;  %v348_v47 = vld [vmem:[%s15614_s1 + $0x980] sm:$0xff] }
 0x3cc   :  { %6911 = vmatpush.msra.mxu2 %v14331_v48  ;;  %v6998_v57 = vsub.f32 %v14427_v51, %v16136_v46 }
 0x3cd   :  { %6825 = vmatpush.msra.mxu0 %v16134_v7  ;;  %6870 = vmatpush.msra.mxu1 %v14043_v39  ;;  %v1783_v7 = vadd.f32 %v1782_v32, %v1746_v62  ;;  %v14483_v39 = vand.u32 4294901760, %v349_v56  ;;  %v7009_v62 = vand.u32 4294901760, %v14456_v22 }
 0x3ce   :  { %6970 = vmatpush.msra.mxu3 %v6969_v26  ;;  %6913 = vmatpush.msra.mxu2 %v14349_v59  ;;  %v14485_v26 = vand.u32 4294901760, %v40_v6  ;;  %v14498_v59 = vand.u32 4294901760, %v348_v47 }
 0x3cf   :  { %6829 = vmatpush.msra.mxu0 %v16135_v50  ;;  %6872 = vmatpush.msra.mxu1 %v14054_v15  ;;  %v1824_v32 = vadd.f32 %v1823_v52, %v1783_v7  ;;  %v14496_v50 = vsub.f32 %v350_v28, %v14467_v13  ;;  %v6993_v15 = vand.u32 4294901760, %v6992_v16  ;;  %v14509_v28 = vsub.f32 %v349_v56, %v14483_v39 }
 0x3d0   :  { %6976 = vmatpush.msra.mxu3 %v6975_v44  ;;  %6915 = vmatpush.msra.mxu2 %v14365_v36  ;;  %v16138_v44 = vand.u32 4294901760, %v14440_v63  ;;  %v14512_v7 = vsub.f32 %v40_v6, %v14485_v26  ;;  %v7010_v16 = vsub.f32 %v14456_v22, %v7009_v62  ;;  %v7016_v6 = vsub.f32 %v14475_v18, %v7015_v54 }
 0x3d1   :  { %6833 = vmatpush.msra.mxu0 %v16137_v27  ;;  %6874 = vmatpush.msra.mxu1 %v14066_v43  ;;  %v1925_v52 = vadd.f32 %v1924_v0, %v1824_v32  ;;  %v1978_v43 = vpop.f32.mrf.mxu2  ;;  %v7021_v56 = vand.u32 4294901760, %v14496_v50  ;;  %v14523_v0 = vsub.f32 %v348_v47, %v14498_v59  ;;  %v7027_v41 = vand.u32 4294901760, %v14509_v28  ;;  %v2017_v47 = vpop.f32.mrf.mxu3 }
 0x3d2   :  { %6982 = vmatpush.msra.mxu3 %v6981_v4  ;;  %v7004_v46 = vsub.f32 %v14440_v63, %v16138_v44  ;;  %6917 = vmatpush.msra.mxu2 %v14382_v38  ;;  %v6999_v4 = vand.u32 4294901760, %v6998_v57  ;;  %v6934_v32 = vand.u32 4294901760, %v14512_v7  ;;  %v16142_v27 = vand.u32 4294901760, %v14238_v61  ;;  %v2086_v44 = vpop.f32.mrf.mxu0 }
 0x3d3   :  { %6837 = vmatpush.msra.mxu0 %v16139_v1  ;;  %6876 = vmatpush.msra.mxu1 %v14091_v10  ;;  %v1979_v57 = vadd.f32 %v1978_v43, %v1925_v52  ;;  %v7028_v61 = vsub.f32 %v14509_v28, %v7027_v41  ;;  %v2123_v43 = vpop.f32.mrf.mxu1 }
 0x3d4   :  { %6988 = vmatpush.msra.mxu3 %v6987_v30  ;;  %6919 = vmatpush.msra.mxu2 %v14399_v2  ;;  %v7005_v10 = vand.u32 4294901760, %v7004_v46  ;;  %v16141_v30 = vand.u32 4294901760, %v14220_v35  ;;  %v7022_v35 = vsub.f32 %v14496_v50, %v7021_v56  ;;  %v7017_v46 = vand.u32 4294901760, %v7016_v6 }
 0x3d5   :  { %6841 = vmatpush.msra.mxu0 %v16140_v37  ;;  %6878 = vmatpush.msra.mxu1 %v14108_v33  ;;  %v7011_v33 = vand.u32 4294901760, %v7010_v16  ;;  %v2018_v52 = vadd.f32 %v2017_v47, %v1979_v57  ;;  %v6935_v1 = vsub.f32 %v14512_v7, %v6934_v32  ;;  %v16146_v47 = vld [vmem:[#allocation6_spill] sm:$0xff] }
 0x3d6   :  { %6994 = vmatpush.msra.mxu3 %v6993_v15  ;;  %6921 = vmatpush.msra.mxu2 %v14414_v45  ;;  %v7033_v15 = vand.u32 4294901760, %v14523_v0 }
 0x3d7   :  { %6845 = vmatpush.msra.mxu0 %v16141_v30  ;;  %6880 = vmatpush.msra.mxu1 %v14122_v19  ;;  %v16143_v19 = vand.u32 4294901760, %v14258_v23  ;;  %v7023_v23 = vand.u32 4294901760, %v7022_v35  ;;  %v16145_v30 = vand.u32 4294901760, %v14279_v20 }
 0x3d8   :  { %7000 = vmatpush.msra.mxu3 %v6999_v4  ;;  %6923 = vmatpush.msra.mxu2 %v14429_v17  ;;  %v16144_v4 = vand.u32 4294901760, %v14286_v3  ;;  %v7034_v16 = vsub.f32 %v14523_v0, %v7033_v15 }
 0x3d9   :  { %6849 = vmatpush.msra.mxu0 %v16142_v27  ;;  %6882 = vmatpush.msra.mxu1 %v14138_v24  ;;  %v2087_v24 = vadd.f32 %v2086_v44, %v2018_v52  ;;  %v2164_v6 = vpop.f32.mrf.mxu2  ;;  %v2265_v57 = vpop.f32.mrf.mxu3  ;;  %v16148_v27 = vld [vmem:[#allocation7_spill] sm:$0xff]  ;;  %v16149_v44 = vld [vmem:[#allocation5_spill] sm:$0xff] }
 0x3da   :  { %7006 = vmatpush.msra.mxu3 %v7005_v10  ;;  %6925 = vmatpush.msra.mxu2 %v14442_v60  ;;  %v6936_v10 = vand.u32 4294901760, %v6935_v1  ;;  %v7035_v3 = vand.u32 4294901760, %v7034_v16 }
 0x3db   :  { %6853 = vmatpush.msra.mxu0 %v16143_v19  ;;  %6884 = vmatpush.msra.mxu1 %v14153_v31  ;;  %v2124_v37 = vadd.f32 %v2123_v43, %v2087_v24  ;;  %v7029_v31 = vand.u32 4294901760, %v7028_v61  ;;  %v2358_v35 = vpop.f32.mrf.mxu1  ;;  %v378_v24 = vld [vmem:[%s15614_s1 + $0xa70] sm:$0xff] }
 0x3dc   :  { %7012 = vmatpush.msra.mxu3 %v7011_v33  ;;  %6927 = vmatpush.msra.mxu2 %v14467_v13  ;;  %v14634_v16 = vand.u32 4294901760, %v378_v24 }
 0x3dd   :  { %6857 = vmatpush.msra.mxu0 %v16144_v4  ;;  %6886 = vmatpush.msra.mxu1 %v14171_v42  ;;  %v2165_v42 = vadd.f32 %v2164_v6, %v2124_v37  ;;  %v374_v6 = vld [vmem:[%s15614_s1 + $0xa50] sm:$0xff] }
 0x3de   :  { %7018 = vmatpush.msra.mxu3 %v7017_v46  ;;  %6859 = vmatmul.f32.vlgmr.msra.gmra.mxu0 %v14182_v55  ;;  %v16150_v46 = vand.u32 4294901760, %v14316_v5 }
 0x3df   :  { %6929 = vmatpush.msra.mxu2 %v14483_v39  ;;  %7044 = vmatpush.msrb.mxu0 %v14279_v20  ;;  %v2266_v33 = vadd.f32 %v2265_v57, %v2165_v42 }
 0x3e0   :  { %6888 = vmatpush.msra.mxu1 %v14188_v53  ;;  %7024 = vmatpush.msra.mxu3 %v7023_v23  ;;  %v2319_v53 = vpop.f32.mrf.mxu0  ;;  %v16159_v23 = vand.u32 4294901760, %v14440_v63 }
 0x3e1   :  { %6931 = vmatpush.msra.mxu2 %v14498_v59  ;;  %7047 = vmatpush.msrb.mxu0 %v14303_v11  ;;  %v2320_v20 = vadd.f32 %v2319_v53, %v2266_v33  ;;  %v2427_v19 = vpop.f32.mrf.mxu2  ;;  %v2464_v61 = vpop.f32.mrf.mxu3 }
 0x3e2   :  { %6890 = vmatpush.msra.mxu1 %v14200_v14  ;;  %7030 = vmatpush.msra.mxu3 %v7029_v31  ;;  %v16147_v14 = vand.u32 4294901760, %v14303_v11  ;;  %v16151_v11 = vand.u32 4294901760, %v14324_v40 }
 0x3e3   :  { %6937 = vmatmul.f32.vlgmr.msra.gmra.mxu2 %v6936_v10  ;;  %7050 = vmatpush.msrb.mxu0 %v14316_v5  ;;  %v2359_v52 = vadd.f32 %v2358_v35, %v2320_v20  ;;  %v2606_v1 = vpop.f32.mrf.mxu1  ;;  %v375_v10 = vld [vmem:[%s15614_s1 + $0xa58] sm:$0xff] }
 0x3e4   :  { %7138 = vmatpush.msrb.mxu2 %v16145_v30  ;;  %6892 = vmatpush.msra.mxu1 %v16146_v47 }
 0x3e5   :  { %7036 = vmatpush.msra.mxu3 %v7035_v3  ;;  %7053 = vmatpush.msrb.mxu0 %v14324_v40  ;;  %v2428_v5 = vadd.f32 %v2427_v19, %v2359_v52  ;;  %v16153_v40 = vand.u32 4294901760, %v14363_v49 }
 0x3e6   :  { %7038 = vmatmul.f32.vlgmr.msra.gmra.mxu3 %v14485_v26  ;;  %7142 = vmatpush.msrb.mxu2 %v16147_v14  ;;  %v371_v14 = vld [vmem:[%s15614_s1 + $0xa38] sm:$0xff] }
 0x3e7   :  { %7205 = vmatpush.msrb.mxu3 %v16148_v27  ;;  %6894 = vmatpush.msra.mxu1 %v16149_v44 }
 0x3e8   :  { %7056 = vmatpush.msrb.mxu0 %v14338_v21  ;;  %6896 = vmatmul.f32.vlgmr.msra.gmra.mxu1 %v14182_v55  ;;  %v16152_v55 = vand.u32 4294901760, %v14338_v21  ;;  %v2505_v21 = vpop.f32.mrf.mxu0 }
 0x3e9   :  { %7146 = vmatpush.msrb.mxu2 %v16150_v46  ;;  %7097 = vmatpush.msrb.mxu1 %v16148_v27  ;;  %v2699_v37 = vpop.f32.mrf.mxu3  ;;  %v370_v46 = vld [vmem:[%s15614_s1 + $0xa30] sm:$0xff] }
 0x3ea   :  { %7207 = vmatpush.msrb.mxu3 %v14268_v9  ;;  %7059 = vmatpush.msrb.mxu0 %v14363_v49  ;;  %v16155_v49 = vand.u32 4294901760, %v14397_v12 }
 0x3eb   :  { %7150 = vmatpush.msrb.mxu2 %v16151_v11  ;;  %7099 = vmatpush.msrb.mxu1 %v14268_v9  ;;  %v16154_v9 = vand.u32 4294901760, %v14380_v25 }
 0x3ec   :  { %7209 = vmatpush.msrb.mxu3 %v14288_v34  ;;  %7062 = vmatpush.msrb.mxu0 %v14380_v25  ;;  %v16157_v25 = vand.u32 4294901760, %v14412_v58 }
 0x3ed   :  { %7154 = vmatpush.msrb.mxu2 %v16152_v55  ;;  %7101 = vmatpush.msrb.mxu1 %v14288_v34  ;;  %v2465_v34 = vadd.f32 %v2464_v61, %v2428_v5  ;;  %v14734_v55 = vand.u32 4294901760, %v371_v14 }
 0x3ee   :  { %7211 = vmatpush.msrb.mxu3 %v14296_v29  ;;  %7065 = vmatpush.msrb.mxu0 %v14397_v12 }
 0x3ef   :  { %7158 = vmatpush.msrb.mxu2 %v16153_v40  ;;  %7103 = vmatpush.msrb.mxu1 %v14296_v29  ;;  %v16156_v29 = vld [vmem:[#allocation8_spill] sm:$0xff]  ;;  %v2506_v43 = vadd.f32 %v2505_v21, %v2465_v34  ;;  %v14750_v21 = vand.u32 4294901760, %v370_v46 }
 0x3f0   :  { %7213 = vmatpush.msrb.mxu3 %v14308_v8  ;;  %7068 = vmatpush.msrb.mxu0 %v14412_v58  ;;  %v2660_v58 = vpop.f32.mrf.mxu2 }
 0x3f1   :  { %7162 = vmatpush.msrb.mxu2 %v16154_v9  ;;  %7105 = vmatpush.msrb.mxu1 %v14308_v8  ;;  %v379_v8 = vld [vmem:[%s15614_s1 + $0xa78] sm:$0xff]  ;;  %v2607_v12 = vadd.f32 %v2606_v1, %v2506_v43  ;;  %v2947_v52 = vpop.f32.mrf.mxu3  ;;  %v368_v1 = vld [vmem:[%s15614_s1 + $0xa20] sm:$0xff] }
 0x3f2   :  { %7215 = vmatpush.msrb.mxu3 %v14331_v48  ;;  %7071 = vmatpush.msrb.mxu0 %v14427_v51  ;;  %v14624_v4 = vand.u32 4294901760, %v379_v8 }
 0x3f3   :  { %7166 = vmatpush.msrb.mxu2 %v16155_v49  ;;  %7107 = vmatpush.msrb.mxu1 %v14331_v48  ;;  %v16158_v48 = vand.u32 4294901760, %v14427_v51  ;;  %v377_v51 = vld [vmem:[%s15614_s1 + $0xa68] sm:$0xff] }
 0x3f4   :  { %7217 = vmatpush.msrb.mxu3 %v16156_v29  ;;  %7074 = vmatpush.msrb.mxu0 %v14440_v63  ;;  %v376_v63 = vld [vmem:[%s15614_s1 + $0xa60] sm:$0xff]  ;;  %v14647_v31 = vsub.f32 %v379_v8, %v14624_v4 }
 0x3f5   :  { %7170 = vmatpush.msrb.mxu2 %v16157_v25  ;;  %7109 = vmatpush.msrb.mxu1 %v16156_v29  ;;  %v41_v8 = vld [vmem:[%s15613_s0 + $0xa0] sm:$0xff] }
 0x3f6   :  { %7219 = vmatpush.msrb.mxu3 %v14365_v36  ;;  %7077 = vmatpush.msrb.mxu0 %v14456_v22  ;;  %v2768_v22 = vpop.f32.mrf.mxu0 }
 0x3f7   :  { %7174 = vmatpush.msrb.mxu2 %v16158_v48  ;;  %7111 = vmatpush.msrb.mxu1 %v14365_v36  ;;  %v2661_v36 = vadd.f32 %v2660_v58, %v2607_v12 }
 0x3f8   :  { %7221 = vmatpush.msrb.mxu3 %v14382_v38  ;;  %7080 = vmatpush.msrb.mxu0 %v14475_v18  ;;  %v14668_v18 = vand.u32 4294901760, %v375_v10  ;;  %v2846_v53 = vpop.f32.mrf.mxu2 }
 0x3f9   :  { %7178 = vmatpush.msrb.mxu2 %v16159_v23  ;;  %7113 = vmatpush.msrb.mxu1 %v14382_v38  ;;  %v14644_v38 = vand.u32 4294901760, %v377_v51  ;;  %v2700_v3 = vadd.f32 %v2699_v37, %v2661_v36  ;;  %v14783_v23 = vand.u32 4294901760, %v368_v1  ;;  %v14787_v36 = vsub.f32 %v370_v46, %v14750_v21 }
 0x3fa   :  { %7223 = vmatpush.msrb.mxu3 %v14399_v2  ;;  %7083 = vmatpush.msrb.mxu0 %v14496_v50  ;;  %v14679_v50 = vand.u32 4294901760, %v374_v6 }
 0x3fb   :  { %7182 = vmatpush.msrb.mxu2 %v7009_v62  ;;  %7115 = vmatpush.msrb.mxu1 %v14399_v2  ;;  %v14657_v2 = vand.u32 4294901760, %v376_v63  ;;  %v14660_v62 = vsub.f32 %v378_v24, %v14634_v16  ;;  %v14674_v42 = vsub.f32 %v377_v51, %v14644_v38  ;;  %v2769_v57 = vadd.f32 %v2768_v22, %v2700_v3  ;;  %v367_v24 = vld [vmem:[%s15614_s1 + $0xa18] sm:$0xff] }
 0x3fc   :  { %7225 = vmatpush.msrb.mxu3 %v14414_v45  ;;  %7086 = vmatpush.msrb.mxu0 %v14509_v28  ;;  %v14694_v28 = vsub.f32 %v375_v10, %v14668_v18  ;;  %v366_v10 = vld [vmem:[%s15614_s1 + $0xa10] sm:$0xff]  ;;  %v14794_v22 = vand.u32 4294901760, %v41_v8 }
 0x3fd   :  { %7186 = vmatpush.msrb.mxu2 %v7015_v54  ;;  %7117 = vmatpush.msrb.mxu1 %v14414_v45  ;;  %v2805_v45 = vpop.f32.mrf.mxu1  ;;  %v7284_v54 = vand.u32 4294901760, %v14647_v31  ;;  %v14688_v30 = vsub.f32 %v376_v63, %v14657_v2 }
 0x3fe   :  { %7227 = vmatpush.msrb.mxu3 %v14429_v17  ;;  %7089 = vmatpush.msrb.mxu0 %v14523_v0  ;;  %v2806_v47 = vadd.f32 %v2805_v45, %v2769_v57  ;;  %v15862_v0 = vand.u32 4294901760, %v14674_v42  ;;  %v15858_v20 = vand.u32 4294901760, %v14694_v28  ;;  %v3001_v40 = vpop.f32.mrf.mxu0  ;;  %v14800_v45 = vand.u32 4294901760, %v367_v24 }
 0x3ff   :  { %7190 = vmatpush.msrb.mxu2 %v7021_v56  ;;  %7119 = vmatpush.msrb.mxu1 %v14429_v17  ;;  %v373_v56 = vld [vmem:[%s15614_s1 + $0xa48] sm:$0xff]  ;;  %v7290_v17 = vand.u32 4294901760, %v14660_v62  ;;  %v15860_v35 = vand.u32 4294901760, %v14688_v30  ;;  %v14824_v46 = vsub.f32 %v41_v8, %v14794_v22 }
 0x400   :  { %7229 = vmatpush.msrb.mxu3 %v14442_v60  ;;  %7092 = vmatmul.f32.vlgmr.msrb.gmra.mxu0 %v14512_v7  ;;  %v14704_v33 = vand.u32 4294901760, %v373_v56  ;;  %v2847_v44 = vadd.f32 %v2846_v53, %v2806_v47  ;;  %v7297_v19 = vsub.f32 %v14674_v42, %v15862_v0  ;;  %v14812_v53 = vand.u32 4294901760, %v366_v10 }
 0x401   :  { %7194 = vmatpush.msrb.mxu2 %v7027_v41  ;;  %7242 = vmatpush.msra.mxu0 %v14624_v4  ;;  %v372_v41 = vld [vmem:[%s15614_s1 + $0xa40] sm:$0xff]  ;;  %v7303_v9 = vsub.f32 %v14688_v30, %v15860_v35 }
 0x402   :  { %7121 = vmatpush.msrb.mxu1 %v14442_v60  ;;  %7231 = vmatpush.msrb.mxu3 %v14467_v13  ;;  %v7285_v60 = vsub.f32 %v14647_v31, %v7284_v54  ;;  %v14720_v27 = vand.u32 4294901760, %v372_v41  ;;  %v2948_v49 = vadd.f32 %v2947_v52, %v2847_v44  ;;  %v7298_v43 = vand.u32 4294901760, %v7297_v19  ;;  %v3146_v52 = vpop.f32.mrf.mxu3 }
 0x403   :  { %7198 = vmatpush.msrb.mxu2 %v7033_v15  ;;  %7244 = vmatpush.msra.mxu0 %v14634_v16  ;;  %v14710_v15 = vsub.f32 %v374_v6, %v14679_v50  ;;  %v7304_v58 = vand.u32 4294901760, %v7303_v9  ;;  %v3109_v6 = vpop.f32.mrf.mxu2  ;;  %v14850_v8 = vsub.f32 %v366_v10, %v14812_v53 }
 0x404   :  { %7123 = vmatpush.msrb.mxu1 %v14467_v13  ;;  %7233 = vmatpush.msrb.mxu3 %v14483_v39  ;;  %v7291_v13 = vsub.f32 %v14660_v62, %v7290_v17  ;;  %v7286_v11 = vand.u32 4294901760, %v7285_v60  ;;  %v14753_v34 = vsub.f32 %v372_v41, %v14720_v27  ;;  %v3002_v12 = vadd.f32 %v3001_v40, %v2948_v49  ;;  %v364_v49 = vld [vmem:[%s15614_s1 + $0xa00] sm:$0xff] }
 0x405   :  { %7200 = vmatmul.f32.vlgmr.msrb.gmra.mxu2 %v14485_v26  ;;  %7246 = vmatpush.msra.mxu0 %v14644_v38  ;;  %v15857_v5 = vand.u32 4294901760, %v14710_v15  ;;  %v3040_v29 = vpop.f32.mrf.mxu1  ;;  %v15852_v60 = vand.u32 4294901760, %v14787_v36  ;;  %v14832_v40 = vsub.f32 %v367_v24, %v14800_v45 }
 0x406   :  { %7385 = vmatpush.msra.mxu2 %v14647_v31  ;;  %7125 = vmatpush.msrb.mxu1 %v14483_v39  ;;  %v14737_v39 = vsub.f32 %v373_v56, %v14704_v33  ;;  %v7292_v61 = vand.u32 4294901760, %v7291_v13  ;;  %v15855_v51 = vand.u32 4294901760, %v14753_v34  ;;  %v3041_v63 = vadd.f32 %v3040_v29, %v3002_v12  ;;  %v365_v13 = vld [vmem:[%s15614_s1 + $0xa08] sm:$0xff]  ;;  %v387_v31 = vld [vmem:[%s15614_s1 + $0xab8] sm:$0xff] }
 0x407   :  { %7235 = vmatpush.msrb.mxu3 %v14498_v59  ;;  %7248 = vmatpush.msra.mxu0 %v14657_v2  ;;  %v7315_v48 = vsub.f32 %v14710_v15, %v15857_v5  ;;  %v14839_v9 = vand.u32 4294901760, %v365_v13  ;;  %v7339_v29 = vsub.f32 %v14787_v36, %v15852_v60 }
 0x408   :  { %7237 = vmatmul.f32.vlgmr.msrb.gmra.mxu3 %v14485_v26  ;;  %7388 = vmatpush.msra.mxu2 %v14660_v62  ;;  %v369_v26 = vld [vmem:[%s15614_s1 + $0xa28] sm:$0xff]  ;;  %v15856_v7 = vand.u32 4294901760, %v14737_v39  ;;  %v7327_v41 = vsub.f32 %v14753_v34, %v15855_v51  ;;  %v3110_v44 = vadd.f32 %v3109_v6, %v3041_v63  ;;  %v14864_v6 = vand.u32 4294901760, %v364_v49  ;;  %v386_v62 = vld [vmem:[%s15614_s1 + $0xab0] sm:$0xff] }
 0x409   :  { %7438 = vmatpush.msra.mxu3 %v14624_v4  ;;  %7127 = vmatpush.msrb.mxu1 %v14498_v59  ;;  %v7309_v59 = vsub.f32 %v14694_v28, %v15858_v20  ;;  %v14765_v25 = vand.u32 4294901760, %v369_v26  ;;  %v7316_v47 = vand.u32 4294901760, %v7315_v48  ;;  %v15861_v48 = vand.u32 4294901760, %v14824_v46 }
 0x40a   :  { %7250 = vmatpush.msra.mxu0 %v14668_v18  ;;  %7131 = vmatmul.f32.vlgmr.msrb.gmra.mxu1 %v6934_v32  ;;  %v14769_v32 = vsub.f32 %v371_v14, %v14734_v55  ;;  %v7321_v3 = vsub.f32 %v14737_v39, %v15856_v7  ;;  %v14816_v14 = vsub.f32 %v368_v1, %v14783_v23  ;;  %v7328_v1 = vand.u32 4294901760, %v7327_v41 }
 0x40b   :  { %7391 = vmatpush.msra.mxu2 %v14674_v42  ;;  %7287 = vmatpush.msra.mxu1 %v7286_v11  ;;  %v7310_v37 = vand.u32 4294901760, %v7309_v59  ;;  %v14804_v56 = vsub.f32 %v369_v26, %v14765_v25  ;;  %v3187_v59 = vpop.f32.mrf.mxu0  ;;  %v3147_v12 = vadd.f32 %v3146_v52, %v3110_v44  ;;  %16161 = vst [vmem:[#allocation7_spill] sm:$0xff] %v14864_v6  ;;  %v393_v44 = vld [vmem:[%s15614_s1 + $0xae8] sm:$0xff]  ;;  %v7340_v52 = vand.u32 4294901760, %v7339_v29 }
 0x40c   :  { %7440 = vmatpush.msra.mxu3 %v14634_v16  ;;  %7252 = vmatpush.msra.mxu0 %v14679_v50  ;;  %v15853_v57 = vand.u32 4294901760, %v14769_v32  ;;  %v7322_v11 = vand.u32 4294901760, %v7321_v3  ;;  %v15854_v3 = vand.u32 4294901760, %v14832_v40  ;;  %v14870_v41 = vsub.f32 %v365_v13, %v14839_v9  ;;  %v392_v13 = vld [vmem:[%s15614_s1 + $0xae0] sm:$0xff] }
 0x40d   :  { %7394 = vmatpush.msra.mxu2 %v14688_v30  ;;  %7293 = vmatpush.msra.mxu1 %v7292_v61  ;;  %v15851_v26 = vand.u32 4294901760, %v14804_v56  ;;  %v395_v61 = vld [vmem:[%s15614_s1 + $0xaf8] sm:$0xff]  ;;  %v3288_v63 = vpop.f32.mrf.mxu1  ;;  %v14900_v60 = vand.u32 4294901760, %v393_v44 }
 0x40e   :  { %7442 = vmatpush.msra.mxu3 %v14644_v38  ;;  %7254 = vmatpush.msra.mxu0 %v14704_v33  ;;  %v7333_v19 = vsub.f32 %v14769_v32, %v15853_v57  ;;  %v14855_v24 = vand.u32 4294901760, %v395_v61  ;;  %v391_v57 = vld [vmem:[%s15614_s1 + $0xad8] sm:$0xff] }
 0x40f   :  { %7397 = vmatpush.msra.mxu2 %v14694_v28  ;;  %7299 = vmatpush.msra.mxu1 %v7298_v43  ;;  %v15850_v43 = vand.u32 4294901760, %v14816_v14  ;;  %v7345_v10 = vsub.f32 %v14804_v56, %v15851_v26  ;;  %16162 = vst [vmem:[#allocation5_spill] sm:$0xff] %v14900_v60  ;;  %v14920_v20 = vand.u32 4294901760, %v391_v57 }
 0x410   :  { %7444 = vmatpush.msra.mxu3 %v14657_v2  ;;  %7256 = vmatpush.msra.mxu0 %v14720_v27  ;;  %16160 = vst [vmem:[#allocation6_spill] sm:$0xff] %v14855_v24  ;;  %v14891_v29 = vsub.f32 %v395_v61, %v14855_v24  ;;  %v15863_v61 = vand.u32 4294901760, %v14870_v41 }
 0x411   :  { %7400 = vmatpush.msra.mxu2 %v14710_v15  ;;  %7305 = vmatpush.msra.mxu1 %v7304_v58  ;;  %v394_v58 = vld [vmem:[%s15614_s1 + $0xaf0] sm:$0xff]  ;;  %v7346_v26 = vand.u32 4294901760, %v7345_v10 }
 0x412   :  { %7446 = vmatpush.msra.mxu3 %v14668_v18  ;;  %7258 = vmatpush.msra.mxu0 %v14734_v55  ;;  %v15864_v5 = vand.u32 4294901760, %v14891_v29 }
 0x413   :  { %7403 = vmatpush.msra.mxu2 %v14737_v39  ;;  %7311 = vmatpush.msra.mxu1 %v7310_v37  ;;  %v7334_v37 = vand.u32 4294901760, %v7333_v19  ;;  %v15859_v19 = vand.u32 4294901760, %v14850_v8 }
 0x414   :  { %7448 = vmatpush.msra.mxu3 %v14679_v50  ;;  %7260 = vmatpush.msra.mxu0 %v14750_v21 }
 0x415   :  { %7406 = vmatpush.msra.mxu2 %v14753_v34  ;;  %7317 = vmatpush.msra.mxu1 %v7316_v47  ;;  %v3188_v47 = vadd.f32 %v3187_v59, %v3147_v12  ;;  %v14880_v59 = vand.u32 4294901760, %v394_v58 }
 0x416   :  { %7450 = vmatpush.msra.mxu3 %v14704_v33  ;;  %7262 = vmatpush.msra.mxu0 %v14765_v25 }
 0x417   :  { %7409 = vmatpush.msra.mxu2 %v14769_v32  ;;  %7323 = vmatpush.msra.mxu1 %v7322_v11  ;;  %v7351_v11 = vsub.f32 %v14816_v14, %v15850_v43  ;;  %v3289_v12 = vadd.f32 %v3288_v63, %v3188_v47  ;;  %v3342_v43 = vpop.f32.mrf.mxu2  ;;  %v7357_v63 = vsub.f32 %v14832_v40, %v15854_v3 }
 0x418   :  { %7452 = vmatpush.msra.mxu3 %v14720_v27  ;;  %7264 = vmatpush.msra.mxu0 %v14783_v23  ;;  %v14898_v47 = vsub.f32 %v364_v49, %v14864_v6  ;;  %v7363_v49 = vsub.f32 %v14850_v8, %v15859_v19  ;;  %v14915_v3 = vsub.f32 %v394_v58, %v14880_v59 }
 0x419   :  { %7412 = vmatpush.msra.mxu2 %v14787_v36  ;;  %7329 = vmatpush.msra.mxu1 %v7328_v1  ;;  %v7276_v1 = vsub.f32 %v14824_v46, %v15861_v48  ;;  %v7352_v10 = vand.u32 4294901760, %v7351_v11  ;;  %v3343_v51 = vadd.f32 %v3342_v43, %v3289_v12  ;;  %v3381_v11 = vpop.f32.mrf.mxu3  ;;  %v7358_v58 = vand.u32 4294901760, %v7357_v63  ;;  %v3450_v63 = vpop.f32.mrf.mxu0 }
 0x41a   :  { %7454 = vmatpush.msra.mxu3 %v14734_v55  ;;  %7266 = vmatpush.msra.mxu0 %v14800_v45  ;;  %v15865_v43 = vand.u32 4294901760, %v14898_v47  ;;  %v14928_v12 = vsub.f32 %v393_v44, %v14900_v60  ;;  %v7364_v44 = vand.u32 4294901760, %v7363_v49  ;;  %v3487_v49 = vpop.f32.mrf.mxu1 }
 0x41b   :  { %7415 = vmatpush.msra.mxu2 %v14804_v56  ;;  %7335 = vmatpush.msra.mxu1 %v7334_v37  ;;  %v14908_v37 = vand.u32 4294901760, %v392_v13  ;;  %v7277_v7 = vand.u32 4294901760, %v7276_v1  ;;  %v7369_v1 = vsub.f32 %v14870_v41, %v15863_v61  ;;  %v3382_v0 = vadd.f32 %v3381_v11, %v3343_v51 }
 0x41c   :  { %7456 = vmatpush.msra.mxu3 %v14750_v21  ;;  %7268 = vmatpush.msra.mxu0 %v14812_v53  ;;  %v14950_v61 = vsub.f32 %v391_v57, %v14920_v20  ;;  %v15866_v51 = vand.u32 4294901760, %v14928_v12 }
 0x41d   :  { %7418 = vmatpush.msra.mxu2 %v14816_v14  ;;  %7341 = vmatpush.msra.mxu1 %v7340_v52  ;;  %v390_v52 = vld [vmem:[%s15614_s1 + $0xad0] sm:$0xff]  ;;  %v14936_v19 = vsub.f32 %v392_v13, %v14908_v37  ;;  %v7626_v13 = vsub.f32 %v14891_v29, %v15864_v5  ;;  %v3451_v5 = vadd.f32 %v3450_v63, %v3382_v0  ;;  %v7370_v57 = vand.u32 4294901760, %v7369_v1 }
 0x41e   :  { %7458 = vmatpush.msra.mxu3 %v14765_v25  ;;  %7270 = vmatpush.msra.mxu0 %v14839_v9  ;;  %v14943_v48 = vand.u32 4294901760, %v390_v52 }
 0x41f   :  { %7421 = vmatpush.msra.mxu2 %v14832_v40  ;;  %7347 = vmatpush.msra.mxu1 %v7346_v26  ;;  %v389_v26 = vld [vmem:[%s15614_s1 + $0xac8] sm:$0xff]  ;;  %v3488_v1 = vadd.f32 %v3487_v49, %v3451_v5  ;;  %v7638_v5 = vsub.f32 %v14928_v12, %v15866_v51  ;;  %v16167_v51 = vand.u32 4294901760, %v14688_v30  ;;  %v384_v30 = vld [vmem:[%s15614_s1 + $0xaa0] sm:$0xff] }
 0x420   :  { %7460 = vmatpush.msra.mxu3 %v14783_v23  ;;  %7272 = vmatpush.msra.mxu0 %v14864_v6  ;;  %v14961_v11 = vand.u32 4294901760, %v389_v26  ;;  %v14975_v0 = vsub.f32 %v390_v52, %v14943_v48 }
 0x421   :  { %7424 = vmatpush.msra.mxu2 %v14850_v8  ;;  %7353 = vmatpush.msra.mxu1 %v7352_v10  ;;  %v388_v10 = vld [vmem:[%s15614_s1 + $0xac0] sm:$0xff] }
 0x422   :  { %7462 = vmatpush.msra.mxu3 %v14800_v45  ;;  %7278 = vmatmul.f32.vlgmr.msra.gmra.mxu0 %v7277_v7  ;;  %v7375_v7 = vsub.f32 %v14898_v47, %v15865_v43  ;;  %v14977_v63 = vand.u32 4294901760, %v388_v10  ;;  %v7627_v43 = vand.u32 4294901760, %v7626_v13  ;;  %v14992_v49 = vsub.f32 %v389_v26, %v14961_v11 }
 0x423   :  { %7427 = vmatpush.msra.mxu2 %v14870_v41  ;;  %7479 = vmatpush.msrb.mxu0 %v7284_v54  ;;  %v16163_v54 = vand.u32 4294901760, %v14915_v3  ;;  %v14994_v13 = vand.u32 4294901760, %v387_v31  ;;  %v15872_v35 = vand.u32 4294901760, %v14975_v0 }
 0x424   :  { %7359 = vmatpush.msra.mxu1 %v7358_v58  ;;  %7464 = vmatpush.msra.mxu3 %v14812_v53  ;;  %v7376_v52 = vand.u32 4294901760, %v7375_v7  ;;  %v385_v7 = vld [vmem:[%s15614_s1 + $0xaa8] sm:$0xff] }
 0x425   :  { %7430 = vmatpush.msra.mxu2 %v14898_v47  ;;  %7483 = vmatpush.msrb.mxu0 %v7290_v17  ;;  %v7632_v58 = vsub.f32 %v14915_v3, %v16163_v54  ;;  %v3528_v17 = vpop.f32.mrf.mxu2  ;;  %v16165_v54 = vand.u32 4294901760, %v14936_v19 }
 0x426   :  { %7365 = vmatpush.msra.mxu1 %v7364_v44  ;;  %7466 = vmatpush.msra.mxu3 %v14839_v9  ;;  %v16164_v44 = vand.u32 4294901760, %v14674_v42 }
 0x427   :  { %7433 = vmatmul.f32.vlgmr.msra.gmra.mxu2 %v14824_v46  ;;  %v7644_v42 = vsub.f32 %v14936_v19, %v16165_v54  ;;  %v7633_v26 = vand.u32 4294901760, %v7632_v58  ;;  %v16168_v54 = vand.u32 4294901760, %v14950_v61  ;;  %v16169_v58 = vand.u32 4294901760, %v14694_v28 }
 0x428   :  { %7487 = vmatpush.msrb.mxu0 %v16164_v44  ;;  %7583 = vmatpush.msrb.mxu2 %v14855_v24  ;;  %v16166_v44 = vand.u32 4294901760, %v14824_v46  ;;  %v3529_v24 = vadd.f32 %v3528_v17, %v3488_v1  ;;  %v15024_v1 = vsub.f32 %v387_v31, %v14994_v13  ;;  %v7656_v28 = vsub.f32 %v14975_v0, %v15872_v35 }
 0x429   :  { %7371 = vmatpush.msra.mxu1 %v7370_v57  ;;  %7468 = vmatpush.msra.mxu3 %v14864_v6  ;;  %v15009_v57 = vsub.f32 %v388_v10, %v14977_v63  ;;  %v15011_v6 = vand.u32 4294901760, %v386_v62  ;;  %v7650_v46 = vsub.f32 %v14950_v61, %v16168_v54  ;;  %v7639_v10 = vand.u32 4294901760, %v7638_v5  ;;  %v3683_v54 = vpop.f32.mrf.mxu0 }
 0x42a   :  { %7472 = vmatmul.f32.vlgmr.msra.gmra.mxu3 %v16166_v44  ;;  %7491 = vmatpush.msrb.mxu0 %v16167_v51  ;;  %v3629_v51 = vpop.f32.mrf.mxu3  ;;  %v7645_v17 = vand.u32 4294901760, %v7644_v42  ;;  %v16170_v44 = vand.u32 4294901760, %v14710_v15  ;;  %v382_v15 = vld [vmem:[%s15614_s1 + $0xa90] sm:$0xff] }
 0x42b   :  { %7585 = vmatpush.msrb.mxu2 %v14880_v59  ;;  %7628 = vmatpush.msrb.mxu3 %v7627_v43  ;;  %v15026_v43 = vand.u32 4294901760, %v385_v7  ;;  %v15039_v5 = vsub.f32 %v386_v62, %v15011_v6  ;;  %v3630_v42 = vadd.f32 %v3629_v51, %v3529_v24  ;;  %v15873_v62 = vand.u32 4294901760, %v15024_v1 }
 0x42c   :  { %7377 = vmatpush.msra.mxu1 %v7376_v52  ;;  %7495 = vmatpush.msrb.mxu0 %v16169_v58  ;;  %v383_v52 = vld [vmem:[%s15614_s1 + $0xa98] sm:$0xff]  ;;  %v15041_v58 = vand.u32 4294901760, %v384_v30  ;;  %v16172_v51 = vand.u32 4294901760, %v14737_v39  ;;  %v381_v39 = vld [vmem:[%s15614_s1 + $0xa88] sm:$0xff] }
 0x42d   :  { %7379 = vmatmul.f32.vlgmr.msra.gmra.mxu1 %v14794_v22  ;;  %7587 = vmatpush.msrb.mxu2 %v14900_v60  ;;  %v7651_v60 = vand.u32 4294901760, %v7650_v46  ;;  %v15052_v31 = vsub.f32 %v385_v7, %v15026_v43  ;;  %v15054_v24 = vand.u32 4294901760, %v383_v52  ;;  %v3684_v46 = vadd.f32 %v3683_v54, %v3630_v42  ;;  %v42_v54 = vld [vmem:[%s15613_s0 + $0xa8] sm:$0xff]  ;;  %v3791_v42 = vpop.f32.mrf.mxu2 }
 0x42e   :  { %7546 = vmatpush.msrb.mxu1 %v14624_v4  ;;  %7634 = vmatpush.msrb.mxu3 %v7633_v26  ;;  %v3722_v4 = vpop.f32.mrf.mxu1  ;;  %v16171_v26 = vand.u32 4294901760, %v14992_v49 }
 0x42f   :  { %7499 = vmatpush.msrb.mxu0 %v16170_v44  ;;  %7589 = vmatpush.msrb.mxu2 %v14908_v37  ;;  %v15874_v44 = vand.u32 4294901760, %v15039_v5 }
 0x430   :  { %7548 = vmatpush.msrb.mxu1 %v14634_v16  ;;  %7640 = vmatpush.msrb.mxu3 %v7639_v10  ;;  %v7662_v35 = vsub.f32 %v14992_v49, %v16171_v26  ;;  %v7657_v16 = vand.u32 4294901760, %v7656_v28  ;;  %v16173_v10 = vand.u32 4294901760, %v15009_v57  ;;  %v15068_v26 = vsub.f32 %v384_v30, %v15041_v58 }
 0x431   :  { %7503 = vmatpush.msrb.mxu0 %v16172_v51  ;;  %7591 = vmatpush.msrb.mxu2 %v14920_v20  ;;  %v15079_v28 = vand.u32 4294901760, %v382_v15  ;;  %v7674_v51 = vsub.f32 %v15024_v1, %v15873_v62 }
 0x432   :  { %7550 = vmatpush.msrb.mxu1 %v14644_v38  ;;  %7646 = vmatpush.msrb.mxu3 %v7645_v17  ;;  %v7668_v7 = vsub.f32 %v15009_v57, %v16173_v10  ;;  %v3723_v38 = vadd.f32 %v3722_v4, %v3684_v46  ;;  %v16174_v17 = vand.u32 4294901760, %v14753_v34  ;;  %v7663_v30 = vand.u32 4294901760, %v7662_v35  ;;  %v380_v34 = vld [vmem:[%s15614_s1 + $0xa80] sm:$0xff] }
 0x433   :  { %7593 = vmatpush.msrb.mxu2 %v14943_v48  ;;  %v15087_v4 = vsub.f32 %v383_v52, %v15054_v24  ;;  %v16175_v46 = vand.u32 4294901760, %v14769_v32  ;;  %v15097_v35 = vand.u32 4294901760, %v42_v54  ;;  %v7680_v52 = vsub.f32 %v15039_v5, %v15874_v44 }
 0x434   :  { %7507 = vmatpush.msrb.mxu0 %v16174_v17  ;;  %7552 = vmatpush.msrb.mxu1 %v14657_v2  ;;  %v15095_v2 = vand.u32 4294901760, %v381_v39  ;;  %v7691_v17 = vand.u32 4294901760, %v15068_v26  ;;  %v3792_v62 = vadd.f32 %v3791_v42, %v3723_v38  ;;  %v16176_v32 = vand.u32 4294901760, %v14787_v36 }
 0x435   :  { %7652 = vmatpush.msrb.mxu3 %v7651_v60  ;;  %7595 = vmatpush.msrb.mxu2 %v14961_v11  ;;  %v7669_v60 = vand.u32 4294901760, %v7668_v7  ;;  %v15110_v10 = vand.u32 4294901760, %v380_v34  ;;  %v16177_v7 = vand.u32 4294901760, %v15052_v31  ;;  %v7697_v38 = vand.u32 4294901760, %v15087_v4 }
 0x436   :  { %7511 = vmatpush.msrb.mxu0 %v16175_v46  ;;  %7554 = vmatpush.msrb.mxu1 %v14668_v18  ;;  %v15108_v46 = vsub.f32 %v382_v15, %v15079_v28  ;;  %v3828_v18 = vpop.f32.mrf.mxu3  ;;  %v16178_v36 = vand.u32 4294901760, %v14804_v56  ;;  %v15121_v15 = vsub.f32 %v381_v39, %v15095_v2  ;;  %v15124_v42 = vsub.f32 %v42_v54, %v15097_v35 }
 0x437   :  { %7658 = vmatpush.msrb.mxu3 %v7657_v16  ;;  %7597 = vmatpush.msrb.mxu2 %v14977_v63  ;;  %v7675_v16 = vand.u32 4294901760, %v7674_v51  ;;  %v7686_v44 = vsub.f32 %v15052_v31, %v16177_v7  ;;  %v7692_v51 = vsub.f32 %v15068_v26, %v7691_v17  ;;  %v16179_v56 = vand.u32 4294901760, %v14816_v14  ;;  %v3970_v7 = vpop.f32.mrf.mxu1 }
 0x438   :  { %7515 = vmatpush.msrb.mxu0 %v16176_v32  ;;  %7556 = vmatpush.msrb.mxu1 %v14679_v50  ;;  %v3869_v50 = vpop.f32.mrf.mxu0  ;;  %v3829_v32 = vadd.f32 %v3828_v18, %v3792_v62  ;;  %v7703_v39 = vand.u32 4294901760, %v15108_v46  ;;  %v15135_v54 = vsub.f32 %v380_v34, %v15110_v10  ;;  %v16180_v14 = vand.u32 4294901760, %v14832_v40 }
 0x439   :  { %7664 = vmatpush.msrb.mxu3 %v7663_v30  ;;  %7599 = vmatpush.msrb.mxu2 %v14994_v13  ;;  %v7681_v30 = vand.u32 4294901760, %v7680_v52  ;;  %v7709_v52 = vand.u32 4294901760, %v15121_v15  ;;  %v7616_v34 = vand.u32 4294901760, %v15124_v42 }
 0x43a   :  { %7519 = vmatpush.msrb.mxu0 %v16178_v36  ;;  %7558 = vmatpush.msrb.mxu1 %v14704_v33  ;;  %v7687_v33 = vand.u32 4294901760, %v7686_v44  ;;  %v3870_v62 = vadd.f32 %v3869_v50, %v3829_v32  ;;  %v16181_v44 = vand.u32 4294901760, %v14850_v8  ;;  %v7704_v40 = vsub.f32 %v15108_v46, %v7703_v39  ;;  %v4024_v36 = vpop.f32.mrf.mxu2 }
 0x43b   :  { %7670 = vmatpush.msrb.mxu3 %v7669_v60  ;;  %7601 = vmatpush.msrb.mxu2 %v15011_v6  ;;  %v7698_v60 = vsub.f32 %v15087_v4, %v7697_v38  ;;  %v7710_v8 = vsub.f32 %v15121_v15, %v7709_v52 }
 0x43c   :  { %7523 = vmatpush.msrb.mxu0 %v16179_v56  ;;  %7560 = vmatpush.msrb.mxu1 %v14720_v27  ;;  %v7693_v27 = vand.u32 4294901760, %v7692_v51  ;;  %v3971_v18 = vadd.f32 %v3970_v7, %v3870_v62 }
 0x43d   :  { %7676 = vmatpush.msrb.mxu3 %v7675_v16  ;;  %7603 = vmatpush.msrb.mxu2 %v15026_v43  ;;  %v7715_v16 = vand.u32 4294901760, %v15135_v54  ;;  %v7699_v50 = vand.u32 4294901760, %v7698_v60 }
 0x43e   :  { %7527 = vmatpush.msrb.mxu0 %v16180_v14  ;;  %7562 = vmatpush.msrb.mxu1 %v14734_v55  ;;  %v16182_v55 = vand.u32 4294901760, %v14870_v41  ;;  %v4025_v51 = vadd.f32 %v4024_v36, %v3971_v18  ;;  %v7705_v41 = vand.u32 4294901760, %v7704_v40  ;;  %v4063_v56 = vpop.f32.mrf.mxu3  ;;  %v16184_v14 = vand.u32 4294901760, %v14891_v29 }
 0x43f   :  { %7682 = vmatpush.msrb.mxu3 %v7681_v30  ;;  %7605 = vmatpush.msrb.mxu2 %v15041_v58  ;;  %v7617_v30 = vsub.f32 %v15124_v42, %v7616_v34  ;;  %v7716_v32 = vsub.f32 %v15135_v54, %v7715_v16  ;;  %v4169_v62 = vpop.f32.mrf.mxu1  ;;  %v16185_v18 = vand.u32 4294901760, %v14915_v3 }
 0x440   :  { %7531 = vmatpush.msrb.mxu0 %v16181_v44  ;;  %7564 = vmatpush.msrb.mxu1 %v14750_v21  ;;  %v16183_v21 = vand.u32 4294901760, %v14898_v47  ;;  %v4064_v47 = vadd.f32 %v4063_v56, %v4025_v51  ;;  %v16187_v44 = vld [vmem:[#allocation7_spill] sm:$0xff] }
 0x441   :  { %7688 = vmatpush.msrb.mxu3 %v7687_v33  ;;  %7607 = vmatpush.msrb.mxu2 %v15054_v24  ;;  %v7618_v7 = vand.u32 4294901760, %v7617_v30  ;;  %v4132_v33 = vpop.f32.mrf.mxu0  ;;  %v7717_v60 = vand.u32 4294901760, %v7716_v32 }
 0x442   :  { %7535 = vmatpush.msrb.mxu0 %v16182_v55  ;;  %7566 = vmatpush.msrb.mxu1 %v14765_v25  ;;  %v7711_v25 = vand.u32 4294901760, %v7710_v8 }
 0x443   :  { %7694 = vmatpush.msrb.mxu3 %v7693_v27  ;;  %7609 = vmatpush.msrb.mxu2 %v15079_v28 }
 0x444   :  { %7539 = vmatpush.msrb.mxu0 %v16183_v21  ;;  %7568 = vmatpush.msrb.mxu1 %v14783_v23  ;;  %v4133_v23 = vadd.f32 %v4132_v33, %v4064_v47 }
 0x445   :  { %7700 = vmatpush.msrb.mxu3 %v7699_v50  ;;  %7541 = vmatmul.f32.vlgmr.msrb.gmra.mxu0 %v14794_v22  ;;  %v16190_v50 = vld [vmem:[#allocation5_spill] sm:$0xff] }
 0x446   :  { %7611 = vmatpush.msrb.mxu2 %v15095_v2  ;;  %7726 = vmatpush.msra.mxu0 %v14891_v29  ;;  %v4170_v27 = vadd.f32 %v4169_v62, %v4133_v23  ;;  %v4311_v40 = vpop.f32.mrf.mxu3 }
 0x447   :  { %7570 = vmatpush.msrb.mxu1 %v14800_v45  ;;  %7706 = vmatpush.msrb.mxu3 %v7705_v41  ;;  %v4210_v45 = vpop.f32.mrf.mxu2 }
 0x448   :  { %7613 = vmatpush.msrb.mxu2 %v15110_v10  ;;  %7729 = vmatpush.msra.mxu0 %v14915_v3  ;;  %v4211_v29 = vadd.f32 %v4210_v45, %v4170_v27  ;;  %v16189_v3 = vand.u32 4294901760, %v14936_v19  ;;  %v43_v27 = vld [vmem:[%s15613_s0 + $0xb0] sm:$0xff] }
 0x449   :  { %7572 = vmatpush.msrb.mxu1 %v14812_v53  ;;  %7712 = vmatpush.msrb.mxu3 %v7711_v25  ;;  %v16186_v53 = vld [vmem:[#allocation6_spill] sm:$0xff]  ;;  %v4365_v36 = vpop.f32.mrf.mxu0  ;;  %v405_v25 = vld [vmem:[%s15614_s1 + $0xb48] sm:$0xff] }
 0x44a   :  { %7619 = vmatmul.f32.vlgmr.msrb.gmra.mxu2 %v7618_v7  ;;  %7732 = vmatpush.msra.mxu0 %v14928_v12  ;;  %v4312_v55 = vadd.f32 %v4311_v40, %v4211_v29  ;;  %v15264_v47 = vand.u32 4294901760, %v405_v25 }
 0x44b   :  { %7820 = vmatpush.msra.mxu2 %v16184_v14  ;;  %7574 = vmatpush.msrb.mxu1 %v14839_v9  ;;  %v16188_v9 = vand.u32 4294901760, %v14928_v12  ;;  %v4404_v12 = vpop.f32.mrf.mxu1 }
 0x44c   :  { %7718 = vmatpush.msrb.mxu3 %v7717_v60  ;;  %7735 = vmatpush.msra.mxu0 %v14936_v19  ;;  %v4366_v8 = vadd.f32 %v4365_v36, %v4312_v55  ;;  %v16192_v19 = vand.u32 4294901760, %v14975_v0  ;;  %v399_v55 = vld [vmem:[%s15614_s1 + $0xb18] sm:$0xff] }
 0x44d   :  { %7720 = vmatmul.f32.vlgmr.msrb.gmra.mxu3 %v15097_v35  ;;  %7824 = vmatpush.msra.mxu2 %v16185_v18 }
 0x44e   :  { %7887 = vmatpush.msra.mxu3 %v16186_v53  ;;  %7576 = vmatpush.msrb.mxu1 %v16187_v44  ;;  %v4510_v21 = vpop.f32.mrf.mxu3 }
 0x44f   :  { %7738 = vmatpush.msra.mxu0 %v14950_v61  ;;  %7578 = vmatmul.f32.vlgmr.msrb.gmra.mxu1 %v14794_v22  ;;  %v16191_v22 = vand.u32 4294901760, %v14950_v61  ;;  %v16193_v61 = vand.u32 4294901760, %v14992_v49  ;;  %v4473_v30 = vpop.f32.mrf.mxu2 }
 0x450   :  { %7828 = vmatpush.msra.mxu2 %v16188_v9  ;;  %7779 = vmatpush.msra.mxu1 %v16186_v53 }
 0x451   :  { %7889 = vmatpush.msra.mxu3 %v14880_v59  ;;  %7741 = vmatpush.msra.mxu0 %v14975_v0  ;;  %v408_v0 = vld [vmem:[%s15614_s1 + $0xb60] sm:$0xf]  ;;  %v4551_v41 = vpop.f32.mrf.mxu0 }
 0x452   :  { %7832 = vmatpush.msra.mxu2 %v16189_v3  ;;  %7781 = vmatpush.msra.mxu1 %v14880_v59  ;;  %v4405_v59 = vadd.f32 %v4404_v12, %v4366_v8  ;;  %v419_v51 = vsel %vm417_vm0, %v408_v0, 0  ;;  %v415_v3 = vsel %vm413_vm1, %v43_v27, 0 }
 0x453   :  { %7891 = vmatpush.msra.mxu3 %v16190_v50  ;;  %7744 = vmatpush.msra.mxu0 %v14992_v49  ;;  %v4652_v56 = vpop.f32.mrf.mxu1 }
 0x454   :  { %7836 = vmatpush.msra.mxu2 %v16191_v22  ;;  %7783 = vmatpush.msra.mxu1 %v16190_v50  ;;  %v4474_v49 = vadd.f32 %v4473_v30, %v4405_v59 }
 0x455   :  { %7893 = vmatpush.msra.mxu3 %v14908_v37  ;;  %7747 = vmatpush.msra.mxu0 %v15009_v57 }
 0x456   :  { %7840 = vmatpush.msra.mxu2 %v16192_v19  ;;  %7785 = vmatpush.msra.mxu1 %v14908_v37  ;;  %v16194_v37 = vand.u32 4294901760, %v15009_v57  ;;  %v16196_v57 = vand.u32 4294901760, %v15039_v5  ;;  %v4511_v32 = vadd.f32 %v4510_v21, %v4474_v49 }
 0x457   :  { %7895 = vmatpush.msra.mxu3 %v14920_v20  ;;  %7750 = vmatpush.msra.mxu0 %v15024_v1 }
 0x458   :  { %7844 = vmatpush.msra.mxu2 %v16193_v61  ;;  %7787 = vmatpush.msra.mxu1 %v14920_v20  ;;  %v16195_v20 = vand.u32 4294901760, %v15024_v1  ;;  %v15236_v1 = vand.u32 4294901760, %v419_v51  ;;  %v4552_v7 = vadd.f32 %v4551_v41, %v4511_v32  ;;  %v15363_v61 = vand.u32 4294901760, %v415_v3 }
 0x459   :  { %7897 = vmatpush.msra.mxu3 %v14943_v48  ;;  %7753 = vmatpush.msra.mxu0 %v15039_v5  ;;  %v16197_v5 = vand.u32 4294901760, %v15052_v31 }
 0x45a   :  { %7848 = vmatpush.msra.mxu2 %v16194_v37  ;;  %7789 = vmatpush.msra.mxu1 %v14943_v48  ;;  %v407_v48 = vld [vmem:[%s15614_s1 + $0xb58] sm:$0xff]  ;;  %v15367_v37 = vand.u32 4294901760, %v399_v55 }
 0x45b   :  { %7899 = vmatpush.msra.mxu3 %v14961_v11  ;;  %7756 = vmatpush.msra.mxu0 %v15052_v31  ;;  %v4653_v31 = vadd.f32 %v4652_v56, %v4552_v7  ;;  %v4851_v44 = vpop.f32.mrf.mxu1 }
 0x45c   :  { %7852 = vmatpush.msra.mxu2 %v16195_v20  ;;  %7791 = vmatpush.msra.mxu1 %v14961_v11  ;;  %v406_v11 = vld [vmem:[%s15614_s1 + $0xb50] sm:$0xff]  ;;  %v15402_v7 = vsub.f32 %v399_v55, %v15367_v37 }
 0x45d   :  { %7901 = vmatpush.msra.mxu3 %v14977_v63  ;;  %7759 = vmatpush.msra.mxu0 %v15068_v26  ;;  %v15254_v33 = vand.u32 4294901760, %v406_v11  ;;  %v404_v26 = vld [vmem:[%s15614_s1 + $0xb40] sm:$0xff] }
 0x45e   :  { %7856 = vmatpush.msra.mxu2 %v16196_v57  ;;  %7793 = vmatpush.msra.mxu1 %v14977_v63  ;;  %v15246_v63 = vand.u32 4294901760, %v407_v48 }
 0x45f   :  { %7903 = vmatpush.msra.mxu3 %v14994_v13  ;;  %7762 = vmatpush.msra.mxu0 %v15087_v4  ;;  %v15278_v4 = vsub.f32 %v406_v11, %v15254_v33  ;;  %v15392_v11 = vsub.f32 %v415_v3, %v15363_v61 }
 0x460   :  { %7860 = vmatpush.msra.mxu2 %v16197_v5  ;;  %7795 = vmatpush.msra.mxu1 %v14994_v13  ;;  %v15259_v13 = vsub.f32 %v419_v51, %v15236_v1 }
 0x461   :  { %7905 = vmatpush.msra.mxu3 %v15011_v6  ;;  %7765 = vmatpush.msra.mxu0 %v15108_v46  ;;  %v15292_v46 = vsub.f32 %v405_v25, %v15264_v47  ;;  %v7954_v27 = vand.u32 4294901760, %v15392_v11 }
 0x462   :  { %7864 = vmatpush.msra.mxu2 %v7691_v17  ;;  %7797 = vmatpush.msra.mxu1 %v15011_v6  ;;  %v4706_v17 = vpop.f32.mrf.mxu2  ;;  %v15272_v6 = vsub.f32 %v407_v48, %v15246_v63  ;;  %v7966_v60 = vand.u32 4294901760, %v15259_v13 }
 0x463   :  { %7907 = vmatpush.msra.mxu3 %v15026_v43  ;;  %7768 = vmatpush.msra.mxu0 %v15121_v15  ;;  %v4707_v62 = vadd.f32 %v4706_v17, %v4653_v31  ;;  %v7978_v15 = vand.u32 4294901760, %v15278_v4  ;;  %v7984_v53 = vand.u32 4294901760, %v15292_v46  ;;  %v396_v31 = vld [vmem:[%s15614_s1 + $0xb00] sm:$0xff] }
 0x464   :  { %7868 = vmatpush.msra.mxu2 %v7697_v38  ;;  %7799 = vmatpush.msra.mxu1 %v15026_v43  ;;  %v403_v38 = vld [vmem:[%s15614_s1 + $0xb38] sm:$0xff]  ;;  %v15285_v43 = vand.u32 4294901760, %v404_v26  ;;  %v7972_v14 = vand.u32 4294901760, %v15272_v6 }
 0x465   :  { %7909 = vmatpush.msra.mxu3 %v15041_v58  ;;  %7771 = vmatpush.msra.mxu0 %v15135_v54  ;;  %v15299_v23 = vand.u32 4294901760, %v403_v38  ;;  %v7967_v54 = vsub.f32 %v15259_v13, %v7966_v60  ;;  %v7979_v50 = vsub.f32 %v15278_v4, %v7978_v15  ;;  %v7985_v59 = vsub.f32 %v15292_v46, %v7984_v53 }
 0x466   :  { %7872 = vmatpush.msra.mxu2 %v7703_v39  ;;  %7801 = vmatpush.msra.mxu1 %v15041_v58  ;;  %v402_v39 = vld [vmem:[%s15614_s1 + $0xb30] sm:$0xff]  ;;  %v4745_v58 = vpop.f32.mrf.mxu3  ;;  %v15320_v45 = vsub.f32 %v404_v26, %v15285_v43  ;;  %v7973_v29 = vsub.f32 %v15272_v6, %v7972_v14 }
 0x467   :  { %7911 = vmatpush.msra.mxu3 %v15054_v24  ;;  %7774 = vmatmul.f32.vlgmr.msra.gmra.mxu0 %v15124_v42  ;;  %v4746_v18 = vadd.f32 %v4745_v58, %v4707_v62  ;;  %v15336_v40 = vsub.f32 %v403_v38, %v15299_v23  ;;  %v7968_v22 = vand.u32 4294901760, %v7967_v54  ;;  %v7980_v51 = vand.u32 4294901760, %v7979_v50 }
 0x468   :  { %7876 = vmatpush.msra.mxu2 %v7709_v52  ;;  %7927 = vmatpush.msrb.mxu0 %v15236_v1  ;;  %v401_v52 = vld [vmem:[%s15614_s1 + $0xb28] sm:$0xff]  ;;  %v7990_v8 = vand.u32 4294901760, %v15320_v45  ;;  %v7974_v0 = vand.u32 4294901760, %v7973_v29  ;;  %v7986_v41 = vand.u32 4294901760, %v7985_v59 }
 0x469   :  { %7803 = vmatpush.msra.mxu1 %v15054_v24  ;;  %7913 = vmatpush.msra.mxu3 %v15079_v28  ;;  %v4814_v24 = vpop.f32.mrf.mxu0  ;;  %v15333_v9 = vand.u32 4294901760, %v401_v52  ;;  %v7996_v49 = vand.u32 4294901760, %v15336_v40 }
 0x46a   :  { %7880 = vmatpush.msra.mxu2 %v7715_v16  ;;  %7929 = vmatpush.msrb.mxu0 %v15246_v63  ;;  %v15317_v16 = vand.u32 4294901760, %v402_v39  ;;  %v4815_v36 = vadd.f32 %v4814_v24, %v4746_v18  ;;  %v4892_v30 = vpop.f32.mrf.mxu2  ;;  %v7991_v21 = vsub.f32 %v15320_v45, %v7990_v8  ;;  %v5086_v24 = vpop.f32.mrf.mxu1 }
 0x46b   :  { %7805 = vmatpush.msra.mxu1 %v15079_v28  ;;  %7915 = vmatpush.msra.mxu3 %v15095_v2  ;;  %v400_v28 = vld [vmem:[%s15614_s1 + $0xb20] sm:$0xff]  ;;  %v15371_v20 = vsub.f32 %v401_v52, %v15333_v9  ;;  %v7997_v5 = vsub.f32 %v15336_v40, %v7996_v49  ;;  %v15419_v52 = vand.u32 4294901760, %v396_v31 }
 0x46c   :  { %7882 = vmatmul.f32.vlgmr.msra.gmra.mxu2 %v15097_v35  ;;  %7931 = vmatpush.msrb.mxu0 %v15254_v33  ;;  %v15349_v12 = vand.u32 4294901760, %v400_v28  ;;  %v4852_v19 = vadd.f32 %v4851_v44, %v4815_v36  ;;  %v7992_v17 = vand.u32 4294901760, %v7991_v21 }
 0x46d   :  { %8052 = vmatpush.msrb.mxu2 %v15259_v13  ;;  %7807 = vmatpush.msra.mxu1 %v15095_v2  ;;  %v15353_v2 = vsub.f32 %v402_v39, %v15317_v16  ;;  %v8008_v25 = vand.u32 4294901760, %v15371_v20  ;;  %v7998_v54 = vand.u32 4294901760, %v7997_v5 }
 0x46e   :  { %7917 = vmatpush.msra.mxu3 %v15110_v10  ;;  %7933 = vmatpush.msrb.mxu0 %v15264_v47  ;;  %v15387_v42 = vsub.f32 %v400_v28, %v15349_v12  ;;  %v4993_v32 = vpop.f32.mrf.mxu3  ;;  %v8020_v28 = vand.u32 4294901760, %v15402_v7 }
 0x46f   :  { %7919 = vmatmul.f32.vlgmr.msra.gmra.mxu3 %v15097_v35  ;;  %8055 = vmatpush.msrb.mxu2 %v15272_v6  ;;  %v398_v35 = vld [vmem:[%s15614_s1 + $0xb10] sm:$0xff]  ;;  %v8002_v48 = vand.u32 4294901760, %v15353_v2  ;;  %v8009_v18 = vsub.f32 %v15371_v20, %v8008_v25 }
 0x470   :  { %8099 = vmatpush.msrb.mxu3 %v15236_v1  ;;  %7809 = vmatpush.msra.mxu1 %v15110_v10  ;;  %v397_v10 = vld [vmem:[%s15614_s1 + $0xb08] sm:$0xff]  ;;  %v15383_v57 = vand.u32 4294901760, %v398_v35  ;;  %v8014_v62 = vand.u32 4294901760, %v15387_v42 }
 0x471   :  { %7935 = vmatpush.msrb.mxu0 %v15285_v43  ;;  %7813 = vmatmul.f32.vlgmr.msra.gmra.mxu1 %v7616_v34  ;;  %v4893_v34 = vadd.f32 %v4892_v30, %v4852_v19  ;;  %v15398_v56 = vand.u32 4294901760, %v397_v10  ;;  %v5047_v26 = vpop.f32.mrf.mxu0  ;;  %v8003_v38 = vsub.f32 %v15353_v2, %v8002_v48  ;;  %v15443_v19 = vsub.f32 %v396_v31, %v15419_v52 }
 0x472   :  { %8058 = vmatpush.msrb.mxu2 %v15278_v4  ;;  %7969 = vmatpush.msrb.mxu1 %v7968_v22  ;;  %v15415_v39 = vsub.f32 %v398_v35, %v15383_v57  ;;  %v8015_v36 = vsub.f32 %v15387_v42, %v8014_v62  ;;  %v7955_v22 = vsub.f32 %v15392_v11, %v7954_v27  ;;  %v5155_v59 = vpop.f32.mrf.mxu2  ;;  %v8010_v35 = vand.u32 4294901760, %v8009_v18 }
 0x473   :  { %8101 = vmatpush.msrb.mxu3 %v15246_v63  ;;  %7937 = vmatpush.msrb.mxu0 %v15299_v23  ;;  %v4994_v58 = vadd.f32 %v4993_v32, %v4893_v34  ;;  %v15428_v44 = vsub.f32 %v397_v10, %v15398_v56  ;;  %v8004_v3 = vand.u32 4294901760, %v8003_v38  ;;  %v8021_v30 = vsub.f32 %v15402_v7, %v8020_v28 }
 0x474   :  { %8061 = vmatpush.msrb.mxu2 %v15292_v46  ;;  %7975 = vmatpush.msrb.mxu1 %v7974_v0  ;;  %v8026_v50 = vand.u32 4294901760, %v15415_v39  ;;  %v7956_v34 = vand.u32 4294901760, %v7955_v22 }
 0x475   :  { %8103 = vmatpush.msrb.mxu3 %v15254_v33  ;;  %7939 = vmatpush.msrb.mxu0 %v15317_v16  ;;  %v5048_v29 = vadd.f32 %v5047_v26, %v4994_v58  ;;  %v8032_v0 = vand.u32 4294901760, %v15428_v44  ;;  %v8022_v5 = vand.u32 4294901760, %v8021_v30 }
 0x476   :  { %8064 = vmatpush.msrb.mxu2 %v15320_v45  ;;  %7981 = vmatpush.msrb.mxu1 %v7980_v51  ;;  %v8016_v51 = vand.u32 4294901760, %v8015_v36  ;;  %v8027_v10 = vsub.f32 %v15415_v39, %v8026_v50  ;;  %v5192_v32 = vpop.f32.mrf.mxu3 }
 0x477   :  { %8105 = vmatpush.msrb.mxu3 %v15264_v47  ;;  %7941 = vmatpush.msrb.mxu0 %v15333_v9  ;;  %v5087_v55 = vadd.f32 %v5086_v24, %v5048_v29  ;;  %v8033_v31 = vsub.f32 %v15428_v44, %v8032_v0  ;;  %v5334_v24 = vpop.f32.mrf.mxu1 }
 0x478   :  { %8067 = vmatpush.msrb.mxu2 %v15336_v40  ;;  %7987 = vmatpush.msrb.mxu1 %v7986_v41  ;;  %v8038_v41 = vand.u32 4294901760, %v15443_v19 }
 0x479   :  { %8107 = vmatpush.msrb.mxu3 %v15285_v43  ;;  %7943 = vmatpush.msrb.mxu0 %v15349_v12  ;;  %v5156_v21 = vadd.f32 %v5155_v59, %v5087_v55  ;;  %v5233_v26 = vpop.f32.mrf.mxu0 }
 0x47a   :  { %8070 = vmatpush.msrb.mxu2 %v15353_v2  ;;  %7993 = vmatpush.msrb.mxu1 %v7992_v17  ;;  %v8028_v17 = vand.u32 4294901760, %v8027_v10  ;;  %v8039_v58 = vsub.f32 %v15443_v19, %v8038_v41  ;;  %v5388_v36 = vpop.f32.mrf.mxu2 }
 0x47b   :  { %8109 = vmatpush.msrb.mxu3 %v15299_v23  ;;  %7945 = vmatpush.msrb.mxu0 %v15367_v37  ;;  %v5193_v38 = vadd.f32 %v5192_v32, %v5156_v21 }
 0x47c   :  { %8073 = vmatpush.msrb.mxu2 %v15371_v20  ;;  %7999 = vmatpush.msrb.mxu1 %v7998_v54  ;;  %v8034_v54 = vand.u32 4294901760, %v8033_v31 }
 0x47d   :  { %8111 = vmatpush.msrb.mxu3 %v15317_v16  ;;  %7947 = vmatpush.msrb.mxu0 %v15383_v57  ;;  %v5234_v18 = vadd.f32 %v5233_v26, %v5193_v38 }
 0x47e   :  { %8076 = vmatpush.msrb.mxu2 %v15387_v42  ;;  %8005 = vmatpush.msrb.mxu1 %v8004_v3  ;;  %v8040_v3 = vand.u32 4294901760, %v8039_v58  ;;  %v5427_v6 = vpop.f32.mrf.mxu3 }
 0x47f   :  { %8113 = vmatpush.msrb.mxu3 %v15333_v9  ;;  %7949 = vmatpush.msrb.mxu0 %v15398_v56  ;;  %v5335_v29 = vadd.f32 %v5334_v24, %v5234_v18 }
 0x480   :  { %8079 = vmatpush.msrb.mxu2 %v15402_v7  ;;  %8011 = vmatpush.msrb.mxu1 %v8010_v35 }
 0x481   :  { %8115 = vmatpush.msrb.mxu3 %v15349_v12  ;;  %7951 = vmatpush.msrb.mxu0 %v15419_v52  ;;  %v5389_v13 = vadd.f32 %v5388_v36, %v5335_v29  ;;  %v5496_v4 = vpop.f32.mrf.mxu0 }
 0x482   :  { %8082 = vmatpush.msrb.mxu2 %v15415_v39  ;;  %8017 = vmatpush.msrb.mxu1 %v8016_v51 }
 0x483   :  { %8117 = vmatpush.msrb.mxu3 %v15367_v37  ;;  %7957 = vmatmul.f32.vlgmr.msrb.gmra.mxu0 %v7956_v34 }
 0x484   :  { %8085 = vmatpush.msrb.mxu2 %v15428_v44  ;;  %8137 = vmatpush.msra.mxu0 %v7966_v60  ;;  %v5428_v60 = vadd.f32 %v5427_v6, %v5389_v13 }
 0x485   :  { %8023 = vmatpush.msrb.mxu1 %v8022_v5  ;;  %8119 = vmatpush.msrb.mxu3 %v15383_v57 }
 0x486   :  { %8088 = vmatpush.msrb.mxu2 %v15443_v19  ;;  %8141 = vmatpush.msra.mxu0 %v7972_v14  ;;  %v5533_v14 = vpop.f32.mrf.mxu1  ;;  %v5497_v46 = vadd.f32 %v5496_v4, %v5428_v60  ;;  %v5675_v45 = vpop.f32.mrf.mxu3 }
 0x487   :  { %8029 = vmatpush.msrb.mxu1 %v8028_v17  ;;  %8121 = vmatpush.msrb.mxu3 %v15398_v56 }
 0x488   :  { %8091 = vmatmul.f32.vlgmr.msrb.gmra.mxu2 %v15392_v11  ;;  %8145 = vmatpush.msra.mxu0 %v7978_v15  ;;  %v5534_v15 = vadd.f32 %v5533_v14, %v5497_v46 }
 0x489   :  { %8035 = vmatpush.msrb.mxu1 %v8034_v54  ;;  %8123 = vmatpush.msrb.mxu3 %v15419_v52 }
 0x48a   :  { %8127 = vmatmul.f32.vlgmr.msrb.gmra.mxu3 %v7954_v27  ;;  %8149 = vmatpush.msra.mxu0 %v7984_v53 }
 0x48b   :  { %8041 = vmatpush.msrb.mxu1 %v8040_v3 }
 0x48c   :  { %8043 = vmatmul.f32.vlgmr.msrb.gmra.mxu1 %v15363_v61  ;;  %8153 = vmatpush.msra.mxu0 %v7990_v8 }
 0x48d   :  { %8195 = vmatpush.msra.mxu1 %v15236_v1  ;;  %v5574_v1 = vpop.f32.mrf.mxu2 }
 0x48e   :  { %8157 = vmatpush.msra.mxu0 %v7996_v49  ;;  %v5874_v8 = vpop.f32.mrf.mxu3 }
 0x48f   :  { %8197 = vmatpush.msra.mxu1 %v15246_v63  ;;  %v5575_v63 = vadd.f32 %v5574_v1, %v5534_v15 }
 0x490   :  { %8161 = vmatpush.msra.mxu0 %v8002_v48 }
 0x491   :  { %8199 = vmatpush.msra.mxu1 %v15254_v33  ;;  %v5729_v33 = vpop.f32.mrf.mxu0 }
 0x492   :  { %8165 = vmatpush.msra.mxu0 %v8008_v25 }
 0x493   :  { %8201 = vmatpush.msra.mxu1 %v15264_v47  ;;  %v5676_v47 = vadd.f32 %v5675_v45, %v5575_v63  ;;  %v8230_v63 = vld [vmem:[%s15616_s3 + $0x20] sm:$0xff] }
 0x494   :  { %8169 = vmatpush.msra.mxu0 %v8014_v62  ;;  %v15522_v45 = vand.u32 4294901760, %v8230_v63 }
 0x495   :  { %8203 = vmatpush.msra.mxu1 %v15285_v43  ;;  %v5768_v43 = vpop.f32.mrf.mxu1  ;;  %v5730_v53 = vadd.f32 %v5729_v33, %v5676_v47  ;;  %v8229_v47 = vld [vmem:[%s15616_s3 + $0x18] sm:$0xff] }
 0x496   :  { %8173 = vmatpush.msra.mxu0 %v8020_v28  ;;  %v6109_v11 = vpop.f32.mrf.mxu3  ;;  %8251 = vmatpush.msra.mxu2 %v15522_v45 }
 0x497   :  { %8205 = vmatpush.msra.mxu1 %v15299_v23  ;;  %v5769_v23 = vadd.f32 %v5768_v43, %v5730_v53  ;;  %v15528_v53 = vsub.f32 %v8230_v63, %v15522_v45 }
 0x498   :  { %8177 = vmatpush.msra.mxu0 %v8026_v50 }
 0x499   :  { %8207 = vmatpush.msra.mxu1 %v15317_v16  ;;  %v5837_v16 = vpop.f32.mrf.mxu2 }
 0x49a   :  { %8181 = vmatpush.msra.mxu0 %v8032_v0  ;;  %v5838_v40 = vadd.f32 %v5837_v16, %v5769_v23  ;;  %v15530_v23 = vand.u32 4294901760, %v8229_v47  ;;  %v8228_v16 = vld [vmem:[%s15616_s3 + $0x10] sm:$0xff] }
 0x49b   :  { %8209 = vmatpush.msra.mxu1 %v15333_v9  ;;  %v5915_v9 = vpop.f32.mrf.mxu0 }
 0x49c   :  { %8185 = vmatpush.msra.mxu0 %v8038_v41  ;;  %v5875_v2 = vadd.f32 %v5874_v8, %v5838_v40  ;;  %v8282_v8 = vand.u32 4294901760, %v15528_v53  ;;  %8253 = vmatpush.msra.mxu2 %v15530_v23 }
 0x49d   :  { %8211 = vmatpush.msra.mxu1 %v15349_v12  ;;  %8187 = vmatmul.f32.vlgmr.msra.gmra.mxu0 %v15363_v61  ;;  %v6016_v49 = vpop.f32.mrf.mxu1 }
 0x49e   :  { %v5916_v12 = vadd.f32 %v5915_v9, %v5875_v2  ;;  %v6357_v27 = vpop.f32.mrf.mxu3  ;;  %v15538_v9 = vsub.f32 %v8229_v47, %v15530_v23  ;;  %v15540_v2 = vand.u32 4294901760, %v8228_v16 }
 0x49f   :  { %8213 = vmatpush.msra.mxu1 %v15367_v37 }
 0x4a0   :  { %v6017_v20 = vadd.f32 %v6016_v49, %v5916_v12  ;;  %v8227_v12 = vld [vmem:[%s15616_s3 + $0x8] sm:$0xff]  ;;  %8255 = vmatpush.msra.mxu2 %v15540_v2 }
 0x4a1   :  { %8215 = vmatpush.msra.mxu1 %v15383_v57  ;;  %v6070_v48 = vpop.f32.mrf.mxu2 }
 0x4a2   :  { %v6071_v42 = vadd.f32 %v6070_v48, %v6017_v20  ;;  %v8283_v20 = vsub.f32 %v15528_v53, %v8282_v8  ;;  %v8288_v48 = vand.u32 4294901760, %v15538_v9 }
 0x4a3   :  { %8217 = vmatpush.msra.mxu1 %v15398_v56  ;;  %v6178_v37 = vpop.f32.mrf.mxu0 }
 0x4a4   :  { %v6110_v25 = vadd.f32 %v6109_v11, %v6071_v42  ;;  %v15551_v42 = vsub.f32 %v8228_v16, %v15540_v2  ;;  %v15553_v11 = vand.u32 4294901760, %v8227_v12 }
 0x4a5   :  { %8219 = vmatpush.msra.mxu1 %v15419_v52  ;;  %v6215_v7 = vpop.f32.mrf.mxu1 }
 0x4a6   :  { %8221 = vmatmul.f32.vlgmr.msra.gmra.mxu1 %v15363_v61  ;;  %v6179_v57 = vadd.f32 %v6178_v37, %v6110_v25  ;;  %v6556_v19 = vpop.f32.mrf.mxu3  ;;  %8257 = vmatpush.msra.mxu2 %v15553_v11 }
 0x4a8   :  { %v6216_v62 = vadd.f32 %v6215_v7, %v6179_v57  ;;  %v8226_v7 = vld [vmem:[%s15616_s3] sm:$0xff]  ;;  %v8284_v57 = vand.u32 4294901760, %v8283_v20 }
 0x4a9   :  { %v6256_v39 = vpop.f32.mrf.mxu2 }
 0x4aa   :  { %v6257_v56 = vadd.f32 %v6256_v39, %v6216_v62  ;;  %v8289_v62 = vsub.f32 %v15538_v9, %v8288_v48  ;;  %v8294_v39 = vand.u32 4294901760, %v15551_v42  ;;  %8285 = vmatpush.msra.mxu3 %v8284_v57 }
 0x4ab   :  { %v6411_v28 = vpop.f32.mrf.mxu0 }
 0x4ac   :  { %v6358_v52 = vadd.f32 %v6357_v27, %v6257_v56  ;;  %v15564_v56 = vsub.f32 %v8227_v12, %v15553_v11  ;;  %v15567_v27 = vand.u32 4294901760, %v8226_v7 }
 0x4ad   :  { %v6450_v44 = vpop.f32.mrf.mxu1 }
 0x4ae   :  { %v6412_v50 = vadd.f32 %v6411_v28, %v6358_v52  ;;  %v6791_v34 = vpop.f32.mrf.mxu3  ;;  %v8290_v52 = vand.u32 4294901760, %v8289_v62  ;;  %8259 = vmatpush.msra.mxu2 %v15567_v27 }
 0x4b0   :  { %v6451_v61 = vadd.f32 %v6450_v44, %v6412_v50  ;;  %v8295_v44 = vsub.f32 %v15551_v42, %v8294_v39  ;;  %v8300_v50 = vand.u32 4294901760, %v15564_v56  ;;  %8291 = vmatpush.msra.mxu3 %v8290_v52  ;;  %8328 = vmatpush.msrb.mxu2 %v15528_v53  ;;  %v8456_v53 = vld [vmem:[%s15617_s4] ss:$0 sm:$0xff] }
 0x4b1   :  { %v6519_v55 = vpop.f32.mrf.mxu2 }
 0x4b2   :  { %v6520_v22 = vadd.f32 %v6519_v55, %v6451_v61  ;;  %v15574_v55 = vsub.f32 %v8226_v7, %v15567_v27  ;;  %8331 = vmatpush.msrb.mxu2 %v15538_v9 }
 0x4b3   :  { %v6597_v59 = vpop.f32.mrf.mxu0 }
 0x4b4   :  { %v6557_v35 = vadd.f32 %v6556_v19, %v6520_v22  ;;  %v8296_v22 = vand.u32 4294901760, %v8295_v44  ;;  %v8301_v19 = vsub.f32 %v15564_v56, %v8300_v50  ;;  %8334 = vmatpush.msrb.mxu2 %v15551_v42 }
 0x4b5   :  { %v6698_v30 = vpop.f32.mrf.mxu1 }
 0x4b6   :  { %v6598_v0 = vadd.f32 %v6597_v59, %v6557_v35  ;;  %v7039_v58 = vpop.f32.mrf.mxu3  ;;  %v8306_v59 = vand.u32 4294901760, %v15574_v55  ;;  %8297 = vmatpush.msra.mxu3 %v8296_v22  ;;  %8337 = vmatpush.msrb.mxu2 %v15564_v56 }
 0x4b8   :  { %v6699_v51 = vadd.f32 %v6698_v30, %v6598_v0  ;;  %v8302_v30 = vand.u32 4294901760, %v8301_v19  ;;  %8340 = vmatpush.msrb.mxu2 %v15574_v55 }
 0x4b9   :  { %v6752_v10 = vpop.f32.mrf.mxu2 }
 0x4ba   :  { %v6753_v21 = vadd.f32 %v6752_v10, %v6699_v51  ;;  %v8307_v51 = vsub.f32 %v15574_v55, %v8306_v59  ;;  %8303 = vmatpush.msra.mxu3 %v8302_v30 }
 0x4bb   :  { %v6860_v41 = vpop.f32.mrf.mxu0 }
 0x4bc   :  { %v6792_v32 = vadd.f32 %v6791_v34, %v6753_v21  ;;  %v8308_v21 = vand.u32 4294901760, %v8307_v51 }
 0x4bd   :  { %v6897_v5 = vpop.f32.mrf.mxu1 }
 0x4be   :  { %v6861_v31 = vadd.f32 %v6860_v41, %v6792_v32  ;;  %v7238_v6 = vpop.f32.mrf.mxu3  ;;  %8309 = vmatpush.msra.mxu3 %v8308_v21 }
 0x4c0   :  { %v6898_v26 = vadd.f32 %v6897_v5, %v6861_v31  ;;  %8359 = vmatpush.msrb.mxu3 %v15522_v45 }
 0x4c1   :  { %v6938_v17 = vpop.f32.mrf.mxu2 }
 0x4c2   :  { %v6939_v38 = vadd.f32 %v6938_v17, %v6898_v26  ;;  %8361 = vmatpush.msrb.mxu3 %v15530_v23 }
 0x4c3   :  { %v7093_v24 = vpop.f32.mrf.mxu0 }
 0x4c4   :  { %v7040_v54 = vadd.f32 %v7039_v58, %v6939_v38  ;;  %8363 = vmatpush.msrb.mxu3 %v15540_v2 }
 0x4c5   :  { %v7132_v18 = vpop.f32.mrf.mxu1 }
 0x4c6   :  { %v7094_v29 = vadd.f32 %v7093_v24, %v7040_v54  ;;  %v7473_v43 = vpop.f32.mrf.mxu3  ;;  %8365 = vmatpush.msrb.mxu3 %v15553_v11 }
 0x4c8   :  { %v7133_v3 = vadd.f32 %v7132_v18, %v7094_v29  ;;  %8367 = vmatpush.msrb.mxu3 %v15567_v27 }
 0x4c9   :  { %v7201_v36 = vpop.f32.mrf.mxu2 }
 0x4ca   :  { %v7202_v13 = vadd.f32 %v7201_v36, %v7133_v3 }
 0x4cb   :  { %v7279_v4 = vpop.f32.mrf.mxu0 }
 0x4cc   :  { %v7239_v60 = vadd.f32 %v7238_v6, %v7202_v13 }
 0x4cd   :  { %v7380_v14 = vpop.f32.mrf.mxu1 }
 0x4ce   :  { %v7280_v46 = vadd.f32 %v7279_v4, %v7239_v60 }
 0x4d0   :  { %v7381_v15 = vadd.f32 %v7380_v14, %v7280_v46  ;;  %v7721_v0 = vpop.f32.mrf.mxu3 }
 0x4d1   :  { %v7434_v1 = vpop.f32.mrf.mxu2 }
 0x4d2   :  { %v7435_v33 = vadd.f32 %v7434_v1, %v7381_v15 }
 0x4d3   :  { %v7542_v40 = vpop.f32.mrf.mxu0 }
 0x4d4   :  { %v7474_v49 = vadd.f32 %v7473_v43, %v7435_v33 }
 0x4d5   :  { %v7579_v25 = vpop.f32.mrf.mxu1 }
 0x4d6   :  { %v7543_v37 = vadd.f32 %v7542_v40, %v7474_v49 }
 0x4d8   :  { %v7580_v28 = vadd.f32 %v7579_v25, %v7543_v37 }
 0x4d9   :  { %v7620_v61 = vpop.f32.mrf.mxu2 }
 0x4da   :  { %v7621_v35 = vadd.f32 %v7620_v61, %v7580_v28 }
 0x4dc   :  { %v7722_v34 = vadd.f32 %v7721_v0, %v7621_v35 }
 0x4e4   :  { %v7775_v10 = vpop.f32.mrf.mxu0 }
 0x4e5   :  { %v7776_v32 = vadd.f32 %v7775_v10, %v7722_v34 }
 0x4ee   :  { %v7814_v41 = vpop.f32.mrf.mxu1 }
 0x4ef   :  { %v7815_v5 = vadd.f32 %v7814_v41, %v7776_v32  ;;  %v7883_v31 = vpop.f32.mrf.mxu2 }
 0x4f1   :  { %v7884_v26 = vadd.f32 %v7883_v31, %v7815_v5 }
 0x4f2   :  { %v7920_v17 = vpop.f32.mrf.mxu3 }
 0x4f3   :  { %v7921_v58 = vadd.f32 %v7920_v17, %v7884_v26 }
 0x500   :  { %v7958_v38 = vpop.f32.mrf.mxu0 }
 0x501   :  { %v7959_v54 = vadd.f32 %v7958_v38, %v7921_v58 }
 0x509   :  { %v8044_v24 = vpop.f32.mrf.mxu1 }
 0x50a   :  { %v8045_v18 = vadd.f32 %v8044_v24, %v7959_v54 }
 0x50b   :  { %v8092_v29 = vpop.f32.mrf.mxu2 }
 0x50c   :  { %v8093_v3 = vadd.f32 %v8092_v29, %v8045_v18 }
 0x50d   :  { %v8128_v36 = vpop.f32.mrf.mxu3 }
 0x50e   :  { %v8129_v6 = vadd.f32 %v8128_v36, %v8093_v3 }
 0x51a   :  { %v8188_v13 = vpop.f32.mrf.mxu0 }
 0x51b   :  { %v8189_v4 = vadd.f32 %v8188_v13, %v8129_v6 }
 0x523   :  { %v8222_v60 = vpop.f32.mrf.mxu1 }
 0x524   :  { %v8223_v14 = vadd.f32 %v8222_v60, %v8189_v4 }
 0x526   :  { %v8225_v46 = vmax.f32 %v8223_v14, 0.0 }
 0x528   :  { %v8237_v15 = vsel %vm8235_vm2, %v8225_v46, 0 }
 0x529   :  { %v8260_v1 = vand.u32 4294901760, %v8237_v15 }
 0x52b   :  { %v8261_v63 = vsub.f32 %v8237_v15, %v8260_v1  ;;  %8311 = vmatmul.f32.vlgmr.msra.gmra.mxu3 %v8260_v1 }
 0x52c   :  { %8423 = vmatpush.msra.mxu3 %v15522_v45 }
 0x52d   :  { %v8262_v33 = vand.u32 4294901760, %v8261_v63 }
 0x52e   :  { %8425 = vmatpush.msra.mxu3 %v15530_v23 }
 0x52f   :  { %v8263_v47 = vsub.f32 %v8261_v63, %v8262_v33 }
 0x530   :  { %8427 = vmatpush.msra.mxu3 %v15540_v2 }
 0x531   :  { %v8264_v43 = vand.u32 4294901760, %v8263_v47 }
 0x532   :  { %8429 = vmatpush.msra.mxu3 %v15553_v11 }
 0x533   :  { %8265 = vmatmul.f32.vlgmr.msra.gmra.mxu2 %v8264_v43  ;;  %8371 = vmatmul.f32.vlgmr.msrb.gmra.mxu3 %v8262_v33 }
 0x534   :  { %8389 = vmatpush.msra.mxu2 %v8282_v8  ;;  %8431 = vmatpush.msra.mxu3 %v15567_v27 }
 0x536   :  { %8393 = vmatpush.msra.mxu2 %v8288_v48 }
 0x538   :  { %8397 = vmatpush.msra.mxu2 %v8294_v39 }
 0x53a   :  { %8401 = vmatpush.msra.mxu2 %v8300_v50 }
 0x53b   :  { %8343 = vmatmul.f32.vlgmr.msrb.gmra.mxu2 %v8261_v63  ;;  %8433 = vmatmul.f32.vlgmr.msra.gmra.mxu3 %v8260_v1 }
 0x53c   :  { %8405 = vmatpush.msra.mxu2 %v8306_v59 }
 0x543   :  { %8407 = vmatmul.f32.vlgmr.msra.gmra.mxu2 %v8260_v1 }
 0x5ae   :  { %v8312_v45 = vpop.f32.mrf.mxu3 }
 0x5b6   :  { %v8266_v23 = vpop.f32.mrf.mxu2  ;;  %v8372_v40 = vpop.f32.mrf.mxu3 }
 0x5b7   :  { %v8267_v16 = vadd.f32 %v8456_v53, %v8266_v23 }
 0x5b9   :  { %v8313_v9 = vadd.f32 %v8312_v45, %v8267_v16 }
 0x5be   :  { %v8344_v8 = vpop.f32.mrf.mxu2  ;;  %v8434_v48 = vpop.f32.mrf.mxu3 }
 0x5bf   :  { %v8345_v2 = vadd.f32 %v8344_v8, %v8313_v9 }
 0x5c1   :  { %v8373_v49 = vadd.f32 %v8372_v40, %v8345_v2 }
 0x5c6   :  { %v8408_v12 = vpop.f32.mrf.mxu2 }
 0x5c7   :  { %v8409_v20 = vadd.f32 %v8408_v12, %v8373_v49 }
 0x5c9   :  { %v8435_v42 = vadd.f32 %v8434_v48, %v8409_v20 }
 0x5cb   :  { %8437 = vst.msk [vmem:[#allocation2] sm:$0xff] %vm8235_vm2, %v8435_v42 }
 0x5cc   :  { %8448 = dma.vmem_to_hbm [thread:$0]  %s8444_s24, 128, %s8446_s27, [#allocation3]  }
 0x5cd   :  { %8481 = dma.done.wait [#allocation3], 128  }
 0x5ce   :  { %8482 = vsyncadd [#allocation3], 4294967168 }
 0x5cf   :  { %8453 = vsyncpa [#allocation3], 1 }

</bundles_post_ra>
